<compile_context>
chip_gen: v7x
topology: tpu7x:2x2x1
jax: 0.10.0
libtpu: 0.0.40
codegen_flags: <defaults>
</compile_context>

<pallas_src>
import functools

import jax
import jax.numpy as jnp
from jax.experimental import pallas as pl
from jax.experimental.pallas import tpu as pltpu


# =============================================================================
# Fused kernel: layer-1 biLSTM -> layer-2 biLSTM (last step only) -> MLP head
# =============================================================================
def _lstm_cell(gates, c_prev, H):
    """Gate columns are [i, f, o, g]: one sigmoid over 3H lanes + one tanh."""
    sg = jax.nn.sigmoid(gates[:, : 3 * H])
    i_g = sg[:, :H]
    f_g = sg[:, H : 2 * H]
    o_g = sg[:, 2 * H : 3 * H]
    g_g = jnp.tanh(gates[:, 3 * H :])
    c = f_g * c_prev + i_g * g_g
    h = o_g * jnp.tanh(c)
    return h, c


def _fused_model_kernel(S, B, H1, H2,
                        # inputs
                        x_ref, wih1_ref, whh1_ref, b1_ref,
                        wih2f_ref, whh2f_ref, b2f_ref, wih2b_ref, b2b_ref,
                        w1_ref, bh1_ref, w2_ref, bh2_ref,
                        # output
                        o_ref,
                        # VMEM scratch
                        gx1_ref, y1_ref, gx2_ref):
    """
    x_ref    : (S*B, D)        time-major flattened input
    wih1_ref : (D, 8*H1)       layer-1 input->gates, cols = [fwd 4H1 | bwd 4H1], [i,f,o,g]
    whh1_ref : (2*H1, 8*H1)    block-diagonal hidden->gates for both directions
    b1_ref   : (1, 8*H1)       b_ih + b_hh, both directions
    wih2f_ref: (2*H1, 4*H2)    layer-2 forward input->gates
    whh2f_ref: (H2, 4*H2)      layer-2 forward hidden->gates
    b2f_ref  : (1, 4*H2)
    wih2b_ref: (2*H1, 4*H2)    layer-2 backward input->gates (only last step needed)
    b2b_ref  : (1, 4*H2)
    w1/bh1, w2/bh2 : MLP head
    gx1_ref  : (S*B, 8*H1)     scratch: hoisted layer-1 projection (both dirs)
    y1_ref   : (S*B, 2*H1)     scratch: layer-1 output (stays in VMEM)
    gx2_ref  : (S*B, 4*H2)     scratch: hoisted layer-2 fwd projection
    """
    G1 = 4 * H1

    # ---- layer 1: hoisted input projection, both directions in ONE matmul ----
    gx1_ref[...] = (
        jnp.dot(x_ref[...], wih1_ref[...], preferred_element_type=jnp.float32)
        + b1_ref[...]
    )

    def step1(s, carry):
        h_cat, c_f, c_b = carry
        # One block-diagonal MXU push drives BOTH directions' recurrent matmul.
        hh = jnp.dot(h_cat, whh1_ref[...], preferred_element_type=jnp.float32)
        # Forward consumes time s; backward consumes time S-1-s (index math only).
        gf = gx1_ref[pl.ds(s * B, B), :G1] + hh[:, :G1]
        gb = gx1_ref[pl.ds((S - 1 - s) * B, B), G1:] + hh[:, G1:]
        h_f, c_f = _lstm_cell(gf, c_f, H1)
        h_b, c_b = _lstm_cell(gb, c_b, H1)
        # Lane-dense writes into the resident y1 scratch (fwd lanes [0:H1),
        # bwd lanes [H1:2H1)); no concatenate, no HBM traffic.
        y1_ref[pl.ds(s * B, B), :H1] = h_f
        y1_ref[pl.ds((S - 1 - s) * B, B), H1:] = h_b
        return jnp.concatenate([h_f, h_b], axis=-1), c_f, c_b

    zh1 = jnp.zeros((B, H1), jnp.float32)
    jax.lax.fori_loop(0, S, step1,
                      (jnp.zeros((B, 2 * H1), jnp.float32), zh1, zh1),
                      unroll=True)

    # ---- layer 2 forward: hoisted projection + recurrence, keep only final h ----
    gx2_ref[...] = (
        jnp.dot(y1_ref[...], wih2f_ref[...], preferred_element_type=jnp.float32)
        + b2f_ref[...]
    )

    def step2(s, carry):
        h, c = carry
        gates = gx2_ref[pl.ds(s * B, B), :] + jnp.dot(
            h, whh2f_ref[...], preferred_element_type=jnp.float32)
        return _lstm_cell(gates, c, H2)

    zh2 = jnp.zeros((B, H2), jnp.float32)
    h2f, _ = jax.lax.fori_loop(0, S, step2, (zh2, zh2), unroll=True)

    # ---- layer 2 backward, last position only: ONE cell step from zero state on
    #      y1[S-1]; h0 == 0 so h0 @ W_hh_b == 0 and W_hh_b is never loaded.
    gates_b = (
        jnp.dot(y1_ref[pl.ds((S - 1) * B, B), :], wih2b_ref[...],
                preferred_element_type=jnp.float32)
        + b2b_ref[...]
    )
    h2b, _ = _lstm_cell(gates_b, zh2, H2)

    # ---- MLP head: relu(last @ W1 + b1) @ W2 + b2 ----
    last = jnp.concatenate([h2f, h2b], axis=-1)            # (B, 2*H2)
    z = jnp.maximum(
        jnp.dot(last, w1_ref[...], preferred_element_type=jnp.float32) + bh1_ref[...],
        0.0)
    o_ref[...] = (
        jnp.dot(z, w2_ref[...], preferred_element_type=jnp.float32) + bh2_ref[...]
    ).astype(o_ref.dtype)


@jax.jit
def lstm_energy_forward(kp, x):
    """x: (batch, seq, input_size)  PyTorch batch_first layout -> (batch, 1)."""
    B, S, D = x.shape
    H1 = kp["w_hh1"].shape[0] // 2
    H2 = kp["w_hh2_f"].shape[0]
    # Flat time-major (S*B, D) slab: the only layout plumbing done outside the kernel.
    x_flat = jnp.transpose(x, (1, 0, 2)).reshape(S * B, D)
    kernel = functools.partial(_fused_model_kernel, S, B, H1, H2)
    return pl.pallas_call(
        kernel,
        out_shape=jax.ShapeDtypeStruct((B, 1), jnp.float32),
        scratch_shapes=[
            # NOTE: for large S*B on v7x (64 MiB VMEM) switch gx1 to bf16 and/or
            # chunk S; at these sizes fp32 whole-sequence-resident is tiny.
            pltpu.VMEM((S * B, 8 * H1), jnp.float32),   # gx1
            pltpu.VMEM((S * B, 2 * H1), jnp.float32),   # y1 (layer-1 output)
            pltpu.VMEM((S * B, 4 * H2), jnp.float32),   # gx2 (layer-2 fwd projection)
        ],
        compiler_params=pltpu.CompilerParams(
            vmem_limit_bytes=32 * 1024 * 1024),
    )(x_flat, kp["w_ih1"], kp["w_hh1"], kp["b1"],
      kp["w_ih2_f"], kp["w_hh2_f"], kp["b2_f"], kp["w_ih2_b"], kp["b2_b"],
      kp["fc1_w"], kp["fc1_b"], kp["fc2_w"], kp["fc2_b"])


# =============================================================================
# Parameter init (PyTorch-style uniform(-1/sqrt(H), 1/sqrt(H)), PyTorch layouts)
# =============================================================================
def _uniform(key, shape, k):
    return jax.random.uniform(key, shape, jnp.float32, minval=-k, maxval=k)


def _init_lstm_dir_raw(keys, input_size, hidden_size):
    k = 1.0 / (hidden_size ** 0.5)
    return {"w_ih": _uniform(keys[0], (4 * hidden_size, input_size), k),
            "w_hh": _uniform(keys[1], (4 * hidden_size, hidden_size), k),
            "b_ih": _uniform(keys[2], (4 * hidden_size,), k),
            "b_hh": _uniform(keys[3], (4 * hidden_size,), k)}


def init_raw_params(key, input_size, hidden1=128, hidden2=64):
    keys = jax.random.split(key, 20)
    raw = {"l1_f": _init_lstm_dir_raw(keys[0:4], input_size, hidden1),
           "l1_b": _init_lstm_dir_raw(keys[4:8], input_size, hidden1),
           "l2_f": _init_lstm_dir_raw(keys[8:12], 2 * hidden1, hidden2),
           "l2_b": _init_lstm_dir_raw(keys[12:16], 2 * hidden1, hidden2)}
    k1 = 1.0 / ((2 * hidden2) ** 0.5)
    k2 = 1.0 / (32 ** 0.5)
    raw["head"] = {"fc1_w": _uniform(keys[16], (32, 2 * hidden2), k1),   # (out, in)
                   "fc1_b": _uniform(keys[17], (32,), k1),
                   "fc2_w": _uniform(keys[18], (1, 32), k2),
                   "fc2_b": _uniform(keys[19], (1,), k2)}
    return raw


def _reorder_ifog(w):
    """PyTorch gate blocks [i, f, g, o] along axis 0 -> kernel order [i, f, o, g]."""
    H = w.shape[0] // 4
    return jnp.concatenate([w[: 2 * H], w[3 * H :], w[2 * H : 3 * H]], axis=0)


def _prep_dir(d):
    w_ih = _reorder_ifog(d["w_ih"]).T                       # (D, 4H)
    w_hh = _reorder_ifog(d["w_hh"]).T                       # (H, 4H)
    b = _reorder_ifog(d["b_ih"] + d["b_hh"])[None, :]       # (1, 4H)
    return w_ih, w_hh, b


def prepare_kernel_params(raw, hidden1, hidden2):
    H1 = hidden1
    wih_f, whh_f, b_f = _prep_dir(raw["l1_f"])
    wih_b, whh_b, b_b = _prep_dir(raw["l1_b"])
    # Layer 1: combine the two directions -> one projection matmul + one
    # block-diagonal recurrent matmul per timestep.
    w_ih1 = jnp.concatenate([wih_f, wih_b], axis=1)                       # (D, 8H1)
    b1 = jnp.concatenate([b_f, b_b], axis=1)                              # (1, 8H1)
    w_hh1 = jnp.zeros((2 * H1, 8 * H1), jnp.float32)
    w_hh1 = w_hh1.at[:H1, : 4 * H1].set(whh_f)
    w_hh1 = w_hh1.at[H1:, 4 * H1 :].set(whh_b)
    # Layer 2: forward full; backward only needs W_ih + b (zero-state shortcut).
    wih2_f, whh2_f, b2_f = _prep_dir(raw["l2_f"])
    wih2_b, _whh2_b_unused, b2_b = _prep_dir(raw["l2_b"])
    head = raw["head"]
    return {"w_ih1": w_ih1, "w_hh1": w_hh1, "b1": b1,
            "w_ih2_f": wih2_f, "w_hh2_f": whh2_f, "b2_f": b2_f,
            "w_ih2_b": wih2_b, "b2_b": b2_b,
            "fc1_w": head["fc1_w"].T, "fc1_b": head["fc1_b"][None, :],
            "fc2_w": head["fc2_w"].T, "fc2_b": head["fc2_b"][None, :]}


# =============================================================================
# Pure-JAX reference (PyTorch [i,f,g,o] semantics) for the correctness check
# =============================================================================
def _ref_lstm_dir(x_tm, d, reverse):
    S, B, _ = x_tm.shape
    H = d["w_hh"].shape[1]
    w_ih, w_hh = d["w_ih"].T, d["w_hh"].T
    b = (d["b_ih"] + d["b_hh"])[None, :]
    xs = x_tm[::-1] if reverse else x_tm

    def step(carry, x_t):
        h, c = carry
        g = x_t @ w_ih + h @ w_hh + b
        i = jax.nn.sigmoid(g[:, :H])
        f = jax.nn.sigmoid(g[:, H:2 * H])
        gg = jnp.tanh(g[:, 2 * H:3 * H])
        o = jax.nn.sigmoid(g[:, 3 * H:4 * H])
        c = f * c + i * gg
        h = o * jnp.tanh(c)
        return (h, c), h

    init = (jnp.zeros((B, H), jnp.float32), jnp.zeros((B, H), jnp.float32))
    _, ys = jax.lax.scan(step, init, xs)
    return ys[::-1] if reverse else ys


def reference_forward(raw, x):
    x_tm = jnp.transpose(x, (1, 0, 2))
    y1 = jnp.concatenate([_ref_lstm_dir(x_tm, raw["l1_f"], False),
                          _ref_lstm_dir(x_tm, raw["l1_b"], True)], axis=-1)
    y2 = jnp.concatenate([_ref_lstm_dir(y1, raw["l2_f"], False),
                          _ref_lstm_dir(y1, raw["l2_b"], True)], axis=-1)
    last = y2[-1]
    h = raw["head"]
    z = jnp.maximum(last @ h["fc1_w"].T + h["fc1_b"], 0.0)
    return z @ h["fc2_w"].T + h["fc2_b"]


if __name__ == "__main__":
    BATCH, SEQ, INPUT = 4, 8, 8
    HIDDEN1, HIDDEN2 = 128, 64            # module defaults (lane-aligned gates)

    key = jax.random.PRNGKey(0)
    pkey, xkey = jax.random.split(key)
    raw = init_raw_params(pkey, INPUT, HIDDEN1, HIDDEN2)
    kparams = prepare_kernel_params(raw, HIDDEN1, HIDDEN2)
    x = jax.random.normal(xkey, (BATCH, SEQ, INPUT), dtype=jnp.float32)

    y = lstm_energy_forward(kparams, x)
    jax.block_until_ready(y)
    assert y.shape == (BATCH, 1), y.shape

    # Cross-check the fused kernel against a plain-JAX LSTM reference.
    with jax.default_matmul_precision("highest"):
        y_ref = reference_forward(raw, x)
    err = float(jnp.max(jnp.abs(y - y_ref)))
    assert err < 5e-3, f"kernel/reference mismatch: {err}"

    print("KERNEL_OK")
</pallas_src>

<mosaic_0001>
module attributes {stable_mosaic.version = 11 : i64} {
  func.func @_fused_model_kernel(%arg0: memref<32x8xf32, #tpu.memory_space<vmem>>, %arg1: memref<8x1024xf32, #tpu.memory_space<vmem>>, %arg2: memref<256x1024xf32, #tpu.memory_space<vmem>>, %arg3: memref<1x1024xf32, #tpu.memory_space<vmem>>, %arg4: memref<256x256xf32, #tpu.memory_space<vmem>>, %arg5: memref<64x256xf32, #tpu.memory_space<vmem>>, %arg6: memref<1x256xf32, #tpu.memory_space<vmem>>, %arg7: memref<256x256xf32, #tpu.memory_space<vmem>>, %arg8: memref<1x256xf32, #tpu.memory_space<vmem>>, %arg9: memref<128x32xf32, #tpu.memory_space<vmem>>, %arg10: memref<1x32xf32, #tpu.memory_space<vmem>>, %arg11: memref<32x1xf32, #tpu.memory_space<vmem>>, %arg12: memref<1x1xf32, #tpu.memory_space<vmem>>, %arg13: memref<4x1xf32, #tpu.memory_space<vmem>>, %arg14: memref<32x1024xf32, #tpu.memory_space<vmem>>, %arg15: memref<32x256xf32, #tpu.memory_space<vmem>>, %arg16: memref<32x256xf32, #tpu.memory_space<vmem>>) attributes {dimension_semantics = [], scalar_prefetch = 0 : i64, scratch_operands = 3 : i64, tpu.core_type = #tpu.core_type<tc>} {
    %c0 = arith.constant 0 : index
    %c0_0 = arith.constant 0 : index
    %0 = vector.load %arg0[%c0, %c0_0] : memref<32x8xf32, #tpu.memory_space<vmem>>, vector<32x8xf32>
    %c0_1 = arith.constant 0 : index
    %c0_2 = arith.constant 0 : index
    %1 = vector.load %arg1[%c0_1, %c0_2] : memref<8x1024xf32, #tpu.memory_space<vmem>>, vector<8x1024xf32>
    %cst = arith.constant dense<0.000000e+00> : vector<32x1024xf32>
    %2 = tpu.matmul %0, %1, %cst {dimension_numbers = #tpu.dot_dimension_numbers<[1], [0], [0], [1], [0, 0, 1, 1], [], []>} : vector<32x8xf32>, vector<8x1024xf32>, vector<32x1024xf32> -> vector<32x1024xf32>
    %c0_3 = arith.constant 0 : index
    %c0_4 = arith.constant 0 : index
    %3 = vector.load %arg3[%c0_3, %c0_4] : memref<1x1024xf32, #tpu.memory_space<vmem>>, vector<1x1024xf32>
    %4 = vector.broadcast %3 : vector<1x1024xf32> to vector<32x1024xf32>
    %5 = arith.addf %2, %4 : vector<32x1024xf32>
    %c0_5 = arith.constant 0 : index
    %c0_6 = arith.constant 0 : index
    %6 = vector.load %arg14[%c0_5, %c0_6] : memref<32x1024xf32, #tpu.memory_space<vmem>>, vector<32x1024xf32>
    tpu.vector_store %arg14[%c0_5, %c0_6], %5 {strides = array<i32>} : memref<32x1024xf32, #tpu.memory_space<vmem>>, vector<32x1024xf32>,
    %cst_7 = arith.constant 0.000000e+00 : f32
    %7 = vector.broadcast %cst_7 : f32 to vector<4x128xf32>
    %cst_8 = arith.constant 0.000000e+00 : f32
    %8 = vector.broadcast %cst_8 : f32 to vector<4x256xf32>
    %c0_i32 = arith.constant 0 : i32
    %c0_9 = arith.constant 0 : index
    %c0_10 = arith.constant 0 : index
    %9 = vector.load %arg2[%c0_9, %c0_10] : memref<256x1024xf32, #tpu.memory_space<vmem>>, vector<256x1024xf32>
    %cst_11 = arith.constant dense<0.000000e+00> : vector<4x1024xf32>
    %10 = tpu.matmul %8, %9, %cst_11 {dimension_numbers = #tpu.dot_dimension_numbers<[1], [0], [0], [1], [0, 0, 1, 1], [], []>} : vector<4x256xf32>, vector<256x1024xf32>, vector<4x1024xf32> -> vector<4x1024xf32>
    %c4_i32 = arith.constant 4 : i32
    %11 = arith.muli %c0_i32, %c4_i32 : i32
    %12 = arith.index_cast %11 : i32 to index
    %c0_12 = arith.constant 0 : index
    %13 = vector.load %arg14[%12, %c0_12] : memref<32x1024xf32, #tpu.memory_space<vmem>>, vector<4x512xf32>
    %14 = vector.extract_strided_slice %10 {offsets = [0, 0], sizes = [4, 512], strides = [1, 1]} : vector<4x1024xf32> to vector<4x512xf32>
    %15 = arith.addf %13, %14 : vector<4x512xf32>
    %c7_i32 = arith.constant 7 : i32
    %16 = arith.subi %c7_i32, %c0_i32 : i32
    %c4_i32_13 = arith.constant 4 : i32
    %17 = arith.muli %16, %c4_i32_13 : i32
    %18 = arith.index_cast %17 : i32 to index
    %c512 = arith.constant 512 : index
    %19 = vector.load %arg14[%18, %c512] : memref<32x1024xf32, #tpu.memory_space<vmem>>, vector<4x512xf32>
    %20 = vector.extract_strided_slice %10 {offsets = [0, 512], sizes = [4, 512], strides = [1, 1]} : vector<4x1024xf32> to vector<4x512xf32>
    %21 = arith.addf %19, %20 : vector<4x512xf32>
    %22 = vector.extract_strided_slice %15 {offsets = [0, 0], sizes = [4, 384], strides = [1, 1]} : vector<4x512xf32> to vector<4x384xf32>
    %23 = arith.negf %22 : vector<4x384xf32>
    %24 = math.exp %23 : vector<4x384xf32>
    %cst_14 = arith.constant 1.000000e+00 : f32
    %25 = vector.broadcast %cst_14 : f32 to vector<4x384xf32>
    %26 = arith.addf %25, %24 : vector<4x384xf32>
    %27 = arith.divf %25, %26 : vector<4x384xf32>
    %28 = vector.extract_strided_slice %27 {offsets = [0, 0], sizes = [4, 128], strides = [1, 1]} : vector<4x384xf32> to vector<4x128xf32>
    %29 = vector.extract_strided_slice %27 {offsets = [0, 128], sizes = [4, 128], strides = [1, 1]} : vector<4x384xf32> to vector<4x128xf32>
    %30 = vector.extract_strided_slice %27 {offsets = [0, 256], sizes = [4, 128], strides = [1, 1]} : vector<4x384xf32> to vector<4x128xf32>
    %31 = vector.extract_strided_slice %15 {offsets = [0, 384], sizes = [4, 128], strides = [1, 1]} : vector<4x512xf32> to vector<4x128xf32>
    %32 = math.tanh %31 : vector<4x128xf32>
    %33 = arith.mulf %29, %7 : vector<4x128xf32>
    %34 = arith.mulf %28, %32 : vector<4x128xf32>
    %35 = arith.addf %33, %34 : vector<4x128xf32>
    %36 = math.tanh %35 : vector<4x128xf32>
    %37 = arith.mulf %30, %36 : vector<4x128xf32>
    %38 = vector.extract_strided_slice %21 {offsets = [0, 0], sizes = [4, 384], strides = [1, 1]} : vector<4x512xf32> to vector<4x384xf32>
    %39 = arith.negf %38 : vector<4x384xf32>
    %40 = math.exp %39 : vector<4x384xf32>
    %cst_15 = arith.constant 1.000000e+00 : f32
    %41 = vector.broadcast %cst_15 : f32 to vector<4x384xf32>
    %42 = arith.addf %41, %40 : vector<4x384xf32>
    %43 = arith.divf %41, %42 : vector<4x384xf32>
    %44 = vector.extract_strided_slice %43 {offsets = [0, 0], sizes = [4, 128], strides = [1, 1]} : vector<4x384xf32> to vector<4x128xf32>
    %45 = vector.extract_strided_slice %43 {offsets = [0, 128], sizes = [4, 128], strides = [1, 1]} : vector<4x384xf32> to vector<4x128xf32>
    %46 = vector.extract_strided_slice %43 {offsets = [0, 256], sizes = [4, 128], strides = [1, 1]} : vector<4x384xf32> to vector<4x128xf32>
    %47 = vector.extract_strided_slice %21 {offsets = [0, 384], sizes = [4, 128], strides = [1, 1]} : vector<4x512xf32> to vector<4x128xf32>
    %48 = math.tanh %47 : vector<4x128xf32>
    %49 = arith.mulf %45, %7 : vector<4x128xf32>
    %50 = arith.mulf %44, %48 : vector<4x128xf32>
    %51 = arith.addf %49, %50 : vector<4x128xf32>
    %52 = math.tanh %51 : vector<4x128xf32>
    %53 = arith.mulf %46, %52 : vector<4x128xf32>
    %c4_i32_16 = arith.constant 4 : i32
    %54 = arith.muli %c0_i32, %c4_i32_16 : i32
    %55 = arith.index_cast %54 : i32 to index
    %c0_17 = arith.constant 0 : index
    %56 = vector.load %arg15[%55, %c0_17] : memref<32x256xf32, #tpu.memory_space<vmem>>, vector<4x128xf32>
    tpu.vector_store %arg15[%55, %c0_17], %37 {strides = array<i32>} : memref<32x256xf32, #tpu.memory_space<vmem>>, vector<4x128xf32>,
    %c7_i32_18 = arith.constant 7 : i32
    %57 = arith.subi %c7_i32_18, %c0_i32 : i32
    %c4_i32_19 = arith.constant 4 : i32
    %58 = arith.muli %57, %c4_i32_19 : i32
    %59 = arith.index_cast %58 : i32 to index
    %c128 = arith.constant 128 : index
    %60 = vector.load %arg15[%59, %c128] : memref<32x256xf32, #tpu.memory_space<vmem>>, vector<4x128xf32>
    tpu.vector_store %arg15[%59, %c128], %53 {strides = array<i32>} : memref<32x256xf32, #tpu.memory_space<vmem>>, vector<4x128xf32>,
    %61 = tpu.concatenate %37, %53 in 1 : vector<4x128xf32>, vector<4x128xf32> -> vector<4x256xf32>
    %c1_i32 = arith.constant 1 : i32
    %c0_20 = arith.constant 0 : index
    %c0_21 = arith.constant 0 : index
    %62 = vector.load %arg2[%c0_20, %c0_21] : memref<256x1024xf32, #tpu.memory_space<vmem>>, vector<256x1024xf32>
    %cst_22 = arith.constant dense<0.000000e+00> : vector<4x1024xf32>
    %63 = tpu.matmul %61, %62, %cst_22 {dimension_numbers = #tpu.dot_dimension_numbers<[1], [0], [0], [1], [0, 0, 1, 1], [], []>} : vector<4x256xf32>, vector<256x1024xf32>, vector<4x1024xf32> -> vector<4x1024xf32>
    %c4_i32_23 = arith.constant 4 : i32
    %64 = arith.muli %c1_i32, %c4_i32_23 : i32
    %65 = arith.index_cast %64 : i32 to index
    %c0_24 = arith.constant 0 : index
    %66 = vector.load %arg14[%65, %c0_24] : memref<32x1024xf32, #tpu.memory_space<vmem>>, vector<4x512xf32>
    %67 = vector.extract_strided_slice %63 {offsets = [0, 0], sizes = [4, 512], strides = [1, 1]} : vector<4x1024xf32> to vector<4x512xf32>
    %68 = arith.addf %66, %67 : vector<4x512xf32>
    %c7_i32_25 = arith.constant 7 : i32
    %69 = arith.subi %c7_i32_25, %c1_i32 : i32
    %c4_i32_26 = arith.constant 4 : i32
    %70 = arith.muli %69, %c4_i32_26 : i32
    %71 = arith.index_cast %70 : i32 to index
    %c512_27 = arith.constant 512 : index
    %72 = vector.load %arg14[%71, %c512_27] : memref<32x1024xf32, #tpu.memory_space<vmem>>, vector<4x512xf32>
    %73 = vector.extract_strided_slice %63 {offsets = [0, 512], sizes = [4, 512], strides = [1, 1]} : vector<4x1024xf32> to vector<4x512xf32>
    %74 = arith.addf %72, %73 : vector<4x512xf32>
    %75 = vector.extract_strided_slice %68 {offsets = [0, 0], sizes = [4, 384], strides = [1, 1]} : vector<4x512xf32> to vector<4x384xf32>
    %76 = arith.negf %75 : vector<4x384xf32>
    %77 = math.exp %76 : vector<4x384xf32>
    %cst_28 = arith.constant 1.000000e+00 : f32
    %78 = vector.broadcast %cst_28 : f32 to vector<4x384xf32>
    %79 = arith.addf %78, %77 : vector<4x384xf32>
    %80 = arith.divf %78, %79 : vector<4x384xf32>
    %81 = vector.extract_strided_slice %80 {offsets = [0, 0], sizes = [4, 128], strides = [1, 1]} : vector<4x384xf32> to vector<4x128xf32>
    %82 = vector.extract_strided_slice %80 {offsets = [0, 128], sizes = [4, 128], strides = [1, 1]} : vector<4x384xf32> to vector<4x128xf32>
    %83 = vector.extract_strided_slice %80 {offsets = [0, 256], sizes = [4, 128], strides = [1, 1]} : vector<4x384xf32> to vector<4x128xf32>
    %84 = vector.extract_strided_slice %68 {offsets = [0, 384], sizes = [4, 128], strides = [1, 1]} : vector<4x512xf32> to vector<4x128xf32>
    %85 = math.tanh %84 : vector<4x128xf32>
    %86 = arith.mulf %82, %35 : vector<4x128xf32>
    %87 = arith.mulf %81, %85 : vector<4x128xf32>
    %88 = arith.addf %86, %87 : vector<4x128xf32>
    %89 = math.tanh %88 : vector<4x128xf32>
    %90 = arith.mulf %83, %89 : vector<4x128xf32>
    %91 = vector.extract_strided_slice %74 {offsets = [0, 0], sizes = [4, 384], strides = [1, 1]} : vector<4x512xf32> to vector<4x384xf32>
    %92 = arith.negf %91 : vector<4x384xf32>
    %93 = math.exp %92 : vector<4x384xf32>
    %cst_29 = arith.constant 1.000000e+00 : f32
    %94 = vector.broadcast %cst_29 : f32 to vector<4x384xf32>
    %95 = arith.addf %94, %93 : vector<4x384xf32>
    %96 = arith.divf %94, %95 : vector<4x384xf32>
    %97 = vector.extract_strided_slice %96 {offsets = [0, 0], sizes = [4, 128], strides = [1, 1]} : vector<4x384xf32> to vector<4x128xf32>
    %98 = vector.extract_strided_slice %96 {offsets = [0, 128], sizes = [4, 128], strides = [1, 1]} : vector<4x384xf32> to vector<4x128xf32>
    %99 = vector.extract_strided_slice %96 {offsets = [0, 256], sizes = [4, 128], strides = [1, 1]} : vector<4x384xf32> to vector<4x128xf32>
    %100 = vector.extract_strided_slice %74 {offsets = [0, 384], sizes = [4, 128], strides = [1, 1]} : vector<4x512xf32> to vector<4x128xf32>
    %101 = math.tanh %100 : vector<4x128xf32>
    %102 = arith.mulf %98, %51 : vector<4x128xf32>
    %103 = arith.mulf %97, %101 : vector<4x128xf32>
    %104 = arith.addf %102, %103 : vector<4x128xf32>
    %105 = math.tanh %104 : vector<4x128xf32>
    %106 = arith.mulf %99, %105 : vector<4x128xf32>
    %c4_i32_30 = arith.constant 4 : i32
    %107 = arith.muli %c1_i32, %c4_i32_30 : i32
    %108 = arith.index_cast %107 : i32 to index
    %c0_31 = arith.constant 0 : index
    %109 = vector.load %arg15[%108, %c0_31] : memref<32x256xf32, #tpu.memory_space<vmem>>, vector<4x128xf32>
    tpu.vector_store %arg15[%108, %c0_31], %90 {strides = array<i32>} : memref<32x256xf32, #tpu.memory_space<vmem>>, vector<4x128xf32>,
    %c7_i32_32 = arith.constant 7 : i32
    %110 = arith.subi %c7_i32_32, %c1_i32 : i32
    %c4_i32_33 = arith.constant 4 : i32
    %111 = arith.muli %110, %c4_i32_33 : i32
    %112 = arith.index_cast %111 : i32 to index
    %c128_34 = arith.constant 128 : index
    %113 = vector.load %arg15[%112, %c128_34] : memref<32x256xf32, #tpu.memory_space<vmem>>, vector<4x128xf32>
    tpu.vector_store %arg15[%112, %c128_34], %106 {strides = array<i32>} : memref<32x256xf32, #tpu.memory_space<vmem>>, vector<4x128xf32>,
    %114 = tpu.concatenate %90, %106 in 1 : vector<4x128xf32>, vector<4x128xf32> -> vector<4x256xf32>
    %c2_i32 = arith.constant 2 : i32
    %c0_35 = arith.constant 0 : index
    %c0_36 = arith.constant 0 : index
    %115 = vector.load %arg2[%c0_35, %c0_36] : memref<256x1024xf32, #tpu.memory_space<vmem>>, vector<256x1024xf32>
    %cst_37 = arith.constant dense<0.000000e+00> : vector<4x1024xf32>
    %116 = tpu.matmul %114, %115, %cst_37 {dimension_numbers = #tpu.dot_dimension_numbers<[1], [0], [0], [1], [0, 0, 1, 1], [], []>} : vector<4x256xf32>, vector<256x1024xf32>, vector<4x1024xf32> -> vector<4x1024xf32>
    %c4_i32_38 = arith.constant 4 : i32
    %117 = arith.muli %c2_i32, %c4_i32_38 : i32
    %118 = arith.index_cast %117 : i32 to index
    %c0_39 = arith.constant 0 : index
    %119 = vector.load %arg14[%118, %c0_39] : memref<32x1024xf32, #tpu.memory_space<vmem>>, vector<4x512xf32>
    %120 = vector.extract_strided_slice %116 {offsets = [0, 0], sizes = [4, 512], strides = [1, 1]} : vector<4x1024xf32> to vector<4x512xf32>
    %121 = arith.addf %119, %120 : vector<4x512xf32>
    %c7_i32_40 = arith.constant 7 : i32
    %122 = arith.subi %c7_i32_40, %c2_i32 : i32
    %c4_i32_41 = arith.constant 4 : i32
    %123 = arith.muli %122, %c4_i32_41 : i32
    %124 = arith.index_cast %123 : i32 to index
    %c512_42 = arith.constant 512 : index
    %125 = vector.load %arg14[%124, %c512_42] : memref<32x1024xf32, #tpu.memory_space<vmem>>, vector<4x512xf32>
    %126 = vector.extract_strided_slice %116 {offsets = [0, 512], sizes = [4, 512], strides = [1, 1]} : vector<4x1024xf32> to vector<4x512xf32>
    %127 = arith.addf %125, %126 : vector<4x512xf32>
    %128 = vector.extract_strided_slice %121 {offsets = [0, 0], sizes = [4, 384], strides = [1, 1]} : vector<4x512xf32> to vector<4x384xf32>
    %129 = arith.negf %128 : vector<4x384xf32>
    %130 = math.exp %129 : vector<4x384xf32>
    %cst_43 = arith.constant 1.000000e+00 : f32
    %131 = vector.broadcast %cst_43 : f32 to vector<4x384xf32>
    %132 = arith.addf %131, %130 : vector<4x384xf32>
    %133 = arith.divf %131, %132 : vector<4x384xf32>
    %134 = vector.extract_strided_slice %133 {offsets = [0, 0], sizes = [4, 128], strides = [1, 1]} : vector<4x384xf32> to vector<4x128xf32>
    %135 = vector.extract_strided_slice %133 {offsets = [0, 128], sizes = [4, 128], strides = [1, 1]} : vector<4x384xf32> to vector<4x128xf32>
    %136 = vector.extract_strided_slice %133 {offsets = [0, 256], sizes = [4, 128], strides = [1, 1]} : vector<4x384xf32> to vector<4x128xf32>
    %137 = vector.extract_strided_slice %121 {offsets = [0, 384], sizes = [4, 128], strides = [1, 1]} : vector<4x512xf32> to vector<4x128xf32>
    %138 = math.tanh %137 : vector<4x128xf32>
    %139 = arith.mulf %135, %88 : vector<4x128xf32>
    %140 = arith.mulf %134, %138 : vector<4x128xf32>
    %141 = arith.addf %139, %140 : vector<4x128xf32>
    %142 = math.tanh %141 : vector<4x128xf32>
    %143 = arith.mulf %136, %142 : vector<4x128xf32>
    %144 = vector.extract_strided_slice %127 {offsets = [0, 0], sizes = [4, 384], strides = [1, 1]} : vector<4x512xf32> to vector<4x384xf32>
    %145 = arith.negf %144 : vector<4x384xf32>
    %146 = math.exp %145 : vector<4x384xf32>
    %cst_44 = arith.constant 1.000000e+00 : f32
    %147 = vector.broadcast %cst_44 : f32 to vector<4x384xf32>
    %148 = arith.addf %147, %146 : vector<4x384xf32>
    %149 = arith.divf %147, %148 : vector<4x384xf32>
    %150 = vector.extract_strided_slice %149 {offsets = [0, 0], sizes = [4, 128], strides = [1, 1]} : vector<4x384xf32> to vector<4x128xf32>
    %151 = vector.extract_strided_slice %149 {offsets = [0, 128], sizes = [4, 128], strides = [1, 1]} : vector<4x384xf32> to vector<4x128xf32>
    %152 = vector.extract_strided_slice %149 {offsets = [0, 256], sizes = [4, 128], strides = [1, 1]} : vector<4x384xf32> to vector<4x128xf32>
    %153 = vector.extract_strided_slice %127 {offsets = [0, 384], sizes = [4, 128], strides = [1, 1]} : vector<4x512xf32> to vector<4x128xf32>
    %154 = math.tanh %153 : vector<4x128xf32>
    %155 = arith.mulf %151, %104 : vector<4x128xf32>
    %156 = arith.mulf %150, %154 : vector<4x128xf32>
    %157 = arith.addf %155, %156 : vector<4x128xf32>
    %158 = math.tanh %157 : vector<4x128xf32>
    %159 = arith.mulf %152, %158 : vector<4x128xf32>
    %c4_i32_45 = arith.constant 4 : i32
    %160 = arith.muli %c2_i32, %c4_i32_45 : i32
    %161 = arith.index_cast %160 : i32 to index
    %c0_46 = arith.constant 0 : index
    %162 = vector.load %arg15[%161, %c0_46] : memref<32x256xf32, #tpu.memory_space<vmem>>, vector<4x128xf32>
    tpu.vector_store %arg15[%161, %c0_46], %143 {strides = array<i32>} : memref<32x256xf32, #tpu.memory_space<vmem>>, vector<4x128xf32>,
    %c7_i32_47 = arith.constant 7 : i32
    %163 = arith.subi %c7_i32_47, %c2_i32 : i32
    %c4_i32_48 = arith.constant 4 : i32
    %164 = arith.muli %163, %c4_i32_48 : i32
    %165 = arith.index_cast %164 : i32 to index
    %c128_49 = arith.constant 128 : index
    %166 = vector.load %arg15[%165, %c128_49] : memref<32x256xf32, #tpu.memory_space<vmem>>, vector<4x128xf32>
    tpu.vector_store %arg15[%165, %c128_49], %159 {strides = array<i32>} : memref<32x256xf32, #tpu.memory_space<vmem>>, vector<4x128xf32>,
    %167 = tpu.concatenate %143, %159 in 1 : vector<4x128xf32>, vector<4x128xf32> -> vector<4x256xf32>
    %c3_i32 = arith.constant 3 : i32
    %c0_50 = arith.constant 0 : index
    %c0_51 = arith.constant 0 : index
    %168 = vector.load %arg2[%c0_50, %c0_51] : memref<256x1024xf32, #tpu.memory_space<vmem>>, vector<256x1024xf32>
    %cst_52 = arith.constant dense<0.000000e+00> : vector<4x1024xf32>
    %169 = tpu.matmul %167, %168, %cst_52 {dimension_numbers = #tpu.dot_dimension_numbers<[1], [0], [0], [1], [0, 0, 1, 1], [], []>} : vector<4x256xf32>, vector<256x1024xf32>, vector<4x1024xf32> -> vector<4x1024xf32>
    %c4_i32_53 = arith.constant 4 : i32
    %170 = arith.muli %c3_i32, %c4_i32_53 : i32
    %171 = arith.index_cast %170 : i32 to index
    %c0_54 = arith.constant 0 : index
    %172 = vector.load %arg14[%171, %c0_54] : memref<32x1024xf32, #tpu.memory_space<vmem>>, vector<4x512xf32>
    %173 = vector.extract_strided_slice %169 {offsets = [0, 0], sizes = [4, 512], strides = [1, 1]} : vector<4x1024xf32> to vector<4x512xf32>
    %174 = arith.addf %172, %173 : vector<4x512xf32>
    %c7_i32_55 = arith.constant 7 : i32
    %175 = arith.subi %c7_i32_55, %c3_i32 : i32
    %c4_i32_56 = arith.constant 4 : i32
    %176 = arith.muli %175, %c4_i32_56 : i32
    %177 = arith.index_cast %176 : i32 to index
    %c512_57 = arith.constant 512 : index
    %178 = vector.load %arg14[%177, %c512_57] : memref<32x1024xf32, #tpu.memory_space<vmem>>, vector<4x512xf32>
    %179 = vector.extract_strided_slice %169 {offsets = [0, 512], sizes = [4, 512], strides = [1, 1]} : vector<4x1024xf32> to vector<4x512xf32>
    %180 = arith.addf %178, %179 : vector<4x512xf32>
    %181 = vector.extract_strided_slice %174 {offsets = [0, 0], sizes = [4, 384], strides = [1, 1]} : vector<4x512xf32> to vector<4x384xf32>
    %182 = arith.negf %181 : vector<4x384xf32>
    %183 = math.exp %182 : vector<4x384xf32>
    %cst_58 = arith.constant 1.000000e+00 : f32
    %184 = vector.broadcast %cst_58 : f32 to vector<4x384xf32>
    %185 = arith.addf %184, %183 : vector<4x384xf32>
    %186 = arith.divf %184, %185 : vector<4x384xf32>
    %187 = vector.extract_strided_slice %186 {offsets = [0, 0], sizes = [4, 128], strides = [1, 1]} : vector<4x384xf32> to vector<4x128xf32>
    %188 = vector.extract_strided_slice %186 {offsets = [0, 128], sizes = [4, 128], strides = [1, 1]} : vector<4x384xf32> to vector<4x128xf32>
    %189 = vector.extract_strided_slice %186 {offsets = [0, 256], sizes = [4, 128], strides = [1, 1]} : vector<4x384xf32> to vector<4x128xf32>
    %190 = vector.extract_strided_slice %174 {offsets = [0, 384], sizes = [4, 128], strides = [1, 1]} : vector<4x512xf32> to vector<4x128xf32>
    %191 = math.tanh %190 : vector<4x128xf32>
    %192 = arith.mulf %188, %141 : vector<4x128xf32>
    %193 = arith.mulf %187, %191 : vector<4x128xf32>
    %194 = arith.addf %192, %193 : vector<4x128xf32>
    %195 = math.tanh %194 : vector<4x128xf32>
    %196 = arith.mulf %189, %195 : vector<4x128xf32>
    %197 = vector.extract_strided_slice %180 {offsets = [0, 0], sizes = [4, 384], strides = [1, 1]} : vector<4x512xf32> to vector<4x384xf32>
    %198 = arith.negf %197 : vector<4x384xf32>
    %199 = math.exp %198 : vector<4x384xf32>
    %cst_59 = arith.constant 1.000000e+00 : f32
    %200 = vector.broadcast %cst_59 : f32 to vector<4x384xf32>
    %201 = arith.addf %200, %199 : vector<4x384xf32>
    %202 = arith.divf %200, %201 : vector<4x384xf32>
    %203 = vector.extract_strided_slice %202 {offsets = [0, 0], sizes = [4, 128], strides = [1, 1]} : vector<4x384xf32> to vector<4x128xf32>
    %204 = vector.extract_strided_slice %202 {offsets = [0, 128], sizes = [4, 128], strides = [1, 1]} : vector<4x384xf32> to vector<4x128xf32>
    %205 = vector.extract_strided_slice %202 {offsets = [0, 256], sizes = [4, 128], strides = [1, 1]} : vector<4x384xf32> to vector<4x128xf32>
    %206 = vector.extract_strided_slice %180 {offsets = [0, 384], sizes = [4, 128], strides = [1, 1]} : vector<4x512xf32> to vector<4x128xf32>
    %207 = math.tanh %206 : vector<4x128xf32>
    %208 = arith.mulf %204, %157 : vector<4x128xf32>
    %209 = arith.mulf %203, %207 : vector<4x128xf32>
    %210 = arith.addf %208, %209 : vector<4x128xf32>
    %211 = math.tanh %210 : vector<4x128xf32>
    %212 = arith.mulf %205, %211 : vector<4x128xf32>
    %c4_i32_60 = arith.constant 4 : i32
    %213 = arith.muli %c3_i32, %c4_i32_60 : i32
    %214 = arith.index_cast %213 : i32 to index
    %c0_61 = arith.constant 0 : index
    %215 = vector.load %arg15[%214, %c0_61] : memref<32x256xf32, #tpu.memory_space<vmem>>, vector<4x128xf32>
    tpu.vector_store %arg15[%214, %c0_61], %196 {strides = array<i32>} : memref<32x256xf32, #tpu.memory_space<vmem>>, vector<4x128xf32>,
    %c7_i32_62 = arith.constant 7 : i32
    %216 = arith.subi %c7_i32_62, %c3_i32 : i32
    %c4_i32_63 = arith.constant 4 : i32
    %217 = arith.muli %216, %c4_i32_63 : i32
    %218 = arith.index_cast %217 : i32 to index
    %c128_64 = arith.constant 128 : index
    %219 = vector.load %arg15[%218, %c128_64] : memref<32x256xf32, #tpu.memory_space<vmem>>, vector<4x128xf32>
    tpu.vector_store %arg15[%218, %c128_64], %212 {strides = array<i32>} : memref<32x256xf32, #tpu.memory_space<vmem>>, vector<4x128xf32>,
    %220 = tpu.concatenate %196, %212 in 1 : vector<4x128xf32>, vector<4x128xf32> -> vector<4x256xf32>
    %c4_i32_65 = arith.constant 4 : i32
    %c0_66 = arith.constant 0 : index
    %c0_67 = arith.constant 0 : index
    %221 = vector.load %arg2[%c0_66, %c0_67] : memref<256x1024xf32, #tpu.memory_space<vmem>>, vector<256x1024xf32>
    %cst_68 = arith.constant dense<0.000000e+00> : vector<4x1024xf32>
    %222 = tpu.matmul %220, %221, %cst_68 {dimension_numbers = #tpu.dot_dimension_numbers<[1], [0], [0], [1], [0, 0, 1, 1], [], []>} : vector<4x256xf32>, vector<256x1024xf32>, vector<4x1024xf32> -> vector<4x1024xf32>
    %c4_i32_69 = arith.constant 4 : i32
    %223 = arith.muli %c4_i32_65, %c4_i32_69 : i32
    %224 = arith.index_cast %223 : i32 to index
    %c0_70 = arith.constant 0 : index
    %225 = vector.load %arg14[%224, %c0_70] : memref<32x1024xf32, #tpu.memory_space<vmem>>, vector<4x512xf32>
    %226 = vector.extract_strided_slice %222 {offsets = [0, 0], sizes = [4, 512], strides = [1, 1]} : vector<4x1024xf32> to vector<4x512xf32>
    %227 = arith.addf %225, %226 : vector<4x512xf32>
    %c7_i32_71 = arith.constant 7 : i32
    %228 = arith.subi %c7_i32_71, %c4_i32_65 : i32
    %c4_i32_72 = arith.constant 4 : i32
    %229 = arith.muli %228, %c4_i32_72 : i32
    %230 = arith.index_cast %229 : i32 to index
    %c512_73 = arith.constant 512 : index
    %231 = vector.load %arg14[%230, %c512_73] : memref<32x1024xf32, #tpu.memory_space<vmem>>, vector<4x512xf32>
    %232 = vector.extract_strided_slice %222 {offsets = [0, 512], sizes = [4, 512], strides = [1, 1]} : vector<4x1024xf32> to vector<4x512xf32>
    %233 = arith.addf %231, %232 : vector<4x512xf32>
    %234 = vector.extract_strided_slice %227 {offsets = [0, 0], sizes = [4, 384], strides = [1, 1]} : vector<4x512xf32> to vector<4x384xf32>
    %235 = arith.negf %234 : vector<4x384xf32>
    %236 = math.exp %235 : vector<4x384xf32>
    %cst_74 = arith.constant 1.000000e+00 : f32
    %237 = vector.broadcast %cst_74 : f32 to vector<4x384xf32>
    %238 = arith.addf %237, %236 : vector<4x384xf32>
    %239 = arith.divf %237, %238 : vector<4x384xf32>
    %240 = vector.extract_strided_slice %239 {offsets = [0, 0], sizes = [4, 128], strides = [1, 1]} : vector<4x384xf32> to vector<4x128xf32>
    %241 = vector.extract_strided_slice %239 {offsets = [0, 128], sizes = [4, 128], strides = [1, 1]} : vector<4x384xf32> to vector<4x128xf32>
    %242 = vector.extract_strided_slice %239 {offsets = [0, 256], sizes = [4, 128], strides = [1, 1]} : vector<4x384xf32> to vector<4x128xf32>
    %243 = vector.extract_strided_slice %227 {offsets = [0, 384], sizes = [4, 128], strides = [1, 1]} : vector<4x512xf32> to vector<4x128xf32>
    %244 = math.tanh %243 : vector<4x128xf32>
    %245 = arith.mulf %241, %194 : vector<4x128xf32>
    %246 = arith.mulf %240, %244 : vector<4x128xf32>
    %247 = arith.addf %245, %246 : vector<4x128xf32>
    %248 = math.tanh %247 : vector<4x128xf32>
    %249 = arith.mulf %242, %248 : vector<4x128xf32>
    %250 = vector.extract_strided_slice %233 {offsets = [0, 0], sizes = [4, 384], strides = [1, 1]} : vector<4x512xf32> to vector<4x384xf32>
    %251 = arith.negf %250 : vector<4x384xf32>
    %252 = math.exp %251 : vector<4x384xf32>
    %cst_75 = arith.constant 1.000000e+00 : f32
    %253 = vector.broadcast %cst_75 : f32 to vector<4x384xf32>
    %254 = arith.addf %253, %252 : vector<4x384xf32>
    %255 = arith.divf %253, %254 : vector<4x384xf32>
    %256 = vector.extract_strided_slice %255 {offsets = [0, 0], sizes = [4, 128], strides = [1, 1]} : vector<4x384xf32> to vector<4x128xf32>
    %257 = vector.extract_strided_slice %255 {offsets = [0, 128], sizes = [4, 128], strides = [1, 1]} : vector<4x384xf32> to vector<4x128xf32>
    %258 = vector.extract_strided_slice %255 {offsets = [0, 256], sizes = [4, 128], strides = [1, 1]} : vector<4x384xf32> to vector<4x128xf32>
    %259 = vector.extract_strided_slice %233 {offsets = [0, 384], sizes = [4, 128], strides = [1, 1]} : vector<4x512xf32> to vector<4x128xf32>
    %260 = math.tanh %259 : vector<4x128xf32>
    %261 = arith.mulf %257, %210 : vector<4x128xf32>
    %262 = arith.mulf %256, %260 : vector<4x128xf32>
    %263 = arith.addf %261, %262 : vector<4x128xf32>
    %264 = math.tanh %263 : vector<4x128xf32>
    %265 = arith.mulf %258, %264 : vector<4x128xf32>
    %c4_i32_76 = arith.constant 4 : i32
    %266 = arith.muli %c4_i32_65, %c4_i32_76 : i32
    %267 = arith.index_cast %266 : i32 to index
    %c0_77 = arith.constant 0 : index
    %268 = vector.load %arg15[%267, %c0_77] : memref<32x256xf32, #tpu.memory_space<vmem>>, vector<4x128xf32>
    tpu.vector_store %arg15[%267, %c0_77], %249 {strides = array<i32>} : memref<32x256xf32, #tpu.memory_space<vmem>>, vector<4x128xf32>,
    %c7_i32_78 = arith.constant 7 : i32
    %269 = arith.subi %c7_i32_78, %c4_i32_65 : i32
    %c4_i32_79 = arith.constant 4 : i32
    %270 = arith.muli %269, %c4_i32_79 : i32
    %271 = arith.index_cast %270 : i32 to index
    %c128_80 = arith.constant 128 : index
    %272 = vector.load %arg15[%271, %c128_80] : memref<32x256xf32, #tpu.memory_space<vmem>>, vector<4x128xf32>
    tpu.vector_store %arg15[%271, %c128_80], %265 {strides = array<i32>} : memref<32x256xf32, #tpu.memory_space<vmem>>, vector<4x128xf32>,
    %273 = tpu.concatenate %249, %265 in 1 : vector<4x128xf32>, vector<4x128xf32> -> vector<4x256xf32>
    %c5_i32 = arith.constant 5 : i32
    %c0_81 = arith.constant 0 : index
    %c0_82 = arith.constant 0 : index
    %274 = vector.load %arg2[%c0_81, %c0_82] : memref<256x1024xf32, #tpu.memory_space<vmem>>, vector<256x1024xf32>
    %cst_83 = arith.constant dense<0.000000e+00> : vector<4x1024xf32>
    %275 = tpu.matmul %273, %274, %cst_83 {dimension_numbers = #tpu.dot_dimension_numbers<[1], [0], [0], [1], [0, 0, 1, 1], [], []>} : vector<4x256xf32>, vector<256x1024xf32>, vector<4x1024xf32> -> vector<4x1024xf32>
    %c4_i32_84 = arith.constant 4 : i32
    %276 = arith.muli %c5_i32, %c4_i32_84 : i32
    %277 = arith.index_cast %276 : i32 to index
    %c0_85 = arith.constant 0 : index
    %278 = vector.load %arg14[%277, %c0_85] : memref<32x1024xf32, #tpu.memory_space<vmem>>, vector<4x512xf32>
    %279 = vector.extract_strided_slice %275 {offsets = [0, 0], sizes = [4, 512], strides = [1, 1]} : vector<4x1024xf32> to vector<4x512xf32>
    %280 = arith.addf %278, %279 : vector<4x512xf32>
    %c7_i32_86 = arith.constant 7 : i32
    %281 = arith.subi %c7_i32_86, %c5_i32 : i32
    %c4_i32_87 = arith.constant 4 : i32
    %282 = arith.muli %281, %c4_i32_87 : i32
    %283 = arith.index_cast %282 : i32 to index
    %c512_88 = arith.constant 512 : index
    %284 = vector.load %arg14[%283, %c512_88] : memref<32x1024xf32, #tpu.memory_space<vmem>>, vector<4x512xf32>
    %285 = vector.extract_strided_slice %275 {offsets = [0, 512], sizes = [4, 512], strides = [1, 1]} : vector<4x1024xf32> to vector<4x512xf32>
    %286 = arith.addf %284, %285 : vector<4x512xf32>
    %287 = vector.extract_strided_slice %280 {offsets = [0, 0], sizes = [4, 384], strides = [1, 1]} : vector<4x512xf32> to vector<4x384xf32>
    %288 = arith.negf %287 : vector<4x384xf32>
    %289 = math.exp %288 : vector<4x384xf32>
    %cst_89 = arith.constant 1.000000e+00 : f32
    %290 = vector.broadcast %cst_89 : f32 to vector<4x384xf32>
    %291 = arith.addf %290, %289 : vector<4x384xf32>
    %292 = arith.divf %290, %291 : vector<4x384xf32>
    %293 = vector.extract_strided_slice %292 {offsets = [0, 0], sizes = [4, 128], strides = [1, 1]} : vector<4x384xf32> to vector<4x128xf32>
    %294 = vector.extract_strided_slice %292 {offsets = [0, 128], sizes = [4, 128], strides = [1, 1]} : vector<4x384xf32> to vector<4x128xf32>
    %295 = vector.extract_strided_slice %292 {offsets = [0, 256], sizes = [4, 128], strides = [1, 1]} : vector<4x384xf32> to vector<4x128xf32>
    %296 = vector.extract_strided_slice %280 {offsets = [0, 384], sizes = [4, 128], strides = [1, 1]} : vector<4x512xf32> to vector<4x128xf32>
    %297 = math.tanh %296 : vector<4x128xf32>
    %298 = arith.mulf %294, %247 : vector<4x128xf32>
    %299 = arith.mulf %293, %297 : vector<4x128xf32>
    %300 = arith.addf %298, %299 : vector<4x128xf32>
    %301 = math.tanh %300 : vector<4x128xf32>
    %302 = arith.mulf %295, %301 : vector<4x128xf32>
    %303 = vector.extract_strided_slice %286 {offsets = [0, 0], sizes = [4, 384], strides = [1, 1]} : vector<4x512xf32> to vector<4x384xf32>
    %304 = arith.negf %303 : vector<4x384xf32>
    %305 = math.exp %304 : vector<4x384xf32>
    %cst_90 = arith.constant 1.000000e+00 : f32
    %306 = vector.broadcast %cst_90 : f32 to vector<4x384xf32>
    %307 = arith.addf %306, %305 : vector<4x384xf32>
    %308 = arith.divf %306, %307 : vector<4x384xf32>
    %309 = vector.extract_strided_slice %308 {offsets = [0, 0], sizes = [4, 128], strides = [1, 1]} : vector<4x384xf32> to vector<4x128xf32>
    %310 = vector.extract_strided_slice %308 {offsets = [0, 128], sizes = [4, 128], strides = [1, 1]} : vector<4x384xf32> to vector<4x128xf32>
    %311 = vector.extract_strided_slice %308 {offsets = [0, 256], sizes = [4, 128], strides = [1, 1]} : vector<4x384xf32> to vector<4x128xf32>
    %312 = vector.extract_strided_slice %286 {offsets = [0, 384], sizes = [4, 128], strides = [1, 1]} : vector<4x512xf32> to vector<4x128xf32>
    %313 = math.tanh %312 : vector<4x128xf32>
    %314 = arith.mulf %310, %263 : vector<4x128xf32>
    %315 = arith.mulf %309, %313 : vector<4x128xf32>
    %316 = arith.addf %314, %315 : vector<4x128xf32>
    %317 = math.tanh %316 : vector<4x128xf32>
    %318 = arith.mulf %311, %317 : vector<4x128xf32>
    %c4_i32_91 = arith.constant 4 : i32
    %319 = arith.muli %c5_i32, %c4_i32_91 : i32
    %320 = arith.index_cast %319 : i32 to index
    %c0_92 = arith.constant 0 : index
    %321 = vector.load %arg15[%320, %c0_92] : memref<32x256xf32, #tpu.memory_space<vmem>>, vector<4x128xf32>
    tpu.vector_store %arg15[%320, %c0_92], %302 {strides = array<i32>} : memref<32x256xf32, #tpu.memory_space<vmem>>, vector<4x128xf32>,
    %c7_i32_93 = arith.constant 7 : i32
    %322 = arith.subi %c7_i32_93, %c5_i32 : i32
    %c4_i32_94 = arith.constant 4 : i32
    %323 = arith.muli %322, %c4_i32_94 : i32
    %324 = arith.index_cast %323 : i32 to index
    %c128_95 = arith.constant 128 : index
    %325 = vector.load %arg15[%324, %c128_95] : memref<32x256xf32, #tpu.memory_space<vmem>>, vector<4x128xf32>
    tpu.vector_store %arg15[%324, %c128_95], %318 {strides = array<i32>} : memref<32x256xf32, #tpu.memory_space<vmem>>, vector<4x128xf32>,
    %326 = tpu.concatenate %302, %318 in 1 : vector<4x128xf32>, vector<4x128xf32> -> vector<4x256xf32>
    %c6_i32 = arith.constant 6 : i32
    %c0_96 = arith.constant 0 : index
    %c0_97 = arith.constant 0 : index
    %327 = vector.load %arg2[%c0_96, %c0_97] : memref<256x1024xf32, #tpu.memory_space<vmem>>, vector<256x1024xf32>
    %cst_98 = arith.constant dense<0.000000e+00> : vector<4x1024xf32>
    %328 = tpu.matmul %326, %327, %cst_98 {dimension_numbers = #tpu.dot_dimension_numbers<[1], [0], [0], [1], [0, 0, 1, 1], [], []>} : vector<4x256xf32>, vector<256x1024xf32>, vector<4x1024xf32> -> vector<4x1024xf32>
    %c4_i32_99 = arith.constant 4 : i32
    %329 = arith.muli %c6_i32, %c4_i32_99 : i32
    %330 = arith.index_cast %329 : i32 to index
    %c0_100 = arith.constant 0 : index
    %331 = vector.load %arg14[%330, %c0_100] : memref<32x1024xf32, #tpu.memory_space<vmem>>, vector<4x512xf32>
    %332 = vector.extract_strided_slice %328 {offsets = [0, 0], sizes = [4, 512], strides = [1, 1]} : vector<4x1024xf32> to vector<4x512xf32>
    %333 = arith.addf %331, %332 : vector<4x512xf32>
    %c7_i32_101 = arith.constant 7 : i32
    %334 = arith.subi %c7_i32_101, %c6_i32 : i32
    %c4_i32_102 = arith.constant 4 : i32
    %335 = arith.muli %334, %c4_i32_102 : i32
    %336 = arith.index_cast %335 : i32 to index
    %c512_103 = arith.constant 512 : index
    %337 = vector.load %arg14[%336, %c512_103] : memref<32x1024xf32, #tpu.memory_space<vmem>>, vector<4x512xf32>
    %338 = vector.extract_strided_slice %328 {offsets = [0, 512], sizes = [4, 512], strides = [1, 1]} : vector<4x1024xf32> to vector<4x512xf32>
    %339 = arith.addf %337, %338 : vector<4x512xf32>
    %340 = vector.extract_strided_slice %333 {offsets = [0, 0], sizes = [4, 384], strides = [1, 1]} : vector<4x512xf32> to vector<4x384xf32>
    %341 = arith.negf %340 : vector<4x384xf32>
    %342 = math.exp %341 : vector<4x384xf32>
    %cst_104 = arith.constant 1.000000e+00 : f32
    %343 = vector.broadcast %cst_104 : f32 to vector<4x384xf32>
    %344 = arith.addf %343, %342 : vector<4x384xf32>
    %345 = arith.divf %343, %344 : vector<4x384xf32>
    %346 = vector.extract_strided_slice %345 {offsets = [0, 0], sizes = [4, 128], strides = [1, 1]} : vector<4x384xf32> to vector<4x128xf32>
    %347 = vector.extract_strided_slice %345 {offsets = [0, 128], sizes = [4, 128], strides = [1, 1]} : vector<4x384xf32> to vector<4x128xf32>
    %348 = vector.extract_strided_slice %345 {offsets = [0, 256], sizes = [4, 128], strides = [1, 1]} : vector<4x384xf32> to vector<4x128xf32>
    %349 = vector.extract_strided_slice %333 {offsets = [0, 384], sizes = [4, 128], strides = [1, 1]} : vector<4x512xf32> to vector<4x128xf32>
    %350 = math.tanh %349 : vector<4x128xf32>
    %351 = arith.mulf %347, %300 : vector<4x128xf32>
    %352 = arith.mulf %346, %350 : vector<4x128xf32>
    %353 = arith.addf %351, %352 : vector<4x128xf32>
    %354 = math.tanh %353 : vector<4x128xf32>
    %355 = arith.mulf %348, %354 : vector<4x128xf32>
    %356 = vector.extract_strided_slice %339 {offsets = [0, 0], sizes = [4, 384], strides = [1, 1]} : vector<4x512xf32> to vector<4x384xf32>
    %357 = arith.negf %356 : vector<4x384xf32>
    %358 = math.exp %357 : vector<4x384xf32>
    %cst_105 = arith.constant 1.000000e+00 : f32
    %359 = vector.broadcast %cst_105 : f32 to vector<4x384xf32>
    %360 = arith.addf %359, %358 : vector<4x384xf32>
    %361 = arith.divf %359, %360 : vector<4x384xf32>
    %362 = vector.extract_strided_slice %361 {offsets = [0, 0], sizes = [4, 128], strides = [1, 1]} : vector<4x384xf32> to vector<4x128xf32>
    %363 = vector.extract_strided_slice %361 {offsets = [0, 128], sizes = [4, 128], strides = [1, 1]} : vector<4x384xf32> to vector<4x128xf32>
    %364 = vector.extract_strided_slice %361 {offsets = [0, 256], sizes = [4, 128], strides = [1, 1]} : vector<4x384xf32> to vector<4x128xf32>
    %365 = vector.extract_strided_slice %339 {offsets = [0, 384], sizes = [4, 128], strides = [1, 1]} : vector<4x512xf32> to vector<4x128xf32>
    %366 = math.tanh %365 : vector<4x128xf32>
    %367 = arith.mulf %363, %316 : vector<4x128xf32>
    %368 = arith.mulf %362, %366 : vector<4x128xf32>
    %369 = arith.addf %367, %368 : vector<4x128xf32>
    %370 = math.tanh %369 : vector<4x128xf32>
    %371 = arith.mulf %364, %370 : vector<4x128xf32>
    %c4_i32_106 = arith.constant 4 : i32
    %372 = arith.muli %c6_i32, %c4_i32_106 : i32
    %373 = arith.index_cast %372 : i32 to index
    %c0_107 = arith.constant 0 : index
    %374 = vector.load %arg15[%373, %c0_107] : memref<32x256xf32, #tpu.memory_space<vmem>>, vector<4x128xf32>
    tpu.vector_store %arg15[%373, %c0_107], %355 {strides = array<i32>} : memref<32x256xf32, #tpu.memory_space<vmem>>, vector<4x128xf32>,
    %c7_i32_108 = arith.constant 7 : i32
    %375 = arith.subi %c7_i32_108, %c6_i32 : i32
    %c4_i32_109 = arith.constant 4 : i32
    %376 = arith.muli %375, %c4_i32_109 : i32
    %377 = arith.index_cast %376 : i32 to index
    %c128_110 = arith.constant 128 : index
    %378 = vector.load %arg15[%377, %c128_110] : memref<32x256xf32, #tpu.memory_space<vmem>>, vector<4x128xf32>
    tpu.vector_store %arg15[%377, %c128_110], %371 {strides = array<i32>} : memref<32x256xf32, #tpu.memory_space<vmem>>, vector<4x128xf32>,
    %379 = tpu.concatenate %355, %371 in 1 : vector<4x128xf32>, vector<4x128xf32> -> vector<4x256xf32>
    %c7_i32_111 = arith.constant 7 : i32
    %c0_112 = arith.constant 0 : index
    %c0_113 = arith.constant 0 : index
    %380 = vector.load %arg2[%c0_112, %c0_113] : memref<256x1024xf32, #tpu.memory_space<vmem>>, vector<256x1024xf32>
    %cst_114 = arith.constant dense<0.000000e+00> : vector<4x1024xf32>
    %381 = tpu.matmul %379, %380, %cst_114 {dimension_numbers = #tpu.dot_dimension_numbers<[1], [0], [0], [1], [0, 0, 1, 1], [], []>} : vector<4x256xf32>, vector<256x1024xf32>, vector<4x1024xf32> -> vector<4x1024xf32>
    %c4_i32_115 = arith.constant 4 : i32
    %382 = arith.muli %c7_i32_111, %c4_i32_115 : i32
    %383 = arith.index_cast %382 : i32 to index
    %c0_116 = arith.constant 0 : index
    %384 = vector.load %arg14[%383, %c0_116] : memref<32x1024xf32, #tpu.memory_space<vmem>>, vector<4x512xf32>
    %385 = vector.extract_strided_slice %381 {offsets = [0, 0], sizes = [4, 512], strides = [1, 1]} : vector<4x1024xf32> to vector<4x512xf32>
    %386 = arith.addf %384, %385 : vector<4x512xf32>
    %c7_i32_117 = arith.constant 7 : i32
    %387 = arith.subi %c7_i32_117, %c7_i32_111 : i32
    %c4_i32_118 = arith.constant 4 : i32
    %388 = arith.muli %387, %c4_i32_118 : i32
    %389 = arith.index_cast %388 : i32 to index
    %c512_119 = arith.constant 512 : index
    %390 = vector.load %arg14[%389, %c512_119] : memref<32x1024xf32, #tpu.memory_space<vmem>>, vector<4x512xf32>
    %391 = vector.extract_strided_slice %381 {offsets = [0, 512], sizes = [4, 512], strides = [1, 1]} : vector<4x1024xf32> to vector<4x512xf32>
    %392 = arith.addf %390, %391 : vector<4x512xf32>
    %393 = vector.extract_strided_slice %386 {offsets = [0, 0], sizes = [4, 384], strides = [1, 1]} : vector<4x512xf32> to vector<4x384xf32>
    %394 = arith.negf %393 : vector<4x384xf32>
    %395 = math.exp %394 : vector<4x384xf32>
    %cst_120 = arith.constant 1.000000e+00 : f32
    %396 = vector.broadcast %cst_120 : f32 to vector<4x384xf32>
    %397 = arith.addf %396, %395 : vector<4x384xf32>
    %398 = arith.divf %396, %397 : vector<4x384xf32>
    %399 = vector.extract_strided_slice %398 {offsets = [0, 0], sizes = [4, 128], strides = [1, 1]} : vector<4x384xf32> to vector<4x128xf32>
    %400 = vector.extract_strided_slice %398 {offsets = [0, 128], sizes = [4, 128], strides = [1, 1]} : vector<4x384xf32> to vector<4x128xf32>
    %401 = vector.extract_strided_slice %398 {offsets = [0, 256], sizes = [4, 128], strides = [1, 1]} : vector<4x384xf32> to vector<4x128xf32>
    %402 = vector.extract_strided_slice %386 {offsets = [0, 384], sizes = [4, 128], strides = [1, 1]} : vector<4x512xf32> to vector<4x128xf32>
    %403 = math.tanh %402 : vector<4x128xf32>
    %404 = arith.mulf %400, %353 : vector<4x128xf32>
    %405 = arith.mulf %399, %403 : vector<4x128xf32>
    %406 = arith.addf %404, %405 : vector<4x128xf32>
    %407 = math.tanh %406 : vector<4x128xf32>
    %408 = arith.mulf %401, %407 : vector<4x128xf32>
    %409 = vector.extract_strided_slice %392 {offsets = [0, 0], sizes = [4, 384], strides = [1, 1]} : vector<4x512xf32> to vector<4x384xf32>
    %410 = arith.negf %409 : vector<4x384xf32>
    %411 = math.exp %410 : vector<4x384xf32>
    %cst_121 = arith.constant 1.000000e+00 : f32
    %412 = vector.broadcast %cst_121 : f32 to vector<4x384xf32>
    %413 = arith.addf %412, %411 : vector<4x384xf32>
    %414 = arith.divf %412, %413 : vector<4x384xf32>
    %415 = vector.extract_strided_slice %414 {offsets = [0, 0], sizes = [4, 128], strides = [1, 1]} : vector<4x384xf32> to vector<4x128xf32>
    %416 = vector.extract_strided_slice %414 {offsets = [0, 128], sizes = [4, 128], strides = [1, 1]} : vector<4x384xf32> to vector<4x128xf32>
    %417 = vector.extract_strided_slice %414 {offsets = [0, 256], sizes = [4, 128], strides = [1, 1]} : vector<4x384xf32> to vector<4x128xf32>
    %418 = vector.extract_strided_slice %392 {offsets = [0, 384], sizes = [4, 128], strides = [1, 1]} : vector<4x512xf32> to vector<4x128xf32>
    %419 = math.tanh %418 : vector<4x128xf32>
    %420 = arith.mulf %416, %369 : vector<4x128xf32>
    %421 = arith.mulf %415, %419 : vector<4x128xf32>
    %422 = arith.addf %420, %421 : vector<4x128xf32>
    %423 = math.tanh %422 : vector<4x128xf32>
    %424 = arith.mulf %417, %423 : vector<4x128xf32>
    %c4_i32_122 = arith.constant 4 : i32
    %425 = arith.muli %c7_i32_111, %c4_i32_122 : i32
    %426 = arith.index_cast %425 : i32 to index
    %c0_123 = arith.constant 0 : index
    %427 = vector.load %arg15[%426, %c0_123] : memref<32x256xf32, #tpu.memory_space<vmem>>, vector<4x128xf32>
    tpu.vector_store %arg15[%426, %c0_123], %408 {strides = array<i32>} : memref<32x256xf32, #tpu.memory_space<vmem>>, vector<4x128xf32>,
    %c7_i32_124 = arith.constant 7 : i32
    %428 = arith.subi %c7_i32_124, %c7_i32_111 : i32
    %c4_i32_125 = arith.constant 4 : i32
    %429 = arith.muli %428, %c4_i32_125 : i32
    %430 = arith.index_cast %429 : i32 to index
    %c128_126 = arith.constant 128 : index
    %431 = vector.load %arg15[%430, %c128_126] : memref<32x256xf32, #tpu.memory_space<vmem>>, vector<4x128xf32>
    tpu.vector_store %arg15[%430, %c128_126], %424 {strides = array<i32>} : memref<32x256xf32, #tpu.memory_space<vmem>>, vector<4x128xf32>,
    %432 = tpu.concatenate %408, %424 in 1 : vector<4x128xf32>, vector<4x128xf32> -> vector<4x256xf32>
    %c8_i32 = arith.constant 8 : i32
    %c0_127 = arith.constant 0 : index
    %c0_128 = arith.constant 0 : index
    %433 = vector.load %arg15[%c0_127, %c0_128] : memref<32x256xf32, #tpu.memory_space<vmem>>, vector<32x256xf32>
    %c0_129 = arith.constant 0 : index
    %c0_130 = arith.constant 0 : index
    %434 = vector.load %arg4[%c0_129, %c0_130] : memref<256x256xf32, #tpu.memory_space<vmem>>, vector<256x256xf32>
    %cst_131 = arith.constant dense<0.000000e+00> : vector<32x256xf32>
    %435 = tpu.matmul %433, %434, %cst_131 {dimension_numbers = #tpu.dot_dimension_numbers<[1], [0], [0], [1], [0, 0, 1, 1], [], []>} : vector<32x256xf32>, vector<256x256xf32>, vector<32x256xf32> -> vector<32x256xf32>
    %c0_132 = arith.constant 0 : index
    %c0_133 = arith.constant 0 : index
    %436 = vector.load %arg6[%c0_132, %c0_133] : memref<1x256xf32, #tpu.memory_space<vmem>>, vector<1x256xf32>
    %437 = vector.broadcast %436 : vector<1x256xf32> to vector<32x256xf32>
    %438 = arith.addf %435, %437 : vector<32x256xf32>
    %c0_134 = arith.constant 0 : index
    %c0_135 = arith.constant 0 : index
    %439 = vector.load %arg16[%c0_134, %c0_135] : memref<32x256xf32, #tpu.memory_space<vmem>>, vector<32x256xf32>
    tpu.vector_store %arg16[%c0_134, %c0_135], %438 {strides = array<i32>} : memref<32x256xf32, #tpu.memory_space<vmem>>, vector<32x256xf32>,
    %cst_136 = arith.constant 0.000000e+00 : f32
    %440 = vector.broadcast %cst_136 : f32 to vector<4x64xf32>
    %c0_i32_137 = arith.constant 0 : i32
    %c4_i32_138 = arith.constant 4 : i32
    %441 = arith.muli %c0_i32_137, %c4_i32_138 : i32
    %442 = arith.index_cast %441 : i32 to index
    %c0_139 = arith.constant 0 : index
    %443 = vector.load %arg16[%442, %c0_139] : memref<32x256xf32, #tpu.memory_space<vmem>>, vector<4x256xf32>
    %c0_140 = arith.constant 0 : index
    %c0_141 = arith.constant 0 : index
    %444 = vector.load %arg5[%c0_140, %c0_141] : memref<64x256xf32, #tpu.memory_space<vmem>>, vector<64x256xf32>
    %cst_142 = arith.constant dense<0.000000e+00> : vector<4x256xf32>
    %445 = tpu.matmul %440, %444, %cst_142 {dimension_numbers = #tpu.dot_dimension_numbers<[1], [0], [0], [1], [0, 0, 1, 1], [], []>} : vector<4x64xf32>, vector<64x256xf32>, vector<4x256xf32> -> vector<4x256xf32>
    %446 = arith.addf %443, %445 : vector<4x256xf32>
    %447 = vector.extract_strided_slice %446 {offsets = [0, 0], sizes = [4, 192], strides = [1, 1]} : vector<4x256xf32> to vector<4x192xf32>
    %448 = arith.negf %447 : vector<4x192xf32>
    %449 = math.exp %448 : vector<4x192xf32>
    %cst_143 = arith.constant 1.000000e+00 : f32
    %450 = vector.broadcast %cst_143 : f32 to vector<4x192xf32>
    %451 = arith.addf %450, %449 : vector<4x192xf32>
    %452 = arith.divf %450, %451 : vector<4x192xf32>
    %453 = vector.extract_strided_slice %452 {offsets = [0, 0], sizes = [4, 64], strides = [1, 1]} : vector<4x192xf32> to vector<4x64xf32>
    %454 = vector.extract_strided_slice %452 {offsets = [0, 64], sizes = [4, 64], strides = [1, 1]} : vector<4x192xf32> to vector<4x64xf32>
    %455 = vector.extract_strided_slice %452 {offsets = [0, 128], sizes = [4, 64], strides = [1, 1]} : vector<4x192xf32> to vector<4x64xf32>
    %456 = vector.extract_strided_slice %446 {offsets = [0, 192], sizes = [4, 64], strides = [1, 1]} : vector<4x256xf32> to vector<4x64xf32>
    %457 = math.tanh %456 : vector<4x64xf32>
    %458 = arith.mulf %454, %440 : vector<4x64xf32>
    %459 = arith.mulf %453, %457 : vector<4x64xf32>
    %460 = arith.addf %458, %459 : vector<4x64xf32>
    %461 = math.tanh %460 : vector<4x64xf32>
    %462 = arith.mulf %455, %461 : vector<4x64xf32>
    %c1_i32_144 = arith.constant 1 : i32
    %c4_i32_145 = arith.constant 4 : i32
    %463 = arith.muli %c1_i32_144, %c4_i32_145 : i32
    %464 = arith.index_cast %463 : i32 to index
    %c0_146 = arith.constant 0 : index
    %465 = vector.load %arg16[%464, %c0_146] : memref<32x256xf32, #tpu.memory_space<vmem>>, vector<4x256xf32>
    %c0_147 = arith.constant 0 : index
    %c0_148 = arith.constant 0 : index
    %466 = vector.load %arg5[%c0_147, %c0_148] : memref<64x256xf32, #tpu.memory_space<vmem>>, vector<64x256xf32>
    %cst_149 = arith.constant dense<0.000000e+00> : vector<4x256xf32>
    %467 = tpu.matmul %462, %466, %cst_149 {dimension_numbers = #tpu.dot_dimension_numbers<[1], [0], [0], [1], [0, 0, 1, 1], [], []>} : vector<4x64xf32>, vector<64x256xf32>, vector<4x256xf32> -> vector<4x256xf32>
    %468 = arith.addf %465, %467 : vector<4x256xf32>
    %469 = vector.extract_strided_slice %468 {offsets = [0, 0], sizes = [4, 192], strides = [1, 1]} : vector<4x256xf32> to vector<4x192xf32>
    %470 = arith.negf %469 : vector<4x192xf32>
    %471 = math.exp %470 : vector<4x192xf32>
    %cst_150 = arith.constant 1.000000e+00 : f32
    %472 = vector.broadcast %cst_150 : f32 to vector<4x192xf32>
    %473 = arith.addf %472, %471 : vector<4x192xf32>
    %474 = arith.divf %472, %473 : vector<4x192xf32>
    %475 = vector.extract_strided_slice %474 {offsets = [0, 0], sizes = [4, 64], strides = [1, 1]} : vector<4x192xf32> to vector<4x64xf32>
    %476 = vector.extract_strided_slice %474 {offsets = [0, 64], sizes = [4, 64], strides = [1, 1]} : vector<4x192xf32> to vector<4x64xf32>
    %477 = vector.extract_strided_slice %474 {offsets = [0, 128], sizes = [4, 64], strides = [1, 1]} : vector<4x192xf32> to vector<4x64xf32>
    %478 = vector.extract_strided_slice %468 {offsets = [0, 192], sizes = [4, 64], strides = [1, 1]} : vector<4x256xf32> to vector<4x64xf32>
    %479 = math.tanh %478 : vector<4x64xf32>
    %480 = arith.mulf %476, %460 : vector<4x64xf32>
    %481 = arith.mulf %475, %479 : vector<4x64xf32>
    %482 = arith.addf %480, %481 : vector<4x64xf32>
    %483 = math.tanh %482 : vector<4x64xf32>
    %484 = arith.mulf %477, %483 : vector<4x64xf32>
    %c2_i32_151 = arith.constant 2 : i32
    %c4_i32_152 = arith.constant 4 : i32
    %485 = arith.muli %c2_i32_151, %c4_i32_152 : i32
    %486 = arith.index_cast %485 : i32 to index
    %c0_153 = arith.constant 0 : index
    %487 = vector.load %arg16[%486, %c0_153] : memref<32x256xf32, #tpu.memory_space<vmem>>, vector<4x256xf32>
    %c0_154 = arith.constant 0 : index
    %c0_155 = arith.constant 0 : index
    %488 = vector.load %arg5[%c0_154, %c0_155] : memref<64x256xf32, #tpu.memory_space<vmem>>, vector<64x256xf32>
    %cst_156 = arith.constant dense<0.000000e+00> : vector<4x256xf32>
    %489 = tpu.matmul %484, %488, %cst_156 {dimension_numbers = #tpu.dot_dimension_numbers<[1], [0], [0], [1], [0, 0, 1, 1], [], []>} : vector<4x64xf32>, vector<64x256xf32>, vector<4x256xf32> -> vector<4x256xf32>
    %490 = arith.addf %487, %489 : vector<4x256xf32>
    %491 = vector.extract_strided_slice %490 {offsets = [0, 0], sizes = [4, 192], strides = [1, 1]} : vector<4x256xf32> to vector<4x192xf32>
    %492 = arith.negf %491 : vector<4x192xf32>
    %493 = math.exp %492 : vector<4x192xf32>
    %cst_157 = arith.constant 1.000000e+00 : f32
    %494 = vector.broadcast %cst_157 : f32 to vector<4x192xf32>
    %495 = arith.addf %494, %493 : vector<4x192xf32>
    %496 = arith.divf %494, %495 : vector<4x192xf32>
    %497 = vector.extract_strided_slice %496 {offsets = [0, 0], sizes = [4, 64], strides = [1, 1]} : vector<4x192xf32> to vector<4x64xf32>
    %498 = vector.extract_strided_slice %496 {offsets = [0, 64], sizes = [4, 64], strides = [1, 1]} : vector<4x192xf32> to vector<4x64xf32>
    %499 = vector.extract_strided_slice %496 {offsets = [0, 128], sizes = [4, 64], strides = [1, 1]} : vector<4x192xf32> to vector<4x64xf32>
    %500 = vector.extract_strided_slice %490 {offsets = [0, 192], sizes = [4, 64], strides = [1, 1]} : vector<4x256xf32> to vector<4x64xf32>
    %501 = math.tanh %500 : vector<4x64xf32>
    %502 = arith.mulf %498, %482 : vector<4x64xf32>
    %503 = arith.mulf %497, %501 : vector<4x64xf32>
    %504 = arith.addf %502, %503 : vector<4x64xf32>
    %505 = math.tanh %504 : vector<4x64xf32>
    %506 = arith.mulf %499, %505 : vector<4x64xf32>
    %c3_i32_158 = arith.constant 3 : i32
    %c4_i32_159 = arith.constant 4 : i32
    %507 = arith.muli %c3_i32_158, %c4_i32_159 : i32
    %508 = arith.index_cast %507 : i32 to index
    %c0_160 = arith.constant 0 : index
    %509 = vector.load %arg16[%508, %c0_160] : memref<32x256xf32, #tpu.memory_space<vmem>>, vector<4x256xf32>
    %c0_161 = arith.constant 0 : index
    %c0_162 = arith.constant 0 : index
    %510 = vector.load %arg5[%c0_161, %c0_162] : memref<64x256xf32, #tpu.memory_space<vmem>>, vector<64x256xf32>
    %cst_163 = arith.constant dense<0.000000e+00> : vector<4x256xf32>
    %511 = tpu.matmul %506, %510, %cst_163 {dimension_numbers = #tpu.dot_dimension_numbers<[1], [0], [0], [1], [0, 0, 1, 1], [], []>} : vector<4x64xf32>, vector<64x256xf32>, vector<4x256xf32> -> vector<4x256xf32>
    %512 = arith.addf %509, %511 : vector<4x256xf32>
    %513 = vector.extract_strided_slice %512 {offsets = [0, 0], sizes = [4, 192], strides = [1, 1]} : vector<4x256xf32> to vector<4x192xf32>
    %514 = arith.negf %513 : vector<4x192xf32>
    %515 = math.exp %514 : vector<4x192xf32>
    %cst_164 = arith.constant 1.000000e+00 : f32
    %516 = vector.broadcast %cst_164 : f32 to vector<4x192xf32>
    %517 = arith.addf %516, %515 : vector<4x192xf32>
    %518 = arith.divf %516, %517 : vector<4x192xf32>
    %519 = vector.extract_strided_slice %518 {offsets = [0, 0], sizes = [4, 64], strides = [1, 1]} : vector<4x192xf32> to vector<4x64xf32>
    %520 = vector.extract_strided_slice %518 {offsets = [0, 64], sizes = [4, 64], strides = [1, 1]} : vector<4x192xf32> to vector<4x64xf32>
    %521 = vector.extract_strided_slice %518 {offsets = [0, 128], sizes = [4, 64], strides = [1, 1]} : vector<4x192xf32> to vector<4x64xf32>
    %522 = vector.extract_strided_slice %512 {offsets = [0, 192], sizes = [4, 64], strides = [1, 1]} : vector<4x256xf32> to vector<4x64xf32>
    %523 = math.tanh %522 : vector<4x64xf32>
    %524 = arith.mulf %520, %504 : vector<4x64xf32>
    %525 = arith.mulf %519, %523 : vector<4x64xf32>
    %526 = arith.addf %524, %525 : vector<4x64xf32>
    %527 = math.tanh %526 : vector<4x64xf32>
    %528 = arith.mulf %521, %527 : vector<4x64xf32>
    %c4_i32_165 = arith.constant 4 : i32
    %c4_i32_166 = arith.constant 4 : i32
    %529 = arith.muli %c4_i32_165, %c4_i32_166 : i32
    %530 = arith.index_cast %529 : i32 to index
    %c0_167 = arith.constant 0 : index
    %531 = vector.load %arg16[%530, %c0_167] : memref<32x256xf32, #tpu.memory_space<vmem>>, vector<4x256xf32>
    %c0_168 = arith.constant 0 : index
    %c0_169 = arith.constant 0 : index
    %532 = vector.load %arg5[%c0_168, %c0_169] : memref<64x256xf32, #tpu.memory_space<vmem>>, vector<64x256xf32>
    %cst_170 = arith.constant dense<0.000000e+00> : vector<4x256xf32>
    %533 = tpu.matmul %528, %532, %cst_170 {dimension_numbers = #tpu.dot_dimension_numbers<[1], [0], [0], [1], [0, 0, 1, 1], [], []>} : vector<4x64xf32>, vector<64x256xf32>, vector<4x256xf32> -> vector<4x256xf32>
    %534 = arith.addf %531, %533 : vector<4x256xf32>
    %535 = vector.extract_strided_slice %534 {offsets = [0, 0], sizes = [4, 192], strides = [1, 1]} : vector<4x256xf32> to vector<4x192xf32>
    %536 = arith.negf %535 : vector<4x192xf32>
    %537 = math.exp %536 : vector<4x192xf32>
    %cst_171 = arith.constant 1.000000e+00 : f32
    %538 = vector.broadcast %cst_171 : f32 to vector<4x192xf32>
    %539 = arith.addf %538, %537 : vector<4x192xf32>
    %540 = arith.divf %538, %539 : vector<4x192xf32>
    %541 = vector.extract_strided_slice %540 {offsets = [0, 0], sizes = [4, 64], strides = [1, 1]} : vector<4x192xf32> to vector<4x64xf32>
    %542 = vector.extract_strided_slice %540 {offsets = [0, 64], sizes = [4, 64], strides = [1, 1]} : vector<4x192xf32> to vector<4x64xf32>
    %543 = vector.extract_strided_slice %540 {offsets = [0, 128], sizes = [4, 64], strides = [1, 1]} : vector<4x192xf32> to vector<4x64xf32>
    %544 = vector.extract_strided_slice %534 {offsets = [0, 192], sizes = [4, 64], strides = [1, 1]} : vector<4x256xf32> to vector<4x64xf32>
    %545 = math.tanh %544 : vector<4x64xf32>
    %546 = arith.mulf %542, %526 : vector<4x64xf32>
    %547 = arith.mulf %541, %545 : vector<4x64xf32>
    %548 = arith.addf %546, %547 : vector<4x64xf32>
    %549 = math.tanh %548 : vector<4x64xf32>
    %550 = arith.mulf %543, %549 : vector<4x64xf32>
    %c5_i32_172 = arith.constant 5 : i32
    %c4_i32_173 = arith.constant 4 : i32
    %551 = arith.muli %c5_i32_172, %c4_i32_173 : i32
    %552 = arith.index_cast %551 : i32 to index
    %c0_174 = arith.constant 0 : index
    %553 = vector.load %arg16[%552, %c0_174] : memref<32x256xf32, #tpu.memory_space<vmem>>, vector<4x256xf32>
    %c0_175 = arith.constant 0 : index
    %c0_176 = arith.constant 0 : index
    %554 = vector.load %arg5[%c0_175, %c0_176] : memref<64x256xf32, #tpu.memory_space<vmem>>, vector<64x256xf32>
    %cst_177 = arith.constant dense<0.000000e+00> : vector<4x256xf32>
    %555 = tpu.matmul %550, %554, %cst_177 {dimension_numbers = #tpu.dot_dimension_numbers<[1], [0], [0], [1], [0, 0, 1, 1], [], []>} : vector<4x64xf32>, vector<64x256xf32>, vector<4x256xf32> -> vector<4x256xf32>
    %556 = arith.addf %553, %555 : vector<4x256xf32>
    %557 = vector.extract_strided_slice %556 {offsets = [0, 0], sizes = [4, 192], strides = [1, 1]} : vector<4x256xf32> to vector<4x192xf32>
    %558 = arith.negf %557 : vector<4x192xf32>
    %559 = math.exp %558 : vector<4x192xf32>
    %cst_178 = arith.constant 1.000000e+00 : f32
    %560 = vector.broadcast %cst_178 : f32 to vector<4x192xf32>
    %561 = arith.addf %560, %559 : vector<4x192xf32>
    %562 = arith.divf %560, %561 : vector<4x192xf32>
    %563 = vector.extract_strided_slice %562 {offsets = [0, 0], sizes = [4, 64], strides = [1, 1]} : vector<4x192xf32> to vector<4x64xf32>
    %564 = vector.extract_strided_slice %562 {offsets = [0, 64], sizes = [4, 64], strides = [1, 1]} : vector<4x192xf32> to vector<4x64xf32>
    %565 = vector.extract_strided_slice %562 {offsets = [0, 128], sizes = [4, 64], strides = [1, 1]} : vector<4x192xf32> to vector<4x64xf32>
    %566 = vector.extract_strided_slice %556 {offsets = [0, 192], sizes = [4, 64], strides = [1, 1]} : vector<4x256xf32> to vector<4x64xf32>
    %567 = math.tanh %566 : vector<4x64xf32>
    %568 = arith.mulf %564, %548 : vector<4x64xf32>
    %569 = arith.mulf %563, %567 : vector<4x64xf32>
    %570 = arith.addf %568, %569 : vector<4x64xf32>
    %571 = math.tanh %570 : vector<4x64xf32>
    %572 = arith.mulf %565, %571 : vector<4x64xf32>
    %c6_i32_179 = arith.constant 6 : i32
    %c4_i32_180 = arith.constant 4 : i32
    %573 = arith.muli %c6_i32_179, %c4_i32_180 : i32
    %574 = arith.index_cast %573 : i32 to index
    %c0_181 = arith.constant 0 : index
    %575 = vector.load %arg16[%574, %c0_181] : memref<32x256xf32, #tpu.memory_space<vmem>>, vector<4x256xf32>
    %c0_182 = arith.constant 0 : index
    %c0_183 = arith.constant 0 : index
    %576 = vector.load %arg5[%c0_182, %c0_183] : memref<64x256xf32, #tpu.memory_space<vmem>>, vector<64x256xf32>
    %cst_184 = arith.constant dense<0.000000e+00> : vector<4x256xf32>
    %577 = tpu.matmul %572, %576, %cst_184 {dimension_numbers = #tpu.dot_dimension_numbers<[1], [0], [0], [1], [0, 0, 1, 1], [], []>} : vector<4x64xf32>, vector<64x256xf32>, vector<4x256xf32> -> vector<4x256xf32>
    %578 = arith.addf %575, %577 : vector<4x256xf32>
    %579 = vector.extract_strided_slice %578 {offsets = [0, 0], sizes = [4, 192], strides = [1, 1]} : vector<4x256xf32> to vector<4x192xf32>
    %580 = arith.negf %579 : vector<4x192xf32>
    %581 = math.exp %580 : vector<4x192xf32>
    %cst_185 = arith.constant 1.000000e+00 : f32
    %582 = vector.broadcast %cst_185 : f32 to vector<4x192xf32>
    %583 = arith.addf %582, %581 : vector<4x192xf32>
    %584 = arith.divf %582, %583 : vector<4x192xf32>
    %585 = vector.extract_strided_slice %584 {offsets = [0, 0], sizes = [4, 64], strides = [1, 1]} : vector<4x192xf32> to vector<4x64xf32>
    %586 = vector.extract_strided_slice %584 {offsets = [0, 64], sizes = [4, 64], strides = [1, 1]} : vector<4x192xf32> to vector<4x64xf32>
    %587 = vector.extract_strided_slice %584 {offsets = [0, 128], sizes = [4, 64], strides = [1, 1]} : vector<4x192xf32> to vector<4x64xf32>
    %588 = vector.extract_strided_slice %578 {offsets = [0, 192], sizes = [4, 64], strides = [1, 1]} : vector<4x256xf32> to vector<4x64xf32>
    %589 = math.tanh %588 : vector<4x64xf32>
    %590 = arith.mulf %586, %570 : vector<4x64xf32>
    %591 = arith.mulf %585, %589 : vector<4x64xf32>
    %592 = arith.addf %590, %591 : vector<4x64xf32>
    %593 = math.tanh %592 : vector<4x64xf32>
    %594 = arith.mulf %587, %593 : vector<4x64xf32>
    %c7_i32_186 = arith.constant 7 : i32
    %c4_i32_187 = arith.constant 4 : i32
    %595 = arith.muli %c7_i32_186, %c4_i32_187 : i32
    %596 = arith.index_cast %595 : i32 to index
    %c0_188 = arith.constant 0 : index
    %597 = vector.load %arg16[%596, %c0_188] : memref<32x256xf32, #tpu.memory_space<vmem>>, vector<4x256xf32>
    %c0_189 = arith.constant 0 : index
    %c0_190 = arith.constant 0 : index
    %598 = vector.load %arg5[%c0_189, %c0_190] : memref<64x256xf32, #tpu.memory_space<vmem>>, vector<64x256xf32>
    %cst_191 = arith.constant dense<0.000000e+00> : vector<4x256xf32>
    %599 = tpu.matmul %594, %598, %cst_191 {dimension_numbers = #tpu.dot_dimension_numbers<[1], [0], [0], [1], [0, 0, 1, 1], [], []>} : vector<4x64xf32>, vector<64x256xf32>, vector<4x256xf32> -> vector<4x256xf32>
    %600 = arith.addf %597, %599 : vector<4x256xf32>
    %601 = vector.extract_strided_slice %600 {offsets = [0, 0], sizes = [4, 192], strides = [1, 1]} : vector<4x256xf32> to vector<4x192xf32>
    %602 = arith.negf %601 : vector<4x192xf32>
    %603 = math.exp %602 : vector<4x192xf32>
    %cst_192 = arith.constant 1.000000e+00 : f32
    %604 = vector.broadcast %cst_192 : f32 to vector<4x192xf32>
    %605 = arith.addf %604, %603 : vector<4x192xf32>
    %606 = arith.divf %604, %605 : vector<4x192xf32>
    %607 = vector.extract_strided_slice %606 {offsets = [0, 0], sizes = [4, 64], strides = [1, 1]} : vector<4x192xf32> to vector<4x64xf32>
    %608 = vector.extract_strided_slice %606 {offsets = [0, 64], sizes = [4, 64], strides = [1, 1]} : vector<4x192xf32> to vector<4x64xf32>
    %609 = vector.extract_strided_slice %606 {offsets = [0, 128], sizes = [4, 64], strides = [1, 1]} : vector<4x192xf32> to vector<4x64xf32>
    %610 = vector.extract_strided_slice %600 {offsets = [0, 192], sizes = [4, 64], strides = [1, 1]} : vector<4x256xf32> to vector<4x64xf32>
    %611 = math.tanh %610 : vector<4x64xf32>
    %612 = arith.mulf %608, %592 : vector<4x64xf32>
    %613 = arith.mulf %607, %611 : vector<4x64xf32>
    %614 = arith.addf %612, %613 : vector<4x64xf32>
    %615 = math.tanh %614 : vector<4x64xf32>
    %616 = arith.mulf %609, %615 : vector<4x64xf32>
    %c8_i32_193 = arith.constant 8 : i32
    %c28 = arith.constant 28 : index
    %c0_194 = arith.constant 0 : index
    %617 = vector.load %arg15[%c28, %c0_194] : memref<32x256xf32, #tpu.memory_space<vmem>>, vector<4x256xf32>
    %c0_195 = arith.constant 0 : index
    %c0_196 = arith.constant 0 : index
    %618 = vector.load %arg7[%c0_195, %c0_196] : memref<256x256xf32, #tpu.memory_space<vmem>>, vector<256x256xf32>
    %cst_197 = arith.constant dense<0.000000e+00> : vector<4x256xf32>
    %619 = tpu.matmul %617, %618, %cst_197 {dimension_numbers = #tpu.dot_dimension_numbers<[1], [0], [0], [1], [0, 0, 1, 1], [], []>} : vector<4x256xf32>, vector<256x256xf32>, vector<4x256xf32> -> vector<4x256xf32>
    %c0_198 = arith.constant 0 : index
    %c0_199 = arith.constant 0 : index
    %620 = vector.load %arg8[%c0_198, %c0_199] : memref<1x256xf32, #tpu.memory_space<vmem>>, vector<1x256xf32>
    %621 = vector.broadcast %620 : vector<1x256xf32> to vector<4x256xf32>
    %622 = arith.addf %619, %621 : vector<4x256xf32>
    %623 = vector.extract_strided_slice %622 {offsets = [0, 0], sizes = [4, 192], strides = [1, 1]} : vector<4x256xf32> to vector<4x192xf32>
    %624 = arith.negf %623 : vector<4x192xf32>
    %625 = math.exp %624 : vector<4x192xf32>
    %cst_200 = arith.constant 1.000000e+00 : f32
    %626 = vector.broadcast %cst_200 : f32 to vector<4x192xf32>
    %627 = arith.addf %626, %625 : vector<4x192xf32>
    %628 = arith.divf %626, %627 : vector<4x192xf32>
    %629 = vector.extract_strided_slice %628 {offsets = [0, 0], sizes = [4, 64], strides = [1, 1]} : vector<4x192xf32> to vector<4x64xf32>
    %630 = vector.extract_strided_slice %628 {offsets = [0, 64], sizes = [4, 64], strides = [1, 1]} : vector<4x192xf32> to vector<4x64xf32>
    %631 = vector.extract_strided_slice %628 {offsets = [0, 128], sizes = [4, 64], strides = [1, 1]} : vector<4x192xf32> to vector<4x64xf32>
    %632 = vector.extract_strided_slice %622 {offsets = [0, 192], sizes = [4, 64], strides = [1, 1]} : vector<4x256xf32> to vector<4x64xf32>
    %633 = math.tanh %632 : vector<4x64xf32>
    %634 = arith.mulf %630, %440 : vector<4x64xf32>
    %635 = arith.mulf %629, %633 : vector<4x64xf32>
    %636 = arith.addf %634, %635 : vector<4x64xf32>
    %637 = math.tanh %636 : vector<4x64xf32>
    %638 = arith.mulf %631, %637 : vector<4x64xf32>
    %639 = tpu.concatenate %616, %638 in 1 : vector<4x64xf32>, vector<4x64xf32> -> vector<4x128xf32>
    %c0_201 = arith.constant 0 : index
    %c0_202 = arith.constant 0 : index
    %640 = vector.load %arg9[%c0_201, %c0_202] : memref<128x32xf32, #tpu.memory_space<vmem>>, vector<128x32xf32>
    %cst_203 = arith.constant dense<0.000000e+00> : vector<4x32xf32>
    %641 = tpu.matmul %639, %640, %cst_203 {dimension_numbers = #tpu.dot_dimension_numbers<[1], [0], [0], [1], [0, 0, 1, 1], [], []>} : vector<4x128xf32>, vector<128x32xf32>, vector<4x32xf32> -> vector<4x32xf32>
    %c0_204 = arith.constant 0 : index
    %c0_205 = arith.constant 0 : index
    %642 = vector.load %arg10[%c0_204, %c0_205] : memref<1x32xf32, #tpu.memory_space<vmem>>, vector<1x32xf32>
    %643 = vector.broadcast %642 : vector<1x32xf32> to vector<4x32xf32>
    %644 = arith.addf %641, %643 : vector<4x32xf32>
    %cst_206 = arith.constant 0.000000e+00 : f32
    %645 = vector.broadcast %cst_206 : f32 to vector<4x32xf32>
    %646 = arith.maximumf %644, %645 : vector<4x32xf32>
    %c0_207 = arith.constant 0 : index
    %c0_208 = arith.constant 0 : index
    %647 = vector.load %arg11[%c0_207, %c0_208] : memref<32x1xf32, #tpu.memory_space<vmem>>, vector<32x1xf32>
    %cst_209 = arith.constant dense<0.000000e+00> : vector<4x1xf32>
    %648 = tpu.matmul %646, %647, %cst_209 {dimension_numbers = #tpu.dot_dimension_numbers<[1], [0], [0], [1], [0, 0, 1, 1], [], []>} : vector<4x32xf32>, vector<32x1xf32>, vector<4x1xf32> -> vector<4x1xf32>
    %c0_210 = arith.constant 0 : index
    %c0_211 = arith.constant 0 : index
    %649 = vector.load %arg12[%c0_210, %c0_211] : memref<1x1xf32, #tpu.memory_space<vmem>>, vector<1x1xf32>
    %650 = vector.broadcast %649 : vector<1x1xf32> to vector<4x1xf32>
    %651 = arith.addf %648, %650 : vector<4x1xf32>
    %c0_212 = arith.constant 0 : index
    %c0_213 = arith.constant 0 : index
    %652 = vector.load %arg13[%c0_212, %c0_213] : memref<4x1xf32, #tpu.memory_space<vmem>>, vector<4x1xf32>
    tpu.vector_store %arg13[%c0_212, %c0_213], %651 {strides = array<i32>} : memref<4x1xf32, #tpu.memory_space<vmem>>, vector<4x1xf32>,
    return
  }
}

</mosaic_0001>

<bundles_post_ra>
// kernel: lstm_energy_forward.1
= control target key start
LH: loop header
LB: loop body
LE: loop exit
PB: predicated region body
PF: predicated region fallthrough
CT: control target
= control target key end

     0   :  { %s10675_s0 = inlined_call_operand.vmem [shape: f32[32,8], index: 0, kind: input, shape index: {}]   ;;  %s10676_s1 = inlined_call_operand.vmem [shape: f32[8,1024], index: 1, kind: input, shape index: {}]   ;;  %s10677_s2 = inlined_call_operand.hbm [shape: f32[256,1024], index: 2, kind: input, shape index: {}]   ;;  %s10678_s3 = inlined_call_operand.vmem [shape: f32[1,1024], index: 3, kind: input, shape index: {}]   ;;  %s10679_s4 = inlined_call_operand.hbm [shape: f32[256,256], index: 4, kind: input, shape index: {}]   ;;  %s10680_s5 = inlined_call_operand.vmem [shape: f32[64,256], index: 5, kind: input, shape index: {}]   ;;  %s10681_s6 = inlined_call_operand.vmem [shape: f32[1,256], index: 6, kind: input, shape index: {}]   ;;  %s10682_s7 = inlined_call_operand.hbm [shape: f32[256,256], index: 7, kind: input, shape index: {}]   ;;  %s10683_s8 = inlined_call_operand.vmem [shape: f32[1,256], index: 8, kind: input, shape index: {}]   ;;  %s10684_s9 = inlined_call_operand.vmem [shape: f32[128,32], index: 9, kind: input, shape index: {}]   ;;  %s10685_s10 = inlined_call_operand.vmem [shape: f32[1,32], index: 10, kind: input, shape index: {}]   ;;  %s10686_s11 = inlined_call_operand.vmem [shape: f32[32,1], index: 11, kind: input, shape index: {}]   ;;  %s10687_s12 = inlined_call_operand.<no memory space> [shape: f32[1,1], index: 12, kind: input, shape index: {}]   ;;  %s10688_s13 = inlined_call_operand.vmem [shape: f32[4,1], index: 13, kind: output, shape index: {}]  }
   0x1   :  { %v18_v0 = vstv %s10687_s12 }
   0x2   :  { %19 = vst [vmem:[#allocation5] sm:$0x1] %v18_v0 }
   0x3   :  { %20 = vsyncpa [#allocation7], 0 }
   0x4   :  { %21 = vsyncpa [#allocation9], 0  ;;  %s9992_s27 = smov [#allocation8]   ;;  %s9922_s14 = scalar_lea.hbm %s10679_s4, 8192 }
   0x5   :  { %s45_s28 = sshll.u32 %s9992_s27, 4  ;;  %p9923_p0 = scmp.ne.s32.totalorder %s10679_s4, %s9922_s14  ;;  %s46_s28 = int_to_ptr.vmem [resolvable:$true] %s45_s28 }
   0x6   :  { %p9926_p1 = scmp.lt.u32.totalorder %s9922_s14, %s10679_s4 }
   0x8   :  { %p9928_p2 = pnand %p9926_p1, %p9923_p0 }
   0xa   :  { %9931 = shalt.err (!%p9928_p2)
}
   0xb   :  { %s9932_s12 = scalar_lea.vmem %s46_s28, 8192  ;;  %p9937_p4 = scmp.lt.s32.totalorder %s46_s28, %s46_s28 }
   0xc   :  { %p9933_p3 = scmp.ne.s32.totalorder %s46_s28, %s9932_s12  ;;  %p9938_p5 = scmp.lt.s32.totalorder %s9932_s12, %s9932_s12 }
   0xe   :  { %p9939_p6 = por %p9938_p5, %p9937_p4 }
  0x10   :  { %p9940_p7 = pnand %p9939_p6, %p9933_p3 }
  0x12   :  { %9943 = shalt.err (!%p9940_p7)
}
  0x13   :  { %s9993_s19 = smov 256   ;;  %s9994_s20 = smov 16  }
  0x14   :  { %51 = dma.hbm_to_vmem [thread:$0]  %s10679_s4, 8192, %s46_s28, [#allocation9], %s9993_s19, %s9993_s19, %s9994_s20  }
  0x15   :  { %s9995_s23 = smov [#allocation6]   ;;  %s9944_s27 = scalar_lea.hbm %s10677_s2, 32768 }
  0x16   :  { %s31_s24 = sshll.u32 %s9995_s23, 4  ;;  %p9945_p8 = scmp.ne.s32.totalorder %s10677_s2, %s9944_s27  ;;  %s32_s24 = int_to_ptr.vmem [resolvable:$true] %s31_s24 }
  0x17   :  { %p9948_p9 = scmp.lt.u32.totalorder %s9944_s27, %s10677_s2 }
  0x19   :  { %p9950_p10 = pnand %p9948_p9, %p9945_p8 }
  0x1b   :  { %9953 = shalt.err (!%p9950_p10)
}
  0x1c   :  { %s9954_s16 = scalar_lea.vmem %s32_s24, 32768  ;;  %p9959_p12 = scmp.lt.s32.totalorder %s32_s24, %s32_s24 }
  0x1d   :  { %p9955_p11 = scmp.ne.s32.totalorder %s32_s24, %s9954_s16  ;;  %p9960_p13 = scmp.lt.s32.totalorder %s9954_s16, %s9954_s16 }
  0x1f   :  { %p9961_p0 = por %p9960_p13, %p9959_p12 }
  0x21   :  { %p9962_p1 = pnand %p9961_p0, %p9955_p11 }
  0x23   :  { %9965 = shalt.err (!%p9962_p1)
}
  0x24   :  { %s9996_s4 = smov 1024   ;;  %s9997_s28 = smov 64  }
  0x25   :  { %37 = dma.hbm_to_vmem [thread:$0]  %s10677_s2, 32768, %s32_s24, [#allocation7], %s9996_s4, %s9996_s4, %s9997_s28  }
  0x26   :  { %s9998_s12 = smov [#allocation10]   ;;  %s9966_s25 = scalar_lea.hbm %s10682_s7, 8192 }
  0x27   :  { %s61_s21 = sshll.u32 %s9998_s12, 4  ;;  %p9967_p2 = scmp.ne.s32.totalorder %s10682_s7, %s9966_s25  ;;  %s62_s21 = int_to_ptr.vmem [resolvable:$true] %s61_s21 }
  0x28   :  { %p9970_p3 = scmp.lt.u32.totalorder %s9966_s25, %s10682_s7 }
  0x2a   :  { %p9972_p4 = pnand %p9970_p3, %p9967_p2 }
  0x2c   :  { %9975 = shalt.err (!%p9972_p4)
}
  0x2d   :  { %s9976_s14 = scalar_lea.vmem %s62_s21, 8192  ;;  %p9981_p6 = scmp.lt.s32.totalorder %s62_s21, %s62_s21 }
  0x2e   :  { %p9977_p5 = scmp.ne.s32.totalorder %s62_s21, %s9976_s14  ;;  %p9982_p7 = scmp.lt.s32.totalorder %s9976_s14, %s9976_s14 }
  0x30   :  { %p9983_p8 = por %p9982_p7, %p9981_p6 }
  0x32   :  { %p9984_p9 = pnand %p9983_p8, %p9977_p5 }
  0x34   :  { %9987 = shalt.err (!%p9984_p9)
}
  0x35   :  { %67 = dma.hbm_to_vmem [thread:$0]  %s10682_s7, 8192, %s62_s21, [#allocation9], %s9993_s19, %s9993_s19, %s9994_s20  }
  0x36   :  { %9988 = dma.done.wait [#allocation7], 32768  }
  0x37   :  { %9989 = vsyncadd [#allocation7], 4294934528 }
  0x38   :  { %9990 = dma.done.wait [#allocation9], 16384  }
  0x39   :  { %9991 = vsyncadd [#allocation9], 4294950912  ;;  %v9999_v1 = vmov 0.0   ;;  %v92_v2 = vld [vmem:[%s10676_s1 + $0x8] sm:$0xff]  ;;  %v91_v3 = vld [vmem:[%s10676_s1] sm:$0xff]  ;;  %vm141_vm0 = vcmask 64512  }
  0x3a   :  { %218 = vmatprep.mubr.f32.mxu0 %v9999_v1  ;;  %224 = vmatprep.mubr.f32.mxu1 %v9999_v1  ;;  %v10129_v4 = vld [vmem:[%s10675_s0] sm:$0xff]  ;;  %v10134_v5 = vld [vmem:[%s10675_s0 + $0x8] sm:$0xff]  ;;  %v94_v6 = vld [vmem:[%s10676_s1 + $0x18] sm:$0xff]  ;;  %vm5760_vm1 = vcmask 523264   ;;  %vm10001_vm2 = vmmov 0   ;;  %vm6970_vm3 = vcmask 261120  }
  0x3b   :  { %154 = vmatprep.subr.mxu0 %v92_v2  ;;  %9546 = vmatprep.subr.mxu1 %v92_v2  ;;  %v93_v7 = vld [vmem:[%s10676_s1 + $0x10] sm:$0xff]  ;;  %v96_v8 = vld [vmem:[%s10676_s1 + $0x28] sm:$0xff]  ;;  %v95_v9 = vld [vmem:[%s10676_s1 + $0x20] sm:$0xff]  ;;  %vm7044_vm4 = vcmask 3072  }
  0x3c   :  { %155 = vmatpush1.msra.mxu0 %v91_v3  ;;  %9547 = vmatpush1.msra.mxu1 %v91_v3  ;;  %v543_v10 = vld [vmem:[#allocation6 + $0x8] sm:$0xff]  ;;  %v542_v13 = vld [vmem:[#allocation6] sm:$0xff]  ;;  %v98_v22 = vld [vmem:[%s10676_s1 + $0x38] sm:$0xff] }
  0x3d   :  { %7052 = vmatmul.mubr.msk.f32.vlgmr.msra.gmra.mrb[0].mxu0 %vm141_vm0, %v10129_v4  ;;  %7053 = vmatmul.mubr.msk.f32.vlgmr.msra.gmra.mrb[0].mxu1 %vm141_vm0, %v10134_v5  ;;  %v551_v11 = vld [vmem:[#allocation6 + $0x48] sm:$0xff]  ;;  %v550_v15 = vld [vmem:[#allocation6 + $0x40] sm:$0xff]  ;;  %v10170_v25 = vld [vmem:[%s10675_s0 + $0x18] sm:$0xff] }
  0x3e   :  { %v10155_v12 = vld [vmem:[%s10675_s0 + $0x10] sm:$0xff]  ;;  %243 = vmatprep.subr.mxu1 %v94_v6  ;;  %332 = vmatprep.subr.mxu0 %v96_v8  ;;  %v7212_v14 = vpack.c.bf16 %v551_v11, %v543_v10  ;;  %v7214_v18 = vpack.c.bf16 %v550_v15, %v542_v13  ;;  %v558_v20 = vld [vmem:[#allocation6 + $0x80] sm:$0xff]  ;;  %v545_v32 = vld [vmem:[#allocation6 + $0x18] sm:$0xff] }
  0x3f   :  { %v559_v16 = vld [vmem:[#allocation6 + $0x88] sm:$0xff]  ;;  %244 = vmatpush1.msra.mxu1 %v93_v7  ;;  %333 = vmatpush1.msra.mxu0 %v95_v9  ;;  %v566_v21 = vld [vmem:[#allocation6 + $0xc0] sm:$0xff]  ;;  %v553_v35 = vld [vmem:[#allocation6 + $0x58] sm:$0xff] }
  0x40   :  { %v567_v17 = vld [vmem:[#allocation6 + $0xc8] sm:$0xff]  ;;  %230 = vmatprep.mubr.f32.mxu1 %v9999_v1  ;;  %396 = vmatprep.mubr.f32.mxu0 %v9999_v1  ;;  %v7218_v26 = vpack.c.bf16 %v566_v21, %v558_v20  ;;  %v574_v28 = vld [vmem:[#allocation6 + $0x100] sm:$0xff]  ;;  %v7276_v39 = vpack.c.bf16 %v553_v35, %v545_v32  ;;  %v544_v56 = vld [vmem:[#allocation6 + $0x10] sm:$0xff] }
  0x41   :  { %v7216_v19 = vpack.c.bf16 %v567_v17, %v559_v16  ;;  %7213 = vmatprep.subr.bf16.mxu0 %v7212_v14  ;;  %7054 = vmatmul.mubr.msk.f32.gmra.mrb[2].mxu1 %vm141_vm0, %v10155_v12  ;;  %v575_v23 = vld [vmem:[#allocation6 + $0x108] sm:$0xff]  ;;  %v582_v29 = vld [vmem:[#allocation6 + $0x140] sm:$0xff]  ;;  %v552_v57 = vld [vmem:[#allocation6 + $0x50] sm:$0xff] }
  0x42   :  { %v583_v24 = vld [vmem:[#allocation6 + $0x148] sm:$0xff]  ;;  %7060 = vmatmul.mubr.msk.f32.vlgmr.msra.gmra.mrb[2].mxu0 %vm141_vm0, %v10129_v4  ;;  %236 = vmatprep.mubr.f32.mxu1 %v9999_v1  ;;  %v7222_v33 = vpack.c.bf16 %v582_v29, %v574_v28  ;;  %v590_v37 = vld [vmem:[#allocation6 + $0x180] sm:$0xff]  ;;  %v561_v60 = vld [vmem:[#allocation6 + $0x98] sm:$0xff]  ;;  %v7278_v0 = vpack.c.bf16 %v552_v57, %v544_v56 }
  0x43   :  { %7215 = vmatpush1.bf16.msra.mxu0 %v7214_v18  ;;  %421 = vmatprep.subr.mxu1 %v98_v22  ;;  %v7220_v27 = vpack.c.bf16 %v583_v24, %v575_v23  ;;  %v591_v30 = vld [vmem:[#allocation6 + $0x188] sm:$0xff]  ;;  %v598_v38 = vld [vmem:[#allocation6 + $0x1c0] sm:$0xff]  ;;  %v569_v61 = vld [vmem:[#allocation6 + $0xd8] sm:$0xff] }
  0x44   :  { %7217 = vmatprep.subr.bf16.mxu0 %v7216_v19  ;;  %402 = vmatprep.mubr.f32.mxu0 %v9999_v1  ;;  %v599_v31 = vld [vmem:[#allocation6 + $0x1c8] sm:$0xff]  ;;  %v7226_v42 = vpack.c.bf16 %v598_v38, %v590_v37  ;;  %v606_v44 = vld [vmem:[#allocation6 + $0x200] sm:$0xff]  ;;  %v7280_v3 = vpack.c.bf16 %v569_v61, %v561_v60  ;;  %v560_v7 = vld [vmem:[#allocation6 + $0x90] sm:$0xff] }
  0x45   :  { %7055 = vmatmul.mubr.msk.f32.gmra.mrb[4].mxu1 %vm141_vm0, %v10170_v25  ;;  %v97_v34 = vld [vmem:[%s10676_s1 + $0x30] sm:$0xff]  ;;  %v7224_v36 = vpack.c.bf16 %v599_v31, %v591_v30  ;;  %v614_v45 = vld [vmem:[#allocation6 + $0x240] sm:$0xff]  ;;  %v577_v11 = vld [vmem:[#allocation6 + $0x118] sm:$0xff] }
  0x46   :  { %307 = vmatprep.mubr.f32.mxu1 %v9999_v1  ;;  %7061 = vmatmul.mubr.msk.f32.gmra.mrb[4].mxu0 %vm141_vm0, %v10134_v5  ;;  %v607_v40 = vld [vmem:[#allocation6 + $0x208] sm:$0xff]  ;;  %v7230_v48 = vpack.c.bf16 %v614_v45, %v606_v44  ;;  %v622_v50 = vld [vmem:[#allocation6 + $0x280] sm:$0xff]  ;;  %v568_v8 = vld [vmem:[#allocation6 + $0xd0] sm:$0xff] }
  0x47   :  { %7219 = vmatpush1.bf16.msra.mxu0 %v7218_v26  ;;  %408 = vmatprep.mubr.f32.mxu0 %v9999_v1  ;;  %v615_v41 = vld [vmem:[#allocation6 + $0x248] sm:$0xff]  ;;  %v630_v51 = vld [vmem:[#allocation6 + $0x2c0] sm:$0xff]  ;;  %v585_v13 = vld [vmem:[#allocation6 + $0x158] sm:$0xff]  ;;  %v7282_v16 = vpack.c.bf16 %v568_v8, %v560_v7 }
  0x48   :  { %7221 = vmatprep.subr.bf16.mxu0 %v7220_v27  ;;  %v7228_v43 = vpack.c.bf16 %v615_v41, %v607_v40  ;;  %v623_v46 = vld [vmem:[#allocation6 + $0x288] sm:$0xff]  ;;  %v7234_v54 = vpack.c.bf16 %v630_v51, %v622_v50  ;;  %v638_v55 = vld [vmem:[#allocation6 + $0x300] sm:$0xff]  ;;  %v7284_v18 = vpack.c.bf16 %v585_v13, %v577_v11  ;;  %v576_v20 = vld [vmem:[#allocation6 + $0x110] sm:$0xff] }
  0x49   :  { %7056 = vmatmul.mubr.msk.f32.vlgmr.msra.gmra.mrb[6].mxu1 %vm141_vm0, %v10129_v4  ;;  %v631_v47 = vld [vmem:[#allocation6 + $0x2c8] sm:$0xff]  ;;  %v646_v59 = vld [vmem:[#allocation6 + $0x340] sm:$0xff]  ;;  %v584_v21 = vld [vmem:[#allocation6 + $0x150] sm:$0xff] }
  0x4a   :  { %422 = vmatpush1.msra.mxu1 %v97_v34  ;;  %313 = vmatprep.mubr.f32.mxu1 %v9999_v1  ;;  %v7232_v49 = vpack.c.bf16 %v631_v47, %v623_v46  ;;  %v639_v52 = vld [vmem:[#allocation6 + $0x308] sm:$0xff]  ;;  %v7238_v2 = vpack.c.bf16 %v646_v59, %v638_v55  ;;  %v654_v6 = vld [vmem:[#allocation6 + $0x380] sm:$0xff]  ;;  %v593_v24 = vld [vmem:[#allocation6 + $0x198] sm:$0xff]  ;;  %v7286_v28 = vpack.c.bf16 %v584_v21, %v576_v20 }
  0x4b   :  { %7223 = vmatpush1.bf16.msra.mxu0 %v7222_v33  ;;  %7277 = vmatprep.subr.bf16.mxu1 %v7276_v39  ;;  %v647_v53 = vld [vmem:[#allocation6 + $0x348] sm:$0xff]  ;;  %v662_v10 = vld [vmem:[#allocation6 + $0x3c0] sm:$0xff]  ;;  %v601_v26 = vld [vmem:[#allocation6 + $0x1d8] sm:$0xff] }
  0x4c   :  { %7225 = vmatprep.subr.bf16.mxu0 %v7224_v36  ;;  %7062 = vmatmul.mubr.msk.f32.gmra.mrb[6].mxu0 %vm141_vm0, %v10155_v12  ;;  %v7236_v58 = vpack.c.bf16 %v647_v53, %v639_v52  ;;  %v655_v62 = vld [vmem:[#allocation6 + $0x388] sm:$0xff]  ;;  %v7242_v17 = vpack.c.bf16 %v662_v10, %v654_v6  ;;  %v670_v19 = vld [vmem:[#allocation6 + $0x400] sm:$0xff]  ;;  %v7288_v30 = vpack.c.bf16 %v601_v26, %v593_v24  ;;  %v592_v32 = vld [vmem:[#allocation6 + $0x190] sm:$0xff] }
  0x4d   :  { %7057 = vmatmul.mubr.msk.f32.gmra.mrb[8].mxu1 %vm141_vm0, %v10134_v5  ;;  %414 = vmatprep.mubr.f32.mxu0 %v9999_v1  ;;  %v663_v63 = vld [vmem:[#allocation6 + $0x3c8] sm:$0xff]  ;;  %v678_v23 = vld [vmem:[#allocation6 + $0x440] sm:$0xff]  ;;  %v600_v33 = vld [vmem:[#allocation6 + $0x1d0] sm:$0xff] }
  0x4e   :  { %319 = vmatprep.mubr.f32.mxu1 %v9999_v1  ;;  %v7240_v9 = vpack.c.bf16 %v663_v63, %v655_v62  ;;  %v671_v14 = vld [vmem:[#allocation6 + $0x408] sm:$0xff]  ;;  %v7246_v29 = vpack.c.bf16 %v678_v23, %v670_v19  ;;  %v686_v31 = vld [vmem:[#allocation6 + $0x480] sm:$0xff]  ;;  %v609_v36 = vld [vmem:[#allocation6 + $0x218] sm:$0xff] }
  0x4f   :  { %7227 = vmatpush1.bf16.msra.mxu0 %v7226_v42  ;;  %v679_v15 = vld [vmem:[#allocation6 + $0x448] sm:$0xff]  ;;  %v694_v35 = vld [vmem:[#allocation6 + $0x4c0] sm:$0xff]  ;;  %v617_v37 = vld [vmem:[#allocation6 + $0x258] sm:$0xff] }
  0x50   :  { %7229 = vmatprep.subr.bf16.mxu0 %v7228_v43  ;;  %7063 = vmatmul.mubr.msk.f32.gmra.mrb[8].mxu0 %vm141_vm0, %v10170_v25  ;;  %v7244_v22 = vpack.c.bf16 %v679_v15, %v671_v14  ;;  %v687_v27 = vld [vmem:[#allocation6 + $0x488] sm:$0xff]  ;;  %v7250_v40 = vpack.c.bf16 %v694_v35, %v686_v31  ;;  %v7292_v41 = vpack.c.bf16 %v617_v37, %v609_v36  ;;  %v702_v42 = vld [vmem:[#allocation6 + $0x500] sm:$0xff]  ;;  %v608_v43 = vld [vmem:[#allocation6 + $0x210] sm:$0xff] }
  0x51   :  { %7058 = vmatmul.mubr.msk.f32.gmra.mrb[10].mxu1 %vm141_vm0, %v10155_v12  ;;  %862 = vmatprep.mubr.f32.mxu0 %v9999_v1  ;;  %v703_v38 = vld [vmem:[#allocation6 + $0x508] sm:$0xff]  ;;  %v616_v44 = vld [vmem:[#allocation6 + $0x250] sm:$0xff]  ;;  %v710_v46 = vld [vmem:[#allocation6 + $0x540] sm:$0xff] }
  0x52   :  { %325 = vmatprep.mubr.f32.mxu1 %v9999_v1  ;;  %v711_v39 = vld [vmem:[#allocation6 + $0x548] sm:$0xff]  ;;  %v625_v47 = vld [vmem:[#allocation6 + $0x298] sm:$0xff]  ;;  %v7254_v51 = vpack.c.bf16 %v710_v46, %v702_v42  ;;  %v718_v53 = vld [vmem:[#allocation6 + $0x580] sm:$0xff] }
  0x53   :  { %7231 = vmatpush1.bf16.msra.mxu0 %v7230_v48  ;;  %v7252_v45 = vpack.c.bf16 %v711_v39, %v703_v38  ;;  %v633_v48 = vld [vmem:[#allocation6 + $0x2d8] sm:$0xff]  ;;  %v727_v50 = vld [vmem:[#allocation6 + $0x5c8] sm:$0xff]  ;;  %v632_v55 = vld [vmem:[#allocation6 + $0x2d0] sm:$0xff] }
  0x54   :  { %7233 = vmatprep.subr.bf16.mxu0 %v7232_v49  ;;  %v719_v49 = vld [vmem:[#allocation6 + $0x588] sm:$0xff]  ;;  %v7296_v52 = vpack.c.bf16 %v633_v48, %v625_v47  ;;  %v726_v57 = vld [vmem:[#allocation6 + $0x5c0] sm:$0xff]  ;;  %v649_v59 = vld [vmem:[#allocation6 + $0x358] sm:$0xff] }
  0x55   :  { %7059 = vmatmul.mubr.msk.f32.gmra.mrb[12].mxu1 %vm141_vm0, %v10170_v25  ;;  %v7256_v56 = vpack.c.bf16 %v727_v50, %v719_v49  ;;  %v735_v60 = vld [vmem:[#allocation6 + $0x608] sm:$0xff]  ;;  %v7258_v62 = vpack.c.bf16 %v726_v57, %v718_v53  ;;  %v742_v7 = vld [vmem:[#allocation6 + $0x640] sm:$0xff]  ;;  %v657_v8 = vld [vmem:[#allocation6 + $0x398] sm:$0xff] }
  0x56   :  { %485 = vmatprep.mubr.f32.mxu1 %v9999_v1  ;;  %v743_v61 = vld [vmem:[#allocation6 + $0x648] sm:$0xff]  ;;  %v758_v20 = vld [vmem:[#allocation6 + $0x6c0] sm:$0xff]  ;;  %v673_v21 = vld [vmem:[#allocation6 + $0x418] sm:$0xff] }
  0x57   :  { %7235 = vmatpush1.bf16.msra.mxu0 %v7234_v54  ;;  %v624_v54 = vld [vmem:[#allocation6 + $0x290] sm:$0xff]  ;;  %v7260_v6 = vpack.c.bf16 %v743_v61, %v735_v60  ;;  %v751_v10 = vld [vmem:[#allocation6 + $0x688] sm:$0xff] }
  0x58   :  { %7237 = vmatprep.subr.bf16.mxu0 %v7236_v58  ;;  %v641_v58 = vld [vmem:[#allocation6 + $0x318] sm:$0xff]  ;;  %v759_v11 = vld [vmem:[#allocation6 + $0x6c8] sm:$0xff] }
  0x59   :  { %7064 = vmatmul.mubr.msk.f32.vlgmr.msra.gmra.mrb[14].mxu1 %vm141_vm0, %v10129_v4  ;;  %v695_v4 = vld [vmem:[#allocation6 + $0x4c8] sm:$0xff]  ;;  %v7300_v63 = vpack.c.bf16 %v649_v59, %v641_v58  ;;  %v7264_v19 = vpack.c.bf16 %v759_v11, %v751_v10 }
  0x5a   :  { %7279 = vmatpush1.bf16.msra.mxu1 %v7278_v0  ;;  %491 = vmatprep.mubr.f32.mxu1 %v9999_v1  ;;  %v7248_v34 = vpack.c.bf16 %v695_v4, %v687_v27  ;;  %v734_v0 = vld [vmem:[#allocation6 + $0x600] sm:$0xff]  ;;  %v767_v23 = vld [vmem:[#allocation6 + $0x708] sm:$0xff] }
  0x5b   :  { %7239 = vmatpush1.bf16.msra.mxu0 %v7238_v2  ;;  %7281 = vmatprep.subr.bf16.mxu1 %v7280_v3  ;;  %v640_v2 = vld [vmem:[#allocation6 + $0x310] sm:$0xff]  ;;  %v7262_v14 = vpack.c.bf16 %v742_v7, %v734_v0  ;;  %v775_v24 = vld [vmem:[#allocation6 + $0x748] sm:$0xff] }
  0x5c   :  { %7241 = vmatprep.subr.bf16.mxu0 %v7240_v9  ;;  %v648_v3 = vld [vmem:[#allocation6 + $0x350] sm:$0xff]  ;;  %v665_v9 = vld [vmem:[#allocation6 + $0x3d8] sm:$0xff]  ;;  %v7268_v31 = vpack.c.bf16 %v775_v24, %v767_v23  ;;  %v783_v35 = vld [vmem:[#allocation6 + $0x788] sm:$0xff] }
  0x5d   :  { %7065 = vmatmul.mubr.msk.f32.gmra.mrb[16].mxu1 %vm141_vm0, %v10134_v5  ;;  %v7290_v5 = vpack.c.bf16 %v600_v33, %v592_v32  ;;  %v7302_v13 = vpack.c.bf16 %v648_v3, %v640_v2  ;;  %v7304_v15 = vpack.c.bf16 %v665_v9, %v657_v8  ;;  %v774_v32 = vld [vmem:[#allocation6 + $0x740] sm:$0xff]  ;;  %v689_v33 = vld [vmem:[#allocation6 + $0x498] sm:$0xff]  ;;  %v791_v36 = vld [vmem:[#allocation6 + $0x7c8] sm:$0xff] }
  0x5e   :  { %7283 = vmatpush1.bf16.msra.mxu1 %v7282_v16  ;;  %497 = vmatprep.mubr.f32.mxu1 %v9999_v1  ;;  %v750_v16 = vld [vmem:[#allocation6 + $0x680] sm:$0xff]  ;;  %v7272_v42 = vpack.c.bf16 %v791_v36, %v783_v35  ;;  %v547_v46 = vld [vmem:[#allocation6 + $0x28] sm:$0xff]  ;;  %v737_v3 = vld [vmem:[#allocation6 + $0x618] sm:$0xff] }
  0x5f   :  { %7243 = vmatpush1.bf16.msra.mxu0 %v7242_v17  ;;  %7285 = vmatprep.subr.bf16.mxu1 %v7284_v18  ;;  %v656_v17 = vld [vmem:[#allocation6 + $0x390] sm:$0xff]  ;;  %v7266_v27 = vpack.c.bf16 %v758_v20, %v750_v16  ;;  %v555_v47 = vld [vmem:[#allocation6 + $0x68] sm:$0xff]  ;;  %v570_v2 = vld [vmem:[#allocation6 + $0xe0] sm:$0xff] }
  0x60   :  { %7245 = vmatprep.subr.bf16.mxu0 %v7244_v22  ;;  %v664_v18 = vld [vmem:[#allocation6 + $0x3d0] sm:$0xff]  ;;  %v681_v22 = vld [vmem:[#allocation6 + $0x458] sm:$0xff]  ;;  %v7340_v53 = vpack.c.bf16 %v555_v47, %v547_v46  ;;  %v563_v57 = vld [vmem:[#allocation6 + $0xa8] sm:$0xff] }
  0x61   :  { %7066 = vmatmul.mubr.msk.f32.gmra.mrb[18].mxu1 %vm141_vm0, %v10155_v12  ;;  %v7294_v12 = vpack.c.bf16 %v616_v44, %v608_v43  ;;  %v7306_v26 = vpack.c.bf16 %v664_v18, %v656_v17  ;;  %v7308_v4 = vpack.c.bf16 %v681_v22, %v673_v21  ;;  %v790_v43 = vld [vmem:[#allocation6 + $0x7c0] sm:$0xff]  ;;  %v705_v44 = vld [vmem:[#allocation6 + $0x518] sm:$0xff]  ;;  %v571_v58 = vld [vmem:[#allocation6 + $0xe8] sm:$0xff] }
  0x62   :  { %7287 = vmatpush1.bf16.msra.mxu1 %v7286_v28  ;;  %503 = vmatprep.mubr.f32.mxu1 %v9999_v1  ;;  %v766_v28 = vld [vmem:[#allocation6 + $0x700] sm:$0xff]  ;;  %v7344_v0 = vpack.c.bf16 %v571_v58, %v563_v57  ;;  %v579_v7 = vld [vmem:[#allocation6 + $0x128] sm:$0xff]  ;;  %v753_v18 = vld [vmem:[#allocation6 + $0x698] sm:$0xff] }
  0x63   :  { %7247 = vmatpush1.bf16.msra.mxu0 %v7246_v29  ;;  %7289 = vmatprep.subr.bf16.mxu1 %v7288_v30  ;;  %v672_v29 = vld [vmem:[#allocation6 + $0x410] sm:$0xff]  ;;  %v7270_v38 = vpack.c.bf16 %v774_v32, %v766_v28  ;;  %v587_v8 = vld [vmem:[#allocation6 + $0x168] sm:$0xff]  ;;  %v586_v17 = vld [vmem:[#allocation6 + $0x160] sm:$0xff] }
  0x64   :  { %7249 = vmatprep.subr.bf16.mxu0 %v7248_v34  ;;  %v680_v30 = vld [vmem:[#allocation6 + $0x450] sm:$0xff]  ;;  %v697_v34 = vld [vmem:[#allocation6 + $0x4d8] sm:$0xff]  ;;  %v7348_v16 = vpack.c.bf16 %v587_v8, %v579_v7  ;;  %v595_v20 = vld [vmem:[#allocation6 + $0x1a8] sm:$0xff] }
  0x65   :  { %7067 = vmatmul.mubr.msk.f32.gmra.mrb[20].mxu1 %vm141_vm0, %v10170_v25  ;;  %v7298_v25 = vpack.c.bf16 %v632_v55, %v624_v54  ;;  %v7310_v37 = vpack.c.bf16 %v680_v30, %v672_v29  ;;  %v7312_v39 = vpack.c.bf16 %v697_v34, %v689_v33  ;;  %v554_v54 = vld [vmem:[#allocation6 + $0x60] sm:$0xff]  ;;  %v721_v55 = vld [vmem:[#allocation6 + $0x598] sm:$0xff]  ;;  %v603_v21 = vld [vmem:[#allocation6 + $0x1e8] sm:$0xff] }
  0x66   :  { %7291 = vmatpush1.bf16.msra.mxu1 %v7290_v5  ;;  %933 = vmatprep.mubr.f32.mxu1 %v9999_v1  ;;  %v782_v5 = vld [vmem:[#allocation6 + $0x780] sm:$0xff]  ;;  %v7352_v28 = vpack.c.bf16 %v603_v21, %v595_v20  ;;  %v769_v30 = vld [vmem:[#allocation6 + $0x718] sm:$0xff]  ;;  %v611_v32 = vld [vmem:[#allocation6 + $0x228] sm:$0xff] }
  0x67   :  { %7251 = vmatpush1.bf16.msra.mxu0 %v7250_v40  ;;  %7293 = vmatprep.subr.bf16.mxu1 %v7292_v41  ;;  %v688_v40 = vld [vmem:[#allocation6 + $0x490] sm:$0xff]  ;;  %v7274_v49 = vpack.c.bf16 %v790_v43, %v782_v5  ;;  %v602_v29 = vld [vmem:[#allocation6 + $0x1e0] sm:$0xff]  ;;  %v619_v33 = vld [vmem:[#allocation6 + $0x268] sm:$0xff] }
  0x68   :  { %7253 = vmatprep.subr.bf16.mxu0 %v7252_v45  ;;  %v696_v41 = vld [vmem:[#allocation6 + $0x4d0] sm:$0xff]  ;;  %v713_v45 = vld [vmem:[#allocation6 + $0x558] sm:$0xff]  ;;  %v7356_v5 = vpack.c.bf16 %v619_v33, %v611_v32  ;;  %v627_v43 = vld [vmem:[#allocation6 + $0x2a8] sm:$0xff] }
  0x69   :  { %v7314_v48 = vpack.c.bf16 %v696_v41, %v688_v40  ;;  %v7316_v50 = vpack.c.bf16 %v713_v45, %v705_v44  ;;  %v618_v40 = vld [vmem:[#allocation6 + $0x260] sm:$0xff]  ;;  %v785_v41 = vld [vmem:[#allocation6 + $0x798] sm:$0xff]  ;;  %v635_v44 = vld [vmem:[#allocation6 + $0x2e8] sm:$0xff] }
  0x6a   :  { %7295 = vmatpush1.bf16.msra.mxu1 %v7294_v12  ;;  %v704_v12 = vld [vmem:[#allocation6 + $0x510] sm:$0xff] }
  0x6b   :  { %7255 = vmatpush1.bf16.msra.mxu0 %v7254_v51  ;;  %7297 = vmatprep.subr.bf16.mxu1 %v7296_v52  ;;  %v712_v51 = vld [vmem:[#allocation6 + $0x550] sm:$0xff]  ;;  %v546_v52 = vld [vmem:[#allocation6 + $0x20] sm:$0xff] }
  0x6c   :  { %7257 = vmatprep.subr.bf16.mxu0 %v7256_v56  ;;  %v729_v56 = vld [vmem:[#allocation6 + $0x5d8] sm:$0xff]  ;;  %v7318_v59 = vpack.c.bf16 %v712_v51, %v704_v12  ;;  %v7342_v60 = vpack.c.bf16 %v554_v54, %v546_v52  ;;  %v7360_v12 = vpack.c.bf16 %v635_v44, %v627_v43  ;;  %v634_v51 = vld [vmem:[#allocation6 + $0x2e0] sm:$0xff]  ;;  %v643_v54 = vld [vmem:[#allocation6 + $0x328] sm:$0xff] }
  0x6d   :  { %v7320_v61 = vpack.c.bf16 %v729_v56, %v721_v55  ;;  %v549_v52 = vld [vmem:[#allocation6 + $0x38] sm:$0xff]  ;;  %v651_v55 = vld [vmem:[#allocation6 + $0x368] sm:$0xff] }
  0x6e   :  { %7299 = vmatpush1.bf16.msra.mxu1 %v7298_v25  ;;  %v720_v25 = vld [vmem:[#allocation6 + $0x590] sm:$0xff] }
  0x6f   :  { %7259 = vmatpush1.bf16.msra.mxu0 %v7258_v62  ;;  %7301 = vmatprep.subr.bf16.mxu1 %v7300_v63  ;;  %v728_v62 = vld [vmem:[#allocation6 + $0x5d0] sm:$0xff]  ;;  %v562_v63 = vld [vmem:[#allocation6 + $0xa0] sm:$0xff] }
  0x70   :  { %7261 = vmatprep.subr.bf16.mxu0 %v7260_v6  ;;  %v745_v6 = vld [vmem:[#allocation6 + $0x658] sm:$0xff]  ;;  %v7322_v9 = vpack.c.bf16 %v728_v62, %v720_v25  ;;  %v7346_v10 = vpack.c.bf16 %v570_v2, %v562_v63  ;;  %v7364_v25 = vpack.c.bf16 %v651_v55, %v643_v54  ;;  %v650_v62 = vld [vmem:[#allocation6 + $0x360] sm:$0xff]  ;;  %v659_v2 = vld [vmem:[#allocation6 + $0x3a8] sm:$0xff] }
  0x71   :  { %v7324_v11 = vpack.c.bf16 %v745_v6, %v737_v3  ;;  %v565_v63 = vld [vmem:[#allocation6 + $0xb8] sm:$0xff]  ;;  %v667_v3 = vld [vmem:[#allocation6 + $0x3e8] sm:$0xff] }
  0x72   :  { %7303 = vmatpush1.bf16.msra.mxu1 %v7302_v13  ;;  %v736_v13 = vld [vmem:[#allocation6 + $0x610] sm:$0xff] }
  0x73   :  { %7263 = vmatpush1.bf16.msra.mxu0 %v7262_v14  ;;  %7305 = vmatprep.subr.bf16.mxu1 %v7304_v15  ;;  %v744_v14 = vld [vmem:[#allocation6 + $0x650] sm:$0xff]  ;;  %v578_v15 = vld [vmem:[#allocation6 + $0x120] sm:$0xff] }
  0x74   :  { %7265 = vmatprep.subr.bf16.mxu0 %v7264_v19  ;;  %v761_v19 = vld [vmem:[#allocation6 + $0x6d8] sm:$0xff]  ;;  %v7326_v22 = vpack.c.bf16 %v744_v14, %v736_v13  ;;  %v7350_v23 = vpack.c.bf16 %v586_v17, %v578_v15  ;;  %v7368_v13 = vpack.c.bf16 %v667_v3, %v659_v2  ;;  %v666_v14 = vld [vmem:[#allocation6 + $0x3e0] sm:$0xff]  ;;  %v675_v17 = vld [vmem:[#allocation6 + $0x428] sm:$0xff] }
  0x75   :  { %v7328_v24 = vpack.c.bf16 %v761_v19, %v753_v18  ;;  %v581_v15 = vld [vmem:[#allocation6 + $0x138] sm:$0xff]  ;;  %v683_v18 = vld [vmem:[#allocation6 + $0x468] sm:$0xff] }
  0x76   :  { %7307 = vmatpush1.bf16.msra.mxu1 %v7306_v26  ;;  %v752_v26 = vld [vmem:[#allocation6 + $0x690] sm:$0xff] }
  0x77   :  { %7267 = vmatpush1.bf16.msra.mxu0 %v7266_v27  ;;  %7309 = vmatprep.subr.bf16.mxu1 %v7308_v4  ;;  %v760_v27 = vld [vmem:[#allocation6 + $0x6d0] sm:$0xff]  ;;  %v594_v4 = vld [vmem:[#allocation6 + $0x1a0] sm:$0xff] }
  0x78   :  { %7269 = vmatprep.subr.bf16.mxu0 %v7268_v31  ;;  %v777_v31 = vld [vmem:[#allocation6 + $0x758] sm:$0xff]  ;;  %v7330_v34 = vpack.c.bf16 %v760_v27, %v752_v26  ;;  %v7354_v35 = vpack.c.bf16 %v602_v29, %v594_v4  ;;  %v7372_v26 = vpack.c.bf16 %v683_v18, %v675_v17  ;;  %v682_v27 = vld [vmem:[#allocation6 + $0x460] sm:$0xff]  ;;  %v691_v29 = vld [vmem:[#allocation6 + $0x4a8] sm:$0xff] }
  0x79   :  { %v7332_v36 = vpack.c.bf16 %v777_v31, %v769_v30  ;;  %v597_v4 = vld [vmem:[#allocation6 + $0x1b8] sm:$0xff]  ;;  %v699_v30 = vld [vmem:[#allocation6 + $0x4e8] sm:$0xff] }
  0x7a   :  { %7311 = vmatpush1.bf16.msra.mxu1 %v7310_v37  ;;  %v768_v37 = vld [vmem:[#allocation6 + $0x710] sm:$0xff] }
  0x7b   :  { %7271 = vmatpush1.bf16.msra.mxu0 %v7270_v38  ;;  %7313 = vmatprep.subr.bf16.mxu1 %v7312_v39  ;;  %v776_v38 = vld [vmem:[#allocation6 + $0x750] sm:$0xff]  ;;  %v610_v39 = vld [vmem:[#allocation6 + $0x220] sm:$0xff] }
  0x7c   :  { %7273 = vmatprep.subr.bf16.mxu0 %v7272_v42  ;;  %v793_v42 = vld [vmem:[#allocation6 + $0x7d8] sm:$0xff]  ;;  %v7334_v45 = vpack.c.bf16 %v776_v38, %v768_v37  ;;  %v7358_v46 = vpack.c.bf16 %v618_v40, %v610_v39  ;;  %v7376_v37 = vpack.c.bf16 %v699_v30, %v691_v29  ;;  %v698_v38 = vld [vmem:[#allocation6 + $0x4e0] sm:$0xff]  ;;  %v707_v40 = vld [vmem:[#allocation6 + $0x528] sm:$0xff] }
  0x7d   :  { %v7336_v47 = vpack.c.bf16 %v793_v42, %v785_v41  ;;  %v613_v39 = vld [vmem:[#allocation6 + $0x238] sm:$0xff]  ;;  %v715_v41 = vld [vmem:[#allocation6 + $0x568] sm:$0xff] }
  0x7e   :  { %7315 = vmatpush1.bf16.msra.mxu1 %v7314_v48  ;;  %v784_v48 = vld [vmem:[#allocation6 + $0x790] sm:$0xff] }
  0x7f   :  { %7275 = vmatpush1.bf16.msra.mxu0 %v7274_v49  ;;  %7317 = vmatprep.subr.bf16.mxu1 %v7316_v50  ;;  %v792_v49 = vld [vmem:[#allocation6 + $0x7d0] sm:$0xff]  ;;  %v626_v50 = vld [vmem:[#allocation6 + $0x2a0] sm:$0xff] }
  0x80   :  { %7341 = vmatprep.subr.bf16.mxu0 %v7340_v53  ;;  %v557_v53 = vld [vmem:[#allocation6 + $0x78] sm:$0xff]  ;;  %v7338_v56 = vpack.c.bf16 %v792_v49, %v784_v48  ;;  %v7362_v57 = vpack.c.bf16 %v634_v51, %v626_v50  ;;  %v7380_v48 = vpack.c.bf16 %v715_v41, %v707_v40  ;;  %v714_v49 = vld [vmem:[#allocation6 + $0x560] sm:$0xff]  ;;  %v723_v51 = vld [vmem:[#allocation6 + $0x5a8] sm:$0xff] }
  0x81   :  { %v7404_v58 = vpack.c.bf16 %v557_v53, %v549_v52  ;;  %v629_v50 = vld [vmem:[#allocation6 + $0x2b8] sm:$0xff]  ;;  %v731_v52 = vld [vmem:[#allocation6 + $0x5e8] sm:$0xff] }
  0x82   :  { %863 = vmatmul.mubr.f32.vlgmr.msra.gmra.mrb[10].mxu0 %v9999_v1  ;;  %7319 = vmatpush1.bf16.msra.mxu1 %v7318_v59  ;;  %v642_v59 = vld [vmem:[#allocation6 + $0x320] sm:$0xff] }
  0x83   :  { %7343 = vmatpush1.bf16.msra.mxu0 %v7342_v60  ;;  %7321 = vmatprep.subr.bf16.mxu1 %v7320_v61  ;;  %v548_v60 = vld [vmem:[#allocation6 + $0x30] sm:$0xff]  ;;  %v7366_v7 = vpack.c.bf16 %v650_v62, %v642_v59  ;;  %v7384_v59 = vpack.c.bf16 %v731_v52, %v723_v51  ;;  %v739_v62 = vld [vmem:[#allocation6 + $0x628] sm:$0xff] }
  0x84   :  { %7345 = vmatprep.subr.bf16.mxu0 %v7344_v0  ;;  %1004 = vmatprep.mubr.f32.mxu0 %v9999_v1  ;;  %v556_v61 = vld [vmem:[#allocation6 + $0x70] sm:$0xff]  ;;  %v573_v0 = vld [vmem:[#allocation6 + $0xf8] sm:$0xff] }
  0x85   :  { %v7406_v6 = vpack.c.bf16 %v556_v61, %v548_v60  ;;  %v7408_v8 = vpack.c.bf16 %v573_v0, %v565_v63  ;;  %v730_v60 = vld [vmem:[#allocation6 + $0x5e0] sm:$0xff]  ;;  %v645_v61 = vld [vmem:[#allocation6 + $0x338] sm:$0xff]  ;;  %v747_v63 = vld [vmem:[#allocation6 + $0x668] sm:$0xff] }
  0x86   :  { %7323 = vmatpush1.bf16.msra.mxu1 %v7322_v9  ;;  %v658_v9 = vld [vmem:[#allocation6 + $0x3a0] sm:$0xff]  ;;  %v708_v51 = vld [vmem:[#allocation6 + $0x530] sm:$0xff] }
  0x87   :  { %7347 = vmatpush1.bf16.msra.mxu0 %v7346_v10  ;;  %7325 = vmatprep.subr.bf16.mxu1 %v7324_v11  ;;  %v564_v10 = vld [vmem:[#allocation6 + $0xb0] sm:$0xff]  ;;  %v7370_v20 = vpack.c.bf16 %v666_v14, %v658_v9  ;;  %v7388_v9 = vpack.c.bf16 %v747_v63, %v739_v62  ;;  %v755_v14 = vld [vmem:[#allocation6 + $0x6a8] sm:$0xff] }
  0x88   :  { %7349 = vmatprep.subr.bf16.mxu0 %v7348_v16  ;;  %v572_v11 = vld [vmem:[#allocation6 + $0xf0] sm:$0xff]  ;;  %v589_v16 = vld [vmem:[#allocation6 + $0x178] sm:$0xff] }
  0x89   :  { %v7410_v19 = vpack.c.bf16 %v572_v11, %v564_v10  ;;  %v7412_v21 = vpack.c.bf16 %v589_v16, %v581_v15  ;;  %v746_v10 = vld [vmem:[#allocation6 + $0x660] sm:$0xff]  ;;  %v661_v11 = vld [vmem:[#allocation6 + $0x3b8] sm:$0xff]  ;;  %v763_v15 = vld [vmem:[#allocation6 + $0x6e8] sm:$0xff] }
  0x8a   :  { %7327 = vmatpush1.bf16.msra.mxu1 %v7326_v22  ;;  %v674_v22 = vld [vmem:[#allocation6 + $0x420] sm:$0xff]  ;;  %v716_v52 = vld [vmem:[#allocation6 + $0x570] sm:$0xff] }
  0x8b   :  { %7351 = vmatpush1.bf16.msra.mxu0 %v7350_v23  ;;  %7329 = vmatprep.subr.bf16.mxu1 %v7328_v24  ;;  %v580_v23 = vld [vmem:[#allocation6 + $0x130] sm:$0xff]  ;;  %v7374_v32 = vpack.c.bf16 %v682_v27, %v674_v22  ;;  %v7392_v22 = vpack.c.bf16 %v763_v15, %v755_v14  ;;  %v771_v27 = vld [vmem:[#allocation6 + $0x728] sm:$0xff] }
  0x8c   :  { %7353 = vmatprep.subr.bf16.mxu0 %v7352_v28  ;;  %v588_v24 = vld [vmem:[#allocation6 + $0x170] sm:$0xff]  ;;  %v605_v28 = vld [vmem:[#allocation6 + $0x1f8] sm:$0xff] }
  0x8d   :  { %v7414_v31 = vpack.c.bf16 %v588_v24, %v580_v23  ;;  %v7416_v33 = vpack.c.bf16 %v605_v28, %v597_v4  ;;  %v762_v23 = vld [vmem:[#allocation6 + $0x6e0] sm:$0xff]  ;;  %v677_v24 = vld [vmem:[#allocation6 + $0x438] sm:$0xff]  ;;  %v779_v4 = vld [vmem:[#allocation6 + $0x768] sm:$0xff] }
  0x8e   :  { %7331 = vmatpush1.bf16.msra.mxu1 %v7330_v34  ;;  %v690_v34 = vld [vmem:[#allocation6 + $0x4a0] sm:$0xff]  ;;  %v740_v62 = vld [vmem:[#allocation6 + $0x630] sm:$0xff] }
  0x8f   :  { %7355 = vmatpush1.bf16.msra.mxu0 %v7354_v35  ;;  %7333 = vmatprep.subr.bf16.mxu1 %v7332_v36  ;;  %v596_v35 = vld [vmem:[#allocation6 + $0x1b0] sm:$0xff]  ;;  %v7378_v43 = vpack.c.bf16 %v698_v38, %v690_v34  ;;  %v7396_v34 = vpack.c.bf16 %v779_v4, %v771_v27  ;;  %v787_v38 = vld [vmem:[#allocation6 + $0x7a8] sm:$0xff]  ;;  %v1174_v4 = vld [vmem:[#allocation6 + $0x58] sm:$0xff] }
  0x90   :  { %7357 = vmatprep.subr.bf16.mxu0 %v7356_v5  ;;  %v604_v36 = vld [vmem:[#allocation6 + $0x1f0] sm:$0xff]  ;;  %v621_v5 = vld [vmem:[#allocation6 + $0x278] sm:$0xff] }
  0x91   :  { %v7418_v42 = vpack.c.bf16 %v604_v36, %v596_v35  ;;  %v7420_v44 = vpack.c.bf16 %v621_v5, %v613_v39  ;;  %v778_v35 = vld [vmem:[#allocation6 + $0x760] sm:$0xff]  ;;  %v693_v36 = vld [vmem:[#allocation6 + $0x4b8] sm:$0xff]  ;;  %v795_v39 = vld [vmem:[#allocation6 + $0x7e8] sm:$0xff] }
  0x92   :  { %7335 = vmatpush1.bf16.msra.mxu1 %v7334_v45  ;;  %v706_v45 = vld [vmem:[#allocation6 + $0x520] sm:$0xff]  ;;  %v748_v63 = vld [vmem:[#allocation6 + $0x670] sm:$0xff] }
  0x93   :  { %7359 = vmatpush1.bf16.msra.mxu0 %v7358_v46  ;;  %7337 = vmatprep.subr.bf16.mxu1 %v7336_v47  ;;  %v612_v46 = vld [vmem:[#allocation6 + $0x230] sm:$0xff]  ;;  %v7382_v54 = vpack.c.bf16 %v714_v49, %v706_v45  ;;  %v7400_v45 = vpack.c.bf16 %v795_v39, %v787_v38  ;;  %v10226_v38 = vld [vmem:[%s10678_s3] sm:$0xff] }
  0x94   :  { %7361 = vmatprep.subr.bf16.mxu0 %v7360_v12  ;;  %v620_v47 = vld [vmem:[#allocation6 + $0x270] sm:$0xff]  ;;  %v637_v12 = vld [vmem:[#allocation6 + $0x2f8] sm:$0xff] }
  0x95   :  { %v7422_v53 = vpack.c.bf16 %v620_v47, %v612_v46  ;;  %v7424_v55 = vpack.c.bf16 %v637_v12, %v629_v50  ;;  %v794_v46 = vld [vmem:[#allocation6 + $0x7e0] sm:$0xff]  ;;  %v709_v47 = vld [vmem:[#allocation6 + $0x538] sm:$0xff]  ;;  %v772_v14 = vld [vmem:[#allocation6 + $0x730] sm:$0xff] }
  0x96   :  { %7339 = vmatpush1.bf16.msra.mxu1 %v7338_v56  ;;  %v722_v56 = vld [vmem:[#allocation6 + $0x5a0] sm:$0xff]  ;;  %v780_v15 = vld [vmem:[#allocation6 + $0x770] sm:$0xff] }
  0x97   :  { %7363 = vmatpush1.bf16.msra.mxu0 %v7362_v57  ;;  %7405 = vmatprep.subr.bf16.mxu1 %v7404_v58  ;;  %v628_v57 = vld [vmem:[#allocation6 + $0x2b0] sm:$0xff]  ;;  %v7386_v2 = vpack.c.bf16 %v730_v60, %v722_v56  ;;  %v749_v60 = vld [vmem:[#allocation6 + $0x678] sm:$0xff] }
  0x98   :  { %7365 = vmatprep.subr.bf16.mxu0 %v7364_v25  ;;  %v636_v58 = vld [vmem:[#allocation6 + $0x2f0] sm:$0xff]  ;;  %v653_v25 = vld [vmem:[#allocation6 + $0x378] sm:$0xff] }
  0x99   :  { %934 = vmatmul.mubr.f32.vlgmr.msra.gmra.mrb[22].mxu1 %v9999_v1  ;;  %v7426_v0 = vpack.c.bf16 %v636_v58, %v628_v57  ;;  %v7428_v3 = vpack.c.bf16 %v653_v25, %v645_v61  ;;  %v724_v57 = vld [vmem:[#allocation6 + $0x5b0] sm:$0xff] }
  0x9a   :  { %7407 = vmatpush1.bf16.msra.mxu1 %v7406_v6  ;;  %1075 = vmatprep.mubr.f32.mxu1 %v9999_v1  ;;  %v738_v6 = vld [vmem:[#allocation6 + $0x620] sm:$0xff]  ;;  %v732_v58 = vld [vmem:[#allocation6 + $0x5f0] sm:$0xff] }
  0x9b   :  { %7367 = vmatpush1.bf16.msra.mxu0 %v7366_v7  ;;  %7409 = vmatprep.subr.bf16.mxu1 %v7408_v8  ;;  %v644_v7 = vld [vmem:[#allocation6 + $0x330] sm:$0xff]  ;;  %v7390_v17 = vpack.c.bf16 %v746_v10, %v738_v6  ;;  %v7450_v61 = vpack.c.bf16 %v732_v58, %v724_v57  ;;  %v781_v10 = vld [vmem:[#allocation6 + $0x778] sm:$0xff]  ;;  %v1179_v57 = vld [vmem:[#allocation6 + $0x80] sm:$0xff] }
  0x9c   :  { %7369 = vmatprep.subr.bf16.mxu0 %v7368_v13  ;;  %v652_v8 = vld [vmem:[#allocation6 + $0x370] sm:$0xff]  ;;  %v669_v13 = vld [vmem:[#allocation6 + $0x3f8] sm:$0xff]  ;;  %v1187_v58 = vld [vmem:[#allocation6 + $0xc0] sm:$0xff] }
  0x9d   :  { %v7430_v16 = vpack.c.bf16 %v652_v8, %v644_v7  ;;  %v7432_v18 = vpack.c.bf16 %v669_v13, %v661_v11  ;;  %v756_v7 = vld [vmem:[#allocation6 + $0x6b0] sm:$0xff] }
  0x9e   :  { %7411 = vmatpush1.bf16.msra.mxu1 %v7410_v19  ;;  %v754_v19 = vld [vmem:[#allocation6 + $0x6a0] sm:$0xff]  ;;  %v764_v8 = vld [vmem:[#allocation6 + $0x6f0] sm:$0xff] }
  0x9f   :  { %7371 = vmatpush1.bf16.msra.mxu0 %v7370_v20  ;;  %7413 = vmatprep.subr.bf16.mxu1 %v7412_v21  ;;  %v660_v20 = vld [vmem:[#allocation6 + $0x3b0] sm:$0xff]  ;;  %v7394_v29 = vpack.c.bf16 %v762_v23, %v754_v19  ;;  %v7458_v11 = vpack.c.bf16 %v764_v8, %v756_v7  ;;  %v1164_v23 = vld [vmem:[#allocation6 + $0x8] sm:$0xff] }
  0xa0   :  { %7373 = vmatprep.subr.bf16.mxu0 %v7372_v26  ;;  %v668_v21 = vld [vmem:[#allocation6 + $0x3f0] sm:$0xff]  ;;  %v685_v26 = vld [vmem:[#allocation6 + $0x478] sm:$0xff] }
  0xa1   :  { %v7434_v28 = vpack.c.bf16 %v668_v21, %v660_v20  ;;  %v7436_v30 = vpack.c.bf16 %v685_v26, %v677_v24  ;;  %v788_v20 = vld [vmem:[#allocation6 + $0x7b0] sm:$0xff]  ;;  %v1172_v24 = vld [vmem:[#allocation6 + $0x48] sm:$0xff]  ;;  %v1166_v26 = vld [vmem:[#allocation6 + $0x18] sm:$0xff] }
  0xa2   :  { %7415 = vmatpush1.bf16.msra.mxu1 %v7414_v31  ;;  %v770_v31 = vld [vmem:[#allocation6 + $0x720] sm:$0xff]  ;;  %v796_v21 = vld [vmem:[#allocation6 + $0x7f0] sm:$0xff]  ;;  %v7468_v27 = vpack.c.bf16 %v1172_v24, %v1164_v23 }
  0xa3   :  { %7375 = vmatpush1.bf16.msra.mxu0 %v7374_v32  ;;  %7417 = vmatprep.subr.bf16.mxu1 %v7416_v33  ;;  %v676_v32 = vld [vmem:[#allocation6 + $0x430] sm:$0xff]  ;;  %v7398_v40 = vpack.c.bf16 %v778_v35, %v770_v31  ;;  %v7532_v31 = vpack.c.bf16 %v1174_v4, %v1166_v26 }
  0xa4   :  { %7377 = vmatprep.subr.bf16.mxu0 %v7376_v37  ;;  %v684_v33 = vld [vmem:[#allocation6 + $0x470] sm:$0xff]  ;;  %v701_v37 = vld [vmem:[#allocation6 + $0x4f8] sm:$0xff] }
  0xa5   :  { %v7438_v5 = vpack.c.bf16 %v684_v33, %v676_v32  ;;  %v7440_v41 = vpack.c.bf16 %v701_v37, %v693_v36  ;;  %v1165_v33 = vld [vmem:[#allocation6 + $0x10] sm:$0xff] }
  0xa6   :  { %7419 = vmatpush1.bf16.msra.mxu1 %v7418_v42  ;;  %v786_v42 = vld [vmem:[#allocation6 + $0x7a0] sm:$0xff]  ;;  %v1197_v23 = vld [vmem:[#allocation6 + $0x110] sm:$0xff] }
  0xa7   :  { %7379 = vmatpush1.bf16.msra.mxu0 %v7378_v43  ;;  %7421 = vmatprep.subr.bf16.mxu1 %v7420_v44  ;;  %v692_v43 = vld [vmem:[#allocation6 + $0x4b0] sm:$0xff]  ;;  %v7402_v50 = vpack.c.bf16 %v794_v46, %v786_v42 }
  0xa8   :  { %7381 = vmatprep.subr.bf16.mxu0 %v7380_v48  ;;  %v700_v44 = vld [vmem:[#allocation6 + $0x4f0] sm:$0xff]  ;;  %v717_v48 = vld [vmem:[#allocation6 + $0x578] sm:$0xff] }
  0xa9   :  { %v7442_v49 = vpack.c.bf16 %v700_v44, %v692_v43  ;;  %v7444_v12 = vpack.c.bf16 %v717_v48, %v709_v47  ;;  %v1205_v24 = vld [vmem:[#allocation6 + $0x150] sm:$0xff] }
  0xaa   :  { %7423 = vmatpush1.bf16.msra.mxu1 %v7422_v53  ;;  %v725_v53 = vld [vmem:[#allocation6 + $0x5b8] sm:$0xff] }
  0xab   :  { %7383 = vmatpush1.bf16.msra.mxu0 %v7382_v54  ;;  %7425 = vmatprep.subr.bf16.mxu1 %v7424_v55  ;;  %v733_v54 = vld [vmem:[#allocation6 + $0x5f8] sm:$0xff]  ;;  %v7446_v55 = vpack.c.bf16 %v716_v52, %v708_v51  ;;  %v1180_v51 = vld [vmem:[#allocation6 + $0x88] sm:$0xff] }
  0xac   :  { %7385 = vmatprep.subr.bf16.mxu0 %v7384_v59  ;;  %v7448_v56 = vpack.c.bf16 %v733_v54, %v725_v53  ;;  %v741_v59 = vld [vmem:[#allocation6 + $0x638] sm:$0xff]  ;;  %v1188_v52 = vld [vmem:[#allocation6 + $0xc8] sm:$0xff] }
  0xad   :  { %v7452_v25 = vpack.c.bf16 %v749_v60, %v741_v59  ;;  %v1182_v53 = vld [vmem:[#allocation6 + $0x98] sm:$0xff] }
  0xae   :  { %7427 = vmatpush1.bf16.msra.mxu1 %v7426_v0  ;;  %v757_v0 = vld [vmem:[#allocation6 + $0x6b8] sm:$0xff] }
  0xaf   :  { %7387 = vmatpush1.bf16.msra.mxu0 %v7386_v2  ;;  %7429 = vmatprep.subr.bf16.mxu1 %v7428_v3  ;;  %v765_v2 = vld [vmem:[#allocation6 + $0x6f8] sm:$0xff]  ;;  %v7454_v3 = vpack.c.bf16 %v748_v63, %v740_v62  ;;  %v1189_v62 = vld [vmem:[#allocation6 + $0xd0] sm:$0xff] }
  0xb0   :  { %7389 = vmatprep.subr.bf16.mxu0 %v7388_v9  ;;  %v7456_v6 = vpack.c.bf16 %v765_v2, %v757_v0  ;;  %v773_v9 = vld [vmem:[#allocation6 + $0x738] sm:$0xff] }
  0xb1   :  { %v7460_v13 = vpack.c.bf16 %v781_v10, %v773_v9 }
  0xb2   :  { %7431 = vmatpush1.bf16.msra.mxu1 %v7430_v16  ;;  %v789_v16 = vld [vmem:[#allocation6 + $0x7b8] sm:$0xff] }
  0xb3   :  { %7391 = vmatpush1.bf16.msra.mxu0 %v7390_v17  ;;  %7433 = vmatprep.subr.bf16.mxu1 %v7432_v18  ;;  %v797_v17 = vld [vmem:[#allocation6 + $0x7f8] sm:$0xff]  ;;  %v7462_v18 = vpack.c.bf16 %v780_v15, %v772_v14 }
  0xb4   :  { %7393 = vmatprep.subr.bf16.mxu0 %v7392_v22  ;;  %v7464_v19 = vpack.c.bf16 %v797_v17, %v789_v16  ;;  %v7466_v22 = vpack.c.bf16 %v796_v21, %v788_v20  ;;  %v1198_v14 = vld [vmem:[#allocation6 + $0x118] sm:$0xff] }
  0xb5   :  { %v1206_v17 = vld [vmem:[#allocation6 + $0x158] sm:$0xff] }
  0xb6   :  { %7435 = vmatpush1.bf16.msra.mxu1 %v7434_v28  ;;  %v1163_v28 = vld [vmem:[#allocation6] sm:$0xff]  ;;  %v7540_v21 = vpack.c.bf16 %v1206_v17, %v1198_v14  ;;  %v1244_v14 = vld [vmem:[#allocation6 + $0x288] sm:$0xff] }
  0xb7   :  { %7395 = vmatpush1.bf16.msra.mxu0 %v7394_v29  ;;  %7437 = vmatprep.subr.bf16.mxu1 %v7436_v30  ;;  %v1171_v29 = vld [vmem:[#allocation6 + $0x40] sm:$0xff]  ;;  %v101_v30 = vlaneseq }
  0xb8   :  { %7397 = vmatprep.subr.bf16.mxu0 %v7396_v34  ;;  %v7470_v32 = vpack.c.bf16 %v1171_v29, %v1163_v28  ;;  %v1173_v34 = vld [vmem:[#allocation6 + $0x50] sm:$0xff]  ;;  %v7542_v29 = vpack.c.bf16 %v1205_v24, %v1197_v23 }
  0xb9   :  { %v7534_v35 = vpack.c.bf16 %v1173_v34, %v1165_v33  ;;  %v10218_v36 = vshrl.u32 %v101_v30, 7  ;;  %v1212_v34 = vld [vmem:[#allocation6 + $0x188] sm:$0xff] }
  0xba   :  { %7439 = vmatpush1.bf16.msra.mxu1 %v7438_v5 }
  0xbb   :  { %7399 = vmatpush1.bf16.msra.mxu0 %v7398_v40  ;;  %7441 = vmatprep.subr.bf16.mxu1 %v7440_v41  ;;  %v10221_v37 = vsub.s32 0, %v10218_v36  ;;  %v10229_v39 = vsub.s32 1, %v10218_v36  ;;  %v119_v41 = vsub.s32 4, %v10218_v36  ;;  %v123_v42 = vsub.s32 5, %v10218_v36 }
  0xbc   :  { %7401 = vmatprep.subr.bf16.mxu0 %v7400_v45  ;;  %v111_v2 = vsub.s32 2, %v10218_v36  ;;  %v115_v8 = vsub.s32 3, %v10218_v36 }
  0xbd   :  { %v104_v5 = vrot.slane %v10226_v38, %v10221_v37  ;;  %v10235_v40 = vrot.slane %v10226_v38, %v10229_v39  ;;  %v10245_v54 = vrot.slane %v10226_v38, %v123_v42  ;;  %v1214_v42 = vld [vmem:[#allocation6 + $0x198] sm:$0xff] }
  0xbe   :  { %7443 = vmatpush1.bf16.msra.mxu1 %v7442_v49  ;;  %v10253_v4 = vrot.slane %v10226_v38, %v111_v2 }
  0xbf   :  { %7403 = vmatpush1.bf16.msra.mxu0 %v7402_v50  ;;  %7445 = vmatprep.subr.bf16.mxu1 %v7444_v12  ;;  %v10242_v12 = vrot.slane %v10226_v38, %v119_v41 }
  0xc0   :  { %7469 = vmatprep.subr.bf16.mxu0 %v7468_v27 }
  0xc2   :  { %1005 = vmatmul.mubr.f32.vlgmr.msra.gmra.mrb[12].mxu0 %v9999_v1  ;;  %7447 = vmatpush1.bf16.msra.mxu1 %v7446_v55  ;;  %v7472_v55 = vpack.c.bf16 %v1188_v52, %v1180_v51  ;;  %v1221_v51 = vld [vmem:[#allocation6 + $0x1d0] sm:$0xff] }
  0xc3   :  { %7449 = vmatprep.subr.bf16.mxu1 %v7448_v56  ;;  %7471 = vmatpush1.bf16.msra.mxu0 %v7470_v32  ;;  %v1190_v56 = vld [vmem:[#allocation6 + $0xd8] sm:$0xff] }
  0xc4   :  { %v7536_v60 = vpack.c.bf16 %v1190_v56, %v1182_v53  ;;  %7473 = vmatprep.subr.bf16.mxu0 %v7472_v55  ;;  %v1228_v55 = vld [vmem:[#allocation6 + $0x208] sm:$0xff] }
  0xc5   :  { %v1236_v56 = vld [vmem:[#allocation6 + $0x248] sm:$0xff] }
  0xc6   :  { %7451 = vmatpush1.bf16.msra.mxu1 %v7450_v61  ;;  %v7474_v61 = vpack.c.bf16 %v1187_v58, %v1179_v57  ;;  %v1230_v57 = vld [vmem:[#allocation6 + $0x218] sm:$0xff] }
  0xc7   :  { %7453 = vmatprep.subr.bf16.mxu1 %v7452_v25  ;;  %v1181_v25 = vld [vmem:[#allocation6 + $0x90] sm:$0xff] }
  0xc8   :  { %7475 = vmatpush1.bf16.msra.mxu0 %v7474_v61  ;;  %v1227_v61 = vld [vmem:[#allocation6 + $0x200] sm:$0xff] }
  0xca   :  { %7455 = vmatpush1.bf16.msra.mxu1 %v7454_v3 }
  0xcb   :  { %7457 = vmatprep.subr.bf16.mxu1 %v7456_v6  ;;  %v7538_v6 = vpack.c.bf16 %v1189_v62, %v1181_v25  ;;  %v1235_v25 = vld [vmem:[#allocation6 + $0x240] sm:$0xff] }
  0xce   :  { %7459 = vmatpush1.bf16.msra.mxu1 %v7458_v11  ;;  %v1196_v11 = vld [vmem:[#allocation6 + $0x108] sm:$0xff] }
  0xcf   :  { %7461 = vmatprep.subr.bf16.mxu1 %v7460_v13  ;;  %v1204_v13 = vld [vmem:[#allocation6 + $0x148] sm:$0xff] }
  0xd0   :  { %v7476_v16 = vpack.c.bf16 %v1204_v13, %v1196_v11 }
  0xd2   :  { %7463 = vmatpush1.bf16.msra.mxu1 %v7462_v18  ;;  %v1195_v18 = vld [vmem:[#allocation6 + $0x100] sm:$0xff]  ;;  %7477 = vmatprep.subr.bf16.mxu0 %v7476_v16  ;;  %v1246_v16 = vld [vmem:[#allocation6 + $0x298] sm:$0xff] }
  0xd3   :  { %7465 = vmatprep.subr.bf16.mxu1 %v7464_v19  ;;  %v1203_v19 = vld [vmem:[#allocation6 + $0x140] sm:$0xff] }
  0xd6   :  { %7467 = vmatpush1.bf16.msra.mxu1 %v7466_v22  ;;  %v7478_v22 = vpack.c.bf16 %v1203_v19, %v1195_v18  ;;  %v1254_v19 = vld [vmem:[#allocation6 + $0x2d8] sm:$0xff] }
  0xd7   :  { %7533 = vmatprep.subr.bf16.mxu1 %v7532_v31  ;;  %v10257_v31 = vrot.slane %v10226_v38, %v115_v8 }
  0xd8   :  { %7479 = vmatpush1.bf16.msra.mxu0 %v7478_v22 }
  0xd9   :  { %1076 = vmatmul.mubr.f32.vlgmr.msra.gmra.mrb[24].mxu1 %v9999_v1 }
  0xda   :  { %7535 = vmatpush1.bf16.msra.mxu1 %v7534_v35  ;;  %v1220_v35 = vld [vmem:[#allocation6 + $0x1c8] sm:$0xff] }
  0xdb   :  { %7537 = vmatprep.subr.bf16.mxu1 %v7536_v60  ;;  %v7480_v41 = vpack.c.bf16 %v1220_v35, %v1212_v34  ;;  %v1238_v60 = vld [vmem:[#allocation6 + $0x258] sm:$0xff] }
  0xdc   :  { %v7548_v2 = vpack.c.bf16 %v1238_v60, %v1230_v57  ;;  %v1276_v57 = vld [vmem:[#allocation6 + $0x388] sm:$0xff]  ;;  %v1286_v60 = vld [vmem:[#allocation6 + $0x3d8] sm:$0xff] }
  0xdd   :  { %7481 = vmatprep.subr.bf16.mxu0 %v7480_v41  ;;  %v131_v41 = vsub.s32 7, %v10218_v36 }
  0xde   :  { %7539 = vmatpush1.bf16.msra.mxu1 %v7538_v6  ;;  %v1229_v6 = vld [vmem:[#allocation6 + $0x210] sm:$0xff] }
  0xdf   :  { %7541 = vmatprep.subr.bf16.mxu1 %v7540_v21  ;;  %v1251_v21 = vld [vmem:[#allocation6 + $0x2c0] sm:$0xff] }
  0xe2   :  { %7543 = vmatpush1.bf16.msra.mxu1 %v7542_v29  ;;  %v1253_v29 = vld [vmem:[#allocation6 + $0x2d0] sm:$0xff] }
 0x110   :  { %v226_v43 = vpop.f32.mrb[0].mxu1  ;;  %v220_v44 = vpop.f32.mrb[0].mxu0 }
 0x111   :  { %v227_v45 = vadd.f32 %v226_v43, %v104_v5  ;;  %v228_v46 = vpop.f32.mrb[1].mxu1  ;;  %v221_v47 = vadd.f32 %v220_v44, %v104_v5  ;;  %v222_v48 = vpop.f32.mrb[1].mxu0  ;;  %v1222_v43 = vld [vmem:[#allocation6 + $0x1d8] sm:$0xff] }
 0x112   :  { %v229_v49 = vadd.f32 %v228_v46, %v10235_v40  ;;  %v223_v50 = vadd.f32 %v222_v48, %v10235_v40  ;;  %v1219_v46 = vld [vmem:[#allocation6 + $0x1c0] sm:$0xff] }
 0x113   :  { %518 = vst [vmem:[#allocation2 + $0x40] sm:$0xff] %v227_v45  ;;  %510 = vst [vmem:[#allocation2] sm:$0xff] %v221_v47  ;;  %v1211_v45 = vld [vmem:[#allocation6 + $0x180] sm:$0xff]  ;;  %v1213_v47 = vld [vmem:[#allocation6 + $0x190] sm:$0xff] }
 0x114   :  { %519 = vst [vmem:[#allocation2 + $0x48] sm:$0xff] %v229_v49  ;;  %v232_v59 = vpop.f32.mrb[2].mxu1  ;;  %511 = vst [vmem:[#allocation2 + $0x8] sm:$0xff] %v223_v50  ;;  %v7482_v50 = vpack.c.bf16 %v1219_v46, %v1211_v45  ;;  %v7546_v53 = vpack.c.bf16 %v1221_v51, %v1213_v47  ;;  %v1259_v46 = vld [vmem:[#allocation6 + $0x300] sm:$0xff] }
 0x115   :  { %v233_v63 = vadd.f32 %v232_v59, %v104_v5  ;;  %v234_v0 = vpop.f32.mrb[3].mxu1  ;;  %v398_v3 = vpop.f32.mrb[2].mxu0  ;;  %v7484_v59 = vpack.c.bf16 %v1236_v56, %v1228_v55  ;;  %v1267_v47 = vld [vmem:[#allocation6 + $0x340] sm:$0xff]  ;;  %v10279_v55 = vrot.slane %v10226_v38, %v131_v41  ;;  %v1309_v41 = vld [vmem:[#allocation6 + $0x490] sm:$0xff] }
 0x116   :  { %v235_v7 = vadd.f32 %v234_v0, %v10235_v40  ;;  %v399_v9 = vadd.f32 %v398_v3, %v10242_v12  ;;  %v400_v10 = vpop.f32.mrb[3].mxu0  ;;  %7483 = vmatpush1.bf16.msra.mxu0 %v7482_v50  ;;  %v7486_v3 = vpack.c.bf16 %v1235_v25, %v1227_v61  ;;  %v7494_v51 = vpack.c.bf16 %v1267_v47, %v1259_v46  ;;  %v1275_v61 = vld [vmem:[#allocation6 + $0x380] sm:$0xff]  ;;  %v1326_v46 = vld [vmem:[#allocation6 + $0x518] sm:$0xff] }
 0x117   :  { %526 = vst [vmem:[#allocation2 + $0x80] sm:$0xff] %v233_v63  ;;  %v401_v15 = vadd.f32 %v400_v10, %v10245_v54  ;;  %7485 = vmatprep.subr.bf16.mxu0 %v7484_v59  ;;  %v1278_v59 = vld [vmem:[#allocation6 + $0x398] sm:$0xff]  ;;  %v1283_v25 = vld [vmem:[#allocation6 + $0x3c0] sm:$0xff] }
 0x118   :  { %527 = vst [vmem:[#allocation2 + $0x88] sm:$0xff] %v235_v7  ;;  %v238_v20 = vpop.f32.mrb[4].mxu1  ;;  %514 = vst [vmem:[#allocation2 + $0x20] sm:$0xff] %v399_v9  ;;  %v1237_v7 = vld [vmem:[#allocation6 + $0x250] sm:$0xff] }
 0x119   :  { %v239_v26 = vadd.f32 %v238_v20, %v104_v5  ;;  %v240_v27 = vpop.f32.mrb[5].mxu1  ;;  %515 = vst [vmem:[#allocation2 + $0x28] sm:$0xff] %v401_v15  ;;  %v404_v28 = vpop.f32.mrb[4].mxu0  ;;  %v7550_v11 = vpack.c.bf16 %v1237_v7, %v1229_v6  ;;  %v1252_v15 = vld [vmem:[#allocation6 + $0x2c8] sm:$0xff]  ;;  %v1243_v20 = vld [vmem:[#allocation6 + $0x280] sm:$0xff] }
 0x11a   :  { %v241_v30 = vadd.f32 %v240_v27, %v10235_v40  ;;  %v405_v32 = vadd.f32 %v404_v28, %v10242_v12  ;;  %v406_v33 = vpop.f32.mrb[5].mxu0  ;;  %v7544_v40 = vpack.c.bf16 %v1222_v43, %v1214_v42  ;;  %7487 = vmatpush1.bf16.msra.mxu0 %v7486_v3  ;;  %v7488_v18 = vpack.c.bf16 %v1252_v15, %v1244_v14  ;;  %v1245_v28 = vld [vmem:[#allocation6 + $0x290] sm:$0xff]  ;;  %v1268_v42 = vld [vmem:[#allocation6 + $0x348] sm:$0xff]  ;;  %v1291_v14 = vld [vmem:[#allocation6 + $0x400] sm:$0xff] }
 0x11b   :  { %534 = vst [vmem:[#allocation2 + $0xc0] sm:$0xff] %v239_v26  ;;  %v407_v5 = vadd.f32 %v406_v33, %v10245_v54  ;;  %v7552_v26 = vpack.c.bf16 %v1254_v19, %v1246_v16  ;;  %v7490_v27 = vpack.c.bf16 %v1251_v21, %v1243_v20  ;;  %v127_v33 = vsub.s32 6, %v10218_v36  ;;  %v1301_v19 = vld [vmem:[#allocation6 + $0x450] sm:$0xff] }
 0x11c   :  { %535 = vst [vmem:[#allocation2 + $0xc8] sm:$0xff] %v241_v30  ;;  %v309_v44 = vpop.f32.mrb[6].mxu1  ;;  %522 = vst [vmem:[#allocation2 + $0x60] sm:$0xff] %v405_v32  ;;  %7545 = vmatprep.subr.bf16.mxu1 %v7544_v40  ;;  %7489 = vmatprep.subr.bf16.mxu0 %v7488_v18  ;;  %v7554_v35 = vpack.c.bf16 %v1253_v29, %v1245_v28  ;;  %v1270_v40 = vld [vmem:[#allocation6 + $0x358] sm:$0xff]  ;;  %v1293_v18 = vld [vmem:[#allocation6 + $0x410] sm:$0xff] }
 0x11d   :  { %v310_v48 = vadd.f32 %v309_v44, %v10253_v4  ;;  %v311_v49 = vpop.f32.mrb[7].mxu1  ;;  %523 = vst [vmem:[#allocation2 + $0x68] sm:$0xff] %v407_v5  ;;  %7547 = vmatpush1.bf16.msra.mxu1 %v7546_v53  ;;  %v1262_v44 = vld [vmem:[#allocation6 + $0x318] sm:$0xff]  ;;  %v10275_v50 = vrot.slane %v10226_v38, %v127_v33  ;;  %v1315_v33 = vld [vmem:[#allocation6 + $0x4c0] sm:$0xff] }
 0x11e   :  { %v312_v52 = vadd.f32 %v311_v49, %v10257_v31  ;;  %7549 = vmatprep.subr.bf16.mxu1 %v7548_v2  ;;  %7491 = vmatpush1.bf16.msra.mxu0 %v7490_v27  ;;  %v1285_v2 = vld [vmem:[#allocation6 + $0x3d0] sm:$0xff]  ;;  %v1316_v27 = vld [vmem:[#allocation6 + $0x4c8] sm:$0xff]  ;;  %v1310_v28 = vld [vmem:[#allocation6 + $0x498] sm:$0xff] }
 0x11f   :  { %512 = vst [vmem:[#allocation2 + $0x10] sm:$0xff] %v310_v48  ;;  %v410_v58 = vpop.f32.mrb[6].mxu0  ;;  %v1261_v48 = vld [vmem:[#allocation6 + $0x310] sm:$0xff] }
 0x120   :  { %513 = vst [vmem:[#allocation2 + $0x18] sm:$0xff] %v312_v52  ;;  %v315_v62 = vpop.f32.mrb[8].mxu1  ;;  %v411_v63 = vadd.f32 %v410_v58, %v10242_v12  ;;  %v412_v0 = vpop.f32.mrb[7].mxu0  ;;  %v1269_v52 = vld [vmem:[#allocation6 + $0x350] sm:$0xff]  ;;  %v1284_v58 = vld [vmem:[#allocation6 + $0x3c8] sm:$0xff] }
 0x121   :  { %v316_v8 = vadd.f32 %v315_v62, %v10253_v4  ;;  %v317_v9 = vpop.f32.mrb[9].mxu1  ;;  %v413_v10 = vadd.f32 %v412_v0, %v10245_v54  ;;  %7551 = vmatpush1.bf16.msra.mxu1 %v7550_v11  ;;  %v7558_v56 = vpack.c.bf16 %v1269_v52, %v1261_v48  ;;  %v7498_v0 = vpack.c.bf16 %v1283_v25, %v1275_v61  ;;  %v1294_v11 = vld [vmem:[#allocation6 + $0x418] sm:$0xff]  ;;  %v1340_v61 = vld [vmem:[#allocation6 + $0x588] sm:$0xff] }
 0x122   :  { %v318_v13 = vadd.f32 %v317_v9, %v10257_v31  ;;  %530 = vst [vmem:[#allocation2 + $0xa0] sm:$0xff] %v411_v63  ;;  %7553 = vmatprep.subr.bf16.mxu1 %v7552_v26  ;;  %v7560_v63 = vpack.c.bf16 %v1286_v60, %v1278_v59  ;;  %v1300_v9 = vld [vmem:[#allocation6 + $0x448] sm:$0xff]  ;;  %v1334_v48 = vld [vmem:[#allocation6 + $0x558] sm:$0xff] }
 0x123   :  { %520 = vst [vmem:[#allocation2 + $0x50] sm:$0xff] %v316_v8  ;;  %531 = vst [vmem:[#allocation2 + $0xa8] sm:$0xff] %v413_v10  ;;  %v416_v17 = vpop.f32.mrb[8].mxu0  ;;  %v1292_v8 = vld [vmem:[#allocation6 + $0x408] sm:$0xff]  ;;  %v7572_v52 = vpack.c.bf16 %v1334_v48, %v1326_v46  ;;  %v1406_v48 = vld [vmem:[#allocation6 + $0x798] sm:$0xff] }
 0x124   :  { %521 = vst [vmem:[#allocation2 + $0x58] sm:$0xff] %v318_v13  ;;  %v321_v22 = vpop.f32.mrb[10].mxu1  ;;  %v417_v23 = vadd.f32 %v416_v17, %v10242_v12  ;;  %v418_v24 = vpop.f32.mrb[9].mxu0  ;;  %v1260_v12 = vld [vmem:[#allocation6 + $0x308] sm:$0xff]  ;;  %v7500_v10 = vpack.c.bf16 %v1300_v9, %v1292_v8  ;;  %v1302_v13 = vld [vmem:[#allocation6 + $0x458] sm:$0xff]  ;;  %v1299_v17 = vld [vmem:[#allocation6 + $0x440] sm:$0xff] }
 0x125   :  { %v322_v30 = vadd.f32 %v321_v22, %v10253_v4  ;;  %v323_v32 = vpop.f32.mrb[11].mxu1  ;;  %v419_v34 = vadd.f32 %v418_v24, %v10245_v54  ;;  %v7492_v43 = vpack.c.bf16 %v1268_v42, %v1260_v12  ;;  %7555 = vmatpush1.bf16.msra.mxu1 %v7554_v35  ;;  %v7556_v54 = vpack.c.bf16 %v1270_v40, %v1262_v44  ;;  %v1308_v26 = vld [vmem:[#allocation6 + $0x488] sm:$0xff]  ;;  %v1317_v12 = vld [vmem:[#allocation6 + $0x4d0] sm:$0xff]  ;;  %v1358_v9 = vld [vmem:[#allocation6 + $0x618] sm:$0xff] }
 0x126   :  { %v324_v5 = vadd.f32 %v323_v32, %v10257_v31  ;;  %538 = vst [vmem:[#allocation2 + $0xe0] sm:$0xff] %v417_v23  ;;  %v7564_v16 = vpack.c.bf16 %v1302_v13, %v1294_v11  ;;  %v7502_v22 = vpack.c.bf16 %v1299_v17, %v1291_v14  ;;  %v7566_v23 = vpack.c.bf16 %v1301_v19, %v1293_v18  ;;  %v1307_v32 = vld [vmem:[#allocation6 + $0x480] sm:$0xff]  ;;  %v1348_v25 = vld [vmem:[#allocation6 + $0x5c8] sm:$0xff]  ;;  %v1366_v11 = vld [vmem:[#allocation6 + $0x658] sm:$0xff] }
 0x127   :  { %528 = vst [vmem:[#allocation2 + $0x90] sm:$0xff] %v322_v30  ;;  %539 = vst [vmem:[#allocation2 + $0xe8] sm:$0xff] %v419_v34  ;;  %7493 = vmatprep.subr.bf16.mxu0 %v7492_v43  ;;  %7557 = vmatprep.subr.bf16.mxu1 %v7556_v54  ;;  %v7504_v29 = vpack.c.bf16 %v1316_v27, %v1308_v26  ;;  %v1318_v30 = vld [vmem:[#allocation6 + $0x4d8] sm:$0xff]  ;;  %v7570_v44 = vpack.c.bf16 %v1317_v12, %v1309_v41  ;;  %v1332_v54 = vld [vmem:[#allocation6 + $0x548] sm:$0xff] }
 0x128   :  { %529 = vst [vmem:[#allocation2 + $0x98] sm:$0xff] %v324_v5  ;;  %v327_v45 = vpop.f32.mrb[12].mxu1  ;;  %7495 = vmatpush1.bf16.msra.mxu0 %v7494_v51  ;;  %v7568_v35 = vpack.c.bf16 %v1318_v30, %v1310_v28  ;;  %v7506_v5 = vpack.c.bf16 %v1315_v33, %v1307_v32  ;;  %v1364_v8 = vld [vmem:[#allocation6 + $0x648] sm:$0xff]  ;;  %v1355_v13 = vld [vmem:[#allocation6 + $0x600] sm:$0xff]  ;;  %v1357_v17 = vld [vmem:[#allocation6 + $0x610] sm:$0xff] }
 0x129   :  { %v328_v49 = vadd.f32 %v327_v45, %v10253_v4  ;;  %v329_v36 = vpop.f32.mrb[13].mxu1  ;;  %v7496_v4 = vpack.c.bf16 %v1284_v58, %v1276_v57  ;;  %7559 = vmatpush1.bf16.msra.mxu1 %v7558_v56  ;;  %v1324_v45 = vld [vmem:[#allocation6 + $0x508] sm:$0xff]  ;;  %v1325_v56 = vld [vmem:[#allocation6 + $0x510] sm:$0xff]  ;;  %v1363_v14 = vld [vmem:[#allocation6 + $0x640] sm:$0xff] }
 0x12a   :  { %v330_v53 = vadd.f32 %v329_v36, %v10257_v31  ;;  %v1277_v31 = vld [vmem:[#allocation6 + $0x390] sm:$0xff]  ;;  %7561 = vmatprep.subr.bf16.mxu1 %v7560_v63  ;;  %v7508_v47 = vpack.c.bf16 %v1332_v54, %v1324_v45  ;;  %v1331_v36 = vld [vmem:[#allocation6 + $0x540] sm:$0xff]  ;;  %v7512_v63 = vpack.c.bf16 %v1348_v25, %v1340_v61  ;;  %v1388_v33 = vld [vmem:[#allocation6 + $0x708] sm:$0xff] }
 0x12b   :  { %536 = vst [vmem:[#allocation2 + $0xd0] sm:$0xff] %v328_v49  ;;  %7497 = vmatprep.subr.bf16.mxu0 %v7496_v4  ;;  %v7562_v6 = vpack.c.bf16 %v1285_v2, %v1277_v31  ;;  %v1323_v49 = vld [vmem:[#allocation6 + $0x500] sm:$0xff]  ;;  %v1333_v57 = vld [vmem:[#allocation6 + $0x550] sm:$0xff]  ;;  %v1390_v41 = vld [vmem:[#allocation6 + $0x718] sm:$0xff] }
 0x12c   :  { %537 = vst [vmem:[#allocation2 + $0xd8] sm:$0xff] %v330_v53  ;;  %v487_v62 = vpop.f32.mrb[14].mxu1  ;;  %7499 = vmatpush1.bf16.msra.mxu0 %v7498_v0  ;;  %v7510_v53 = vpack.c.bf16 %v1331_v36, %v1323_v49  ;;  %v7574_v4 = vpack.c.bf16 %v1333_v57, %v1325_v56  ;;  %v1350_v0 = vld [vmem:[#allocation6 + $0x5d8] sm:$0xff]  ;;  %v1339_v31 = vld [vmem:[#allocation6 + $0x580] sm:$0xff]  ;;  %v1365_v18 = vld [vmem:[#allocation6 + $0x650] sm:$0xff] }
 0x12d   :  { %v488_v38 = vadd.f32 %v487_v62, %v10275_v50  ;;  %v489_v3 = vpop.f32.mrb[15].mxu1  ;;  %7563 = vmatpush1.bf16.msra.mxu1 %v7562_v6  ;;  %7501 = vmatprep.subr.bf16.mxu0 %v7500_v10  ;;  %v1342_v62 = vld [vmem:[#allocation6 + $0x598] sm:$0xff]  ;;  %v1347_v2 = vld [vmem:[#allocation6 + $0x5c0] sm:$0xff]  ;;  %v1349_v6 = vld [vmem:[#allocation6 + $0x5d0] sm:$0xff]  ;;  %v7582_v19 = vpack.c.bf16 %v1365_v18, %v1357_v17 }
 0x12e   :  { %v490_v7 = vadd.f32 %v489_v3, %v10279_v55  ;;  %7565 = vmatprep.subr.bf16.mxu1 %v7564_v16  ;;  %v7514_v3 = vpack.c.bf16 %v1347_v2, %v1339_v31  ;;  %v7518_v16 = vpack.c.bf16 %v1363_v14, %v1355_v13  ;;  %v1371_v26 = vld [vmem:[#allocation6 + $0x680] sm:$0xff]  ;;  %v1381_v32 = vld [vmem:[#allocation6 + $0x6d0] sm:$0xff]  ;;  %v1398_v12 = vld [vmem:[#allocation6 + $0x758] sm:$0xff] }
 0x12f   :  { %516 = vst [vmem:[#allocation2 + $0x30] sm:$0xff] %v488_v38  ;;  %v7576_v38 = vpack.c.bf16 %v1350_v0, %v1342_v62  ;;  %v1379_v28 = vld [vmem:[#allocation6 + $0x6c0] sm:$0xff]  ;;  %v1397_v45 = vld [vmem:[#allocation6 + $0x750] sm:$0xff]  ;;  %v1404_v46 = vld [vmem:[#allocation6 + $0x788] sm:$0xff] }
 0x130   :  { %517 = vst [vmem:[#allocation2 + $0x38] sm:$0xff] %v490_v7  ;;  %v493_v15 = vpop.f32.mrb[16].mxu1  ;;  %7503 = vmatpush1.bf16.msra.mxu0 %v7502_v22  ;;  %v1374_v22 = vld [vmem:[#allocation6 + $0x698] sm:$0xff]  ;;  %v7522_v30 = vpack.c.bf16 %v1379_v28, %v1371_v26  ;;  %v1405_v57 = vld [vmem:[#allocation6 + $0x790] sm:$0xff]  ;;  %v1176_v61 = vld [vmem:[#allocation6 + $0x68] sm:$0xff] }
 0x131   :  { %v494_v20 = vadd.f32 %v493_v15, %v10275_v50  ;;  %v495_v21 = vpop.f32.mrb[17].mxu1  ;;  %7567 = vmatpush1.bf16.msra.mxu1 %v7566_v23  ;;  %7505 = vmatprep.subr.bf16.mxu0 %v7504_v29  ;;  %v7580_v15 = vpack.c.bf16 %v1366_v11, %v1358_v9  ;;  %v1373_v29 = vld [vmem:[#allocation6 + $0x690] sm:$0xff]  ;;  %v1170_v25 = vld [vmem:[#allocation6 + $0x38] sm:$0xff] }
 0x132   :  { %v496_v24 = vadd.f32 %v495_v21, %v10279_v55  ;;  %7569 = vmatprep.subr.bf16.mxu1 %v7568_v35  ;;  %v1380_v21 = vld [vmem:[#allocation6 + $0x6c8] sm:$0xff]  ;;  %v7586_v35 = vpack.c.bf16 %v1381_v32, %v1373_v29  ;;  %v1082_v2 = vld [vmem:[#allocation2] sm:$0xf]  ;;  %v1085_v17 = vld [vmem:[#allocation2 + $0x18] sm:$0xf] }
 0x133   :  { %524 = vst [vmem:[#allocation2 + $0x70] sm:$0xff] %v494_v20  ;;  %v1372_v20 = vld [vmem:[#allocation6 + $0x688] sm:$0xff] }
 0x134   :  { %525 = vst [vmem:[#allocation2 + $0x78] sm:$0xff] %v496_v24  ;;  %v499_v34 = vpop.f32.mrb[18].mxu1  ;;  %7507 = vmatpush1.bf16.msra.mxu0 %v7506_v5  ;;  %v7520_v23 = vpack.c.bf16 %v1380_v21, %v1372_v20  ;;  %v1382_v24 = vld [vmem:[#allocation6 + $0x6d8] sm:$0xff]  ;;  %v1084_v14 = vld [vmem:[#allocation2 + $0x10] sm:$0xf] }
 0x135   :  { %v500_v42 = vadd.f32 %v499_v34, %v10275_v50  ;;  %v501_v43 = vpop.f32.mrb[19].mxu1  ;;  %7571 = vmatpush1.bf16.msra.mxu1 %v7570_v44  ;;  %7509 = vmatprep.subr.bf16.mxu0 %v7508_v47  ;;  %v7584_v27 = vpack.c.bf16 %v1382_v24, %v1374_v22  ;;  %v1396_v34 = vld [vmem:[#allocation6 + $0x748] sm:$0xff]  ;;  %v1395_v44 = vld [vmem:[#allocation6 + $0x740] sm:$0xff] }
 0x136   :  { %v502_v40 = vadd.f32 %v501_v43, %v10279_v55  ;;  %7573 = vmatprep.subr.bf16.mxu1 %v7572_v52  ;;  %v7524_v5 = vpack.c.bf16 %v1396_v34, %v1388_v33  ;;  %v7588_v43 = vpack.c.bf16 %v1398_v12, %v1390_v41  ;;  %v1412_v47 = vld [vmem:[#allocation6 + $0x7c8] sm:$0xff]  ;;  %v1403_v52 = vld [vmem:[#allocation6 + $0x780] sm:$0xff] }
 0x137   :  { %532 = vst [vmem:[#allocation2 + $0xb0] sm:$0xff] %v500_v42  ;;  %v1387_v42 = vld [vmem:[#allocation6 + $0x700] sm:$0xff]  ;;  %v7528_v36 = vpack.c.bf16 %v1412_v47, %v1404_v46 }
 0x138   :  { %533 = vst [vmem:[#allocation2 + $0xb8] sm:$0xff] %v502_v40  ;;  %v505_v51 = vpop.f32.mrb[20].mxu1  ;;  %7511 = vmatpush1.bf16.msra.mxu0 %v7510_v53  ;;  %v1389_v40 = vld [vmem:[#allocation6 + $0x710] sm:$0xff]  ;;  %v7526_v54 = vpack.c.bf16 %v1395_v44, %v1387_v42  ;;  %v1411_v53 = vld [vmem:[#allocation6 + $0x7c0] sm:$0xff]  ;;  %v1091_v42 = vld [vmem:[#allocation2 + $0xe8] sm:$0xf0] }
 0x139   :  { %v506_v58 = vadd.f32 %v505_v51, %v10275_v50  ;;  %v507_v59 = vpop.f32.mrb[21].mxu1  ;;  %7575 = vmatpush1.bf16.msra.mxu1 %v7574_v4  ;;  %v1341_v50 = vld [vmem:[#allocation6 + $0x590] sm:$0xff]  ;;  %7513 = vmatprep.subr.bf16.mxu0 %v7512_v63  ;;  %v7590_v49 = vpack.c.bf16 %v1397_v45, %v1389_v40  ;;  %v1414_v51 = vld [vmem:[#allocation6 + $0x7d8] sm:$0xff] }
 0x13a   :  { %v508_v60 = vadd.f32 %v507_v59, %v10279_v55  ;;  %v7578_v7 = vpack.c.bf16 %v1349_v6, %v1341_v50  ;;  %7577 = vmatprep.subr.bf16.mxu1 %v7576_v38  ;;  %v1356_v55 = vld [vmem:[#allocation6 + $0x608] sm:$0xff]  ;;  %v7592_v56 = vpack.c.bf16 %v1414_v51, %v1406_v48  ;;  %v7530_v59 = vpack.c.bf16 %v1411_v53, %v1403_v52  ;;  %v1178_v63 = vld [vmem:[#allocation6 + $0x78] sm:$0xff] }
 0x13b   :  { %540 = vst [vmem:[#allocation2 + $0xf0] sm:$0xff] %v506_v58  ;;  %v7516_v10 = vpack.c.bf16 %v1364_v8, %v1356_v55  ;;  %v1413_v58 = vld [vmem:[#allocation6 + $0x7d0] sm:$0xff]  ;;  %v7660_v0 = vpack.c.bf16 %v1178_v63, %v1170_v25  ;;  %v1083_v50 = vld [vmem:[#allocation2 + $0x8] sm:$0xf] }
 0x13c   :  { %541 = vst [vmem:[#allocation2 + $0xf8] sm:$0xff] %v508_v60  ;;  %7515 = vmatpush1.bf16.msra.mxu0 %v7514_v3  ;;  %v7594_v4 = vpack.c.bf16 %v1413_v58, %v1405_v57  ;;  %v1168_v60 = vld [vmem:[#allocation6 + $0x28] sm:$0xff] }
 0x13d   :  { %7579 = vmatpush1.bf16.msra.mxu1 %v7578_v7  ;;  %7517 = vmatprep.subr.bf16.mxu0 %v7516_v10  ;;  %v7596_v62 = vpack.c.bf16 %v1176_v61, %v1168_v60 }
 0x13e   :  { %7581 = vmatprep.subr.bf16.mxu1 %v7580_v15 }
 0x140   :  { %7519 = vmatpush1.bf16.msra.mxu0 %v7518_v16 }
 0x141   :  { %7583 = vmatpush1.bf16.msra.mxu1 %v7582_v19  ;;  %7521 = vmatprep.subr.bf16.mxu0 %v7520_v23 }
 0x142   :  { %7585 = vmatprep.subr.bf16.mxu1 %v7584_v27  ;;  %v1092_v51 = vld [vmem:[#allocation2 + $0xf0] sm:$0xf0] }
 0x144   :  { %7523 = vmatpush1.bf16.msra.mxu0 %v7522_v30 }
 0x145   :  { %7587 = vmatpush1.bf16.msra.mxu1 %v7586_v35  ;;  %7525 = vmatprep.subr.bf16.mxu0 %v7524_v5  ;;  %v1090_v5 = vld [vmem:[#allocation2 + $0xe0] sm:$0xf0] }
 0x146   :  { %7589 = vmatprep.subr.bf16.mxu1 %v7588_v43 }
 0x148   :  { %7527 = vmatpush1.bf16.msra.mxu0 %v7526_v54 }
 0x149   :  { %7591 = vmatpush1.bf16.msra.mxu1 %v7590_v49  ;;  %7529 = vmatprep.subr.bf16.mxu0 %v7528_v36 }
 0x14a   :  { %7593 = vmatprep.subr.bf16.mxu1 %v7592_v56  ;;  %v1093_v56 = vld [vmem:[#allocation2 + $0xf8] sm:$0xf0] }
 0x14c   :  { %7531 = vmatpush1.bf16.msra.mxu0 %v7530_v59 }
 0x14d   :  { %7595 = vmatpush1.bf16.msra.mxu1 %v7594_v4  ;;  %7597 = vmatprep.subr.bf16.mxu0 %v7596_v62 }
 0x14e   :  { %7661 = vmatprep.subr.bf16.mxu1 %v7660_v0 }
 0x155   :  { %v864_v31 = vpop.f32.mrb[10].mxu0 }
 0x156   :  { %v1086_v38 = vadd.f32 %v1082_v2, %v864_v31  ;;  %v866_v3 = vpop.f32.mrb[11].mxu0  ;;  %v1167_v2 = vld [vmem:[#allocation6 + $0x20] sm:$0xff] }
 0x157   :  { %v1087_v6 = vadd.f32 %v1083_v50, %v866_v3  ;;  %v1175_v3 = vld [vmem:[#allocation6 + $0x60] sm:$0xff]  ;;  %v1169_v50 = vld [vmem:[#allocation6 + $0x30] sm:$0xff] }
 0x158   :  { %v7068_v55 = vmul.f32 -1.442695, %v1086_v38 }
 0x159   :  { %v7069_v7 = vmul.f32 -1.442695, %v1087_v6  ;;  %v1177_v6 = vld [vmem:[#allocation6 + $0x70] sm:$0xff] }
 0x15b   :  { %9558 = vpow2.f32 %v7069_v7 }
 0x15c   :  { %9560 = vpow2.f32 %v7068_v55  ;;  %v1184_v55 = vld [vmem:[#allocation6 + $0xa8] sm:$0xff] }
 0x165   :  { %v9559_v8 = vpop.eup %9558 }
 0x166   :  { %v9561_v9 = vpop.eup %9560  ;;  %v1120_v10 = vadd.f32 1.0, %v9559_v8  ;;  %v1192_v8 = vld [vmem:[#allocation6 + $0xe8] sm:$0xff] }
 0x167   :  { %v1119_v11 = vadd.f32 1.0, %v9561_v9  ;;  %v1186_v9 = vld [vmem:[#allocation6 + $0xb8] sm:$0xff] }
 0x168   :  { %9562 = vrcp.f32 %v1120_v10  ;;  %v1194_v10 = vld [vmem:[#allocation6 + $0xf8] sm:$0xff] }
 0x169   :  { %9564 = vrcp.f32 %v1119_v11 }
 0x16c   :  { %v935_v13 = vpop.f32.mrb[22].mxu1 }
 0x16d   :  { %v1088_v15 = vadd.f32 %v1084_v14, %v935_v13  ;;  %v937_v16 = vpop.f32.mrb[23].mxu1  ;;  %v7598_v13 = vpack.c.bf16 %v1175_v3, %v1167_v2  ;;  %v7662_v14 = vpack.c.bf16 %v1177_v6, %v1169_v50  ;;  %v1258_v2 = vld [vmem:[#allocation6 + $0x2f8] sm:$0xff]  ;;  %v1247_v50 = vld [vmem:[#allocation6 + $0x2a0] sm:$0xff] }
 0x16e   :  { %v1089_v18 = vadd.f32 %v1085_v17, %v937_v16  ;;  %v1191_v16 = vld [vmem:[#allocation6 + $0xe0] sm:$0xff]  ;;  %v1185_v17 = vld [vmem:[#allocation6 + $0xb0] sm:$0xff] }
 0x16f   :  { %v7070_v19 = vmul.f32 -1.442695, %v1088_v15  ;;  %v1183_v15 = vld [vmem:[#allocation6 + $0xa0] sm:$0xff] }
 0x170   :  { %9566 = vtanh.f32 %v1089_v18  ;;  %v1193_v18 = vld [vmem:[#allocation6 + $0xf0] sm:$0xff]  ;;  %v1255_v6 = vld [vmem:[#allocation6 + $0x2e0] sm:$0xff] }
 0x171   :  { %9568 = vpow2.f32 %v7070_v19  ;;  %v1200_v19 = vld [vmem:[#allocation6 + $0x128] sm:$0xff] }
 0x172   :  { %v9563_v20 = vpop.eup %9562 }
 0x173   :  { %v9565_v21 = vpop.eup %9564  ;;  %v1129_v24 = vmul.f32 0.0, %v9563_v20  ;;  %v7600_v20 = vpack.c.bf16 %v1192_v8, %v1184_v55  ;;  %v1249_v8 = vld [vmem:[#allocation6 + $0x2b0] sm:$0xff] }
 0x17a   :  { %v9567_v22 = vpop.eup %9566 }
 0x17b   :  { %v9569_v23 = vpop.eup %9568  ;;  %v1130_v26 = vmul.f32 %v9567_v22, %v9565_v21  ;;  %v7664_v21 = vpack.c.bf16 %v1194_v10, %v1186_v9  ;;  %v1208_v22 = vld [vmem:[#allocation6 + $0x168] sm:$0xff]  ;;  %v1257_v9 = vld [vmem:[#allocation6 + $0x2f0] sm:$0xff] }
 0x17c   :  { %v1121_v27 = vadd.f32 1.0, %v9569_v23  ;;  %v1202_v23 = vld [vmem:[#allocation6 + $0x138] sm:$0xff]  ;;  %v1264_v10 = vld [vmem:[#allocation6 + $0x328] sm:$0xff] }
 0x17d   :  { %v10289_v28 = vadd.f32 %v1130_v26, %v1129_v24  ;;  %v1210_v24 = vld [vmem:[#allocation6 + $0x178] sm:$0xff]  ;;  %v7602_v26 = vpack.c.bf16 %v1191_v16, %v1183_v15  ;;  %v7618_v15 = vpack.c.bf16 %v1255_v6, %v1247_v50  ;;  %v7682_v16 = vpack.c.bf16 %v1257_v9, %v1249_v8 }
 0x17e   :  { %9570 = vrcp.f32 %v1121_v27  ;;  %v7666_v27 = vpack.c.bf16 %v1193_v18, %v1185_v17  ;;  %v1263_v17 = vld [vmem:[#allocation6 + $0x320] sm:$0xff] }
 0x17f   :  { %9572 = vtanh.f32 %v10289_v28  ;;  %v1271_v18 = vld [vmem:[#allocation6 + $0x360] sm:$0xff] }
 0x188   :  { %v9571_v29 = vpop.eup %9570 }
 0x189   :  { %v9573_v30 = vpop.eup %9572 }
 0x18a   :  { %v10292_v32 = vmul.f32 %v9573_v30, %v9571_v29  ;;  %v1199_v29 = vld [vmem:[#allocation6 + $0x120] sm:$0xff] }
 0x18b   :  { %v1207_v30 = vld [vmem:[#allocation6 + $0x160] sm:$0xff] }
 0x18c   :  { %1158 = vst [vmem:[#allocation3] sm:$0xf] %v10292_v32 }
 0x195   :  { %v1006_v33 = vpop.f32.mrb[12].mxu0 }
 0x196   :  { %v1098_v34 = vrot.slane %v1006_v33, 4  ;;  %v1008_v35 = vpop.f32.mrb[13].mxu0  ;;  %v7604_v33 = vpack.c.bf16 %v1208_v22, %v1200_v19  ;;  %v1273_v22 = vld [vmem:[#allocation6 + $0x370] sm:$0xff] }
 0x197   :  { %v1099_v41 = vrot.slane %v1008_v35, 4  ;;  %v1201_v35 = vld [vmem:[#allocation6 + $0x130] sm:$0xff] }
 0x198   :  { %v1106_v12 = vadd.f32 %v1098_v34, %v1090_v5  ;;  %v7668_v34 = vpack.c.bf16 %v1210_v24, %v1202_v23  ;;  %v1209_v5 = vld [vmem:[#allocation6 + $0x170] sm:$0xff]  ;;  %v1280_v23 = vld [vmem:[#allocation6 + $0x3a8] sm:$0xff] }
 0x199   :  { %v1107_v43 = vadd.f32 %v1099_v41, %v1091_v42  ;;  %v1216_v41 = vld [vmem:[#allocation6 + $0x1a8] sm:$0xff]  ;;  %v1218_v42 = vld [vmem:[#allocation6 + $0x1b8] sm:$0xff] }
 0x19a   :  { %v7071_v40 = vmul.f32 -1.442695, %v1106_v12  ;;  %v1224_v12 = vld [vmem:[#allocation6 + $0x1e8] sm:$0xff] }
 0x19b   :  { %v7072_v44 = vmul.f32 -1.442695, %v1107_v43  ;;  %v1226_v43 = vld [vmem:[#allocation6 + $0x1f8] sm:$0xff]  ;;  %v1288_v24 = vld [vmem:[#allocation6 + $0x3e8] sm:$0xff] }
 0x19d   :  { %9574 = vpow2.f32 %v7072_v44  ;;  %v7606_v44 = vpack.c.bf16 %v1207_v30, %v1199_v29  ;;  %v7622_v29 = vpack.c.bf16 %v1271_v18, %v1263_v17 }
 0x19e   :  { %9576 = vpow2.f32 %v7071_v40  ;;  %v7670_v40 = vpack.c.bf16 %v1209_v5, %v1201_v35  ;;  %v7624_v35 = vpack.c.bf16 %v1288_v24, %v1280_v23  ;;  %v1345_v23 = vld [vmem:[#allocation6 + $0x5b0] sm:$0xff] }
 0x19f   :  { %v1353_v24 = vld [vmem:[#allocation6 + $0x5f0] sm:$0xff] }
 0x1a7   :  { %v9575_v45 = vpop.eup %9574 }
 0x1a8   :  { %v9577_v54 = vpop.eup %9576  ;;  %v1144_v46 = vadd.f32 1.0, %v9575_v45  ;;  %v1215_v45 = vld [vmem:[#allocation6 + $0x1a0] sm:$0xff] }
 0x1a9   :  { %v1143_v48 = vadd.f32 1.0, %v9577_v54  ;;  %v1223_v54 = vld [vmem:[#allocation6 + $0x1e0] sm:$0xff] }
 0x1aa   :  { %9578 = vrcp.f32 %v1144_v46  ;;  %v7608_v46 = vpack.c.bf16 %v1224_v12, %v1216_v41  ;;  %v1281_v41 = vld [vmem:[#allocation6 + $0x3b0] sm:$0xff] }
 0x1ab   :  { %9580 = vrcp.f32 %v1143_v48  ;;  %v1217_v48 = vld [vmem:[#allocation6 + $0x1b0] sm:$0xff] }
 0x1ac   :  { %v1077_v47 = vpop.f32.mrb[24].mxu1  ;;  %v1289_v12 = vld [vmem:[#allocation6 + $0x3f0] sm:$0xff] }
 0x1ad   :  { %v1100_v49 = vrot.slane %v1077_v47, 4  ;;  %v1079_v36 = vpop.f32.mrb[25].mxu1  ;;  %v7672_v47 = vpack.c.bf16 %v1226_v43, %v1218_v42  ;;  %v1296_v42 = vld [vmem:[#allocation6 + $0x428] sm:$0xff] }
 0x1ae   :  { %v1101_v52 = vrot.slane %v1079_v36, 4  ;;  %v1232_v36 = vld [vmem:[#allocation6 + $0x228] sm:$0xff] }
 0x1af   :  { %v1108_v53 = vadd.f32 %v1100_v49, %v1092_v51  ;;  %v1225_v49 = vld [vmem:[#allocation6 + $0x1f0] sm:$0xff]  ;;  %v1240_v51 = vld [vmem:[#allocation6 + $0x268] sm:$0xff] }
 0x1b0   :  { %v1109_v57 = vadd.f32 %v1101_v52, %v1093_v56  ;;  %v1234_v52 = vld [vmem:[#allocation6 + $0x238] sm:$0xff]  ;;  %v7610_v56 = vpack.c.bf16 %v1223_v54, %v1215_v45  ;;  %v1304_v43 = vld [vmem:[#allocation6 + $0x468] sm:$0xff]  ;;  %v7690_v54 = vpack.c.bf16 %v1289_v12, %v1281_v41 }
 0x1b1   :  { %v7073_v58 = vmul.f32 -1.442695, %v1108_v53  ;;  %v1242_v53 = vld [vmem:[#allocation6 + $0x278] sm:$0xff] }
 0x1b2   :  { %9582 = vtanh.f32 %v1109_v57  ;;  %v7674_v57 = vpack.c.bf16 %v1225_v49, %v1217_v48  ;;  %v7628_v48 = vpack.c.bf16 %v1304_v43, %v1296_v42  ;;  %v1361_v42 = vld [vmem:[#allocation6 + $0x630] sm:$0xff] }
 0x1b3   :  { %9584 = vpow2.f32 %v7073_v58  ;;  %v1231_v58 = vld [vmem:[#allocation6 + $0x220] sm:$0xff]  ;;  %v1369_v43 = vld [vmem:[#allocation6 + $0x670] sm:$0xff] }
 0x1b4   :  { %v9579_v59 = vpop.eup %9578 }
 0x1b5   :  { %v9581_v4 = vpop.eup %9580  ;;  %v1153_v25 = vmul.f32 0.0, %v9579_v59  ;;  %v1239_v59 = vld [vmem:[#allocation6 + $0x260] sm:$0xff] }
 0x1bc   :  { %v9583_v60 = vpop.eup %9582 }
 0x1bd   :  { %v9585_v61 = vpop.eup %9584  ;;  %v1154_v62 = vmul.f32 %v9583_v60, %v9581_v4  ;;  %v7612_v4 = vpack.c.bf16 %v1240_v51, %v1232_v36  ;;  %v7676_v60 = vpack.c.bf16 %v1242_v53, %v1234_v52  ;;  %v1297_v36 = vld [vmem:[#allocation6 + $0x430] sm:$0xff]  ;;  %v1312_v52 = vld [vmem:[#allocation6 + $0x4a8] sm:$0xff] }
 0x1be   :  { %v1145_v63 = vadd.f32 1.0, %v9585_v61  ;;  %v1233_v61 = vld [vmem:[#allocation6 + $0x230] sm:$0xff]  ;;  %v1320_v53 = vld [vmem:[#allocation6 + $0x4e8] sm:$0xff] }
 0x1bf   :  { %v10295_v0 = vadd.f32 %v1154_v62, %v1153_v25  ;;  %v1241_v25 = vld [vmem:[#allocation6 + $0x270] sm:$0xff]  ;;  %v1248_v62 = vld [vmem:[#allocation6 + $0x2a8] sm:$0xff] }
 0x1c0   :  { %9586 = vrcp.f32 %v1145_v63  ;;  %v1256_v63 = vld [vmem:[#allocation6 + $0x2e8] sm:$0xff]  ;;  %v7678_v3 = vpack.c.bf16 %v1241_v25, %v1233_v61  ;;  %v1305_v51 = vld [vmem:[#allocation6 + $0x470] sm:$0xff]  ;;  %v7632_v61 = vpack.c.bf16 %v1320_v53, %v1312_v52 }
 0x1c1   :  { %9588 = vtanh.f32 %v10295_v0  ;;  %v1377_v52 = vld [vmem:[#allocation6 + $0x6b0] sm:$0xff] }
 0x1c2   :  { %v1385_v53 = vld [vmem:[#allocation6 + $0x6f0] sm:$0xff] }
 0x1ca   :  { %v9587_v31 = vpop.eup %9586 }
 0x1cb   :  { %v9589_v38 = vpop.eup %9588 }
 0x1cc   :  { %v1157_v7 = vmul.f32 %v9589_v38, %v9587_v31  ;;  %v1250_v31 = vld [vmem:[#allocation6 + $0x2b8] sm:$0xff]  ;;  %v7614_v38 = vpack.c.bf16 %v1239_v59, %v1231_v58  ;;  %v7694_v59 = vpack.c.bf16 %v1305_v51, %v1297_v36 }
 0x1cd   :  { %v7680_v55 = vpack.c.bf16 %v1258_v2, %v1250_v31  ;;  %v1328_v31 = vld [vmem:[#allocation6 + $0x528] sm:$0xff] }
 0x1ce   :  { %1159 = vst [vmem:[#allocation3 + $0x38] sm:$0xf0] %v1157_v7  ;;  %v1161_v11 = vrot.slane %v1157_v7, 4  ;;  %v7616_v7 = vpack.c.bf16 %v1256_v63, %v1248_v62  ;;  %v1313_v62 = vld [vmem:[#allocation6 + $0x4b0] sm:$0xff]  ;;  %v1336_v2 = vld [vmem:[#allocation6 + $0x568] sm:$0xff] }
 0x1cf   :  { %v1321_v63 = vld [vmem:[#allocation6 + $0x4f0] sm:$0xff]  ;;  %v7636_v8 = vpack.c.bf16 %v1336_v2, %v1328_v31 }
 0x1d0   :  { %1483 = vmatprep.mubr.f32.mxu0 %v1161_v11  ;;  %1554 = vmatprep.mubr.f32.mxu1 %v1161_v11  ;;  %v7698_v6 = vpack.c.bf16 %v1321_v63, %v1313_v62  ;;  %v1393_v31 = vld [vmem:[#allocation6 + $0x730] sm:$0xff] }
 0x1d1   :  { %1484 = vmatmul.mubr.f32.vlgmr.msra.gmra.mrb[14].mxu0 %v10292_v32  ;;  %1555 = vmatmul.mubr.f32.vlgmr.msra.gmra.mrb[26].mxu1 %v10292_v32  ;;  %v1401_v2 = vld [vmem:[#allocation6 + $0x770] sm:$0xff] }
 0x1d2   :  { %7599 = vmatpush1.bf16.msra.mxu0 %v7598_v13  ;;  %7663 = vmatpush1.bf16.msra.mxu1 %v7662_v14  ;;  %v1266_v13 = vld [vmem:[#allocation6 + $0x338] sm:$0xff] }
 0x1d3   :  { %1625 = vmatprep.mubr.f32.mxu0 %v1161_v11  ;;  %1696 = vmatprep.mubr.f32.mxu1 %v1161_v11  ;;  %v1272_v11 = vld [vmem:[#allocation6 + $0x368] sm:$0xff]  ;;  %v1274_v14 = vld [vmem:[#allocation6 + $0x378] sm:$0xff] }
 0x1d4   :  { %7601 = vmatprep.subr.bf16.mxu0 %v7600_v20  ;;  %7665 = vmatprep.subr.bf16.mxu1 %v7664_v21  ;;  %v7620_v19 = vpack.c.bf16 %v1272_v11, %v1264_v10  ;;  %v7684_v20 = vpack.c.bf16 %v1274_v14, %v1266_v13  ;;  %v1265_v21 = vld [vmem:[#allocation6 + $0x330] sm:$0xff]  ;;  %v1344_v13 = vld [vmem:[#allocation6 + $0x5a8] sm:$0xff] }
 0x1d5   :  { %v7686_v30 = vpack.c.bf16 %v1273_v22, %v1265_v21  ;;  %v1329_v10 = vld [vmem:[#allocation6 + $0x530] sm:$0xff]  ;;  %v1352_v14 = vld [vmem:[#allocation6 + $0x5e8] sm:$0xff] }
 0x1d6   :  { %7603 = vmatpush1.bf16.msra.mxu0 %v7602_v26  ;;  %7667 = vmatpush1.bf16.msra.mxu1 %v7666_v27  ;;  %v1282_v26 = vld [vmem:[#allocation6 + $0x3b8] sm:$0xff]  ;;  %v1337_v11 = vld [vmem:[#allocation6 + $0x570] sm:$0xff]  ;;  %v7640_v21 = vpack.c.bf16 %v1352_v14, %v1344_v13 }
 0x1d7   :  { %7605 = vmatprep.subr.bf16.mxu0 %v7604_v33  ;;  %7669 = vmatprep.subr.bf16.mxu1 %v7668_v34  ;;  %v1290_v27 = vld [vmem:[#allocation6 + $0x3f8] sm:$0xff]  ;;  %v1279_v33 = vld [vmem:[#allocation6 + $0x3a0] sm:$0xff]  ;;  %v7702_v18 = vpack.c.bf16 %v1337_v11, %v1329_v10  ;;  %v1409_v13 = vld [vmem:[#allocation6 + $0x7b0] sm:$0xff] }
 0x1d8   :  { %v1287_v34 = vld [vmem:[#allocation6 + $0x3e0] sm:$0xff]  ;;  %v7688_v5 = vpack.c.bf16 %v1290_v27, %v1282_v26  ;;  %v1360_v26 = vld [vmem:[#allocation6 + $0x628] sm:$0xff]  ;;  %v1417_v14 = vld [vmem:[#allocation6 + $0x7f0] sm:$0xff] }
 0x1d9   :  { %v7626_v45 = vpack.c.bf16 %v1287_v34, %v1279_v33  ;;  %v1368_v27 = vld [vmem:[#allocation6 + $0x668] sm:$0xff]  ;;  %v7706_v34 = vpack.c.bf16 %v1353_v24, %v1345_v23  ;;  %v1415_v11 = vld [vmem:[#allocation6 + $0x7e0] sm:$0xff] }
 0x1da   :  { %7607 = vmatpush1.bf16.msra.mxu0 %v7606_v44  ;;  %7671 = vmatpush1.bf16.msra.mxu1 %v7670_v40  ;;  %v1298_v44 = vld [vmem:[#allocation6 + $0x438] sm:$0xff]  ;;  %v7644_v41 = vpack.c.bf16 %v1368_v27, %v1360_v26  ;;  %v1797_v23 = vld [vmem:[#allocation6 + $0x40] sm:$0xff]  ;;  %v1791_v27 = vld [vmem:[#allocation6 + $0x10] sm:$0xff] }
 0x1db   :  { %7609 = vmatprep.subr.bf16.mxu0 %v7608_v46  ;;  %7673 = vmatprep.subr.bf16.mxu1 %v7672_v47  ;;  %v1306_v40 = vld [vmem:[#allocation6 + $0x478] sm:$0xff]  ;;  %v1295_v46 = vld [vmem:[#allocation6 + $0x420] sm:$0xff] }
 0x1dc   :  { %v1303_v47 = vld [vmem:[#allocation6 + $0x460] sm:$0xff]  ;;  %v7692_v49 = vpack.c.bf16 %v1306_v40, %v1298_v44  ;;  %v1376_v44 = vld [vmem:[#allocation6 + $0x6a8] sm:$0xff] }
 0x1dd   :  { %v7630_v58 = vpack.c.bf16 %v1303_v47, %v1295_v46  ;;  %v1384_v40 = vld [vmem:[#allocation6 + $0x6e8] sm:$0xff]  ;;  %v7710_v47 = vpack.c.bf16 %v1369_v43, %v1361_v42  ;;  %v1813_v42 = vld [vmem:[#allocation6 + $0xc0] sm:$0xff]  ;;  %v1807_v43 = vld [vmem:[#allocation6 + $0x90] sm:$0xff] }
 0x1de   :  { %7611 = vmatpush1.bf16.msra.mxu0 %v7610_v56  ;;  %7675 = vmatpush1.bf16.msra.mxu1 %v7674_v57  ;;  %v1314_v56 = vld [vmem:[#allocation6 + $0x4b8] sm:$0xff]  ;;  %v7648_v36 = vpack.c.bf16 %v1384_v40, %v1376_v44  ;;  %v1815_v40 = vld [vmem:[#allocation6 + $0xd0] sm:$0xff] }
 0x1df   :  { %7613 = vmatprep.subr.bf16.mxu0 %v7612_v4  ;;  %7677 = vmatprep.subr.bf16.mxu1 %v7676_v60  ;;  %v1322_v57 = vld [vmem:[#allocation6 + $0x4f8] sm:$0xff]  ;;  %v1311_v4 = vld [vmem:[#allocation6 + $0x4a0] sm:$0xff] }
 0x1e0   :  { %v1319_v60 = vld [vmem:[#allocation6 + $0x4e0] sm:$0xff]  ;;  %v7696_v25 = vpack.c.bf16 %v1322_v57, %v1314_v56  ;;  %v1392_v56 = vld [vmem:[#allocation6 + $0x728] sm:$0xff] }
 0x1e1   :  { %v7634_v50 = vpack.c.bf16 %v1319_v60, %v1311_v4  ;;  %v1400_v57 = vld [vmem:[#allocation6 + $0x768] sm:$0xff]  ;;  %v7714_v60 = vpack.c.bf16 %v1385_v53, %v1377_v52  ;;  %v1829_v52 = vld [vmem:[#allocation6 + $0x140] sm:$0xff]  ;;  %v1823_v53 = vld [vmem:[#allocation6 + $0x110] sm:$0xff] }
 0x1e2   :  { %7615 = vmatpush1.bf16.msra.mxu0 %v7614_v38  ;;  %7679 = vmatpush1.bf16.msra.mxu1 %v7678_v3  ;;  %v1330_v38 = vld [vmem:[#allocation6 + $0x538] sm:$0xff]  ;;  %v7652_v62 = vpack.c.bf16 %v1400_v57, %v1392_v56  ;;  %v1831_v56 = vld [vmem:[#allocation6 + $0x150] sm:$0xff] }
 0x1e3   :  { %7617 = vmatprep.subr.bf16.mxu0 %v7616_v7  ;;  %7681 = vmatprep.subr.bf16.mxu1 %v7680_v55  ;;  %v1338_v3 = vld [vmem:[#allocation6 + $0x578] sm:$0xff]  ;;  %v1327_v7 = vld [vmem:[#allocation6 + $0x520] sm:$0xff] }
 0x1e4   :  { %v1335_v55 = vld [vmem:[#allocation6 + $0x560] sm:$0xff]  ;;  %v7700_v9 = vpack.c.bf16 %v1338_v3, %v1330_v38  ;;  %v1408_v38 = vld [vmem:[#allocation6 + $0x7a8] sm:$0xff] }
 0x1e5   :  { %v7638_v17 = vpack.c.bf16 %v1335_v55, %v1327_v7  ;;  %v1416_v3 = vld [vmem:[#allocation6 + $0x7e8] sm:$0xff]  ;;  %v7718_v55 = vpack.c.bf16 %v1401_v2, %v1393_v31  ;;  %v1845_v31 = vld [vmem:[#allocation6 + $0x1c0] sm:$0xff]  ;;  %v1839_v2 = vld [vmem:[#allocation6 + $0x190] sm:$0xff] }
 0x1e6   :  { %7619 = vmatpush1.bf16.msra.mxu0 %v7618_v15  ;;  %7683 = vmatpush1.bf16.msra.mxu1 %v7682_v16  ;;  %v1346_v15 = vld [vmem:[#allocation6 + $0x5b8] sm:$0xff] }
 0x1e7   :  { %7621 = vmatprep.subr.bf16.mxu0 %v7620_v19  ;;  %7685 = vmatprep.subr.bf16.mxu1 %v7684_v20  ;;  %v1354_v16 = vld [vmem:[#allocation6 + $0x5f8] sm:$0xff]  ;;  %v1343_v19 = vld [vmem:[#allocation6 + $0x5a0] sm:$0xff] }
 0x1e8   :  { %v1351_v20 = vld [vmem:[#allocation6 + $0x5e0] sm:$0xff]  ;;  %v7704_v22 = vpack.c.bf16 %v1354_v16, %v1346_v15  ;;  %v7722_v16 = vpack.c.bf16 %v1417_v14, %v1409_v13 }
 0x1e9   :  { %v7642_v33 = vpack.c.bf16 %v1351_v20, %v1343_v19  ;;  %v1792_v19 = vld [vmem:[#allocation6 + $0x18] sm:$0xff] }
 0x1ea   :  { %7623 = vmatpush1.bf16.msra.mxu0 %v7622_v29  ;;  %7687 = vmatpush1.bf16.msra.mxu1 %v7686_v30  ;;  %v1362_v29 = vld [vmem:[#allocation6 + $0x638] sm:$0xff] }
 0x1eb   :  { %7625 = vmatprep.subr.bf16.mxu0 %v7624_v35  ;;  %7689 = vmatprep.subr.bf16.mxu1 %v7688_v5  ;;  %v1370_v30 = vld [vmem:[#allocation6 + $0x678] sm:$0xff]  ;;  %v1359_v35 = vld [vmem:[#allocation6 + $0x620] sm:$0xff] }
 0x1ec   :  { %v1367_v5 = vld [vmem:[#allocation6 + $0x660] sm:$0xff]  ;;  %v7708_v12 = vpack.c.bf16 %v1370_v30, %v1362_v29  ;;  %v1799_v29 = vld [vmem:[#allocation6 + $0x50] sm:$0xff]  ;;  %v1806_v30 = vld [vmem:[#allocation6 + $0x88] sm:$0xff] }
 0x1ed   :  { %v7646_v46 = vpack.c.bf16 %v1367_v5, %v1359_v35  ;;  %v1808_v35 = vld [vmem:[#allocation6 + $0x98] sm:$0xff] }
 0x1ee   :  { %7627 = vmatpush1.bf16.msra.mxu0 %v7626_v45  ;;  %7691 = vmatpush1.bf16.msra.mxu1 %v7690_v54  ;;  %v1378_v45 = vld [vmem:[#allocation6 + $0x6b8] sm:$0xff] }
 0x1ef   :  { %7629 = vmatprep.subr.bf16.mxu0 %v7628_v48  ;;  %7693 = vmatprep.subr.bf16.mxu1 %v7692_v49  ;;  %v1386_v54 = vld [vmem:[#allocation6 + $0x6f8] sm:$0xff]  ;;  %v1375_v48 = vld [vmem:[#allocation6 + $0x6a0] sm:$0xff] }
 0x1f0   :  { %v1383_v49 = vld [vmem:[#allocation6 + $0x6e0] sm:$0xff]  ;;  %v7712_v51 = vpack.c.bf16 %v1386_v54, %v1378_v45  ;;  %v1816_v5 = vld [vmem:[#allocation6 + $0xd8] sm:$0xff]  ;;  %v1822_v45 = vld [vmem:[#allocation6 + $0x108] sm:$0xff] }
 0x1f1   :  { %v7650_v4 = vpack.c.bf16 %v1383_v49, %v1375_v48  ;;  %v1830_v54 = vld [vmem:[#allocation6 + $0x148] sm:$0xff]  ;;  %v1824_v48 = vld [vmem:[#allocation6 + $0x118] sm:$0xff] }
 0x1f2   :  { %7631 = vmatpush1.bf16.msra.mxu0 %v7630_v58  ;;  %7695 = vmatpush1.bf16.msra.mxu1 %v7694_v59  ;;  %v1394_v58 = vld [vmem:[#allocation6 + $0x738] sm:$0xff] }
 0x1f3   :  { %7633 = vmatprep.subr.bf16.mxu0 %v7632_v61  ;;  %7697 = vmatprep.subr.bf16.mxu1 %v7696_v25  ;;  %v1402_v59 = vld [vmem:[#allocation6 + $0x778] sm:$0xff]  ;;  %v1391_v61 = vld [vmem:[#allocation6 + $0x720] sm:$0xff] }
 0x1f4   :  { %v1399_v25 = vld [vmem:[#allocation6 + $0x760] sm:$0xff]  ;;  %v7716_v63 = vpack.c.bf16 %v1402_v59, %v1394_v58  ;;  %v1832_v49 = vld [vmem:[#allocation6 + $0x158] sm:$0xff]  ;;  %v1838_v58 = vld [vmem:[#allocation6 + $0x188] sm:$0xff] }
 0x1f5   :  { %v7654_v7 = vpack.c.bf16 %v1399_v25, %v1391_v61  ;;  %v1846_v59 = vld [vmem:[#allocation6 + $0x1c8] sm:$0xff]  ;;  %v1848_v25 = vld [vmem:[#allocation6 + $0x1d8] sm:$0xff] }
 0x1f6   :  { %7635 = vmatpush1.bf16.msra.mxu0 %v7634_v50  ;;  %7699 = vmatpush1.bf16.msra.mxu1 %v7698_v6  ;;  %v1410_v50 = vld [vmem:[#allocation6 + $0x7b8] sm:$0xff]  ;;  %v7736_v61 = vpack.c.bf16 %v1846_v59, %v1838_v58  ;;  %v1911_v58 = vld [vmem:[#allocation6 + $0x3d0] sm:$0xff] }
 0x1f7   :  { %7637 = vmatprep.subr.bf16.mxu0 %v7636_v8  ;;  %7701 = vmatprep.subr.bf16.mxu1 %v7700_v9  ;;  %v1418_v6 = vld [vmem:[#allocation6 + $0x7f8] sm:$0xff]  ;;  %v1407_v8 = vld [vmem:[#allocation6 + $0x7a0] sm:$0xff]  ;;  %v7656_v9 = vpack.c.bf16 %v1416_v3, %v1408_v38  ;;  %v1847_v3 = vld [vmem:[#allocation6 + $0x1d0] sm:$0xff] }
 0x1f8   :  { %v7720_v10 = vpack.c.bf16 %v1418_v6, %v1410_v50  ;;  %v7658_v15 = vpack.c.bf16 %v1415_v11, %v1407_v8  ;;  %v7802_v50 = vpack.c.bf16 %v1847_v3, %v1839_v2  ;;  %v1854_v6 = vld [vmem:[#allocation6 + $0x208] sm:$0xff]  ;;  %v1861_v11 = vld [vmem:[#allocation6 + $0x240] sm:$0xff]  ;;  %v1919_v3 = vld [vmem:[#allocation6 + $0x410] sm:$0xff] }
 0x1fa   :  { %7639 = vmatpush1.bf16.msra.mxu0 %v7638_v17  ;;  %7703 = vmatpush1.bf16.msra.mxu1 %v7702_v18  ;;  %v1790_v17 = vld [vmem:[#allocation6 + $0x8] sm:$0xff] }
 0x1fb   :  { %7641 = vmatprep.subr.bf16.mxu0 %v7640_v21  ;;  %7705 = vmatprep.subr.bf16.mxu1 %v7704_v22  ;;  %v1798_v18 = vld [vmem:[#allocation6 + $0x48] sm:$0xff]  ;;  %v1800_v21 = vld [vmem:[#allocation6 + $0x58] sm:$0xff]  ;;  %v1789_v22 = vld [vmem:[#allocation6] sm:$0xff] }
 0x1fc   :  { %v7724_v20 = vpack.c.bf16 %v1798_v18, %v1790_v17  ;;  %v7788_v24 = vpack.c.bf16 %v1800_v21, %v1792_v19  ;;  %v7726_v26 = vpack.c.bf16 %v1797_v23, %v1789_v22  ;;  %v1870_v18 = vld [vmem:[#allocation6 + $0x288] sm:$0xff]  ;;  %v1880_v22 = vld [vmem:[#allocation6 + $0x2d8] sm:$0xff]  ;;  %v1869_v23 = vld [vmem:[#allocation6 + $0x280] sm:$0xff] }
 0x1fd   :  { %v1878_v19 = vld [vmem:[#allocation6 + $0x2c8] sm:$0xff] }
 0x1fe   :  { %7643 = vmatpush1.bf16.msra.mxu0 %v7642_v33  ;;  %7707 = vmatpush1.bf16.msra.mxu1 %v7706_v34  ;;  %v7790_v33 = vpack.c.bf16 %v1799_v29, %v1791_v27  ;;  %v1814_v34 = vld [vmem:[#allocation6 + $0xc8] sm:$0xff]  ;;  %v7744_v21 = vpack.c.bf16 %v1878_v19, %v1870_v18  ;;  %v1871_v29 = vld [vmem:[#allocation6 + $0x290] sm:$0xff] }
 0x1ff   :  { %7645 = vmatprep.subr.bf16.mxu0 %v7644_v41  ;;  %7709 = vmatprep.subr.bf16.mxu1 %v7708_v12  ;;  %v7792_v41 = vpack.c.bf16 %v1816_v5, %v1808_v35  ;;  %v1805_v12 = vld [vmem:[#allocation6 + $0x80] sm:$0xff]  ;;  %v1894_v35 = vld [vmem:[#allocation6 + $0x348] sm:$0xff]  ;;  %v1888_v5 = vld [vmem:[#allocation6 + $0x318] sm:$0xff] }
 0x200   :  { %v7730_v44 = vpack.c.bf16 %v1813_v42, %v1805_v12  ;;  %v1885_v12 = vld [vmem:[#allocation6 + $0x300] sm:$0xff]  ;;  %v1950_v19 = vld [vmem:[#allocation6 + $0x508] sm:$0xff] }
 0x201   :  { %v1893_v42 = vld [vmem:[#allocation6 + $0x340] sm:$0xff] }
 0x202   :  { %7647 = vmatpush1.bf16.msra.mxu0 %v7646_v46  ;;  %7711 = vmatpush1.bf16.msra.mxu1 %v7710_v47  ;;  %v7794_v46 = vpack.c.bf16 %v1815_v40, %v1807_v43  ;;  %v7732_v47 = vpack.c.bf16 %v1830_v54, %v1822_v45  ;;  %v1887_v40 = vld [vmem:[#allocation6 + $0x310] sm:$0xff] }
 0x203   :  { %7649 = vmatprep.subr.bf16.mxu0 %v7648_v36  ;;  %7713 = vmatprep.subr.bf16.mxu1 %v7712_v51  ;;  %v1821_v36 = vld [vmem:[#allocation6 + $0x100] sm:$0xff]  ;;  %v7796_v51 = vpack.c.bf16 %v1832_v49, %v1824_v48  ;;  %v1895_v45 = vld [vmem:[#allocation6 + $0x350] sm:$0xff]  ;;  %v1904_v48 = vld [vmem:[#allocation6 + $0x398] sm:$0xff] }
 0x204   :  { %v7734_v57 = vpack.c.bf16 %v1829_v52, %v1821_v36  ;;  %v7814_v54 = vpack.c.bf16 %v1895_v45, %v1887_v40  ;;  %v1912_v36 = vld [vmem:[#allocation6 + $0x3d8] sm:$0xff]  ;;  %v1909_v52 = vld [vmem:[#allocation6 + $0x3c0] sm:$0xff]  ;;  %v1967_v45 = vld [vmem:[#allocation6 + $0x590] sm:$0xff] }
 0x206   :  { %7651 = vmatpush1.bf16.msra.mxu0 %v7650_v4  ;;  %7715 = vmatpush1.bf16.msra.mxu1 %v7714_v60  ;;  %v1840_v4 = vld [vmem:[#allocation6 + $0x198] sm:$0xff]  ;;  %v7798_v60 = vpack.c.bf16 %v1831_v56, %v1823_v53  ;;  %v7816_v53 = vpack.c.bf16 %v1912_v36, %v1904_v48  ;;  %v1990_v48 = vld [vmem:[#allocation6 + $0x648] sm:$0xff] }
 0x207   :  { %7653 = vmatprep.subr.bf16.mxu0 %v7652_v62  ;;  %7717 = vmatprep.subr.bf16.mxu1 %v7716_v63  ;;  %v7800_v62 = vpack.c.bf16 %v1848_v25, %v1840_v4  ;;  %v1837_v63 = vld [vmem:[#allocation6 + $0x180] sm:$0xff]  ;;  %v1918_v4 = vld [vmem:[#allocation6 + $0x408] sm:$0xff] }
 0x208   :  { %v7738_v38 = vpack.c.bf16 %v1845_v31, %v1837_v63  ;;  %v1917_v63 = vld [vmem:[#allocation6 + $0x400] sm:$0xff] }
 0x209   :  { %v1925_v31 = vld [vmem:[#allocation6 + $0x440] sm:$0xff] }
 0x20a   :  { %7655 = vmatpush1.bf16.msra.mxu0 %v7654_v7  ;;  %7719 = vmatpush1.bf16.msra.mxu1 %v7718_v55  ;;  %v1862_v7 = vld [vmem:[#allocation6 + $0x248] sm:$0xff]  ;;  %v1856_v55 = vld [vmem:[#allocation6 + $0x218] sm:$0xff] }
 0x20b   :  { %7657 = vmatprep.subr.bf16.mxu0 %v7656_v9  ;;  %7721 = vmatprep.subr.bf16.mxu1 %v7720_v10  ;;  %v7740_v8 = vpack.c.bf16 %v1862_v7, %v1854_v6  ;;  %v1864_v9 = vld [vmem:[#allocation6 + $0x258] sm:$0xff]  ;;  %v1853_v10 = vld [vmem:[#allocation6 + $0x200] sm:$0xff]  ;;  %v1934_v7 = vld [vmem:[#allocation6 + $0x488] sm:$0xff] }
 0x20c   :  { %v7804_v13 = vpack.c.bf16 %v1864_v9, %v1856_v55  ;;  %v7742_v14 = vpack.c.bf16 %v1861_v11, %v1853_v10  ;;  %v1942_v55 = vld [vmem:[#allocation6 + $0x4c8] sm:$0xff]  ;;  %v1944_v10 = vld [vmem:[#allocation6 + $0x4d8] sm:$0xff]  ;;  %v1933_v11 = vld [vmem:[#allocation6 + $0x480] sm:$0xff] }
 0x20d   :  { %v7760_v9 = vpack.c.bf16 %v1942_v55, %v1934_v7  ;;  %v2014_v7 = vld [vmem:[#allocation6 + $0x708] sm:$0xff] }
 0x20e   :  { %7659 = vmatpush1.bf16.msra.mxu0 %v7658_v15  ;;  %7723 = vmatpush1.bf16.msra.mxu1 %v7722_v16  ;;  %v1855_v15 = vld [vmem:[#allocation6 + $0x210] sm:$0xff]  ;;  %v2022_v55 = vld [vmem:[#allocation6 + $0x748] sm:$0xff] }
 0x20f   :  { %7725 = vmatprep.subr.bf16.mxu0 %v7724_v20  ;;  %7789 = vmatprep.subr.bf16.mxu1 %v7788_v24  ;;  %v1863_v16 = vld [vmem:[#allocation6 + $0x250] sm:$0xff]  ;;  %v1872_v20 = vld [vmem:[#allocation6 + $0x298] sm:$0xff]  ;;  %v1877_v24 = vld [vmem:[#allocation6 + $0x2c0] sm:$0xff] }
 0x210   :  { %v7806_v17 = vpack.c.bf16 %v1863_v16, %v1855_v15  ;;  %v7746_v27 = vpack.c.bf16 %v1877_v24, %v1869_v23  ;;  %v1935_v16 = vld [vmem:[#allocation6 + $0x490] sm:$0xff]  ;;  %v1960_v23 = vld [vmem:[#allocation6 + $0x558] sm:$0xff]  ;;  %v1949_v24 = vld [vmem:[#allocation6 + $0x500] sm:$0xff] }
 0x211   :  { %1626 = vmatmul.mubr.f32.vlgmr.msra.gmra.mrb[16].mxu0 %v10292_v32  ;;  %1697 = vmatmul.mubr.f32.vlgmr.msra.gmra.mrb[28].mxu1 %v10292_v32  ;;  %v7728_v32 = vpack.c.bf16 %v1814_v34, %v1806_v30  ;;  %v1879_v30 = vld [vmem:[#allocation6 + $0x2d0] sm:$0xff]  ;;  %v1886_v34 = vld [vmem:[#allocation6 + $0x308] sm:$0xff] }
 0x212   :  { %7727 = vmatpush1.bf16.msra.mxu0 %v7726_v26  ;;  %7791 = vmatpush1.bf16.msra.mxu1 %v7790_v33  ;;  %v7808_v26 = vpack.c.bf16 %v1880_v22, %v1872_v20  ;;  %v7810_v33 = vpack.c.bf16 %v1879_v30, %v1871_v29  ;;  %v1958_v20 = vld [vmem:[#allocation6 + $0x548] sm:$0xff]  ;;  %v1951_v30 = vld [vmem:[#allocation6 + $0x510] sm:$0xff] }
 0x213   :  { %7729 = vmatprep.subr.bf16.mxu0 %v7728_v32  ;;  %7793 = vmatprep.subr.bf16.mxu1 %v7792_v41  ;;  %v7748_v32 = vpack.c.bf16 %v1894_v35, %v1886_v34  ;;  %v1896_v41 = vld [vmem:[#allocation6 + $0x358] sm:$0xff]  ;;  %v7764_v22 = vpack.c.bf16 %v1958_v20, %v1950_v19  ;;  %v1966_v35 = vld [vmem:[#allocation6 + $0x588] sm:$0xff] }
 0x214   :  { %v7812_v43 = vpack.c.bf16 %v1896_v41, %v1888_v5  ;;  %v1974_v5 = vld [vmem:[#allocation6 + $0x5c8] sm:$0xff] }
 0x215   :  { %v7768_v41 = vpack.c.bf16 %v1974_v5, %v1966_v35  ;;  %v2030_v19 = vld [vmem:[#allocation6 + $0x788] sm:$0xff] }
 0x216   :  { %7731 = vmatpush1.bf16.msra.mxu0 %v7730_v44  ;;  %7795 = vmatpush1.bf16.msra.mxu1 %v7794_v46  ;;  %v7750_v44 = vpack.c.bf16 %v1893_v42, %v1885_v12  ;;  %v1902_v46 = vld [vmem:[#allocation6 + $0x388] sm:$0xff]  ;;  %v1976_v12 = vld [vmem:[#allocation6 + $0x5d8] sm:$0xff]  ;;  %v1965_v42 = vld [vmem:[#allocation6 + $0x580] sm:$0xff] }
 0x217   :  { %7733 = vmatprep.subr.bf16.mxu0 %v7732_v47  ;;  %7797 = vmatprep.subr.bf16.mxu1 %v7796_v51  ;;  %v1910_v47 = vld [vmem:[#allocation6 + $0x3c8] sm:$0xff]  ;;  %v1901_v51 = vld [vmem:[#allocation6 + $0x380] sm:$0xff] }
 0x218   :  { %v7752_v49 = vpack.c.bf16 %v1910_v47, %v1902_v46  ;;  %v7754_v56 = vpack.c.bf16 %v1909_v52, %v1901_v51  ;;  %v1982_v47 = vld [vmem:[#allocation6 + $0x608] sm:$0xff]  ;;  %v1992_v51 = vld [vmem:[#allocation6 + $0x658] sm:$0xff]  ;;  %v1981_v52 = vld [vmem:[#allocation6 + $0x600] sm:$0xff] }
 0x219   :  { %v7772_v36 = vpack.c.bf16 %v1990_v48, %v1982_v47  ;;  %v2038_v20 = vld [vmem:[#allocation6 + $0x7c8] sm:$0xff]  ;;  %v1703_v47 = vld [vmem:[#allocation2] sm:$0xf0] }
 0x21a   :  { %7735 = vmatpush1.bf16.msra.mxu0 %v7734_v57  ;;  %7799 = vmatpush1.bf16.msra.mxu1 %v7798_v60  ;;  %v1903_v57 = vld [vmem:[#allocation6 + $0x390] sm:$0xff]  ;;  %v1926_v60 = vld [vmem:[#allocation6 + $0x448] sm:$0xff] }
 0x21b   :  { %7737 = vmatprep.subr.bf16.mxu0 %v7736_v61  ;;  %7801 = vmatprep.subr.bf16.mxu1 %v7800_v62  ;;  %v7818_v59 = vpack.c.bf16 %v1911_v58, %v1903_v57  ;;  %v1920_v61 = vld [vmem:[#allocation6 + $0x418] sm:$0xff]  ;;  %v7756_v25 = vpack.c.bf16 %v1926_v60, %v1918_v4  ;;  %v1983_v58 = vld [vmem:[#allocation6 + $0x610] sm:$0xff]  ;;  %v1998_v4 = vld [vmem:[#allocation6 + $0x688] sm:$0xff] }
 0x21c   :  { %v1928_v62 = vld [vmem:[#allocation6 + $0x458] sm:$0xff]  ;;  %v1794_v5 = vld [vmem:[#allocation6 + $0x28] sm:$0xff] }
 0x21d   :  { %v7820_v2 = vpack.c.bf16 %v1928_v62, %v1920_v61  ;;  %v2006_v61 = vld [vmem:[#allocation6 + $0x6c8] sm:$0xff]  ;;  %v2008_v62 = vld [vmem:[#allocation6 + $0x6d8] sm:$0xff] }
 0x21e   :  { %7739 = vmatpush1.bf16.msra.mxu0 %v7738_v38  ;;  %7803 = vmatpush1.bf16.msra.mxu1 %v7802_v50  ;;  %v7758_v38 = vpack.c.bf16 %v1925_v31, %v1917_v63  ;;  %v1927_v50 = vld [vmem:[#allocation6 + $0x450] sm:$0xff]  ;;  %v7776_v63 = vpack.c.bf16 %v2006_v61, %v1998_v4  ;;  %v1706_v4 = vld [vmem:[#allocation2 + $0x18] sm:$0xf0] }
 0x21f   :  { %7741 = vmatprep.subr.bf16.mxu0 %v7740_v8  ;;  %7805 = vmatprep.subr.bf16.mxu1 %v7804_v13  ;;  %v7822_v6 = vpack.c.bf16 %v1927_v50, %v1919_v3  ;;  %v1936_v8 = vld [vmem:[#allocation6 + $0x498] sm:$0xff]  ;;  %v1941_v13 = vld [vmem:[#allocation6 + $0x4c0] sm:$0xff]  ;;  %v1999_v3 = vld [vmem:[#allocation6 + $0x690] sm:$0xff] }
 0x220   :  { %v7762_v15 = vpack.c.bf16 %v1941_v13, %v1933_v11  ;;  %v2024_v11 = vld [vmem:[#allocation6 + $0x758] sm:$0xff]  ;;  %v2013_v13 = vld [vmem:[#allocation6 + $0x700] sm:$0xff] }
 0x222   :  { %7743 = vmatpush1.bf16.msra.mxu0 %v7742_v14  ;;  %7807 = vmatpush1.bf16.msra.mxu1 %v7806_v17  ;;  %v7824_v14 = vpack.c.bf16 %v1944_v10, %v1936_v8  ;;  %v1943_v17 = vld [vmem:[#allocation6 + $0x4d0] sm:$0xff]  ;;  %v2016_v10 = vld [vmem:[#allocation6 + $0x718] sm:$0xff] }
 0x223   :  { %7745 = vmatprep.subr.bf16.mxu0 %v7744_v21  ;;  %7809 = vmatprep.subr.bf16.mxu1 %v7808_v26  ;;  %v7826_v18 = vpack.c.bf16 %v1943_v17, %v1935_v16  ;;  %v1952_v21 = vld [vmem:[#allocation6 + $0x518] sm:$0xff]  ;;  %v1957_v26 = vld [vmem:[#allocation6 + $0x540] sm:$0xff]  ;;  %v2015_v16 = vld [vmem:[#allocation6 + $0x710] sm:$0xff] }
 0x224   :  { %v7766_v29 = vpack.c.bf16 %v1957_v26, %v1949_v24  ;;  %v2023_v17 = vld [vmem:[#allocation6 + $0x750] sm:$0xff]  ;;  %v2040_v24 = vld [vmem:[#allocation6 + $0x7d8] sm:$0xff]  ;;  %v2029_v26 = vld [vmem:[#allocation6 + $0x780] sm:$0xff] }
 0x226   :  { %7747 = vmatpush1.bf16.msra.mxu0 %v7746_v27  ;;  %7811 = vmatpush1.bf16.msra.mxu1 %v7810_v33  ;;  %v7828_v27 = vpack.c.bf16 %v1960_v23, %v1952_v21  ;;  %v1959_v33 = vld [vmem:[#allocation6 + $0x550] sm:$0xff]  ;;  %v2032_v21 = vld [vmem:[#allocation6 + $0x798] sm:$0xff]  ;;  %v7784_v23 = vpack.c.bf16 %v2038_v20, %v2030_v19  ;;  %v1724_v19 = vld [vmem:[#allocation2 + $0xe8] sm:$0xf] }
 0x227   :  { %7749 = vmatprep.subr.bf16.mxu0 %v7748_v32  ;;  %7813 = vmatprep.subr.bf16.mxu1 %v7812_v43  ;;  %v7830_v34 = vpack.c.bf16 %v1959_v33, %v1951_v30  ;;  %v1968_v32 = vld [vmem:[#allocation6 + $0x598] sm:$0xff]  ;;  %v1973_v43 = vld [vmem:[#allocation6 + $0x5c0] sm:$0xff]  ;;  %v2031_v30 = vld [vmem:[#allocation6 + $0x790] sm:$0xff] }
 0x228   :  { %v7770_v40 = vpack.c.bf16 %v1973_v43, %v1965_v42  ;;  %v2039_v33 = vld [vmem:[#allocation6 + $0x7d0] sm:$0xff]  ;;  %v1804_v42 = vld [vmem:[#allocation6 + $0x78] sm:$0xff] }
 0x229   :  { %v7850_v35 = vpack.c.bf16 %v2039_v33, %v2031_v30 }
 0x22a   :  { %7751 = vmatpush1.bf16.msra.mxu0 %v7750_v44  ;;  %7815 = vmatpush1.bf16.msra.mxu1 %v7814_v54  ;;  %v7832_v44 = vpack.c.bf16 %v1976_v12, %v1968_v32  ;;  %v1975_v54 = vld [vmem:[#allocation6 + $0x5d0] sm:$0xff]  ;;  %v1802_v32 = vld [vmem:[#allocation6 + $0x68] sm:$0xff] }
 0x22b   :  { %7753 = vmatprep.subr.bf16.mxu0 %v7752_v49  ;;  %7817 = vmatprep.subr.bf16.mxu1 %v7816_v53  ;;  %v7834_v46 = vpack.c.bf16 %v1975_v54, %v1967_v45  ;;  %v1984_v49 = vld [vmem:[#allocation6 + $0x618] sm:$0xff]  ;;  %v1989_v53 = vld [vmem:[#allocation6 + $0x640] sm:$0xff]  ;;  %v7852_v12 = vpack.c.bf16 %v1802_v32, %v1794_v5 }
 0x22c   :  { %v7774_v57 = vpack.c.bf16 %v1989_v53, %v1981_v52 }
 0x22e   :  { %7755 = vmatpush1.bf16.msra.mxu0 %v7754_v56  ;;  %7819 = vmatpush1.bf16.msra.mxu1 %v7818_v59  ;;  %v7836_v56 = vpack.c.bf16 %v1992_v51, %v1984_v49  ;;  %v1991_v59 = vld [vmem:[#allocation6 + $0x650] sm:$0xff] }
 0x22f   :  { %7757 = vmatprep.subr.bf16.mxu0 %v7756_v25  ;;  %7821 = vmatprep.subr.bf16.mxu1 %v7820_v2  ;;  %v7838_v60 = vpack.c.bf16 %v1991_v59, %v1983_v58  ;;  %v2000_v25 = vld [vmem:[#allocation6 + $0x698] sm:$0xff]  ;;  %v1997_v2 = vld [vmem:[#allocation6 + $0x680] sm:$0xff] }
 0x230   :  { %v7840_v31 = vpack.c.bf16 %v2008_v62, %v2000_v25 }
 0x232   :  { %7759 = vmatpush1.bf16.msra.mxu0 %v7758_v38  ;;  %7823 = vmatpush1.bf16.msra.mxu1 %v7822_v6  ;;  %v2005_v38 = vld [vmem:[#allocation6 + $0x6c0] sm:$0xff]  ;;  %v2007_v6 = vld [vmem:[#allocation6 + $0x6d0] sm:$0xff] }
 0x233   :  { %7761 = vmatprep.subr.bf16.mxu0 %v7760_v9  ;;  %7825 = vmatprep.subr.bf16.mxu1 %v7824_v14  ;;  %v7778_v50 = vpack.c.bf16 %v2005_v38, %v1997_v2  ;;  %v7842_v8 = vpack.c.bf16 %v2007_v6, %v1999_v3  ;;  %v7780_v9 = vpack.c.bf16 %v2022_v55, %v2014_v7 }
 0x234   :  { %v7844_v14 = vpack.c.bf16 %v2024_v11, %v2016_v10 }
 0x236   :  { %7763 = vmatpush1.bf16.msra.mxu0 %v7762_v15  ;;  %7827 = vmatpush1.bf16.msra.mxu1 %v7826_v18  ;;  %v2021_v15 = vld [vmem:[#allocation6 + $0x740] sm:$0xff] }
 0x237   :  { %7765 = vmatprep.subr.bf16.mxu0 %v7764_v22  ;;  %7829 = vmatprep.subr.bf16.mxu1 %v7828_v27  ;;  %v7782_v18 = vpack.c.bf16 %v2021_v15, %v2013_v13  ;;  %v7846_v22 = vpack.c.bf16 %v2023_v17, %v2015_v16  ;;  %v2037_v27 = vld [vmem:[#allocation6 + $0x7c0] sm:$0xff] }
 0x238   :  { %v1723_v15 = vld [vmem:[#allocation2 + $0xe0] sm:$0xf] }
 0x23a   :  { %7767 = vmatpush1.bf16.msra.mxu0 %v7766_v29  ;;  %7831 = vmatpush1.bf16.msra.mxu1 %v7830_v34  ;;  %v7848_v29 = vpack.c.bf16 %v2040_v24, %v2032_v21  ;;  %v7786_v34 = vpack.c.bf16 %v2037_v27, %v2029_v26  ;;  %v1726_v26 = vld [vmem:[#allocation2 + $0xf8] sm:$0xf] }
 0x23b   :  { %7769 = vmatprep.subr.bf16.mxu0 %v7768_v41  ;;  %7833 = vmatprep.subr.bf16.mxu1 %v7832_v44  ;;  %v1796_v41 = vld [vmem:[#allocation6 + $0x38] sm:$0xff] }
 0x23c   :  { %v7916_v43 = vpack.c.bf16 %v1804_v42, %v1796_v41 }
 0x23e   :  { %7771 = vmatpush1.bf16.msra.mxu0 %v7770_v40  ;;  %7835 = vmatpush1.bf16.msra.mxu1 %v7834_v46 }
 0x23f   :  { %7773 = vmatprep.subr.bf16.mxu0 %v7772_v36  ;;  %7837 = vmatprep.subr.bf16.mxu1 %v7836_v56  ;;  %v1704_v36 = vld [vmem:[#allocation2 + $0x8] sm:$0xf0] }
 0x242   :  { %7775 = vmatpush1.bf16.msra.mxu0 %v7774_v57  ;;  %7839 = vmatpush1.bf16.msra.mxu1 %v7838_v60  ;;  %v1705_v57 = vld [vmem:[#allocation2 + $0x10] sm:$0xf0] }
 0x243   :  { %7777 = vmatprep.subr.bf16.mxu0 %v7776_v63  ;;  %7841 = vmatprep.subr.bf16.mxu1 %v7840_v31 }
 0x246   :  { %7779 = vmatpush1.bf16.msra.mxu0 %v7778_v50  ;;  %7843 = vmatpush1.bf16.msra.mxu1 %v7842_v8  ;;  %v1751_v50 = vrot.slane %v10289_v28, 4 }
 0x247   :  { %7781 = vmatprep.subr.bf16.mxu0 %v7780_v9  ;;  %7845 = vmatprep.subr.bf16.mxu1 %v7844_v14 }
 0x24a   :  { %7783 = vmatpush1.bf16.msra.mxu0 %v7782_v18  ;;  %7847 = vmatpush1.bf16.msra.mxu1 %v7846_v22 }
 0x24b   :  { %7785 = vmatprep.subr.bf16.mxu0 %v7784_v23  ;;  %7849 = vmatprep.subr.bf16.mxu1 %v7848_v29  ;;  %v1725_v23 = vld [vmem:[#allocation2 + $0xf0] sm:$0xf] }
 0x24e   :  { %7787 = vmatpush1.bf16.msra.mxu0 %v7786_v34  ;;  %7851 = vmatpush1.bf16.msra.mxu1 %v7850_v35 }
 0x24f   :  { %7853 = vmatprep.subr.bf16.mxu0 %v7852_v12  ;;  %7917 = vmatprep.subr.bf16.mxu1 %v7916_v43  ;;  %v1778_v12 = vrot.slane %v10295_v0, 4  ;;  %v1818_v0 = vld [vmem:[#allocation6 + $0xe8] sm:$0xff] }
 0x2a4   :  { %v1485_v44 = vpop.f32.mrb[14].mxu0  ;;  %v1556_v40 = vpop.f32.mrb[26].mxu1 }
 0x2a5   :  { %v1711_v45 = vrot.slane %v1485_v44, 4  ;;  %v1487_v54 = vpop.f32.mrb[15].mxu0  ;;  %v1558_v46 = vpop.f32.mrb[27].mxu1  ;;  %v1713_v56 = vrot.slane %v1556_v40, 4 }
 0x2a6   :  { %v1712_v48 = vrot.slane %v1487_v54, 4  ;;  %v1714_v58 = vrot.slane %v1558_v46, 4 }
 0x2a7   :  { %v1719_v49 = vadd.f32 %v1711_v45, %v1703_v47  ;;  %v1721_v59 = vadd.f32 %v1713_v56, %v1705_v57  ;;  %v1812_v56 = vld [vmem:[#allocation6 + $0xb8] sm:$0xff] }
 0x2a8   :  { %v1720_v51 = vadd.f32 %v1712_v48, %v1704_v36  ;;  %v1722_v60 = vadd.f32 %v1714_v58, %v1706_v4  ;;  %v1793_v48 = vld [vmem:[#allocation6 + $0x20] sm:$0xff]  ;;  %v1795_v36 = vld [vmem:[#allocation6 + $0x30] sm:$0xff]  ;;  %v1820_v57 = vld [vmem:[#allocation6 + $0xf8] sm:$0xff] }
 0x2a9   :  { %v7074_v52 = vmul.f32 -1.442695, %v1719_v49  ;;  %v7076_v61 = vmul.f32 -1.442695, %v1721_v59  ;;  %v1801_v49 = vld [vmem:[#allocation6 + $0x60] sm:$0xff] }
 0x2aa   :  { %v7075_v53 = vmul.f32 -1.442695, %v1720_v51  ;;  %v1803_v51 = vld [vmem:[#allocation6 + $0x70] sm:$0xff]  ;;  %v7854_v59 = vpack.c.bf16 %v1801_v49, %v1793_v48 }
 0x2ab   :  { %9590 = vpow2.f32 %v7074_v52  ;;  %v7918_v4 = vpack.c.bf16 %v1803_v51, %v1795_v36  ;;  %v1873_v36 = vld [vmem:[#allocation6 + $0x2a0] sm:$0xff] }
 0x2ac   :  { %9592 = vpow2.f32 %v7075_v53  ;;  %v1810_v53 = vld [vmem:[#allocation6 + $0xa8] sm:$0xff]  ;;  %v1881_v51 = vld [vmem:[#allocation6 + $0x2e0] sm:$0xff] }
 0x2ad   :  { %9594 = vtanh.f32 %v1722_v60  ;;  %v1809_v60 = vld [vmem:[#allocation6 + $0xa0] sm:$0xff] }
 0x2ae   :  { %9596 = vpow2.f32 %v7076_v61  ;;  %v1817_v61 = vld [vmem:[#allocation6 + $0xe0] sm:$0xff] }
 0x2b5   :  { %v9591_v25 = vpop.eup %9590 }
 0x2b6   :  { %v1740_v62 = vadd.f32 1.0, %v9591_v25  ;;  %v9593_v63 = vpop.eup %9592 }
 0x2b7   :  { %v1741_v31 = vadd.f32 1.0, %v9593_v63  ;;  %v9595_v2 = vpop.eup %9594  ;;  %v1819_v63 = vld [vmem:[#allocation6 + $0xf0] sm:$0xff] }
 0x2b8   :  { %9598 = vrcp.f32 %v1740_v62  ;;  %v9597_v38 = vpop.eup %9596  ;;  %v1811_v62 = vld [vmem:[#allocation6 + $0xb0] sm:$0xff] }
 0x2b9   :  { %9600 = vrcp.f32 %v1741_v31  ;;  %v1742_v55 = vadd.f32 1.0, %v9597_v38  ;;  %v1826_v31 = vld [vmem:[#allocation6 + $0x128] sm:$0xff]  ;;  %v7920_v38 = vpack.c.bf16 %v1820_v57, %v1812_v56  ;;  %v1883_v56 = vld [vmem:[#allocation6 + $0x2f0] sm:$0xff] }
 0x2ba   :  { %v1890_v57 = vld [vmem:[#allocation6 + $0x328] sm:$0xff] }
 0x2bb   :  { %9602 = vrcp.f32 %v1742_v55  ;;  %v7922_v55 = vpack.c.bf16 %v1819_v63, %v1811_v62  ;;  %v1889_v62 = vld [vmem:[#allocation6 + $0x320] sm:$0xff] }
 0x2bc   :  { %v1897_v63 = vld [vmem:[#allocation6 + $0x360] sm:$0xff] }
 0x2c2   :  { %v9599_v3 = vpop.eup %9598 }
 0x2c3   :  { %v1754_v6 = vmul.f32 %v9599_v3, %v9595_v2  ;;  %v9601_v7 = vpop.eup %9600  ;;  %v7856_v2 = vpack.c.bf16 %v1818_v0, %v1810_v53  ;;  %v1834_v3 = vld [vmem:[#allocation6 + $0x168] sm:$0xff]  ;;  %v1875_v0 = vld [vmem:[#allocation6 + $0x2b0] sm:$0xff] }
 0x2c4   :  { %v1753_v8 = vmul.f32 %v9601_v7, %v1751_v50  ;;  %v1828_v50 = vld [vmem:[#allocation6 + $0x138] sm:$0xff]  ;;  %v7858_v7 = vpack.c.bf16 %v1817_v61, %v1809_v60  ;;  %v7874_v60 = vpack.c.bf16 %v1881_v51, %v1873_v36  ;;  %v7938_v61 = vpack.c.bf16 %v1883_v56, %v1875_v0 }
 0x2c5   :  { %v9603_v10 = vpop.eup %9602 }
 0x2c6   :  { %v10303_v9 = vadd.f32 %v1754_v6, %v1753_v8  ;;  %v1836_v6 = vld [vmem:[#allocation6 + $0x178] sm:$0xff]  ;;  %v1825_v8 = vld [vmem:[#allocation6 + $0x120] sm:$0xff] }
 0x2c8   :  { %9604 = vtanh.f32 %v10303_v9 }
 0x2d2   :  { %v9605_v11 = vpop.eup %9604 }
 0x2d3   :  { %v1757_v13 = vmul.f32 %v9605_v11, %v9603_v10  ;;  %v1833_v10 = vld [vmem:[#allocation6 + $0x160] sm:$0xff]  ;;  %v7860_v11 = vpack.c.bf16 %v1834_v3, %v1826_v31  ;;  %v1899_v3 = vld [vmem:[#allocation6 + $0x370] sm:$0xff] }
 0x2d5   :  { %1785 = vst [vmem:[#allocation3] sm:$0xf0] %v1757_v13  ;;  %v10310_v25 = vrot.slane %v1757_v13, 4  ;;  %v7924_v13 = vpack.c.bf16 %v1836_v6, %v1828_v50  ;;  %v1906_v50 = vld [vmem:[#allocation6 + $0x3a8] sm:$0xff] }
 0x2d6   :  { %v1914_v6 = vld [vmem:[#allocation6 + $0x3e8] sm:$0xff] }
 0x2e4   :  { %v1627_v14 = vpop.f32.mrb[16].mxu0  ;;  %v1698_v16 = vpop.f32.mrb[28].mxu1 }
 0x2e5   :  { %v1727_v17 = vadd.f32 %v1723_v15, %v1627_v14  ;;  %v1629_v18 = vpop.f32.mrb[17].mxu0  ;;  %v1700_v28 = vpop.f32.mrb[29].mxu1  ;;  %v1729_v24 = vadd.f32 %v1725_v23, %v1698_v16  ;;  %v1827_v14 = vld [vmem:[#allocation6 + $0x130] sm:$0xff]  ;;  %v1842_v16 = vld [vmem:[#allocation6 + $0x1a8] sm:$0xff] }
 0x2e6   :  { %v1728_v20 = vadd.f32 %v1724_v19, %v1629_v18  ;;  %v1730_v27 = vadd.f32 %v1726_v26, %v1700_v28  ;;  %v1835_v15 = vld [vmem:[#allocation6 + $0x170] sm:$0xff]  ;;  %v1844_v18 = vld [vmem:[#allocation6 + $0x1b8] sm:$0xff]  ;;  %v7862_v28 = vpack.c.bf16 %v1833_v10, %v1825_v8  ;;  %v7878_v8 = vpack.c.bf16 %v1897_v63, %v1889_v62 }
 0x2e7   :  { %v7077_v21 = vmul.f32 -1.442695, %v1727_v17  ;;  %v7079_v29 = vmul.f32 -1.442695, %v1729_v24  ;;  %v1850_v17 = vld [vmem:[#allocation6 + $0x1e8] sm:$0xff]  ;;  %v1852_v19 = vld [vmem:[#allocation6 + $0x1f8] sm:$0xff] }
 0x2e8   :  { %v7078_v22 = vmul.f32 -1.442695, %v1728_v20  ;;  %v7926_v20 = vpack.c.bf16 %v1835_v15, %v1827_v14  ;;  %v7864_v23 = vpack.c.bf16 %v1850_v17, %v1842_v16  ;;  %v7928_v24 = vpack.c.bf16 %v1852_v19, %v1844_v18  ;;  %v1843_v26 = vld [vmem:[#allocation6 + $0x1b0] sm:$0xff]  ;;  %v1922_v18 = vld [vmem:[#allocation6 + $0x428] sm:$0xff] }
 0x2e9   :  { %9606 = vpow2.f32 %v7077_v21  ;;  %v1841_v21 = vld [vmem:[#allocation6 + $0x1a0] sm:$0xff]  ;;  %v7880_v14 = vpack.c.bf16 %v1914_v6, %v1906_v50  ;;  %v1907_v16 = vld [vmem:[#allocation6 + $0x3b0] sm:$0xff]  ;;  %v1930_v19 = vld [vmem:[#allocation6 + $0x468] sm:$0xff] }
 0x2ea   :  { %9608 = vpow2.f32 %v7078_v22  ;;  %v1849_v22 = vld [vmem:[#allocation6 + $0x1e0] sm:$0xff]  ;;  %v1915_v17 = vld [vmem:[#allocation6 + $0x3f0] sm:$0xff] }
 0x2eb   :  { %9610 = vtanh.f32 %v1730_v27  ;;  %v1851_v27 = vld [vmem:[#allocation6 + $0x1f0] sm:$0xff] }
 0x2ec   :  { %9612 = vpow2.f32 %v7079_v29  ;;  %v1858_v29 = vld [vmem:[#allocation6 + $0x228] sm:$0xff]  ;;  %v1971_v50 = vld [vmem:[#allocation6 + $0x5b0] sm:$0xff] }
 0x2ed   :  { %v1979_v6 = vld [vmem:[#allocation6 + $0x5f0] sm:$0xff] }
 0x2f3   :  { %v9607_v30 = vpop.eup %9606 }
 0x2f4   :  { %v1767_v33 = vadd.f32 1.0, %v9607_v30  ;;  %v9609_v34 = vpop.eup %9608  ;;  %v1866_v30 = vld [vmem:[#allocation6 + $0x268] sm:$0xff] }
 0x2f5   :  { %v1768_v35 = vadd.f32 1.0, %v9609_v34  ;;  %v9611_v5 = vpop.eup %9610  ;;  %v1868_v34 = vld [vmem:[#allocation6 + $0x278] sm:$0xff] }
 0x2f6   :  { %9614 = vrcp.f32 %v1767_v33  ;;  %v9613_v32 = vpop.eup %9612  ;;  %v1860_v33 = vld [vmem:[#allocation6 + $0x238] sm:$0xff] }
 0x2f7   :  { %9616 = vrcp.f32 %v1768_v35  ;;  %v1769_v44 = vadd.f32 1.0, %v9613_v32  ;;  %v7866_v35 = vpack.c.bf16 %v1849_v22, %v1841_v21  ;;  %v1857_v32 = vld [vmem:[#allocation6 + $0x220] sm:$0xff]  ;;  %v7946_v22 = vpack.c.bf16 %v1915_v17, %v1907_v16 }
 0x2f9   :  { %9618 = vrcp.f32 %v1769_v44  ;;  %v1867_v44 = vld [vmem:[#allocation6 + $0x270] sm:$0xff] }
 0x300   :  { %v9615_v41 = vpop.eup %9614 }
 0x301   :  { %v1781_v42 = vmul.f32 %v9615_v41, %v9611_v5  ;;  %v9617_v43 = vpop.eup %9616  ;;  %v7930_v5 = vpack.c.bf16 %v1851_v27, %v1843_v26  ;;  %v1865_v41 = vld [vmem:[#allocation6 + $0x260] sm:$0xff]  ;;  %v7884_v26 = vpack.c.bf16 %v1930_v19, %v1922_v18  ;;  %v1987_v18 = vld [vmem:[#allocation6 + $0x630] sm:$0xff] }
 0x302   :  { %v1780_v40 = vmul.f32 %v9617_v43, %v1778_v12  ;;  %v7868_v12 = vpack.c.bf16 %v1866_v30, %v1858_v29  ;;  %v1859_v43 = vld [vmem:[#allocation6 + $0x230] sm:$0xff]  ;;  %v7870_v48 = vpack.c.bf16 %v1865_v41, %v1857_v32 }
 0x303   :  { %v9619_v54 = vpop.eup %9618  ;;  %v7934_v49 = vpack.c.bf16 %v1867_v44, %v1859_v43  ;;  %v1923_v29 = vld [vmem:[#allocation6 + $0x430] sm:$0xff] }
 0x304   :  { %v10307_v45 = vadd.f32 %v1781_v42, %v1780_v40  ;;  %v7932_v42 = vpack.c.bf16 %v1868_v34, %v1860_v33  ;;  %v1874_v40 = vld [vmem:[#allocation6 + $0x2a8] sm:$0xff]  ;;  %v1931_v30 = vld [vmem:[#allocation6 + $0x470] sm:$0xff] }
 0x305   :  { %v1938_v33 = vld [vmem:[#allocation6 + $0x4a8] sm:$0xff]  ;;  %v7950_v41 = vpack.c.bf16 %v1931_v30, %v1923_v29  ;;  %v1995_v19 = vld [vmem:[#allocation6 + $0x670] sm:$0xff] }
 0x306   :  { %9620 = vtanh.f32 %v10307_v45  ;;  %v1946_v34 = vld [vmem:[#allocation6 + $0x4e8] sm:$0xff] }
 0x307   :  { %v7888_v43 = vpack.c.bf16 %v1946_v34, %v1938_v33  ;;  %v2003_v33 = vld [vmem:[#allocation6 + $0x6b0] sm:$0xff] }
 0x308   :  { %v2011_v34 = vld [vmem:[#allocation6 + $0x6f0] sm:$0xff] }
 0x310   :  { %v9621_v46 = vpop.eup %9620 }
 0x311   :  { %v1784_v47 = vmul.f32 %v9621_v46, %v9619_v54  ;;  %v1882_v54 = vld [vmem:[#allocation6 + $0x2e8] sm:$0xff]  ;;  %v1876_v46 = vld [vmem:[#allocation6 + $0x2b8] sm:$0xff] }
 0x313   :  { %1786 = vst [vmem:[#allocation3 + $0x38] sm:$0xf] %v1784_v47  ;;  %v1788_v52 = vrot.slane %v1784_v47, 4  ;;  %v1884_v47 = vld [vmem:[#allocation6 + $0x2f8] sm:$0xff] }
 0x314   :  { %v7936_v53 = vpack.c.bf16 %v1884_v47, %v1876_v46  ;;  %v1954_v46 = vld [vmem:[#allocation6 + $0x528] sm:$0xff] }
 0x315   :  { %v2047_v58 = vrot.slane %v1788_v52, 4  ;;  %v7872_v52 = vpack.c.bf16 %v1882_v54, %v1874_v40  ;;  %v1939_v40 = vld [vmem:[#allocation6 + $0x4b0] sm:$0xff]  ;;  %v1962_v47 = vld [vmem:[#allocation6 + $0x568] sm:$0xff] }
 0x316   :  { %v1947_v54 = vld [vmem:[#allocation6 + $0x4f0] sm:$0xff]  ;;  %v7892_v0 = vpack.c.bf16 %v1962_v47, %v1954_v46 }
 0x317   :  { %2114 = vmatprep.mubr.f32.mxu0 %v2047_v58  ;;  %2185 = vmatprep.mubr.f32.mxu1 %v2047_v58  ;;  %v7954_v51 = vpack.c.bf16 %v1947_v54, %v1939_v40  ;;  %v2019_v46 = vld [vmem:[#allocation6 + $0x730] sm:$0xff] }
 0x318   :  { %2115 = vmatmul.mubr.f32.vlgmr.msra.gmra.mrb[18].mxu0 %v10310_v25  ;;  %2186 = vmatmul.mubr.f32.vlgmr.msra.gmra.mrb[30].mxu1 %v10310_v25  ;;  %v2027_v47 = vld [vmem:[#allocation6 + $0x770] sm:$0xff] }
 0x319   :  { %7855 = vmatpush1.bf16.msra.mxu0 %v7854_v59  ;;  %7919 = vmatpush1.bf16.msra.mxu1 %v7918_v4  ;;  %v1892_v59 = vld [vmem:[#allocation6 + $0x338] sm:$0xff] }
 0x31a   :  { %2256 = vmatprep.mubr.f32.mxu0 %v2047_v58  ;;  %2327 = vmatprep.mubr.f32.mxu1 %v2047_v58  ;;  %v1898_v58 = vld [vmem:[#allocation6 + $0x368] sm:$0xff]  ;;  %v1900_v4 = vld [vmem:[#allocation6 + $0x378] sm:$0xff] }
 0x31b   :  { %7857 = vmatprep.subr.bf16.mxu0 %v7856_v2  ;;  %7921 = vmatprep.subr.bf16.mxu1 %v7920_v38  ;;  %v7876_v31 = vpack.c.bf16 %v1898_v58, %v1890_v57  ;;  %v7940_v2 = vpack.c.bf16 %v1900_v4, %v1892_v59  ;;  %v1891_v38 = vld [vmem:[#allocation6 + $0x330] sm:$0xff]  ;;  %v1970_v59 = vld [vmem:[#allocation6 + $0x5a8] sm:$0xff] }
 0x31c   :  { %v7942_v10 = vpack.c.bf16 %v1899_v3, %v1891_v38  ;;  %v1955_v57 = vld [vmem:[#allocation6 + $0x530] sm:$0xff]  ;;  %v1978_v4 = vld [vmem:[#allocation6 + $0x5e8] sm:$0xff] }
 0x31d   :  { %7859 = vmatpush1.bf16.msra.mxu0 %v7858_v7  ;;  %7923 = vmatpush1.bf16.msra.mxu1 %v7922_v55  ;;  %v1908_v7 = vld [vmem:[#allocation6 + $0x3b8] sm:$0xff]  ;;  %v1963_v58 = vld [vmem:[#allocation6 + $0x570] sm:$0xff]  ;;  %v7896_v38 = vpack.c.bf16 %v1978_v4, %v1970_v59 }
 0x31e   :  { %7861 = vmatprep.subr.bf16.mxu0 %v7860_v11  ;;  %7925 = vmatprep.subr.bf16.mxu1 %v7924_v13  ;;  %v1916_v55 = vld [vmem:[#allocation6 + $0x3f8] sm:$0xff]  ;;  %v1905_v11 = vld [vmem:[#allocation6 + $0x3a0] sm:$0xff]  ;;  %v7958_v63 = vpack.c.bf16 %v1963_v58, %v1955_v57  ;;  %v2035_v59 = vld [vmem:[#allocation6 + $0x7b0] sm:$0xff] }
 0x31f   :  { %v1913_v13 = vld [vmem:[#allocation6 + $0x3e0] sm:$0xff]  ;;  %v7944_v15 = vpack.c.bf16 %v1916_v55, %v1908_v7  ;;  %v1986_v7 = vld [vmem:[#allocation6 + $0x628] sm:$0xff]  ;;  %v2043_v4 = vld [vmem:[#allocation6 + $0x7f0] sm:$0xff] }
 0x320   :  { %v7882_v21 = vpack.c.bf16 %v1913_v13, %v1905_v11  ;;  %v1994_v55 = vld [vmem:[#allocation6 + $0x668] sm:$0xff]  ;;  %v7962_v13 = vpack.c.bf16 %v1979_v6, %v1971_v50  ;;  %v2041_v58 = vld [vmem:[#allocation6 + $0x7e0] sm:$0xff] }
 0x321   :  { %7863 = vmatpush1.bf16.msra.mxu0 %v7862_v28  ;;  %7927 = vmatpush1.bf16.msra.mxu1 %v7926_v20  ;;  %v1924_v28 = vld [vmem:[#allocation6 + $0x438] sm:$0xff]  ;;  %v7900_v16 = vpack.c.bf16 %v1994_v55, %v1986_v7  ;;  %v2429_v50 = vld [vmem:[#allocation6 + $0x40] sm:$0xff]  ;;  %v2423_v55 = vld [vmem:[#allocation6 + $0x10] sm:$0xff] }
 0x322   :  { %7865 = vmatprep.subr.bf16.mxu0 %v7864_v23  ;;  %7929 = vmatprep.subr.bf16.mxu1 %v7928_v24  ;;  %v1932_v20 = vld [vmem:[#allocation6 + $0x478] sm:$0xff]  ;;  %v1921_v23 = vld [vmem:[#allocation6 + $0x420] sm:$0xff] }
 0x323   :  { %v1929_v24 = vld [vmem:[#allocation6 + $0x460] sm:$0xff]  ;;  %v7948_v27 = vpack.c.bf16 %v1932_v20, %v1924_v28  ;;  %v2002_v28 = vld [vmem:[#allocation6 + $0x6a8] sm:$0xff] }
 0x324   :  { %v7886_v32 = vpack.c.bf16 %v1929_v24, %v1921_v23  ;;  %v2010_v20 = vld [vmem:[#allocation6 + $0x6e8] sm:$0xff]  ;;  %v7966_v24 = vpack.c.bf16 %v1995_v19, %v1987_v18  ;;  %v2445_v18 = vld [vmem:[#allocation6 + $0xc0] sm:$0xff]  ;;  %v2439_v19 = vld [vmem:[#allocation6 + $0x90] sm:$0xff] }
 0x325   :  { %7867 = vmatpush1.bf16.msra.mxu0 %v7866_v35  ;;  %7931 = vmatpush1.bf16.msra.mxu1 %v7930_v5  ;;  %v1940_v35 = vld [vmem:[#allocation6 + $0x4b8] sm:$0xff]  ;;  %v7904_v29 = vpack.c.bf16 %v2010_v20, %v2002_v28  ;;  %v2447_v20 = vld [vmem:[#allocation6 + $0xd0] sm:$0xff] }
 0x326   :  { %7869 = vmatprep.subr.bf16.mxu0 %v7868_v12  ;;  %7933 = vmatprep.subr.bf16.mxu1 %v7932_v42  ;;  %v1948_v5 = vld [vmem:[#allocation6 + $0x4f8] sm:$0xff]  ;;  %v1937_v12 = vld [vmem:[#allocation6 + $0x4a0] sm:$0xff] }
 0x327   :  { %v1945_v42 = vld [vmem:[#allocation6 + $0x4e0] sm:$0xff]  ;;  %v7952_v44 = vpack.c.bf16 %v1948_v5, %v1940_v35  ;;  %v2018_v35 = vld [vmem:[#allocation6 + $0x728] sm:$0xff] }
 0x328   :  { %v7890_v36 = vpack.c.bf16 %v1945_v42, %v1937_v12  ;;  %v2026_v5 = vld [vmem:[#allocation6 + $0x768] sm:$0xff]  ;;  %v7970_v42 = vpack.c.bf16 %v2011_v34, %v2003_v33  ;;  %v2461_v33 = vld [vmem:[#allocation6 + $0x140] sm:$0xff]  ;;  %v2455_v34 = vld [vmem:[#allocation6 + $0x110] sm:$0xff] }
 0x329   :  { %7871 = vmatpush1.bf16.msra.mxu0 %v7870_v48  ;;  %7935 = vmatpush1.bf16.msra.mxu1 %v7934_v49  ;;  %v1956_v48 = vld [vmem:[#allocation6 + $0x538] sm:$0xff]  ;;  %v7908_v40 = vpack.c.bf16 %v2026_v5, %v2018_v35  ;;  %v2463_v35 = vld [vmem:[#allocation6 + $0x150] sm:$0xff] }
 0x32a   :  { %7873 = vmatprep.subr.bf16.mxu0 %v7872_v52  ;;  %7937 = vmatprep.subr.bf16.mxu1 %v7936_v53  ;;  %v1964_v49 = vld [vmem:[#allocation6 + $0x578] sm:$0xff]  ;;  %v1953_v52 = vld [vmem:[#allocation6 + $0x520] sm:$0xff] }
 0x32b   :  { %v1961_v53 = vld [vmem:[#allocation6 + $0x560] sm:$0xff]  ;;  %v7956_v56 = vpack.c.bf16 %v1964_v49, %v1956_v48  ;;  %v2034_v48 = vld [vmem:[#allocation6 + $0x7a8] sm:$0xff] }
 0x32c   :  { %v7894_v62 = vpack.c.bf16 %v1961_v53, %v1953_v52  ;;  %v2042_v49 = vld [vmem:[#allocation6 + $0x7e8] sm:$0xff]  ;;  %v7974_v53 = vpack.c.bf16 %v2027_v47, %v2019_v46  ;;  %v2477_v46 = vld [vmem:[#allocation6 + $0x1c0] sm:$0xff]  ;;  %v2471_v47 = vld [vmem:[#allocation6 + $0x190] sm:$0xff] }
 0x32d   :  { %7875 = vmatpush1.bf16.msra.mxu0 %v7874_v60  ;;  %7939 = vmatpush1.bf16.msra.mxu1 %v7938_v61  ;;  %v1972_v60 = vld [vmem:[#allocation6 + $0x5b8] sm:$0xff] }
 0x32e   :  { %7877 = vmatprep.subr.bf16.mxu0 %v7876_v31  ;;  %7941 = vmatprep.subr.bf16.mxu1 %v7940_v2  ;;  %v1980_v61 = vld [vmem:[#allocation6 + $0x5f8] sm:$0xff]  ;;  %v1969_v31 = vld [vmem:[#allocation6 + $0x5a0] sm:$0xff] }
 0x32f   :  { %v1977_v2 = vld [vmem:[#allocation6 + $0x5e0] sm:$0xff]  ;;  %v7960_v3 = vpack.c.bf16 %v1980_v61, %v1972_v60  ;;  %v7978_v61 = vpack.c.bf16 %v2043_v4, %v2035_v59 }
 0x330   :  { %v7898_v11 = vpack.c.bf16 %v1977_v2, %v1969_v31  ;;  %v2424_v31 = vld [vmem:[#allocation6 + $0x18] sm:$0xff] }
 0x331   :  { %7879 = vmatpush1.bf16.msra.mxu0 %v7878_v8  ;;  %7943 = vmatpush1.bf16.msra.mxu1 %v7942_v10  ;;  %v1988_v8 = vld [vmem:[#allocation6 + $0x638] sm:$0xff] }
 0x332   :  { %7881 = vmatprep.subr.bf16.mxu0 %v7880_v14  ;;  %7945 = vmatprep.subr.bf16.mxu1 %v7944_v15  ;;  %v1996_v10 = vld [vmem:[#allocation6 + $0x678] sm:$0xff]  ;;  %v1985_v14 = vld [vmem:[#allocation6 + $0x620] sm:$0xff] }
 0x333   :  { %v1993_v15 = vld [vmem:[#allocation6 + $0x660] sm:$0xff]  ;;  %v7964_v17 = vpack.c.bf16 %v1996_v10, %v1988_v8  ;;  %v2431_v8 = vld [vmem:[#allocation6 + $0x50] sm:$0xff]  ;;  %v2438_v10 = vld [vmem:[#allocation6 + $0x88] sm:$0xff] }
 0x334   :  { %v7902_v23 = vpack.c.bf16 %v1993_v15, %v1985_v14  ;;  %v2440_v14 = vld [vmem:[#allocation6 + $0x98] sm:$0xff] }
 0x335   :  { %7883 = vmatpush1.bf16.msra.mxu0 %v7882_v21  ;;  %7947 = vmatpush1.bf16.msra.mxu1 %v7946_v22  ;;  %v2004_v21 = vld [vmem:[#allocation6 + $0x6b8] sm:$0xff] }
 0x336   :  { %7885 = vmatprep.subr.bf16.mxu0 %v7884_v26  ;;  %7949 = vmatprep.subr.bf16.mxu1 %v7948_v27  ;;  %v2012_v22 = vld [vmem:[#allocation6 + $0x6f8] sm:$0xff]  ;;  %v2001_v26 = vld [vmem:[#allocation6 + $0x6a0] sm:$0xff] }
 0x337   :  { %v2009_v27 = vld [vmem:[#allocation6 + $0x6e0] sm:$0xff]  ;;  %v7968_v30 = vpack.c.bf16 %v2012_v22, %v2004_v21  ;;  %v2448_v15 = vld [vmem:[#allocation6 + $0xd8] sm:$0xff]  ;;  %v2454_v21 = vld [vmem:[#allocation6 + $0x108] sm:$0xff] }
 0x338   :  { %v7906_v12 = vpack.c.bf16 %v2009_v27, %v2001_v26  ;;  %v2462_v22 = vld [vmem:[#allocation6 + $0x148] sm:$0xff]  ;;  %v2456_v26 = vld [vmem:[#allocation6 + $0x118] sm:$0xff] }
 0x339   :  { %7887 = vmatpush1.bf16.msra.mxu0 %v7886_v32  ;;  %7951 = vmatpush1.bf16.msra.mxu1 %v7950_v41  ;;  %v2020_v32 = vld [vmem:[#allocation6 + $0x738] sm:$0xff] }
 0x33a   :  { %7889 = vmatprep.subr.bf16.mxu0 %v7888_v43  ;;  %7953 = vmatprep.subr.bf16.mxu1 %v7952_v44  ;;  %v2028_v41 = vld [vmem:[#allocation6 + $0x778] sm:$0xff]  ;;  %v2017_v43 = vld [vmem:[#allocation6 + $0x720] sm:$0xff] }
 0x33b   :  { %v2025_v44 = vld [vmem:[#allocation6 + $0x760] sm:$0xff]  ;;  %v7972_v54 = vpack.c.bf16 %v2028_v41, %v2020_v32  ;;  %v2464_v27 = vld [vmem:[#allocation6 + $0x158] sm:$0xff]  ;;  %v2470_v32 = vld [vmem:[#allocation6 + $0x188] sm:$0xff] }
 0x33c   :  { %v7910_v52 = vpack.c.bf16 %v2025_v44, %v2017_v43  ;;  %v2478_v41 = vld [vmem:[#allocation6 + $0x1c8] sm:$0xff]  ;;  %v2480_v44 = vld [vmem:[#allocation6 + $0x1d8] sm:$0xff] }
 0x33d   :  { %7891 = vmatpush1.bf16.msra.mxu0 %v7890_v36  ;;  %7955 = vmatpush1.bf16.msra.mxu1 %v7954_v51  ;;  %v2036_v36 = vld [vmem:[#allocation6 + $0x7b8] sm:$0xff]  ;;  %v7992_v43 = vpack.c.bf16 %v2478_v41, %v2470_v32  ;;  %v2543_v32 = vld [vmem:[#allocation6 + $0x3d0] sm:$0xff] }
 0x33e   :  { %7893 = vmatprep.subr.bf16.mxu0 %v7892_v0  ;;  %7957 = vmatprep.subr.bf16.mxu1 %v7956_v56  ;;  %v2044_v51 = vld [vmem:[#allocation6 + $0x7f8] sm:$0xff]  ;;  %v2033_v0 = vld [vmem:[#allocation6 + $0x7a0] sm:$0xff]  ;;  %v7912_v56 = vpack.c.bf16 %v2042_v49, %v2034_v48  ;;  %v2479_v49 = vld [vmem:[#allocation6 + $0x1d0] sm:$0xff] }
 0x33f   :  { %v7976_v57 = vpack.c.bf16 %v2044_v51, %v2036_v36  ;;  %v7914_v60 = vpack.c.bf16 %v2041_v58, %v2033_v0  ;;  %v8058_v36 = vpack.c.bf16 %v2479_v49, %v2471_v47  ;;  %v2486_v51 = vld [vmem:[#allocation6 + $0x208] sm:$0xff]  ;;  %v2493_v58 = vld [vmem:[#allocation6 + $0x240] sm:$0xff]  ;;  %v2551_v49 = vld [vmem:[#allocation6 + $0x410] sm:$0xff] }
 0x341   :  { %7895 = vmatpush1.bf16.msra.mxu0 %v7894_v62  ;;  %7959 = vmatpush1.bf16.msra.mxu1 %v7958_v63  ;;  %v2422_v62 = vld [vmem:[#allocation6 + $0x8] sm:$0xff] }
 0x342   :  { %7897 = vmatprep.subr.bf16.mxu0 %v7896_v38  ;;  %7961 = vmatprep.subr.bf16.mxu1 %v7960_v3  ;;  %v2430_v63 = vld [vmem:[#allocation6 + $0x48] sm:$0xff]  ;;  %v2432_v38 = vld [vmem:[#allocation6 + $0x58] sm:$0xff]  ;;  %v2421_v3 = vld [vmem:[#allocation6] sm:$0xff] }
 0x343   :  { %v7980_v2 = vpack.c.bf16 %v2430_v63, %v2422_v62  ;;  %v8044_v6 = vpack.c.bf16 %v2432_v38, %v2424_v31  ;;  %v7982_v7 = vpack.c.bf16 %v2429_v50, %v2421_v3  ;;  %v2502_v63 = vld [vmem:[#allocation6 + $0x288] sm:$0xff]  ;;  %v2512_v3 = vld [vmem:[#allocation6 + $0x2d8] sm:$0xff]  ;;  %v2501_v50 = vld [vmem:[#allocation6 + $0x280] sm:$0xff] }
 0x344   :  { %v2510_v31 = vld [vmem:[#allocation6 + $0x2c8] sm:$0xff] }
 0x345   :  { %7899 = vmatpush1.bf16.msra.mxu0 %v7898_v11  ;;  %7963 = vmatpush1.bf16.msra.mxu1 %v7962_v13  ;;  %v8046_v11 = vpack.c.bf16 %v2431_v8, %v2423_v55  ;;  %v2446_v13 = vld [vmem:[#allocation6 + $0xc8] sm:$0xff]  ;;  %v8000_v38 = vpack.c.bf16 %v2510_v31, %v2502_v63  ;;  %v2503_v8 = vld [vmem:[#allocation6 + $0x290] sm:$0xff] }
 0x346   :  { %7901 = vmatprep.subr.bf16.mxu0 %v7900_v16  ;;  %7965 = vmatprep.subr.bf16.mxu1 %v7964_v17  ;;  %v8048_v16 = vpack.c.bf16 %v2448_v15, %v2440_v14  ;;  %v2437_v17 = vld [vmem:[#allocation6 + $0x80] sm:$0xff]  ;;  %v2526_v14 = vld [vmem:[#allocation6 + $0x348] sm:$0xff]  ;;  %v2520_v15 = vld [vmem:[#allocation6 + $0x318] sm:$0xff] }
 0x347   :  { %v7986_v28 = vpack.c.bf16 %v2445_v18, %v2437_v17  ;;  %v2517_v17 = vld [vmem:[#allocation6 + $0x300] sm:$0xff]  ;;  %v2582_v31 = vld [vmem:[#allocation6 + $0x508] sm:$0xff] }
 0x348   :  { %v2525_v18 = vld [vmem:[#allocation6 + $0x340] sm:$0xff] }
 0x349   :  { %7903 = vmatpush1.bf16.msra.mxu0 %v7902_v23  ;;  %7967 = vmatpush1.bf16.msra.mxu1 %v7966_v24  ;;  %v8050_v23 = vpack.c.bf16 %v2447_v20, %v2439_v19  ;;  %v7988_v24 = vpack.c.bf16 %v2462_v22, %v2454_v21  ;;  %v2519_v20 = vld [vmem:[#allocation6 + $0x310] sm:$0xff] }
 0x34a   :  { %7905 = vmatprep.subr.bf16.mxu0 %v7904_v29  ;;  %7969 = vmatprep.subr.bf16.mxu1 %v7968_v30  ;;  %v2453_v29 = vld [vmem:[#allocation6 + $0x100] sm:$0xff]  ;;  %v8052_v30 = vpack.c.bf16 %v2464_v27, %v2456_v26  ;;  %v2527_v21 = vld [vmem:[#allocation6 + $0x350] sm:$0xff]  ;;  %v2536_v26 = vld [vmem:[#allocation6 + $0x398] sm:$0xff] }
 0x34b   :  { %v7990_v5 = vpack.c.bf16 %v2461_v33, %v2453_v29  ;;  %v8070_v22 = vpack.c.bf16 %v2527_v21, %v2519_v20  ;;  %v2544_v29 = vld [vmem:[#allocation6 + $0x3d8] sm:$0xff]  ;;  %v2541_v33 = vld [vmem:[#allocation6 + $0x3c0] sm:$0xff]  ;;  %v2599_v21 = vld [vmem:[#allocation6 + $0x590] sm:$0xff] }
 0x34d   :  { %7907 = vmatpush1.bf16.msra.mxu0 %v7906_v12  ;;  %7971 = vmatpush1.bf16.msra.mxu1 %v7970_v42  ;;  %v2472_v12 = vld [vmem:[#allocation6 + $0x198] sm:$0xff]  ;;  %v8054_v42 = vpack.c.bf16 %v2463_v35, %v2455_v34  ;;  %v8072_v34 = vpack.c.bf16 %v2544_v29, %v2536_v26  ;;  %v2622_v26 = vld [vmem:[#allocation6 + $0x648] sm:$0xff] }
 0x34e   :  { %7909 = vmatprep.subr.bf16.mxu0 %v7908_v40  ;;  %7973 = vmatprep.subr.bf16.mxu1 %v7972_v54  ;;  %v8056_v40 = vpack.c.bf16 %v2480_v44, %v2472_v12  ;;  %v2469_v54 = vld [vmem:[#allocation6 + $0x180] sm:$0xff]  ;;  %v2550_v12 = vld [vmem:[#allocation6 + $0x408] sm:$0xff] }
 0x34f   :  { %v7994_v48 = vpack.c.bf16 %v2477_v46, %v2469_v54  ;;  %v2549_v54 = vld [vmem:[#allocation6 + $0x400] sm:$0xff] }
 0x350   :  { %v2557_v46 = vld [vmem:[#allocation6 + $0x440] sm:$0xff] }
 0x351   :  { %7911 = vmatpush1.bf16.msra.mxu0 %v7910_v52  ;;  %7975 = vmatpush1.bf16.msra.mxu1 %v7974_v53  ;;  %v2494_v52 = vld [vmem:[#allocation6 + $0x248] sm:$0xff]  ;;  %v2488_v53 = vld [vmem:[#allocation6 + $0x218] sm:$0xff] }
 0x352   :  { %7913 = vmatprep.subr.bf16.mxu0 %v7912_v56  ;;  %7977 = vmatprep.subr.bf16.mxu1 %v7976_v57  ;;  %v7996_v0 = vpack.c.bf16 %v2494_v52, %v2486_v51  ;;  %v2496_v56 = vld [vmem:[#allocation6 + $0x258] sm:$0xff]  ;;  %v2485_v57 = vld [vmem:[#allocation6 + $0x200] sm:$0xff]  ;;  %v2566_v52 = vld [vmem:[#allocation6 + $0x488] sm:$0xff] }
 0x353   :  { %v8060_v59 = vpack.c.bf16 %v2496_v56, %v2488_v53  ;;  %v7998_v4 = vpack.c.bf16 %v2493_v58, %v2485_v57  ;;  %v2574_v53 = vld [vmem:[#allocation6 + $0x4c8] sm:$0xff]  ;;  %v2576_v57 = vld [vmem:[#allocation6 + $0x4d8] sm:$0xff]  ;;  %v2565_v58 = vld [vmem:[#allocation6 + $0x480] sm:$0xff] }
 0x354   :  { %v8016_v56 = vpack.c.bf16 %v2574_v53, %v2566_v52  ;;  %v2646_v52 = vld [vmem:[#allocation6 + $0x708] sm:$0xff] }
 0x355   :  { %7915 = vmatpush1.bf16.msra.mxu0 %v7914_v60  ;;  %7979 = vmatpush1.bf16.msra.mxu1 %v7978_v61  ;;  %v2487_v60 = vld [vmem:[#allocation6 + $0x210] sm:$0xff] }
 0x356   :  { %7981 = vmatprep.subr.bf16.mxu0 %v7980_v2  ;;  %8045 = vmatprep.subr.bf16.mxu1 %v8044_v6  ;;  %v2495_v61 = vld [vmem:[#allocation6 + $0x250] sm:$0xff]  ;;  %v2504_v2 = vld [vmem:[#allocation6 + $0x298] sm:$0xff]  ;;  %v2509_v6 = vld [vmem:[#allocation6 + $0x2c0] sm:$0xff] }
 0x357   :  { %v8062_v62 = vpack.c.bf16 %v2495_v61, %v2487_v60  ;;  %v8002_v55 = vpack.c.bf16 %v2509_v6, %v2501_v50  ;;  %v2567_v61 = vld [vmem:[#allocation6 + $0x490] sm:$0xff]  ;;  %v2592_v50 = vld [vmem:[#allocation6 + $0x558] sm:$0xff]  ;;  %v2581_v6 = vld [vmem:[#allocation6 + $0x500] sm:$0xff] }
 0x358   :  { %2257 = vmatmul.mubr.f32.vlgmr.msra.gmra.mrb[20].mxu0 %v10310_v25  ;;  %2328 = vmatmul.mubr.f32.vlgmr.msra.gmra.mrb[32].mxu1 %v10310_v25  ;;  %v7984_v25 = vpack.c.bf16 %v2446_v13, %v2438_v10  ;;  %v2511_v10 = vld [vmem:[#allocation6 + $0x2d0] sm:$0xff]  ;;  %v2518_v13 = vld [vmem:[#allocation6 + $0x308] sm:$0xff] }
 0x359   :  { %7983 = vmatpush1.bf16.msra.mxu0 %v7982_v7  ;;  %8047 = vmatpush1.bf16.msra.mxu1 %v8046_v11  ;;  %v8064_v7 = vpack.c.bf16 %v2512_v3, %v2504_v2  ;;  %v8066_v11 = vpack.c.bf16 %v2511_v10, %v2503_v8  ;;  %v2590_v2 = vld [vmem:[#allocation6 + $0x548] sm:$0xff]  ;;  %v2583_v10 = vld [vmem:[#allocation6 + $0x510] sm:$0xff] }
 0x35a   :  { %7985 = vmatprep.subr.bf16.mxu0 %v7984_v25  ;;  %8049 = vmatprep.subr.bf16.mxu1 %v8048_v16  ;;  %v8004_v25 = vpack.c.bf16 %v2526_v14, %v2518_v13  ;;  %v2528_v16 = vld [vmem:[#allocation6 + $0x358] sm:$0xff]  ;;  %v8020_v3 = vpack.c.bf16 %v2590_v2, %v2582_v31  ;;  %v2598_v14 = vld [vmem:[#allocation6 + $0x588] sm:$0xff] }
 0x35b   :  { %v8068_v19 = vpack.c.bf16 %v2528_v16, %v2520_v15  ;;  %v2606_v15 = vld [vmem:[#allocation6 + $0x5c8] sm:$0xff] }
 0x35c   :  { %v8024_v16 = vpack.c.bf16 %v2606_v15, %v2598_v14  ;;  %v2662_v31 = vld [vmem:[#allocation6 + $0x788] sm:$0xff] }
 0x35d   :  { %7987 = vmatpush1.bf16.msra.mxu0 %v7986_v28  ;;  %8051 = vmatpush1.bf16.msra.mxu1 %v8050_v23  ;;  %v8006_v28 = vpack.c.bf16 %v2525_v18, %v2517_v17  ;;  %v2534_v23 = vld [vmem:[#allocation6 + $0x388] sm:$0xff]  ;;  %v2608_v17 = vld [vmem:[#allocation6 + $0x5d8] sm:$0xff]  ;;  %v2597_v18 = vld [vmem:[#allocation6 + $0x580] sm:$0xff] }
 0x35e   :  { %7989 = vmatprep.subr.bf16.mxu0 %v7988_v24  ;;  %8053 = vmatprep.subr.bf16.mxu1 %v8052_v30  ;;  %v2542_v24 = vld [vmem:[#allocation6 + $0x3c8] sm:$0xff]  ;;  %v2533_v30 = vld [vmem:[#allocation6 + $0x380] sm:$0xff] }
 0x35f   :  { %v8008_v27 = vpack.c.bf16 %v2542_v24, %v2534_v23  ;;  %v8010_v35 = vpack.c.bf16 %v2541_v33, %v2533_v30  ;;  %v2614_v24 = vld [vmem:[#allocation6 + $0x608] sm:$0xff]  ;;  %v2624_v30 = vld [vmem:[#allocation6 + $0x658] sm:$0xff]  ;;  %v2613_v33 = vld [vmem:[#allocation6 + $0x600] sm:$0xff] }
 0x360   :  { %v8028_v29 = vpack.c.bf16 %v2622_v26, %v2614_v24  ;;  %v2670_v2 = vld [vmem:[#allocation6 + $0x7c8] sm:$0xff] }
 0x361   :  { %7991 = vmatpush1.bf16.msra.mxu0 %v7990_v5  ;;  %8055 = vmatpush1.bf16.msra.mxu1 %v8054_v42  ;;  %v2535_v5 = vld [vmem:[#allocation6 + $0x390] sm:$0xff]  ;;  %v2558_v42 = vld [vmem:[#allocation6 + $0x448] sm:$0xff] }
 0x362   :  { %7993 = vmatprep.subr.bf16.mxu0 %v7992_v43  ;;  %8057 = vmatprep.subr.bf16.mxu1 %v8056_v40  ;;  %v8074_v41 = vpack.c.bf16 %v2543_v32, %v2535_v5  ;;  %v2552_v43 = vld [vmem:[#allocation6 + $0x418] sm:$0xff]  ;;  %v8012_v44 = vpack.c.bf16 %v2558_v42, %v2550_v12  ;;  %v2615_v32 = vld [vmem:[#allocation6 + $0x610] sm:$0xff]  ;;  %v2630_v42 = vld [vmem:[#allocation6 + $0x688] sm:$0xff] }
 0x363   :  { %v2560_v40 = vld [vmem:[#allocation6 + $0x458] sm:$0xff]  ;;  %v2426_v15 = vld [vmem:[#allocation6 + $0x28] sm:$0xff] }
 0x364   :  { %v8076_v47 = vpack.c.bf16 %v2560_v40, %v2552_v43  ;;  %v2638_v43 = vld [vmem:[#allocation6 + $0x6c8] sm:$0xff] }
 0x365   :  { %7995 = vmatpush1.bf16.msra.mxu0 %v7994_v48  ;;  %8059 = vmatpush1.bf16.msra.mxu1 %v8058_v36  ;;  %v8014_v48 = vpack.c.bf16 %v2557_v46, %v2549_v54  ;;  %v2559_v36 = vld [vmem:[#allocation6 + $0x450] sm:$0xff]  ;;  %v8032_v40 = vpack.c.bf16 %v2638_v43, %v2630_v42  ;;  %v2640_v54 = vld [vmem:[#allocation6 + $0x6d8] sm:$0xff]  ;;  %v2629_v46 = vld [vmem:[#allocation6 + $0x680] sm:$0xff] }
 0x366   :  { %7997 = vmatprep.subr.bf16.mxu0 %v7996_v0  ;;  %8061 = vmatprep.subr.bf16.mxu1 %v8060_v59  ;;  %v8078_v51 = vpack.c.bf16 %v2559_v36, %v2551_v49  ;;  %v2568_v0 = vld [vmem:[#allocation6 + $0x498] sm:$0xff]  ;;  %v2573_v59 = vld [vmem:[#allocation6 + $0x4c0] sm:$0xff]  ;;  %v2631_v36 = vld [vmem:[#allocation6 + $0x690] sm:$0xff] }
 0x367   :  { %v8018_v60 = vpack.c.bf16 %v2573_v59, %v2565_v58  ;;  %v2335_v24 = vld [vmem:[#allocation2 + $0x48] sm:$0xf] }
 0x369   :  { %7999 = vmatpush1.bf16.msra.mxu0 %v7998_v4  ;;  %8063 = vmatpush1.bf16.msra.mxu1 %v8062_v62  ;;  %v8080_v4 = vpack.c.bf16 %v2576_v57, %v2568_v0  ;;  %v2575_v62 = vld [vmem:[#allocation6 + $0x4d0] sm:$0xff]  ;;  %v2654_v0 = vld [vmem:[#allocation6 + $0x748] sm:$0xff]  ;;  %v2656_v57 = vld [vmem:[#allocation6 + $0x758] sm:$0xff] }
 0x36a   :  { %8001 = vmatprep.subr.bf16.mxu0 %v8000_v38  ;;  %8065 = vmatprep.subr.bf16.mxu1 %v8064_v7  ;;  %v8082_v63 = vpack.c.bf16 %v2575_v62, %v2567_v61  ;;  %v2584_v38 = vld [vmem:[#allocation6 + $0x518] sm:$0xff]  ;;  %v2589_v7 = vld [vmem:[#allocation6 + $0x540] sm:$0xff]  ;;  %v8036_v58 = vpack.c.bf16 %v2654_v0, %v2646_v52  ;;  %v2647_v61 = vld [vmem:[#allocation6 + $0x710] sm:$0xff] }
 0x36b   :  { %v8022_v8 = vpack.c.bf16 %v2589_v7, %v2581_v6  ;;  %v2672_v6 = vld [vmem:[#allocation6 + $0x7d8] sm:$0xff]  ;;  %v2661_v7 = vld [vmem:[#allocation6 + $0x780] sm:$0xff] }
 0x36d   :  { %8003 = vmatpush1.bf16.msra.mxu0 %v8002_v55  ;;  %8067 = vmatpush1.bf16.msra.mxu1 %v8066_v11  ;;  %v8084_v55 = vpack.c.bf16 %v2592_v50, %v2584_v38  ;;  %v2591_v11 = vld [vmem:[#allocation6 + $0x550] sm:$0xff]  ;;  %v2664_v50 = vld [vmem:[#allocation6 + $0x798] sm:$0xff] }
 0x36e   :  { %8005 = vmatprep.subr.bf16.mxu0 %v8004_v25  ;;  %8069 = vmatprep.subr.bf16.mxu1 %v8068_v19  ;;  %v8086_v13 = vpack.c.bf16 %v2591_v11, %v2583_v10  ;;  %v2600_v25 = vld [vmem:[#allocation6 + $0x598] sm:$0xff]  ;;  %v2605_v19 = vld [vmem:[#allocation6 + $0x5c0] sm:$0xff]  ;;  %v2663_v10 = vld [vmem:[#allocation6 + $0x790] sm:$0xff] }
 0x36f   :  { %v8026_v20 = vpack.c.bf16 %v2605_v19, %v2597_v18  ;;  %v2671_v11 = vld [vmem:[#allocation6 + $0x7d0] sm:$0xff]  ;;  %v2436_v18 = vld [vmem:[#allocation6 + $0x78] sm:$0xff] }
 0x370   :  { %v8106_v14 = vpack.c.bf16 %v2671_v11, %v2663_v10 }
 0x371   :  { %8007 = vmatpush1.bf16.msra.mxu0 %v8006_v28  ;;  %8071 = vmatpush1.bf16.msra.mxu1 %v8070_v22  ;;  %v8088_v28 = vpack.c.bf16 %v2608_v17, %v2600_v25  ;;  %v2607_v22 = vld [vmem:[#allocation6 + $0x5d0] sm:$0xff]  ;;  %v2434_v25 = vld [vmem:[#allocation6 + $0x68] sm:$0xff] }
 0x372   :  { %8009 = vmatprep.subr.bf16.mxu0 %v8008_v27  ;;  %8073 = vmatprep.subr.bf16.mxu1 %v8072_v34  ;;  %v8090_v23 = vpack.c.bf16 %v2607_v22, %v2599_v21  ;;  %v2616_v27 = vld [vmem:[#allocation6 + $0x618] sm:$0xff]  ;;  %v2621_v34 = vld [vmem:[#allocation6 + $0x640] sm:$0xff]  ;;  %v8108_v17 = vpack.c.bf16 %v2434_v25, %v2426_v15 }
 0x373   :  { %v8030_v5 = vpack.c.bf16 %v2621_v34, %v2613_v33  ;;  %v2336_v33 = vld [vmem:[#allocation2 + $0x50] sm:$0xf] }
 0x375   :  { %8011 = vmatpush1.bf16.msra.mxu0 %v8010_v35  ;;  %8075 = vmatpush1.bf16.msra.mxu1 %v8074_v41  ;;  %v8092_v35 = vpack.c.bf16 %v2624_v30, %v2616_v27  ;;  %v2623_v41 = vld [vmem:[#allocation6 + $0x650] sm:$0xff] }
 0x376   :  { %8013 = vmatprep.subr.bf16.mxu0 %v8012_v44  ;;  %8077 = vmatprep.subr.bf16.mxu1 %v8076_v47  ;;  %v8094_v12 = vpack.c.bf16 %v2623_v41, %v2615_v32  ;;  %v2632_v44 = vld [vmem:[#allocation6 + $0x698] sm:$0xff]  ;;  %v2637_v47 = vld [vmem:[#allocation6 + $0x6c0] sm:$0xff] }
 0x377   :  { %v8034_v49 = vpack.c.bf16 %v2637_v47, %v2629_v46  ;;  %v2382_v46 = vrot.slane %v10303_v9, 4 }
 0x379   :  { %8015 = vmatpush1.bf16.msra.mxu0 %v8014_v48  ;;  %8079 = vmatpush1.bf16.msra.mxu1 %v8078_v51  ;;  %v8096_v48 = vpack.c.bf16 %v2640_v54, %v2632_v44  ;;  %v2639_v51 = vld [vmem:[#allocation6 + $0x6d0] sm:$0xff] }
 0x37a   :  { %8017 = vmatprep.subr.bf16.mxu0 %v8016_v56  ;;  %8081 = vmatprep.subr.bf16.mxu1 %v8080_v4  ;;  %v8098_v53 = vpack.c.bf16 %v2639_v51, %v2631_v36  ;;  %v2648_v56 = vld [vmem:[#allocation6 + $0x718] sm:$0xff]  ;;  %v2645_v4 = vld [vmem:[#allocation6 + $0x700] sm:$0xff] }
 0x37b   :  { %v8100_v59 = vpack.c.bf16 %v2656_v57, %v2648_v56 }
 0x37d   :  { %8019 = vmatpush1.bf16.msra.mxu0 %v8018_v60  ;;  %8083 = vmatpush1.bf16.msra.mxu1 %v8082_v63  ;;  %v2653_v60 = vld [vmem:[#allocation6 + $0x740] sm:$0xff]  ;;  %v2655_v63 = vld [vmem:[#allocation6 + $0x750] sm:$0xff] }
 0x37e   :  { %8021 = vmatprep.subr.bf16.mxu0 %v8020_v3  ;;  %8085 = vmatprep.subr.bf16.mxu1 %v8084_v55  ;;  %v8038_v62 = vpack.c.bf16 %v2653_v60, %v2645_v4  ;;  %v8102_v38 = vpack.c.bf16 %v2655_v63, %v2647_v61  ;;  %v8040_v3 = vpack.c.bf16 %v2670_v2, %v2662_v31  ;;  %v2342_v4 = vld [vmem:[#allocation2 + $0xa0] sm:$0xf0] }
 0x37f   :  { %v8104_v55 = vpack.c.bf16 %v2672_v6, %v2664_v50 }
 0x381   :  { %8023 = vmatpush1.bf16.msra.mxu0 %v8022_v8  ;;  %8087 = vmatpush1.bf16.msra.mxu1 %v8086_v13  ;;  %v2669_v8 = vld [vmem:[#allocation6 + $0x7c0] sm:$0xff] }
 0x382   :  { %8025 = vmatprep.subr.bf16.mxu0 %v8024_v16  ;;  %8089 = vmatprep.subr.bf16.mxu1 %v8088_v28  ;;  %v8042_v13 = vpack.c.bf16 %v2669_v8, %v2661_v7  ;;  %v2428_v16 = vld [vmem:[#allocation6 + $0x38] sm:$0xff] }
 0x383   :  { %v8172_v19 = vpack.c.bf16 %v2436_v18, %v2428_v16  ;;  %v2345_v7 = vld [vmem:[#allocation2 + $0xb8] sm:$0xf0] }
 0x385   :  { %8027 = vmatpush1.bf16.msra.mxu0 %v8026_v20  ;;  %8091 = vmatpush1.bf16.msra.mxu1 %v8090_v23  ;;  %v2334_v20 = vld [vmem:[#allocation2 + $0x40] sm:$0xf] }
 0x386   :  { %8029 = vmatprep.subr.bf16.mxu0 %v8028_v29  ;;  %8093 = vmatprep.subr.bf16.mxu1 %v8092_v35  ;;  %v2337_v35 = vld [vmem:[#allocation2 + $0x58] sm:$0xf] }
 0x389   :  { %8031 = vmatpush1.bf16.msra.mxu0 %v8030_v5  ;;  %8095 = vmatpush1.bf16.msra.mxu1 %v8094_v12 }
 0x38a   :  { %8033 = vmatprep.subr.bf16.mxu0 %v8032_v40  ;;  %8097 = vmatprep.subr.bf16.mxu1 %v8096_v48 }
 0x38d   :  { %8035 = vmatpush1.bf16.msra.mxu0 %v8034_v49  ;;  %8099 = vmatpush1.bf16.msra.mxu1 %v8098_v53 }
 0x38e   :  { %8037 = vmatprep.subr.bf16.mxu0 %v8036_v58  ;;  %8101 = vmatprep.subr.bf16.mxu1 %v8100_v59 }
 0x391   :  { %8039 = vmatpush1.bf16.msra.mxu0 %v8038_v62  ;;  %8103 = vmatpush1.bf16.msra.mxu1 %v8102_v38  ;;  %v2343_v62 = vld [vmem:[#allocation2 + $0xa8] sm:$0xf0] }
 0x392   :  { %8041 = vmatprep.subr.bf16.mxu0 %v8040_v3  ;;  %8105 = vmatprep.subr.bf16.mxu1 %v8104_v55  ;;  %v2344_v3 = vld [vmem:[#allocation2 + $0xb0] sm:$0xf0] }
 0x395   :  { %8043 = vmatpush1.bf16.msra.mxu0 %v8042_v13  ;;  %8107 = vmatpush1.bf16.msra.mxu1 %v8106_v14 }
 0x396   :  { %8109 = vmatprep.subr.bf16.mxu0 %v8108_v17  ;;  %8173 = vmatprep.subr.bf16.mxu1 %v8172_v19  ;;  %v2409_v17 = vrot.slane %v10307_v45, 4  ;;  %v2452_v45 = vld [vmem:[#allocation6 + $0xf8] sm:$0xff] }
 0x3eb   :  { %v2116_v28 = vpop.f32.mrb[18].mxu0  ;;  %v2187_v21 = vpop.f32.mrb[30].mxu1 }
 0x3ec   :  { %v2338_v22 = vadd.f32 %v2334_v20, %v2116_v28  ;;  %v2118_v23 = vpop.f32.mrb[19].mxu0  ;;  %v2189_v26 = vpop.f32.mrb[31].mxu1  ;;  %v2340_v34 = vadd.f32 %v2336_v33, %v2187_v21  ;;  %v2442_v33 = vld [vmem:[#allocation6 + $0xa8] sm:$0xff] }
 0x3ed   :  { %v2339_v27 = vadd.f32 %v2335_v24, %v2118_v23  ;;  %v2341_v5 = vadd.f32 %v2337_v35, %v2189_v26  ;;  %v2425_v23 = vld [vmem:[#allocation6 + $0x20] sm:$0xff]  ;;  %v2444_v35 = vld [vmem:[#allocation6 + $0xb8] sm:$0xff] }
 0x3ee   :  { %v7080_v29 = vmul.f32 -1.442695, %v2338_v22  ;;  %v7082_v32 = vmul.f32 -1.442695, %v2340_v34  ;;  %v2433_v26 = vld [vmem:[#allocation6 + $0x60] sm:$0xff]  ;;  %v2450_v34 = vld [vmem:[#allocation6 + $0xe8] sm:$0xff] }
 0x3ef   :  { %v7081_v30 = vmul.f32 -1.442695, %v2339_v27  ;;  %v2427_v27 = vld [vmem:[#allocation6 + $0x30] sm:$0xff] }
 0x3f0   :  { %9622 = vpow2.f32 %v7080_v29  ;;  %v2435_v29 = vld [vmem:[#allocation6 + $0x70] sm:$0xff] }
 0x3f1   :  { %9624 = vpow2.f32 %v7081_v30 }
 0x3f2   :  { %9626 = vtanh.f32 %v2341_v5 }
 0x3f3   :  { %9628 = vpow2.f32 %v7082_v32  ;;  %v8110_v32 = vpack.c.bf16 %v2433_v26, %v2425_v23  ;;  %v2516_v23 = vld [vmem:[#allocation6 + $0x2f8] sm:$0xff] }
 0x3fa   :  { %v9623_v41 = vpop.eup %9622 }
 0x3fb   :  { %v2371_v12 = vadd.f32 1.0, %v9623_v41  ;;  %v9625_v42 = vpop.eup %9624  ;;  %v8174_v41 = vpack.c.bf16 %v2435_v29, %v2427_v27  ;;  %v2505_v27 = vld [vmem:[#allocation6 + $0x2a0] sm:$0xff] }
 0x3fc   :  { %v2372_v43 = vadd.f32 1.0, %v9625_v42  ;;  %v9627_v44 = vpop.eup %9626  ;;  %v2449_v42 = vld [vmem:[#allocation6 + $0xe0] sm:$0xff] }
 0x3fd   :  { %9630 = vrcp.f32 %v2371_v12  ;;  %v9629_v40 = vpop.eup %9628  ;;  %v2441_v12 = vld [vmem:[#allocation6 + $0xa0] sm:$0xff] }
 0x3fe   :  { %9632 = vrcp.f32 %v2372_v43  ;;  %v2373_v49 = vadd.f32 1.0, %v9629_v40  ;;  %v2443_v43 = vld [vmem:[#allocation6 + $0xb0] sm:$0xff]  ;;  %v2458_v40 = vld [vmem:[#allocation6 + $0x128] sm:$0xff]  ;;  %v2513_v29 = vld [vmem:[#allocation6 + $0x2e0] sm:$0xff] }
 0x400   :  { %9634 = vrcp.f32 %v2373_v49  ;;  %v2468_v49 = vld [vmem:[#allocation6 + $0x178] sm:$0xff] }
 0x407   :  { %v9631_v54 = vpop.eup %9630 }
 0x408   :  { %v2385_v47 = vmul.f32 %v9631_v54, %v9627_v44  ;;  %v9633_v48 = vpop.eup %9632  ;;  %v2451_v44 = vld [vmem:[#allocation6 + $0xf0] sm:$0xff]  ;;  %v8112_v54 = vpack.c.bf16 %v2450_v34, %v2442_v33 }
 0x409   :  { %v2384_v36 = vmul.f32 %v9633_v48, %v2382_v46  ;;  %v8176_v46 = vpack.c.bf16 %v2452_v45, %v2444_v35  ;;  %v2460_v48 = vld [vmem:[#allocation6 + $0x138] sm:$0xff]  ;;  %v2507_v34 = vld [vmem:[#allocation6 + $0x2b0] sm:$0xff]  ;;  %v2522_v45 = vld [vmem:[#allocation6 + $0x328] sm:$0xff] }
 0x40a   :  { %v9635_v52 = vpop.eup %9634  ;;  %v2515_v35 = vld [vmem:[#allocation6 + $0x2f0] sm:$0xff] }
 0x40b   :  { %v10317_v51 = vadd.f32 %v2385_v47, %v2384_v36  ;;  %v2466_v47 = vld [vmem:[#allocation6 + $0x168] sm:$0xff]  ;;  %v8114_v36 = vpack.c.bf16 %v2449_v42, %v2441_v12  ;;  %v8130_v12 = vpack.c.bf16 %v2513_v29, %v2505_v27  ;;  %v8194_v42 = vpack.c.bf16 %v2515_v35, %v2507_v34 }
 0x40d   :  { %9636 = vtanh.f32 %v10317_v51 }
 0x417   :  { %v9637_v53 = vpop.eup %9636 }
 0x418   :  { %v10320_v0 = vmul.f32 %v9637_v53, %v9635_v52  ;;  %v8178_v52 = vpack.c.bf16 %v2451_v44, %v2443_v43  ;;  %v2457_v53 = vld [vmem:[#allocation6 + $0x120] sm:$0xff] }
 0x419   :  { %v2521_v43 = vld [vmem:[#allocation6 + $0x320] sm:$0xff] }
 0x41a   :  { %2416 = vst [vmem:[#allocation3 + $0x10] sm:$0xf] %v10320_v0  ;;  %v2529_v44 = vld [vmem:[#allocation6 + $0x360] sm:$0xff] }
 0x42b   :  { %v2258_v56 = vpop.f32.mrb[20].mxu0  ;;  %v2329_v57 = vpop.f32.mrb[32].mxu1 }
 0x42c   :  { %v2350_v58 = vrot.slane %v2258_v56, 4  ;;  %v2260_v59 = vpop.f32.mrb[21].mxu0  ;;  %v2331_v9 = vpop.f32.mrb[33].mxu1  ;;  %v2352_v38 = vrot.slane %v2329_v57, 4  ;;  %v2465_v56 = vld [vmem:[#allocation6 + $0x160] sm:$0xff]  ;;  %v8116_v57 = vpack.c.bf16 %v2466_v47, %v2458_v40  ;;  %v2531_v47 = vld [vmem:[#allocation6 + $0x370] sm:$0xff] }
 0x42d   :  { %v2351_v60 = vrot.slane %v2260_v59, 4  ;;  %v2353_v50 = vrot.slane %v2331_v9, 4  ;;  %v2459_v59 = vld [vmem:[#allocation6 + $0x130] sm:$0xff] }
 0x42e   :  { %v2358_v61 = vadd.f32 %v2350_v58, %v2342_v4  ;;  %v2360_v6 = vadd.f32 %v2352_v38, %v2344_v3  ;;  %v8180_v58 = vpack.c.bf16 %v2468_v49, %v2460_v48  ;;  %v2467_v9 = vld [vmem:[#allocation6 + $0x170] sm:$0xff]  ;;  %v2474_v4 = vld [vmem:[#allocation6 + $0x1a8] sm:$0xff]  ;;  %v2481_v38 = vld [vmem:[#allocation6 + $0x1e0] sm:$0xff] }
 0x42f   :  { %v2359_v63 = vadd.f32 %v2351_v60, %v2343_v62  ;;  %v2361_v55 = vadd.f32 %v2353_v50, %v2345_v7  ;;  %v2482_v60 = vld [vmem:[#allocation6 + $0x1e8] sm:$0xff]  ;;  %v2484_v62 = vld [vmem:[#allocation6 + $0x1f8] sm:$0xff]  ;;  %v2483_v7 = vld [vmem:[#allocation6 + $0x1f0] sm:$0xff] }
 0x430   :  { %v7083_v31 = vmul.f32 -1.442695, %v2358_v61  ;;  %v7085_v8 = vmul.f32 -1.442695, %v2360_v6  ;;  %v2476_v61 = vld [vmem:[#allocation6 + $0x1b8] sm:$0xff]  ;;  %v8120_v3 = vpack.c.bf16 %v2482_v60, %v2474_v4  ;;  %v2475_v6 = vld [vmem:[#allocation6 + $0x1b0] sm:$0xff] }
 0x431   :  { %v7084_v2 = vmul.f32 -1.442695, %v2359_v63  ;;  %v8118_v63 = vpack.c.bf16 %v2465_v56, %v2457_v53  ;;  %v8184_v50 = vpack.c.bf16 %v2484_v62, %v2476_v61  ;;  %v2538_v48 = vld [vmem:[#allocation6 + $0x3a8] sm:$0xff]  ;;  %v8134_v53 = vpack.c.bf16 %v2529_v44, %v2521_v43  ;;  %v2539_v4 = vld [vmem:[#allocation6 + $0x3b0] sm:$0xff] }
 0x432   :  { %9638 = vpow2.f32 %v7083_v31  ;;  %v8182_v31 = vpack.c.bf16 %v2467_v9, %v2459_v59  ;;  %v2546_v49 = vld [vmem:[#allocation6 + $0x3e8] sm:$0xff]  ;;  %v2547_v60 = vld [vmem:[#allocation6 + $0x3f0] sm:$0xff] }
 0x433   :  { %9640 = vpow2.f32 %v7084_v2  ;;  %v2473_v2 = vld [vmem:[#allocation6 + $0x1a0] sm:$0xff]  ;;  %v8136_v59 = vpack.c.bf16 %v2546_v49, %v2538_v48  ;;  %v2554_v61 = vld [vmem:[#allocation6 + $0x428] sm:$0xff]  ;;  %v2603_v48 = vld [vmem:[#allocation6 + $0x5b0] sm:$0xff] }
 0x434   :  { %9642 = vtanh.f32 %v2361_v55  ;;  %v2490_v55 = vld [vmem:[#allocation6 + $0x228] sm:$0xff]  ;;  %v2611_v49 = vld [vmem:[#allocation6 + $0x5f0] sm:$0xff] }
 0x435   :  { %9644 = vpow2.f32 %v7085_v8  ;;  %v2498_v8 = vld [vmem:[#allocation6 + $0x268] sm:$0xff] }
 0x436   :  { %v2562_v62 = vld [vmem:[#allocation6 + $0x468] sm:$0xff] }
 0x43c   :  { %v9639_v10 = vpop.eup %9638 }
 0x43d   :  { %v2398_v11 = vadd.f32 1.0, %v9639_v10  ;;  %v9641_v13 = vpop.eup %9640  ;;  %v2492_v10 = vld [vmem:[#allocation6 + $0x238] sm:$0xff] }
 0x43e   :  { %v2399_v14 = vadd.f32 1.0, %v9641_v13  ;;  %v9643_v15 = vpop.eup %9642  ;;  %v8122_v13 = vpack.c.bf16 %v2481_v38, %v2473_v2  ;;  %v8202_v38 = vpack.c.bf16 %v2547_v60, %v2539_v4 }
 0x43f   :  { %9646 = vrcp.f32 %v2398_v11  ;;  %v9645_v25 = vpop.eup %9644  ;;  %v2500_v11 = vld [vmem:[#allocation6 + $0x278] sm:$0xff] }
 0x440   :  { %9648 = vrcp.f32 %v2399_v14  ;;  %v2400_v28 = vadd.f32 1.0, %v9645_v25  ;;  %v8186_v14 = vpack.c.bf16 %v2483_v7, %v2475_v6  ;;  %v2497_v25 = vld [vmem:[#allocation6 + $0x260] sm:$0xff]  ;;  %v8140_v6 = vpack.c.bf16 %v2562_v62, %v2554_v61  ;;  %v2619_v61 = vld [vmem:[#allocation6 + $0x630] sm:$0xff] }
 0x441   :  { %v2627_v62 = vld [vmem:[#allocation6 + $0x670] sm:$0xff] }
 0x442   :  { %9650 = vrcp.f32 %v2400_v28  ;;  %v2506_v28 = vld [vmem:[#allocation6 + $0x2a8] sm:$0xff] }
 0x449   :  { %v9647_v16 = vpop.eup %9646 }
 0x44a   :  { %v2412_v18 = vmul.f32 %v9647_v16, %v9643_v15  ;;  %v9649_v19 = vpop.eup %9648  ;;  %v2489_v15 = vld [vmem:[#allocation6 + $0x220] sm:$0xff]  ;;  %v8124_v16 = vpack.c.bf16 %v2498_v8, %v2490_v55  ;;  %v2555_v55 = vld [vmem:[#allocation6 + $0x430] sm:$0xff] }
 0x44b   :  { %v2411_v20 = vmul.f32 %v9649_v19, %v2409_v17  ;;  %v8188_v17 = vpack.c.bf16 %v2500_v11, %v2492_v10  ;;  %v2499_v19 = vld [vmem:[#allocation6 + $0x270] sm:$0xff]  ;;  %v2570_v10 = vld [vmem:[#allocation6 + $0x4a8] sm:$0xff] }
 0x44c   :  { %v9651_v22 = vpop.eup %9650  ;;  %v2563_v8 = vld [vmem:[#allocation6 + $0x470] sm:$0xff]  ;;  %v2578_v11 = vld [vmem:[#allocation6 + $0x4e8] sm:$0xff] }
 0x44d   :  { %v10324_v21 = vadd.f32 %v2412_v18, %v2411_v20  ;;  %v2491_v18 = vld [vmem:[#allocation6 + $0x230] sm:$0xff]  ;;  %v2514_v20 = vld [vmem:[#allocation6 + $0x2e8] sm:$0xff] }
 0x44e   :  { %v8190_v26 = vpack.c.bf16 %v2499_v19, %v2491_v18  ;;  %v8144_v18 = vpack.c.bf16 %v2578_v11, %v2570_v10  ;;  %v2635_v10 = vld [vmem:[#allocation6 + $0x6b0] sm:$0xff] }
 0x44f   :  { %9652 = vtanh.f32 %v10324_v21  ;;  %v2643_v11 = vld [vmem:[#allocation6 + $0x6f0] sm:$0xff] }
 0x459   :  { %v9653_v24 = vpop.eup %9652 }
 0x45a   :  { %v2415_v30 = vmul.f32 %v9653_v24, %v9651_v22  ;;  %v2508_v22 = vld [vmem:[#allocation6 + $0x2b8] sm:$0xff]  ;;  %v8126_v24 = vpack.c.bf16 %v2497_v25, %v2489_v15  ;;  %v8206_v25 = vpack.c.bf16 %v2563_v8, %v2555_v55 }
 0x45b   :  { %v8192_v33 = vpack.c.bf16 %v2516_v23, %v2508_v22  ;;  %v2586_v22 = vld [vmem:[#allocation6 + $0x528] sm:$0xff] }
 0x45c   :  { %2417 = vst [vmem:[#allocation3 + $0x28] sm:$0xf0] %v2415_v30  ;;  %v2419_v5 = vrot.slane %v2415_v30, 4  ;;  %v8128_v30 = vpack.c.bf16 %v2514_v20, %v2506_v28  ;;  %v2571_v28 = vld [vmem:[#allocation6 + $0x4b0] sm:$0xff]  ;;  %v2594_v23 = vld [vmem:[#allocation6 + $0x568] sm:$0xff] }
 0x45d   :  { %v2579_v20 = vld [vmem:[#allocation6 + $0x4f0] sm:$0xff]  ;;  %v8148_v34 = vpack.c.bf16 %v2594_v23, %v2586_v22 }
 0x45e   :  { %2741 = vmatprep.mubr.f32.mxu0 %v2419_v5  ;;  %2812 = vmatprep.mubr.f32.mxu1 %v2419_v5  ;;  %v8210_v29 = vpack.c.bf16 %v2579_v20, %v2571_v28  ;;  %v2651_v22 = vld [vmem:[#allocation6 + $0x730] sm:$0xff] }
 0x45f   :  { %2742 = vmatmul.mubr.f32.vlgmr.msra.gmra.mrb[22].mxu0 %v10320_v0  ;;  %2813 = vmatmul.mubr.f32.vlgmr.msra.gmra.mrb[34].mxu1 %v10320_v0  ;;  %v2659_v23 = vld [vmem:[#allocation6 + $0x770] sm:$0xff] }
 0x460   :  { %8111 = vmatpush1.bf16.msra.mxu0 %v8110_v32  ;;  %8175 = vmatpush1.bf16.msra.mxu1 %v8174_v41  ;;  %v2524_v32 = vld [vmem:[#allocation6 + $0x338] sm:$0xff] }
 0x461   :  { %2883 = vmatprep.mubr.f32.mxu0 %v2419_v5  ;;  %2954 = vmatprep.mubr.f32.mxu1 %v2419_v5  ;;  %v2530_v5 = vld [vmem:[#allocation6 + $0x368] sm:$0xff]  ;;  %v2532_v41 = vld [vmem:[#allocation6 + $0x378] sm:$0xff] }
 0x462   :  { %8113 = vmatprep.subr.bf16.mxu0 %v8112_v54  ;;  %8177 = vmatprep.subr.bf16.mxu1 %v8176_v46  ;;  %v8132_v40 = vpack.c.bf16 %v2530_v5, %v2522_v45  ;;  %v8196_v54 = vpack.c.bf16 %v2532_v41, %v2524_v32  ;;  %v2523_v46 = vld [vmem:[#allocation6 + $0x330] sm:$0xff]  ;;  %v2602_v32 = vld [vmem:[#allocation6 + $0x5a8] sm:$0xff] }
 0x463   :  { %v8198_v56 = vpack.c.bf16 %v2531_v47, %v2523_v46  ;;  %v2587_v45 = vld [vmem:[#allocation6 + $0x530] sm:$0xff]  ;;  %v2610_v41 = vld [vmem:[#allocation6 + $0x5e8] sm:$0xff] }
 0x464   :  { %8115 = vmatpush1.bf16.msra.mxu0 %v8114_v36  ;;  %8179 = vmatpush1.bf16.msra.mxu1 %v8178_v52  ;;  %v2540_v36 = vld [vmem:[#allocation6 + $0x3b8] sm:$0xff]  ;;  %v2595_v5 = vld [vmem:[#allocation6 + $0x570] sm:$0xff]  ;;  %v8152_v46 = vpack.c.bf16 %v2610_v41, %v2602_v32 }
 0x465   :  { %8117 = vmatprep.subr.bf16.mxu0 %v8116_v57  ;;  %8181 = vmatprep.subr.bf16.mxu1 %v8180_v58  ;;  %v2548_v52 = vld [vmem:[#allocation6 + $0x3f8] sm:$0xff]  ;;  %v2537_v57 = vld [vmem:[#allocation6 + $0x3a0] sm:$0xff]  ;;  %v8214_v44 = vpack.c.bf16 %v2595_v5, %v2587_v45  ;;  %v2667_v32 = vld [vmem:[#allocation6 + $0x7b0] sm:$0xff] }
 0x466   :  { %v2545_v58 = vld [vmem:[#allocation6 + $0x3e0] sm:$0xff]  ;;  %v8200_v9 = vpack.c.bf16 %v2548_v52, %v2540_v36  ;;  %v2618_v36 = vld [vmem:[#allocation6 + $0x628] sm:$0xff]  ;;  %v2675_v41 = vld [vmem:[#allocation6 + $0x7f0] sm:$0xff] }
 0x467   :  { %v8138_v2 = vpack.c.bf16 %v2545_v58, %v2537_v57  ;;  %v2626_v52 = vld [vmem:[#allocation6 + $0x668] sm:$0xff]  ;;  %v8218_v58 = vpack.c.bf16 %v2611_v49, %v2603_v48  ;;  %v2673_v5 = vld [vmem:[#allocation6 + $0x7e0] sm:$0xff] }
 0x468   :  { %8119 = vmatpush1.bf16.msra.mxu0 %v8118_v63  ;;  %8183 = vmatpush1.bf16.msra.mxu1 %v8182_v31  ;;  %v2556_v63 = vld [vmem:[#allocation6 + $0x438] sm:$0xff]  ;;  %v8156_v4 = vpack.c.bf16 %v2626_v52, %v2618_v36  ;;  %v3055_v48 = vld [vmem:[#allocation6 + $0x40] sm:$0xff]  ;;  %v3049_v52 = vld [vmem:[#allocation6 + $0x10] sm:$0xff] }
 0x469   :  { %8121 = vmatprep.subr.bf16.mxu0 %v8120_v3  ;;  %8185 = vmatprep.subr.bf16.mxu1 %v8184_v50  ;;  %v2564_v31 = vld [vmem:[#allocation6 + $0x478] sm:$0xff]  ;;  %v2553_v3 = vld [vmem:[#allocation6 + $0x420] sm:$0xff] }
 0x46a   :  { %v2561_v50 = vld [vmem:[#allocation6 + $0x460] sm:$0xff]  ;;  %v8204_v7 = vpack.c.bf16 %v2564_v31, %v2556_v63  ;;  %v2634_v63 = vld [vmem:[#allocation6 + $0x6a8] sm:$0xff] }
 0x46b   :  { %v8142_v15 = vpack.c.bf16 %v2561_v50, %v2553_v3  ;;  %v2642_v31 = vld [vmem:[#allocation6 + $0x6e8] sm:$0xff]  ;;  %v8222_v50 = vpack.c.bf16 %v2627_v62, %v2619_v61  ;;  %v3071_v61 = vld [vmem:[#allocation6 + $0xc0] sm:$0xff]  ;;  %v3065_v62 = vld [vmem:[#allocation6 + $0x90] sm:$0xff] }
 0x46c   :  { %8123 = vmatpush1.bf16.msra.mxu0 %v8122_v13  ;;  %8187 = vmatpush1.bf16.msra.mxu1 %v8186_v14  ;;  %v2572_v13 = vld [vmem:[#allocation6 + $0x4b8] sm:$0xff]  ;;  %v8160_v55 = vpack.c.bf16 %v2642_v31, %v2634_v63  ;;  %v3073_v31 = vld [vmem:[#allocation6 + $0xd0] sm:$0xff] }
 0x46d   :  { %8125 = vmatprep.subr.bf16.mxu0 %v8124_v16  ;;  %8189 = vmatprep.subr.bf16.mxu1 %v8188_v17  ;;  %v2580_v14 = vld [vmem:[#allocation6 + $0x4f8] sm:$0xff]  ;;  %v2569_v16 = vld [vmem:[#allocation6 + $0x4a0] sm:$0xff] }
 0x46e   :  { %v2577_v17 = vld [vmem:[#allocation6 + $0x4e0] sm:$0xff]  ;;  %v8208_v19 = vpack.c.bf16 %v2580_v14, %v2572_v13  ;;  %v2650_v13 = vld [vmem:[#allocation6 + $0x728] sm:$0xff] }
 0x46f   :  { %v8146_v27 = vpack.c.bf16 %v2577_v17, %v2569_v16  ;;  %v2658_v14 = vld [vmem:[#allocation6 + $0x768] sm:$0xff]  ;;  %v8226_v17 = vpack.c.bf16 %v2643_v11, %v2635_v10  ;;  %v3087_v10 = vld [vmem:[#allocation6 + $0x140] sm:$0xff]  ;;  %v3081_v11 = vld [vmem:[#allocation6 + $0x110] sm:$0xff] }
 0x470   :  { %8127 = vmatpush1.bf16.msra.mxu0 %v8126_v24  ;;  %8191 = vmatpush1.bf16.msra.mxu1 %v8190_v26  ;;  %v2588_v24 = vld [vmem:[#allocation6 + $0x538] sm:$0xff]  ;;  %v8164_v28 = vpack.c.bf16 %v2658_v14, %v2650_v13  ;;  %v3089_v13 = vld [vmem:[#allocation6 + $0x150] sm:$0xff] }
 0x471   :  { %8129 = vmatprep.subr.bf16.mxu0 %v8128_v30  ;;  %8193 = vmatprep.subr.bf16.mxu1 %v8192_v33  ;;  %v2596_v26 = vld [vmem:[#allocation6 + $0x578] sm:$0xff]  ;;  %v2585_v30 = vld [vmem:[#allocation6 + $0x520] sm:$0xff] }
 0x472   :  { %v2593_v33 = vld [vmem:[#allocation6 + $0x560] sm:$0xff]  ;;  %v8212_v35 = vpack.c.bf16 %v2596_v26, %v2588_v24  ;;  %v2666_v24 = vld [vmem:[#allocation6 + $0x7a8] sm:$0xff] }
 0x473   :  { %v8150_v43 = vpack.c.bf16 %v2593_v33, %v2585_v30  ;;  %v2674_v26 = vld [vmem:[#allocation6 + $0x7e8] sm:$0xff]  ;;  %v8230_v33 = vpack.c.bf16 %v2659_v23, %v2651_v22  ;;  %v3103_v22 = vld [vmem:[#allocation6 + $0x1c0] sm:$0xff]  ;;  %v3097_v23 = vld [vmem:[#allocation6 + $0x190] sm:$0xff] }
 0x474   :  { %8131 = vmatpush1.bf16.msra.mxu0 %v8130_v12  ;;  %8195 = vmatpush1.bf16.msra.mxu1 %v8194_v42  ;;  %v2604_v12 = vld [vmem:[#allocation6 + $0x5b8] sm:$0xff] }
 0x475   :  { %8133 = vmatprep.subr.bf16.mxu0 %v8132_v40  ;;  %8197 = vmatprep.subr.bf16.mxu1 %v8196_v54  ;;  %v2612_v42 = vld [vmem:[#allocation6 + $0x5f8] sm:$0xff]  ;;  %v2601_v40 = vld [vmem:[#allocation6 + $0x5a0] sm:$0xff] }
 0x476   :  { %v2609_v54 = vld [vmem:[#allocation6 + $0x5e0] sm:$0xff]  ;;  %v8216_v47 = vpack.c.bf16 %v2612_v42, %v2604_v12  ;;  %v8234_v42 = vpack.c.bf16 %v2675_v41, %v2667_v32 }
 0x477   :  { %v8154_v57 = vpack.c.bf16 %v2609_v54, %v2601_v40  ;;  %v3050_v40 = vld [vmem:[#allocation6 + $0x18] sm:$0xff] }
 0x478   :  { %8135 = vmatpush1.bf16.msra.mxu0 %v8134_v53  ;;  %8199 = vmatpush1.bf16.msra.mxu1 %v8198_v56  ;;  %v2620_v53 = vld [vmem:[#allocation6 + $0x638] sm:$0xff] }
 0x479   :  { %8137 = vmatprep.subr.bf16.mxu0 %v8136_v59  ;;  %8201 = vmatprep.subr.bf16.mxu1 %v8200_v9  ;;  %v2628_v56 = vld [vmem:[#allocation6 + $0x678] sm:$0xff]  ;;  %v2617_v59 = vld [vmem:[#allocation6 + $0x620] sm:$0xff] }
 0x47a   :  { %v2625_v9 = vld [vmem:[#allocation6 + $0x660] sm:$0xff]  ;;  %v8220_v60 = vpack.c.bf16 %v2628_v56, %v2620_v53  ;;  %v3057_v53 = vld [vmem:[#allocation6 + $0x50] sm:$0xff]  ;;  %v3064_v56 = vld [vmem:[#allocation6 + $0x88] sm:$0xff] }
 0x47b   :  { %v8158_v3 = vpack.c.bf16 %v2625_v9, %v2617_v59  ;;  %v3066_v59 = vld [vmem:[#allocation6 + $0x98] sm:$0xff] }
 0x47c   :  { %8139 = vmatpush1.bf16.msra.mxu0 %v8138_v2  ;;  %8203 = vmatpush1.bf16.msra.mxu1 %v8202_v38  ;;  %v2636_v2 = vld [vmem:[#allocation6 + $0x6b8] sm:$0xff] }
 0x47d   :  { %8141 = vmatprep.subr.bf16.mxu0 %v8140_v6  ;;  %8205 = vmatprep.subr.bf16.mxu1 %v8204_v7  ;;  %v2644_v38 = vld [vmem:[#allocation6 + $0x6f8] sm:$0xff]  ;;  %v2633_v6 = vld [vmem:[#allocation6 + $0x6a0] sm:$0xff] }
 0x47e   :  { %v2641_v7 = vld [vmem:[#allocation6 + $0x6e0] sm:$0xff]  ;;  %v8224_v8 = vpack.c.bf16 %v2644_v38, %v2636_v2  ;;  %v3074_v9 = vld [vmem:[#allocation6 + $0xd8] sm:$0xff]  ;;  %v3080_v2 = vld [vmem:[#allocation6 + $0x108] sm:$0xff] }
 0x47f   :  { %v8162_v16 = vpack.c.bf16 %v2641_v7, %v2633_v6  ;;  %v3088_v38 = vld [vmem:[#allocation6 + $0x148] sm:$0xff]  ;;  %v3082_v6 = vld [vmem:[#allocation6 + $0x118] sm:$0xff] }
 0x480   :  { %8143 = vmatpush1.bf16.msra.mxu0 %v8142_v15  ;;  %8207 = vmatpush1.bf16.msra.mxu1 %v8206_v25  ;;  %v2652_v15 = vld [vmem:[#allocation6 + $0x738] sm:$0xff] }
 0x481   :  { %8145 = vmatprep.subr.bf16.mxu0 %v8144_v18  ;;  %8209 = vmatprep.subr.bf16.mxu1 %v8208_v19  ;;  %v2660_v25 = vld [vmem:[#allocation6 + $0x778] sm:$0xff]  ;;  %v2649_v18 = vld [vmem:[#allocation6 + $0x720] sm:$0xff] }
 0x482   :  { %v2657_v19 = vld [vmem:[#allocation6 + $0x760] sm:$0xff]  ;;  %v8228_v20 = vpack.c.bf16 %v2660_v25, %v2652_v15  ;;  %v3090_v7 = vld [vmem:[#allocation6 + $0x158] sm:$0xff]  ;;  %v3096_v15 = vld [vmem:[#allocation6 + $0x188] sm:$0xff] }
 0x483   :  { %v8166_v30 = vpack.c.bf16 %v2657_v19, %v2649_v18  ;;  %v3104_v25 = vld [vmem:[#allocation6 + $0x1c8] sm:$0xff]  ;;  %v3106_v19 = vld [vmem:[#allocation6 + $0x1d8] sm:$0xff] }
 0x484   :  { %8147 = vmatpush1.bf16.msra.mxu0 %v8146_v27  ;;  %8211 = vmatpush1.bf16.msra.mxu1 %v8210_v29  ;;  %v2668_v27 = vld [vmem:[#allocation6 + $0x7b8] sm:$0xff]  ;;  %v8248_v18 = vpack.c.bf16 %v3104_v25, %v3096_v15  ;;  %v3169_v15 = vld [vmem:[#allocation6 + $0x3d0] sm:$0xff] }
 0x485   :  { %8149 = vmatprep.subr.bf16.mxu0 %v8148_v34  ;;  %8213 = vmatprep.subr.bf16.mxu1 %v8212_v35  ;;  %v2676_v29 = vld [vmem:[#allocation6 + $0x7f8] sm:$0xff]  ;;  %v2665_v34 = vld [vmem:[#allocation6 + $0x7a0] sm:$0xff]  ;;  %v8168_v35 = vpack.c.bf16 %v2674_v26, %v2666_v24  ;;  %v3105_v26 = vld [vmem:[#allocation6 + $0x1d0] sm:$0xff] }
 0x486   :  { %v8232_v45 = vpack.c.bf16 %v2676_v29, %v2668_v27  ;;  %v8170_v12 = vpack.c.bf16 %v2673_v5, %v2665_v34  ;;  %v8314_v27 = vpack.c.bf16 %v3105_v26, %v3097_v23  ;;  %v3112_v29 = vld [vmem:[#allocation6 + $0x208] sm:$0xff]  ;;  %v3119_v5 = vld [vmem:[#allocation6 + $0x240] sm:$0xff]  ;;  %v3177_v26 = vld [vmem:[#allocation6 + $0x410] sm:$0xff] }
 0x488   :  { %8151 = vmatpush1.bf16.msra.mxu0 %v8150_v43  ;;  %8215 = vmatpush1.bf16.msra.mxu1 %v8214_v44  ;;  %v3048_v43 = vld [vmem:[#allocation6 + $0x8] sm:$0xff] }
 0x489   :  { %8153 = vmatprep.subr.bf16.mxu0 %v8152_v46  ;;  %8217 = vmatprep.subr.bf16.mxu1 %v8216_v47  ;;  %v3056_v44 = vld [vmem:[#allocation6 + $0x48] sm:$0xff]  ;;  %v3058_v46 = vld [vmem:[#allocation6 + $0x58] sm:$0xff]  ;;  %v3047_v47 = vld [vmem:[#allocation6] sm:$0xff] }
 0x48a   :  { %v8236_v54 = vpack.c.bf16 %v3056_v44, %v3048_v43  ;;  %v8300_v49 = vpack.c.bf16 %v3058_v46, %v3050_v40  ;;  %v8238_v36 = vpack.c.bf16 %v3055_v48, %v3047_v47  ;;  %v3128_v44 = vld [vmem:[#allocation6 + $0x288] sm:$0xff]  ;;  %v3138_v47 = vld [vmem:[#allocation6 + $0x2d8] sm:$0xff]  ;;  %v3127_v48 = vld [vmem:[#allocation6 + $0x280] sm:$0xff] }
 0x48b   :  { %v3136_v40 = vld [vmem:[#allocation6 + $0x2c8] sm:$0xff] }
 0x48c   :  { %8155 = vmatpush1.bf16.msra.mxu0 %v8154_v57  ;;  %8219 = vmatpush1.bf16.msra.mxu1 %v8218_v58  ;;  %v8302_v57 = vpack.c.bf16 %v3057_v53, %v3049_v52  ;;  %v3072_v58 = vld [vmem:[#allocation6 + $0xc8] sm:$0xff]  ;;  %v8256_v46 = vpack.c.bf16 %v3136_v40, %v3128_v44  ;;  %v3129_v53 = vld [vmem:[#allocation6 + $0x290] sm:$0xff] }
 0x48d   :  { %8157 = vmatprep.subr.bf16.mxu0 %v8156_v4  ;;  %8221 = vmatprep.subr.bf16.mxu1 %v8220_v60  ;;  %v8304_v4 = vpack.c.bf16 %v3074_v9, %v3066_v59  ;;  %v3063_v60 = vld [vmem:[#allocation6 + $0x80] sm:$0xff]  ;;  %v3152_v59 = vld [vmem:[#allocation6 + $0x348] sm:$0xff]  ;;  %v3146_v9 = vld [vmem:[#allocation6 + $0x318] sm:$0xff] }
 0x48e   :  { %v8242_v63 = vpack.c.bf16 %v3071_v61, %v3063_v60  ;;  %v3143_v60 = vld [vmem:[#allocation6 + $0x300] sm:$0xff]  ;;  %v3208_v40 = vld [vmem:[#allocation6 + $0x508] sm:$0xff] }
 0x48f   :  { %v3151_v61 = vld [vmem:[#allocation6 + $0x340] sm:$0xff] }
 0x490   :  { %8159 = vmatpush1.bf16.msra.mxu0 %v8158_v3  ;;  %8223 = vmatpush1.bf16.msra.mxu1 %v8222_v50  ;;  %v8306_v3 = vpack.c.bf16 %v3073_v31, %v3065_v62  ;;  %v8244_v50 = vpack.c.bf16 %v3088_v38, %v3080_v2  ;;  %v3145_v31 = vld [vmem:[#allocation6 + $0x310] sm:$0xff] }
 0x491   :  { %8161 = vmatprep.subr.bf16.mxu0 %v8160_v55  ;;  %8225 = vmatprep.subr.bf16.mxu1 %v8224_v8  ;;  %v3079_v55 = vld [vmem:[#allocation6 + $0x100] sm:$0xff]  ;;  %v8308_v8 = vpack.c.bf16 %v3090_v7, %v3082_v6  ;;  %v3153_v2 = vld [vmem:[#allocation6 + $0x350] sm:$0xff]  ;;  %v3162_v6 = vld [vmem:[#allocation6 + $0x398] sm:$0xff] }
 0x492   :  { %v8246_v14 = vpack.c.bf16 %v3087_v10, %v3079_v55  ;;  %v8326_v38 = vpack.c.bf16 %v3153_v2, %v3145_v31  ;;  %v3170_v55 = vld [vmem:[#allocation6 + $0x3d8] sm:$0xff]  ;;  %v3167_v10 = vld [vmem:[#allocation6 + $0x3c0] sm:$0xff]  ;;  %v3225_v2 = vld [vmem:[#allocation6 + $0x590] sm:$0xff] }
 0x494   :  { %8163 = vmatpush1.bf16.msra.mxu0 %v8162_v16  ;;  %8227 = vmatpush1.bf16.msra.mxu1 %v8226_v17  ;;  %v3098_v16 = vld [vmem:[#allocation6 + $0x198] sm:$0xff]  ;;  %v8310_v17 = vpack.c.bf16 %v3089_v13, %v3081_v11  ;;  %v8328_v11 = vpack.c.bf16 %v3170_v55, %v3162_v6  ;;  %v3248_v6 = vld [vmem:[#allocation6 + $0x648] sm:$0xff] }
 0x495   :  { %8165 = vmatprep.subr.bf16.mxu0 %v8164_v28  ;;  %8229 = vmatprep.subr.bf16.mxu1 %v8228_v20  ;;  %v8312_v28 = vpack.c.bf16 %v3106_v19, %v3098_v16  ;;  %v3095_v20 = vld [vmem:[#allocation6 + $0x180] sm:$0xff]  ;;  %v3176_v16 = vld [vmem:[#allocation6 + $0x408] sm:$0xff]  ;;  %v3250_v55 = vld [vmem:[#allocation6 + $0x658] sm:$0xff] }
 0x496   :  { %v8250_v24 = vpack.c.bf16 %v3103_v22, %v3095_v20  ;;  %v3175_v20 = vld [vmem:[#allocation6 + $0x400] sm:$0xff] }
 0x497   :  { %v3183_v22 = vld [vmem:[#allocation6 + $0x440] sm:$0xff] }
 0x498   :  { %8167 = vmatpush1.bf16.msra.mxu0 %v8166_v30  ;;  %8231 = vmatpush1.bf16.msra.mxu1 %v8230_v33  ;;  %v3120_v30 = vld [vmem:[#allocation6 + $0x248] sm:$0xff]  ;;  %v3114_v33 = vld [vmem:[#allocation6 + $0x218] sm:$0xff] }
 0x499   :  { %8169 = vmatprep.subr.bf16.mxu0 %v8168_v35  ;;  %8233 = vmatprep.subr.bf16.mxu1 %v8232_v45  ;;  %v8252_v34 = vpack.c.bf16 %v3120_v30, %v3112_v29  ;;  %v3122_v35 = vld [vmem:[#allocation6 + $0x258] sm:$0xff]  ;;  %v3111_v45 = vld [vmem:[#allocation6 + $0x200] sm:$0xff]  ;;  %v3192_v30 = vld [vmem:[#allocation6 + $0x488] sm:$0xff] }
 0x49a   :  { %v8316_v32 = vpack.c.bf16 %v3122_v35, %v3114_v33  ;;  %v8254_v41 = vpack.c.bf16 %v3119_v5, %v3111_v45  ;;  %v3200_v33 = vld [vmem:[#allocation6 + $0x4c8] sm:$0xff]  ;;  %v3202_v45 = vld [vmem:[#allocation6 + $0x4d8] sm:$0xff]  ;;  %v3191_v5 = vld [vmem:[#allocation6 + $0x480] sm:$0xff] }
 0x49b   :  { %v8272_v35 = vpack.c.bf16 %v3200_v33, %v3192_v30  ;;  %v3272_v30 = vld [vmem:[#allocation6 + $0x708] sm:$0xff] }
 0x49c   :  { %8171 = vmatpush1.bf16.msra.mxu0 %v8170_v12  ;;  %8235 = vmatpush1.bf16.msra.mxu1 %v8234_v42  ;;  %v3113_v12 = vld [vmem:[#allocation6 + $0x210] sm:$0xff]  ;;  %v3280_v33 = vld [vmem:[#allocation6 + $0x748] sm:$0xff] }
 0x49d   :  { %8237 = vmatprep.subr.bf16.mxu0 %v8236_v54  ;;  %8301 = vmatprep.subr.bf16.mxu1 %v8300_v49  ;;  %v3121_v42 = vld [vmem:[#allocation6 + $0x250] sm:$0xff]  ;;  %v3130_v54 = vld [vmem:[#allocation6 + $0x298] sm:$0xff]  ;;  %v3135_v49 = vld [vmem:[#allocation6 + $0x2c0] sm:$0xff] }
 0x49e   :  { %v8318_v43 = vpack.c.bf16 %v3121_v42, %v3113_v12  ;;  %v8258_v52 = vpack.c.bf16 %v3135_v49, %v3127_v48  ;;  %v3193_v42 = vld [vmem:[#allocation6 + $0x490] sm:$0xff]  ;;  %v3218_v48 = vld [vmem:[#allocation6 + $0x558] sm:$0xff]  ;;  %v3207_v49 = vld [vmem:[#allocation6 + $0x500] sm:$0xff] }
 0x49f   :  { %2884 = vmatmul.mubr.f32.vlgmr.msra.gmra.mrb[24].mxu0 %v10320_v0  ;;  %2955 = vmatmul.mubr.f32.vlgmr.msra.gmra.mrb[36].mxu1 %v10320_v0  ;;  %v8240_v0 = vpack.c.bf16 %v3072_v58, %v3064_v56  ;;  %v3137_v56 = vld [vmem:[#allocation6 + $0x2d0] sm:$0xff]  ;;  %v3144_v58 = vld [vmem:[#allocation6 + $0x308] sm:$0xff] }
 0x4a0   :  { %8239 = vmatpush1.bf16.msra.mxu0 %v8238_v36  ;;  %8303 = vmatpush1.bf16.msra.mxu1 %v8302_v57  ;;  %v8320_v36 = vpack.c.bf16 %v3138_v47, %v3130_v54  ;;  %v8322_v57 = vpack.c.bf16 %v3137_v56, %v3129_v53  ;;  %v3216_v54 = vld [vmem:[#allocation6 + $0x548] sm:$0xff]  ;;  %v3209_v56 = vld [vmem:[#allocation6 + $0x510] sm:$0xff] }
 0x4a1   :  { %8241 = vmatprep.subr.bf16.mxu0 %v8240_v0  ;;  %8305 = vmatprep.subr.bf16.mxu1 %v8304_v4  ;;  %v8260_v0 = vpack.c.bf16 %v3152_v59, %v3144_v58  ;;  %v3154_v4 = vld [vmem:[#allocation6 + $0x358] sm:$0xff]  ;;  %v8276_v47 = vpack.c.bf16 %v3216_v54, %v3208_v40  ;;  %v3224_v59 = vld [vmem:[#allocation6 + $0x588] sm:$0xff] }
 0x4a2   :  { %v8324_v62 = vpack.c.bf16 %v3154_v4, %v3146_v9  ;;  %v3232_v9 = vld [vmem:[#allocation6 + $0x5c8] sm:$0xff]  ;;  %v3290_v54 = vld [vmem:[#allocation6 + $0x798] sm:$0xff] }
 0x4a3   :  { %v8280_v4 = vpack.c.bf16 %v3232_v9, %v3224_v59  ;;  %v3296_v40 = vld [vmem:[#allocation6 + $0x7c8] sm:$0xff] }
 0x4a4   :  { %8243 = vmatpush1.bf16.msra.mxu0 %v8242_v63  ;;  %8307 = vmatpush1.bf16.msra.mxu1 %v8306_v3  ;;  %v8262_v63 = vpack.c.bf16 %v3151_v61, %v3143_v60  ;;  %v3160_v3 = vld [vmem:[#allocation6 + $0x388] sm:$0xff]  ;;  %v3234_v60 = vld [vmem:[#allocation6 + $0x5d8] sm:$0xff]  ;;  %v3223_v61 = vld [vmem:[#allocation6 + $0x580] sm:$0xff] }
 0x4a5   :  { %8245 = vmatprep.subr.bf16.mxu0 %v8244_v50  ;;  %8309 = vmatprep.subr.bf16.mxu1 %v8308_v8  ;;  %v3168_v50 = vld [vmem:[#allocation6 + $0x3c8] sm:$0xff]  ;;  %v3159_v8 = vld [vmem:[#allocation6 + $0x380] sm:$0xff] }
 0x4a6   :  { %v8264_v7 = vpack.c.bf16 %v3168_v50, %v3160_v3  ;;  %v8266_v13 = vpack.c.bf16 %v3167_v10, %v3159_v8  ;;  %v3240_v3 = vld [vmem:[#allocation6 + $0x608] sm:$0xff] }
 0x4a7   :  { %v8284_v8 = vpack.c.bf16 %v3248_v6, %v3240_v3  ;;  %v3052_v9 = vld [vmem:[#allocation6 + $0x28] sm:$0xff] }
 0x4a8   :  { %8247 = vmatpush1.bf16.msra.mxu0 %v8246_v14  ;;  %8311 = vmatpush1.bf16.msra.mxu1 %v8310_v17  ;;  %v3161_v14 = vld [vmem:[#allocation6 + $0x390] sm:$0xff]  ;;  %v3184_v17 = vld [vmem:[#allocation6 + $0x448] sm:$0xff] }
 0x4a9   :  { %8249 = vmatprep.subr.bf16.mxu0 %v8248_v18  ;;  %8313 = vmatprep.subr.bf16.mxu1 %v8312_v28  ;;  %v8330_v25 = vpack.c.bf16 %v3169_v15, %v3161_v14  ;;  %v3178_v18 = vld [vmem:[#allocation6 + $0x418] sm:$0xff]  ;;  %v8268_v19 = vpack.c.bf16 %v3184_v17, %v3176_v16  ;;  %v3241_v14 = vld [vmem:[#allocation6 + $0x610] sm:$0xff]  ;;  %v3256_v16 = vld [vmem:[#allocation6 + $0x688] sm:$0xff] }
 0x4aa   :  { %v3186_v28 = vld [vmem:[#allocation6 + $0x458] sm:$0xff]  ;;  %v3264_v17 = vld [vmem:[#allocation6 + $0x6c8] sm:$0xff] }
 0x4ab   :  { %v8332_v23 = vpack.c.bf16 %v3186_v28, %v3178_v18  ;;  %v3258_v28 = vld [vmem:[#allocation6 + $0x698] sm:$0xff] }
 0x4ac   :  { %8251 = vmatpush1.bf16.msra.mxu0 %v8250_v24  ;;  %8315 = vmatpush1.bf16.msra.mxu1 %v8314_v27  ;;  %v8270_v24 = vpack.c.bf16 %v3183_v22, %v3175_v20  ;;  %v3185_v27 = vld [vmem:[#allocation6 + $0x450] sm:$0xff]  ;;  %v3266_v20 = vld [vmem:[#allocation6 + $0x6d8] sm:$0xff]  ;;  %v3255_v22 = vld [vmem:[#allocation6 + $0x680] sm:$0xff] }
 0x4ad   :  { %8253 = vmatprep.subr.bf16.mxu0 %v8252_v34  ;;  %8317 = vmatprep.subr.bf16.mxu1 %v8316_v32  ;;  %v8334_v29 = vpack.c.bf16 %v3185_v27, %v3177_v26  ;;  %v3194_v34 = vld [vmem:[#allocation6 + $0x498] sm:$0xff]  ;;  %v3199_v32 = vld [vmem:[#allocation6 + $0x4c0] sm:$0xff]  ;;  %v3257_v26 = vld [vmem:[#allocation6 + $0x690] sm:$0xff] }
 0x4ae   :  { %v8274_v12 = vpack.c.bf16 %v3199_v32, %v3191_v5  ;;  %v3265_v27 = vld [vmem:[#allocation6 + $0x6d0] sm:$0xff]  ;;  %v3282_v5 = vld [vmem:[#allocation6 + $0x758] sm:$0xff]  ;;  %v3271_v32 = vld [vmem:[#allocation6 + $0x700] sm:$0xff] }
 0x4b0   :  { %8255 = vmatpush1.bf16.msra.mxu0 %v8254_v41  ;;  %8319 = vmatpush1.bf16.msra.mxu1 %v8318_v43  ;;  %v8336_v41 = vpack.c.bf16 %v3202_v45, %v3194_v34  ;;  %v3201_v43 = vld [vmem:[#allocation6 + $0x4d0] sm:$0xff]  ;;  %v3274_v34 = vld [vmem:[#allocation6 + $0x718] sm:$0xff]  ;;  %v8292_v45 = vpack.c.bf16 %v3280_v33, %v3272_v30 }
 0x4b1   :  { %8257 = vmatprep.subr.bf16.mxu0 %v8256_v46  ;;  %8321 = vmatprep.subr.bf16.mxu1 %v8320_v36  ;;  %v8338_v44 = vpack.c.bf16 %v3201_v43, %v3193_v42  ;;  %v3210_v46 = vld [vmem:[#allocation6 + $0x518] sm:$0xff]  ;;  %v3215_v36 = vld [vmem:[#allocation6 + $0x540] sm:$0xff]  ;;  %v3273_v42 = vld [vmem:[#allocation6 + $0x710] sm:$0xff] }
 0x4b2   :  { %v8278_v53 = vpack.c.bf16 %v3215_v36, %v3207_v49  ;;  %v3281_v43 = vld [vmem:[#allocation6 + $0x750] sm:$0xff]  ;;  %v3287_v36 = vld [vmem:[#allocation6 + $0x780] sm:$0xff] }
 0x4b4   :  { %8259 = vmatpush1.bf16.msra.mxu0 %v8258_v52  ;;  %8323 = vmatpush1.bf16.msra.mxu1 %v8322_v57  ;;  %v8340_v52 = vpack.c.bf16 %v3218_v48, %v3210_v46  ;;  %v3217_v57 = vld [vmem:[#allocation6 + $0x550] sm:$0xff]  ;;  %v3298_v46 = vld [vmem:[#allocation6 + $0x7d8] sm:$0xff]  ;;  %v8358_v48 = vpack.c.bf16 %v3281_v43, %v3273_v42 }
 0x4b5   :  { %8261 = vmatprep.subr.bf16.mxu0 %v8260_v0  ;;  %8325 = vmatprep.subr.bf16.mxu1 %v8324_v62  ;;  %v8342_v58 = vpack.c.bf16 %v3217_v57, %v3209_v56  ;;  %v3226_v0 = vld [vmem:[#allocation6 + $0x598] sm:$0xff]  ;;  %v3231_v62 = vld [vmem:[#allocation6 + $0x5c0] sm:$0xff]  ;;  %v3289_v56 = vld [vmem:[#allocation6 + $0x790] sm:$0xff] }
 0x4b6   :  { %v8282_v31 = vpack.c.bf16 %v3231_v62, %v3223_v61  ;;  %v3297_v57 = vld [vmem:[#allocation6 + $0x7d0] sm:$0xff]  ;;  %v3062_v61 = vld [vmem:[#allocation6 + $0x78] sm:$0xff] }
 0x4b7   :  { %v8362_v59 = vpack.c.bf16 %v3297_v57, %v3289_v56 }
 0x4b8   :  { %8263 = vmatpush1.bf16.msra.mxu0 %v8262_v63  ;;  %8327 = vmatpush1.bf16.msra.mxu1 %v8326_v38  ;;  %v8344_v63 = vpack.c.bf16 %v3234_v60, %v3226_v0  ;;  %v3233_v38 = vld [vmem:[#allocation6 + $0x5d0] sm:$0xff]  ;;  %v3060_v0 = vld [vmem:[#allocation6 + $0x68] sm:$0xff] }
 0x4b9   :  { %8265 = vmatprep.subr.bf16.mxu0 %v8264_v7  ;;  %8329 = vmatprep.subr.bf16.mxu1 %v8328_v11  ;;  %v8346_v50 = vpack.c.bf16 %v3233_v38, %v3225_v2  ;;  %v3242_v7 = vld [vmem:[#allocation6 + $0x618] sm:$0xff]  ;;  %v3239_v11 = vld [vmem:[#allocation6 + $0x600] sm:$0xff]  ;;  %v8364_v60 = vpack.c.bf16 %v3060_v0, %v3052_v9 }
 0x4ba   :  { %v8348_v10 = vpack.c.bf16 %v3250_v55, %v3242_v7  ;;  %v2962_v55 = vld [vmem:[#allocation2 + $0x48] sm:$0xf0] }
 0x4bc   :  { %8267 = vmatpush1.bf16.msra.mxu0 %v8266_v13  ;;  %8331 = vmatpush1.bf16.msra.mxu1 %v8330_v25  ;;  %v3247_v13 = vld [vmem:[#allocation6 + $0x640] sm:$0xff]  ;;  %v3249_v25 = vld [vmem:[#allocation6 + $0x650] sm:$0xff] }
 0x4bd   :  { %8269 = vmatprep.subr.bf16.mxu0 %v8268_v19  ;;  %8333 = vmatprep.subr.bf16.mxu1 %v8332_v23  ;;  %v8286_v15 = vpack.c.bf16 %v3247_v13, %v3239_v11  ;;  %v8350_v18 = vpack.c.bf16 %v3249_v25, %v3241_v14  ;;  %v8288_v19 = vpack.c.bf16 %v3264_v17, %v3256_v16  ;;  %v2963_v14 = vld [vmem:[#allocation2 + $0x50] sm:$0xf0]  ;;  %v2964_v16 = vld [vmem:[#allocation2 + $0x58] sm:$0xf0] }
 0x4be   :  { %v8352_v23 = vpack.c.bf16 %v3266_v20, %v3258_v28 }
 0x4c0   :  { %8271 = vmatpush1.bf16.msra.mxu0 %v8270_v24  ;;  %8335 = vmatpush1.bf16.msra.mxu1 %v8334_v29  ;;  %v3263_v24 = vld [vmem:[#allocation6 + $0x6c0] sm:$0xff] }
 0x4c1   :  { %8273 = vmatprep.subr.bf16.mxu0 %v8272_v35  ;;  %8337 = vmatprep.subr.bf16.mxu1 %v8336_v41  ;;  %v8290_v29 = vpack.c.bf16 %v3263_v24, %v3255_v22  ;;  %v8354_v35 = vpack.c.bf16 %v3265_v27, %v3257_v26  ;;  %v3279_v41 = vld [vmem:[#allocation6 + $0x740] sm:$0xff]  ;;  %v3009_v27 = vrot.slane %v10317_v51, 4 }
 0x4c4   :  { %8275 = vmatpush1.bf16.msra.mxu0 %v8274_v12  ;;  %8339 = vmatpush1.bf16.msra.mxu1 %v8338_v44  ;;  %v8356_v12 = vpack.c.bf16 %v3282_v5, %v3274_v34  ;;  %v3288_v44 = vld [vmem:[#allocation6 + $0x788] sm:$0xff] }
 0x4c5   :  { %8277 = vmatprep.subr.bf16.mxu0 %v8276_v47  ;;  %8341 = vmatprep.subr.bf16.mxu1 %v8340_v52  ;;  %v8294_v47 = vpack.c.bf16 %v3279_v41, %v3271_v32  ;;  %v8296_v49 = vpack.c.bf16 %v3296_v40, %v3288_v44  ;;  %v3295_v52 = vld [vmem:[#allocation6 + $0x7c0] sm:$0xff] }
 0x4c6   :  { %v2982_v40 = vld [vmem:[#allocation2 + $0xa8] sm:$0xf] }
 0x4c8   :  { %8279 = vmatpush1.bf16.msra.mxu0 %v8278_v53  ;;  %8343 = vmatpush1.bf16.msra.mxu1 %v8342_v58  ;;  %v8360_v53 = vpack.c.bf16 %v3298_v46, %v3290_v54  ;;  %v8298_v58 = vpack.c.bf16 %v3295_v52, %v3287_v36  ;;  %v2984_v36 = vld [vmem:[#allocation2 + $0xb8] sm:$0xf] }
 0x4c9   :  { %8281 = vmatprep.subr.bf16.mxu0 %v8280_v4  ;;  %8345 = vmatprep.subr.bf16.mxu1 %v8344_v63  ;;  %v3054_v4 = vld [vmem:[#allocation6 + $0x38] sm:$0xff] }
 0x4ca   :  { %v8428_v62 = vpack.c.bf16 %v3062_v61, %v3054_v4 }
 0x4cc   :  { %8283 = vmatpush1.bf16.msra.mxu0 %v8282_v31  ;;  %8347 = vmatpush1.bf16.msra.mxu1 %v8346_v50  ;;  %v2961_v50 = vld [vmem:[#allocation2 + $0x40] sm:$0xf0] }
 0x4cd   :  { %8285 = vmatprep.subr.bf16.mxu0 %v8284_v8  ;;  %8349 = vmatprep.subr.bf16.mxu1 %v8348_v10 }
 0x4d0   :  { %8287 = vmatpush1.bf16.msra.mxu0 %v8286_v15  ;;  %8351 = vmatpush1.bf16.msra.mxu1 %v8350_v18 }
 0x4d1   :  { %8289 = vmatprep.subr.bf16.mxu0 %v8288_v19  ;;  %8353 = vmatprep.subr.bf16.mxu1 %v8352_v23 }
 0x4d4   :  { %8291 = vmatpush1.bf16.msra.mxu0 %v8290_v29  ;;  %8355 = vmatpush1.bf16.msra.mxu1 %v8354_v35 }
 0x4d5   :  { %8293 = vmatprep.subr.bf16.mxu0 %v8292_v45  ;;  %8357 = vmatprep.subr.bf16.mxu1 %v8356_v12  ;;  %v2981_v12 = vld [vmem:[#allocation2 + $0xa0] sm:$0xf] }
 0x4d8   :  { %8295 = vmatpush1.bf16.msra.mxu0 %v8294_v47  ;;  %8359 = vmatpush1.bf16.msra.mxu1 %v8358_v48  ;;  %v2983_v48 = vld [vmem:[#allocation2 + $0xb0] sm:$0xf] }
 0x4d9   :  { %8297 = vmatprep.subr.bf16.mxu0 %v8296_v49  ;;  %8361 = vmatprep.subr.bf16.mxu1 %v8360_v53 }
 0x4dc   :  { %8299 = vmatpush1.bf16.msra.mxu0 %v8298_v58  ;;  %8363 = vmatpush1.bf16.msra.mxu1 %v8362_v59 }
 0x4dd   :  { %8365 = vmatprep.subr.bf16.mxu0 %v8364_v60  ;;  %8429 = vmatprep.subr.bf16.mxu1 %v8428_v62  ;;  %v3036_v60 = vrot.slane %v10324_v21, 4  ;;  %v3076_v21 = vld [vmem:[#allocation6 + $0xe8] sm:$0xff] }
 0x532   :  { %v2743_v63 = vpop.f32.mrb[22].mxu0  ;;  %v2814_v31 = vpop.f32.mrb[34].mxu1 }
 0x533   :  { %v2969_v2 = vrot.slane %v2743_v63, 4  ;;  %v2745_v38 = vpop.f32.mrb[23].mxu0  ;;  %v2816_v3 = vpop.f32.mrb[35].mxu1  ;;  %v2971_v13 = vrot.slane %v2814_v31, 4 }
 0x534   :  { %v2970_v6 = vrot.slane %v2745_v38, 4  ;;  %v2972_v15 = vrot.slane %v2816_v3, 4 }
 0x535   :  { %v2977_v7 = vadd.f32 %v2969_v2, %v2961_v50  ;;  %v2979_v25 = vadd.f32 %v2971_v13, %v2963_v14  ;;  %v3070_v13 = vld [vmem:[#allocation6 + $0xb8] sm:$0xff] }
 0x536   :  { %v2978_v8 = vadd.f32 %v2970_v6, %v2962_v55  ;;  %v2980_v17 = vadd.f32 %v2972_v15, %v2964_v16  ;;  %v3051_v6 = vld [vmem:[#allocation6 + $0x20] sm:$0xff]  ;;  %v3053_v55 = vld [vmem:[#allocation6 + $0x30] sm:$0xff]  ;;  %v3078_v14 = vld [vmem:[#allocation6 + $0xf8] sm:$0xff] }
 0x537   :  { %v7086_v10 = vmul.f32 -1.442695, %v2977_v7  ;;  %v7088_v18 = vmul.f32 -1.442695, %v2979_v25  ;;  %v3059_v7 = vld [vmem:[#allocation6 + $0x60] sm:$0xff] }
 0x538   :  { %v7087_v11 = vmul.f32 -1.442695, %v2978_v8  ;;  %v3061_v8 = vld [vmem:[#allocation6 + $0x70] sm:$0xff]  ;;  %v8366_v25 = vpack.c.bf16 %v3059_v7, %v3051_v6 }
 0x539   :  { %9654 = vpow2.f32 %v7086_v10  ;;  %v8430_v16 = vpack.c.bf16 %v3061_v8, %v3053_v55  ;;  %v3131_v55 = vld [vmem:[#allocation6 + $0x2a0] sm:$0xff] }
 0x53a   :  { %9656 = vpow2.f32 %v7087_v11  ;;  %v3068_v11 = vld [vmem:[#allocation6 + $0xa8] sm:$0xff]  ;;  %v3139_v8 = vld [vmem:[#allocation6 + $0x2e0] sm:$0xff] }
 0x53b   :  { %9658 = vtanh.f32 %v2980_v17  ;;  %v3067_v17 = vld [vmem:[#allocation6 + $0xa0] sm:$0xff] }
 0x53c   :  { %9660 = vpow2.f32 %v7088_v18  ;;  %v3075_v18 = vld [vmem:[#allocation6 + $0xe0] sm:$0xff] }
 0x543   :  { %v9655_v19 = vpop.eup %9654 }
 0x544   :  { %v2998_v28 = vadd.f32 1.0, %v9655_v19  ;;  %v9657_v20 = vpop.eup %9656 }
 0x545   :  { %v2999_v22 = vadd.f32 1.0, %v9657_v20  ;;  %v9659_v23 = vpop.eup %9658  ;;  %v3077_v20 = vld [vmem:[#allocation6 + $0xf0] sm:$0xff] }
 0x546   :  { %9662 = vrcp.f32 %v2998_v28  ;;  %v9661_v24 = vpop.eup %9660  ;;  %v3069_v28 = vld [vmem:[#allocation6 + $0xb0] sm:$0xff] }
 0x547   :  { %9664 = vrcp.f32 %v2999_v22  ;;  %v3000_v33 = vadd.f32 1.0, %v9661_v24  ;;  %v3084_v22 = vld [vmem:[#allocation6 + $0x128] sm:$0xff]  ;;  %v8432_v24 = vpack.c.bf16 %v3078_v14, %v3070_v13  ;;  %v3141_v13 = vld [vmem:[#allocation6 + $0x2f0] sm:$0xff] }
 0x548   :  { %v3148_v14 = vld [vmem:[#allocation6 + $0x328] sm:$0xff] }
 0x549   :  { %9666 = vrcp.f32 %v3000_v33  ;;  %v8434_v33 = vpack.c.bf16 %v3077_v20, %v3069_v28  ;;  %v3147_v28 = vld [vmem:[#allocation6 + $0x320] sm:$0xff] }
 0x54a   :  { %v3155_v20 = vld [vmem:[#allocation6 + $0x360] sm:$0xff] }
 0x550   :  { %v9663_v26 = vpop.eup %9662 }
 0x551   :  { %v3012_v29 = vmul.f32 %v9663_v26, %v9659_v23  ;;  %v9665_v30 = vpop.eup %9664  ;;  %v8368_v23 = vpack.c.bf16 %v3076_v21, %v3068_v11  ;;  %v3092_v26 = vld [vmem:[#allocation6 + $0x168] sm:$0xff]  ;;  %v3133_v21 = vld [vmem:[#allocation6 + $0x2b0] sm:$0xff] }
 0x552   :  { %v3011_v34 = vmul.f32 %v9665_v30, %v3009_v27  ;;  %v3086_v27 = vld [vmem:[#allocation6 + $0x138] sm:$0xff]  ;;  %v8370_v30 = vpack.c.bf16 %v3075_v18, %v3067_v17  ;;  %v8386_v17 = vpack.c.bf16 %v3139_v8, %v3131_v55  ;;  %v8450_v18 = vpack.c.bf16 %v3141_v13, %v3133_v21 }
 0x553   :  { %v9667_v45 = vpop.eup %9666 }
 0x554   :  { %v10332_v35 = vadd.f32 %v3012_v29, %v3011_v34  ;;  %v3094_v29 = vld [vmem:[#allocation6 + $0x178] sm:$0xff]  ;;  %v3083_v34 = vld [vmem:[#allocation6 + $0x120] sm:$0xff] }
 0x556   :  { %9668 = vtanh.f32 %v10332_v35 }
 0x560   :  { %v9669_v5 = vpop.eup %9668 }
 0x561   :  { %v3015_v32 = vmul.f32 %v9669_v5, %v9667_v45  ;;  %v3091_v45 = vld [vmem:[#allocation6 + $0x160] sm:$0xff]  ;;  %v8372_v5 = vpack.c.bf16 %v3092_v26, %v3084_v22  ;;  %v3157_v26 = vld [vmem:[#allocation6 + $0x370] sm:$0xff] }
 0x563   :  { %3043 = vst [vmem:[#allocation3 + $0x10] sm:$0xf0] %v3015_v32  ;;  %v10339_v19 = vrot.slane %v3015_v32, 4  ;;  %v8436_v32 = vpack.c.bf16 %v3094_v29, %v3086_v27  ;;  %v3164_v27 = vld [vmem:[#allocation6 + $0x3a8] sm:$0xff] }
 0x564   :  { %v3172_v29 = vld [vmem:[#allocation6 + $0x3e8] sm:$0xff] }
 0x572   :  { %v2885_v41 = vpop.f32.mrb[24].mxu0  ;;  %v2956_v42 = vpop.f32.mrb[36].mxu1 }
 0x573   :  { %v2985_v43 = vadd.f32 %v2981_v12, %v2885_v41  ;;  %v2887_v44 = vpop.f32.mrb[25].mxu0  ;;  %v2958_v51 = vpop.f32.mrb[37].mxu1  ;;  %v2987_v49 = vadd.f32 %v2983_v48, %v2956_v42  ;;  %v3085_v41 = vld [vmem:[#allocation6 + $0x130] sm:$0xff]  ;;  %v3100_v42 = vld [vmem:[#allocation6 + $0x1a8] sm:$0xff] }
 0x574   :  { %v2986_v54 = vadd.f32 %v2982_v40, %v2887_v44  ;;  %v2988_v52 = vadd.f32 %v2984_v36, %v2958_v51  ;;  %v3093_v12 = vld [vmem:[#allocation6 + $0x170] sm:$0xff]  ;;  %v3102_v44 = vld [vmem:[#allocation6 + $0x1b8] sm:$0xff]  ;;  %v8374_v51 = vpack.c.bf16 %v3091_v45, %v3083_v34  ;;  %v8390_v34 = vpack.c.bf16 %v3155_v20, %v3147_v28 }
 0x575   :  { %v7089_v46 = vmul.f32 -1.442695, %v2985_v43  ;;  %v7091_v53 = vmul.f32 -1.442695, %v2987_v49  ;;  %v3108_v43 = vld [vmem:[#allocation6 + $0x1e8] sm:$0xff]  ;;  %v3110_v40 = vld [vmem:[#allocation6 + $0x1f8] sm:$0xff] }
 0x576   :  { %v7090_v47 = vmul.f32 -1.442695, %v2986_v54  ;;  %v8438_v54 = vpack.c.bf16 %v3093_v12, %v3085_v41  ;;  %v8376_v48 = vpack.c.bf16 %v3108_v43, %v3100_v42  ;;  %v8440_v49 = vpack.c.bf16 %v3110_v40, %v3102_v44  ;;  %v3101_v36 = vld [vmem:[#allocation6 + $0x1b0] sm:$0xff]  ;;  %v3180_v44 = vld [vmem:[#allocation6 + $0x428] sm:$0xff] }
 0x577   :  { %9670 = vpow2.f32 %v7089_v46  ;;  %v3099_v46 = vld [vmem:[#allocation6 + $0x1a0] sm:$0xff]  ;;  %v8392_v41 = vpack.c.bf16 %v3172_v29, %v3164_v27  ;;  %v3165_v42 = vld [vmem:[#allocation6 + $0x3b0] sm:$0xff]  ;;  %v3188_v40 = vld [vmem:[#allocation6 + $0x468] sm:$0xff] }
 0x578   :  { %9672 = vpow2.f32 %v7090_v47  ;;  %v3107_v47 = vld [vmem:[#allocation6 + $0x1e0] sm:$0xff]  ;;  %v3173_v43 = vld [vmem:[#allocation6 + $0x3f0] sm:$0xff] }
 0x579   :  { %9674 = vtanh.f32 %v2988_v52  ;;  %v3109_v52 = vld [vmem:[#allocation6 + $0x1f0] sm:$0xff] }
 0x57a   :  { %9676 = vpow2.f32 %v7091_v53  ;;  %v3116_v53 = vld [vmem:[#allocation6 + $0x228] sm:$0xff]  ;;  %v3229_v27 = vld [vmem:[#allocation6 + $0x5b0] sm:$0xff] }
 0x57b   :  { %v3237_v29 = vld [vmem:[#allocation6 + $0x5f0] sm:$0xff] }
 0x581   :  { %v9671_v56 = vpop.eup %9670 }
 0x582   :  { %v3025_v57 = vadd.f32 1.0, %v9671_v56  ;;  %v9673_v58 = vpop.eup %9672  ;;  %v3124_v56 = vld [vmem:[#allocation6 + $0x268] sm:$0xff] }
 0x583   :  { %v3026_v59 = vadd.f32 1.0, %v9673_v58  ;;  %v9675_v9 = vpop.eup %9674  ;;  %v3126_v58 = vld [vmem:[#allocation6 + $0x278] sm:$0xff] }
 0x584   :  { %9678 = vrcp.f32 %v3025_v57  ;;  %v9677_v0 = vpop.eup %9676  ;;  %v3118_v57 = vld [vmem:[#allocation6 + $0x238] sm:$0xff] }
 0x585   :  { %9680 = vrcp.f32 %v3026_v59  ;;  %v3027_v63 = vadd.f32 1.0, %v9677_v0  ;;  %v8378_v59 = vpack.c.bf16 %v3107_v47, %v3099_v46  ;;  %v3115_v0 = vld [vmem:[#allocation6 + $0x220] sm:$0xff]  ;;  %v8458_v47 = vpack.c.bf16 %v3173_v43, %v3165_v42 }
 0x587   :  { %9682 = vrcp.f32 %v3027_v63  ;;  %v3125_v63 = vld [vmem:[#allocation6 + $0x270] sm:$0xff] }
 0x58e   :  { %v9679_v4 = vpop.eup %9678 }
 0x58f   :  { %v3039_v61 = vmul.f32 %v9679_v4, %v9675_v9  ;;  %v9681_v62 = vpop.eup %9680  ;;  %v8442_v9 = vpack.c.bf16 %v3109_v52, %v3101_v36  ;;  %v3123_v4 = vld [vmem:[#allocation6 + $0x260] sm:$0xff]  ;;  %v8396_v36 = vpack.c.bf16 %v3188_v40, %v3180_v44  ;;  %v3245_v44 = vld [vmem:[#allocation6 + $0x630] sm:$0xff] }
 0x590   :  { %v3038_v31 = vmul.f32 %v9681_v62, %v3036_v60  ;;  %v8380_v60 = vpack.c.bf16 %v3124_v56, %v3116_v53  ;;  %v3117_v62 = vld [vmem:[#allocation6 + $0x230] sm:$0xff]  ;;  %v8382_v6 = vpack.c.bf16 %v3123_v4, %v3115_v0 }
 0x591   :  { %v9683_v38 = vpop.eup %9682  ;;  %v8446_v7 = vpack.c.bf16 %v3125_v63, %v3117_v62  ;;  %v3181_v53 = vld [vmem:[#allocation6 + $0x430] sm:$0xff] }
 0x592   :  { %v10336_v2 = vadd.f32 %v3039_v61, %v3038_v31  ;;  %v8444_v61 = vpack.c.bf16 %v3126_v58, %v3118_v57  ;;  %v3132_v31 = vld [vmem:[#allocation6 + $0x2a8] sm:$0xff]  ;;  %v3189_v56 = vld [vmem:[#allocation6 + $0x470] sm:$0xff] }
 0x593   :  { %v3196_v57 = vld [vmem:[#allocation6 + $0x4a8] sm:$0xff]  ;;  %v8462_v4 = vpack.c.bf16 %v3189_v56, %v3181_v53  ;;  %v3253_v40 = vld [vmem:[#allocation6 + $0x670] sm:$0xff] }
 0x594   :  { %9684 = vtanh.f32 %v10336_v2  ;;  %v3204_v58 = vld [vmem:[#allocation6 + $0x4e8] sm:$0xff] }
 0x595   :  { %v8400_v62 = vpack.c.bf16 %v3204_v58, %v3196_v57  ;;  %v3261_v57 = vld [vmem:[#allocation6 + $0x6b0] sm:$0xff] }
 0x596   :  { %v3269_v58 = vld [vmem:[#allocation6 + $0x6f0] sm:$0xff] }
 0x59e   :  { %v9685_v3 = vpop.eup %9684 }
 0x59f   :  { %v3042_v50 = vmul.f32 %v9685_v3, %v9683_v38  ;;  %v3140_v38 = vld [vmem:[#allocation6 + $0x2e8] sm:$0xff]  ;;  %v3134_v3 = vld [vmem:[#allocation6 + $0x2b8] sm:$0xff] }
 0x5a1   :  { %3044 = vst [vmem:[#allocation3 + $0x28] sm:$0xf] %v3042_v50  ;;  %v3046_v10 = vrot.slane %v3042_v50, 4  ;;  %v3142_v50 = vld [vmem:[#allocation6 + $0x2f8] sm:$0xff] }
 0x5a2   :  { %v8448_v11 = vpack.c.bf16 %v3142_v50, %v3134_v3  ;;  %v3212_v3 = vld [vmem:[#allocation6 + $0x528] sm:$0xff] }
 0x5a3   :  { %v3305_v15 = vrot.slane %v3046_v10, 4  ;;  %v8384_v10 = vpack.c.bf16 %v3140_v38, %v3132_v31  ;;  %v3197_v31 = vld [vmem:[#allocation6 + $0x4b0] sm:$0xff]  ;;  %v3220_v50 = vld [vmem:[#allocation6 + $0x568] sm:$0xff] }
 0x5a4   :  { %v3205_v38 = vld [vmem:[#allocation6 + $0x4f0] sm:$0xff]  ;;  %v8404_v21 = vpack.c.bf16 %v3220_v50, %v3212_v3 }
 0x5a5   :  { %3372 = vmatprep.mubr.f32.mxu0 %v3305_v15  ;;  %3443 = vmatprep.mubr.f32.mxu1 %v3305_v15  ;;  %v8466_v8 = vpack.c.bf16 %v3205_v38, %v3197_v31  ;;  %v3277_v3 = vld [vmem:[#allocation6 + $0x730] sm:$0xff] }
 0x5a6   :  { %3373 = vmatmul.mubr.f32.vlgmr.msra.gmra.mrb[26].mxu0 %v10339_v19  ;;  %3444 = vmatmul.mubr.f32.vlgmr.msra.gmra.mrb[38].mxu1 %v10339_v19  ;;  %v3285_v50 = vld [vmem:[#allocation6 + $0x770] sm:$0xff] }
 0x5a7   :  { %8367 = vmatpush1.bf16.msra.mxu0 %v8366_v25  ;;  %8431 = vmatpush1.bf16.msra.mxu1 %v8430_v16  ;;  %v3150_v25 = vld [vmem:[#allocation6 + $0x338] sm:$0xff] }
 0x5a8   :  { %3514 = vmatprep.mubr.f32.mxu0 %v3305_v15  ;;  %3585 = vmatprep.mubr.f32.mxu1 %v3305_v15  ;;  %v3156_v15 = vld [vmem:[#allocation6 + $0x368] sm:$0xff]  ;;  %v3158_v16 = vld [vmem:[#allocation6 + $0x378] sm:$0xff] }
 0x5a9   :  { %8369 = vmatprep.subr.bf16.mxu0 %v8368_v23  ;;  %8433 = vmatprep.subr.bf16.mxu1 %v8432_v24  ;;  %v8388_v22 = vpack.c.bf16 %v3156_v15, %v3148_v14  ;;  %v8452_v23 = vpack.c.bf16 %v3158_v16, %v3150_v25  ;;  %v3149_v24 = vld [vmem:[#allocation6 + $0x330] sm:$0xff]  ;;  %v3228_v25 = vld [vmem:[#allocation6 + $0x5a8] sm:$0xff] }
 0x5aa   :  { %v8454_v45 = vpack.c.bf16 %v3157_v26, %v3149_v24  ;;  %v3213_v14 = vld [vmem:[#allocation6 + $0x530] sm:$0xff]  ;;  %v3236_v16 = vld [vmem:[#allocation6 + $0x5e8] sm:$0xff] }
 0x5ab   :  { %8371 = vmatpush1.bf16.msra.mxu0 %v8370_v30  ;;  %8435 = vmatpush1.bf16.msra.mxu1 %v8434_v33  ;;  %v3166_v30 = vld [vmem:[#allocation6 + $0x3b8] sm:$0xff]  ;;  %v3221_v15 = vld [vmem:[#allocation6 + $0x570] sm:$0xff]  ;;  %v8408_v24 = vpack.c.bf16 %v3236_v16, %v3228_v25 }
 0x5ac   :  { %8373 = vmatprep.subr.bf16.mxu0 %v8372_v5  ;;  %8437 = vmatprep.subr.bf16.mxu1 %v8436_v32  ;;  %v3174_v33 = vld [vmem:[#allocation6 + $0x3f8] sm:$0xff]  ;;  %v3163_v5 = vld [vmem:[#allocation6 + $0x3a0] sm:$0xff]  ;;  %v8470_v20 = vpack.c.bf16 %v3221_v15, %v3213_v14  ;;  %v3293_v25 = vld [vmem:[#allocation6 + $0x7b0] sm:$0xff] }
 0x5ad   :  { %v3171_v32 = vld [vmem:[#allocation6 + $0x3e0] sm:$0xff]  ;;  %v8456_v12 = vpack.c.bf16 %v3174_v33, %v3166_v30  ;;  %v3244_v30 = vld [vmem:[#allocation6 + $0x628] sm:$0xff]  ;;  %v3301_v16 = vld [vmem:[#allocation6 + $0x7f0] sm:$0xff] }
 0x5ae   :  { %v8394_v46 = vpack.c.bf16 %v3171_v32, %v3163_v5  ;;  %v3252_v33 = vld [vmem:[#allocation6 + $0x668] sm:$0xff]  ;;  %v8474_v32 = vpack.c.bf16 %v3237_v29, %v3229_v27  ;;  %v3299_v15 = vld [vmem:[#allocation6 + $0x7e0] sm:$0xff] }
 0x5af   :  { %8375 = vmatpush1.bf16.msra.mxu0 %v8374_v51  ;;  %8439 = vmatpush1.bf16.msra.mxu1 %v8438_v54  ;;  %v3182_v51 = vld [vmem:[#allocation6 + $0x438] sm:$0xff]  ;;  %v8412_v42 = vpack.c.bf16 %v3252_v33, %v3244_v30  ;;  %v3687_v27 = vld [vmem:[#allocation6 + $0x40] sm:$0xff]  ;;  %v3681_v33 = vld [vmem:[#allocation6 + $0x10] sm:$0xff] }
 0x5b0   :  { %8377 = vmatprep.subr.bf16.mxu0 %v8376_v48  ;;  %8441 = vmatprep.subr.bf16.mxu1 %v8440_v49  ;;  %v3190_v54 = vld [vmem:[#allocation6 + $0x478] sm:$0xff]  ;;  %v3179_v48 = vld [vmem:[#allocation6 + $0x420] sm:$0xff] }
 0x5b1   :  { %v3187_v49 = vld [vmem:[#allocation6 + $0x460] sm:$0xff]  ;;  %v8460_v52 = vpack.c.bf16 %v3190_v54, %v3182_v51  ;;  %v3260_v51 = vld [vmem:[#allocation6 + $0x6a8] sm:$0xff] }
 0x5b2   :  { %v8398_v0 = vpack.c.bf16 %v3187_v49, %v3179_v48  ;;  %v3268_v54 = vld [vmem:[#allocation6 + $0x6e8] sm:$0xff]  ;;  %v8478_v49 = vpack.c.bf16 %v3253_v40, %v3245_v44  ;;  %v3703_v44 = vld [vmem:[#allocation6 + $0xc0] sm:$0xff]  ;;  %v3697_v40 = vld [vmem:[#allocation6 + $0x90] sm:$0xff] }
 0x5b3   :  { %8379 = vmatpush1.bf16.msra.mxu0 %v8378_v59  ;;  %8443 = vmatpush1.bf16.msra.mxu1 %v8442_v9  ;;  %v3198_v59 = vld [vmem:[#allocation6 + $0x4b8] sm:$0xff]  ;;  %v8416_v53 = vpack.c.bf16 %v3268_v54, %v3260_v51  ;;  %v3705_v54 = vld [vmem:[#allocation6 + $0xd0] sm:$0xff] }
 0x5b4   :  { %8381 = vmatprep.subr.bf16.mxu0 %v8380_v60  ;;  %8445 = vmatprep.subr.bf16.mxu1 %v8444_v61  ;;  %v3206_v9 = vld [vmem:[#allocation6 + $0x4f8] sm:$0xff]  ;;  %v3195_v60 = vld [vmem:[#allocation6 + $0x4a0] sm:$0xff] }
 0x5b5   :  { %v3203_v61 = vld [vmem:[#allocation6 + $0x4e0] sm:$0xff]  ;;  %v8464_v63 = vpack.c.bf16 %v3206_v9, %v3198_v59  ;;  %v3276_v59 = vld [vmem:[#allocation6 + $0x728] sm:$0xff] }
 0x5b6   :  { %v8402_v55 = vpack.c.bf16 %v3203_v61, %v3195_v60  ;;  %v3284_v9 = vld [vmem:[#allocation6 + $0x768] sm:$0xff]  ;;  %v8482_v61 = vpack.c.bf16 %v3269_v58, %v3261_v57  ;;  %v3719_v57 = vld [vmem:[#allocation6 + $0x140] sm:$0xff]  ;;  %v3713_v58 = vld [vmem:[#allocation6 + $0x110] sm:$0xff] }
 0x5b7   :  { %8383 = vmatpush1.bf16.msra.mxu0 %v8382_v6  ;;  %8447 = vmatpush1.bf16.msra.mxu1 %v8446_v7  ;;  %v3214_v6 = vld [vmem:[#allocation6 + $0x538] sm:$0xff]  ;;  %v8420_v31 = vpack.c.bf16 %v3284_v9, %v3276_v59  ;;  %v3721_v59 = vld [vmem:[#allocation6 + $0x150] sm:$0xff] }
 0x5b8   :  { %8385 = vmatprep.subr.bf16.mxu0 %v8384_v10  ;;  %8449 = vmatprep.subr.bf16.mxu1 %v8448_v11  ;;  %v3222_v7 = vld [vmem:[#allocation6 + $0x578] sm:$0xff]  ;;  %v3211_v10 = vld [vmem:[#allocation6 + $0x520] sm:$0xff] }
 0x5b9   :  { %v3219_v11 = vld [vmem:[#allocation6 + $0x560] sm:$0xff]  ;;  %v8468_v13 = vpack.c.bf16 %v3222_v7, %v3214_v6  ;;  %v3292_v6 = vld [vmem:[#allocation6 + $0x7a8] sm:$0xff] }
 0x5ba   :  { %v8406_v28 = vpack.c.bf16 %v3219_v11, %v3211_v10  ;;  %v3300_v7 = vld [vmem:[#allocation6 + $0x7e8] sm:$0xff]  ;;  %v8486_v11 = vpack.c.bf16 %v3285_v50, %v3277_v3  ;;  %v3735_v3 = vld [vmem:[#allocation6 + $0x1c0] sm:$0xff]  ;;  %v3729_v50 = vld [vmem:[#allocation6 + $0x190] sm:$0xff] }
 0x5bb   :  { %8387 = vmatpush1.bf16.msra.mxu0 %v8386_v17  ;;  %8451 = vmatpush1.bf16.msra.mxu1 %v8450_v18  ;;  %v3230_v17 = vld [vmem:[#allocation6 + $0x5b8] sm:$0xff] }
 0x5bc   :  { %8389 = vmatprep.subr.bf16.mxu0 %v8388_v22  ;;  %8453 = vmatprep.subr.bf16.mxu1 %v8452_v23  ;;  %v3238_v18 = vld [vmem:[#allocation6 + $0x5f8] sm:$0xff]  ;;  %v3227_v22 = vld [vmem:[#allocation6 + $0x5a0] sm:$0xff] }
 0x5bd   :  { %v3235_v23 = vld [vmem:[#allocation6 + $0x5e0] sm:$0xff]  ;;  %v8472_v26 = vpack.c.bf16 %v3238_v18, %v3230_v17  ;;  %v8490_v18 = vpack.c.bf16 %v3301_v16, %v3293_v25 }
 0x5be   :  { %v8410_v5 = vpack.c.bf16 %v3235_v23, %v3227_v22  ;;  %v3682_v22 = vld [vmem:[#allocation6 + $0x18] sm:$0xff] }
 0x5bf   :  { %8391 = vmatpush1.bf16.msra.mxu0 %v8390_v34  ;;  %8455 = vmatpush1.bf16.msra.mxu1 %v8454_v45  ;;  %v3246_v34 = vld [vmem:[#allocation6 + $0x638] sm:$0xff] }
 0x5c0   :  { %8393 = vmatprep.subr.bf16.mxu0 %v8392_v41  ;;  %8457 = vmatprep.subr.bf16.mxu1 %v8456_v12  ;;  %v3254_v45 = vld [vmem:[#allocation6 + $0x678] sm:$0xff]  ;;  %v3243_v41 = vld [vmem:[#allocation6 + $0x620] sm:$0xff] }
 0x5c1   :  { %v3251_v12 = vld [vmem:[#allocation6 + $0x660] sm:$0xff]  ;;  %v8476_v43 = vpack.c.bf16 %v3254_v45, %v3246_v34  ;;  %v3689_v34 = vld [vmem:[#allocation6 + $0x50] sm:$0xff]  ;;  %v3696_v45 = vld [vmem:[#allocation6 + $0x88] sm:$0xff] }
 0x5c2   :  { %v8414_v48 = vpack.c.bf16 %v3251_v12, %v3243_v41  ;;  %v3698_v41 = vld [vmem:[#allocation6 + $0x98] sm:$0xff] }
 0x5c3   :  { %8395 = vmatpush1.bf16.msra.mxu0 %v8394_v46  ;;  %8459 = vmatpush1.bf16.msra.mxu1 %v8458_v47  ;;  %v3262_v46 = vld [vmem:[#allocation6 + $0x6b8] sm:$0xff] }
 0x5c4   :  { %8397 = vmatprep.subr.bf16.mxu0 %v8396_v36  ;;  %8461 = vmatprep.subr.bf16.mxu1 %v8460_v52  ;;  %v3270_v47 = vld [vmem:[#allocation6 + $0x6f8] sm:$0xff]  ;;  %v3259_v36 = vld [vmem:[#allocation6 + $0x6a0] sm:$0xff] }
 0x5c5   :  { %v3267_v52 = vld [vmem:[#allocation6 + $0x6e0] sm:$0xff]  ;;  %v8480_v56 = vpack.c.bf16 %v3270_v47, %v3262_v46  ;;  %v3706_v12 = vld [vmem:[#allocation6 + $0xd8] sm:$0xff]  ;;  %v3712_v46 = vld [vmem:[#allocation6 + $0x108] sm:$0xff] }
 0x5c6   :  { %v8418_v60 = vpack.c.bf16 %v3267_v52, %v3259_v36  ;;  %v3720_v47 = vld [vmem:[#allocation6 + $0x148] sm:$0xff]  ;;  %v3714_v36 = vld [vmem:[#allocation6 + $0x118] sm:$0xff] }
 0x5c7   :  { %8399 = vmatpush1.bf16.msra.mxu0 %v8398_v0  ;;  %8463 = vmatpush1.bf16.msra.mxu1 %v8462_v4  ;;  %v3278_v0 = vld [vmem:[#allocation6 + $0x738] sm:$0xff] }
 0x5c8   :  { %8401 = vmatprep.subr.bf16.mxu0 %v8400_v62  ;;  %8465 = vmatprep.subr.bf16.mxu1 %v8464_v63  ;;  %v3286_v4 = vld [vmem:[#allocation6 + $0x778] sm:$0xff]  ;;  %v3275_v62 = vld [vmem:[#allocation6 + $0x720] sm:$0xff] }
 0x5c9   :  { %v3283_v63 = vld [vmem:[#allocation6 + $0x760] sm:$0xff]  ;;  %v8484_v38 = vpack.c.bf16 %v3286_v4, %v3278_v0  ;;  %v3722_v52 = vld [vmem:[#allocation6 + $0x158] sm:$0xff]  ;;  %v3728_v0 = vld [vmem:[#allocation6 + $0x188] sm:$0xff] }
 0x5ca   :  { %v8422_v10 = vpack.c.bf16 %v3283_v63, %v3275_v62  ;;  %v3736_v4 = vld [vmem:[#allocation6 + $0x1c8] sm:$0xff]  ;;  %v3738_v63 = vld [vmem:[#allocation6 + $0x1d8] sm:$0xff] }
 0x5cb   :  { %8403 = vmatpush1.bf16.msra.mxu0 %v8402_v55  ;;  %8467 = vmatpush1.bf16.msra.mxu1 %v8466_v8  ;;  %v3294_v55 = vld [vmem:[#allocation6 + $0x7b8] sm:$0xff]  ;;  %v8504_v62 = vpack.c.bf16 %v3736_v4, %v3728_v0  ;;  %v3801_v0 = vld [vmem:[#allocation6 + $0x3d0] sm:$0xff] }
 0x5cc   :  { %8405 = vmatprep.subr.bf16.mxu0 %v8404_v21  ;;  %8469 = vmatprep.subr.bf16.mxu1 %v8468_v13  ;;  %v3302_v8 = vld [vmem:[#allocation6 + $0x7f8] sm:$0xff]  ;;  %v3291_v21 = vld [vmem:[#allocation6 + $0x7a0] sm:$0xff]  ;;  %v8424_v13 = vpack.c.bf16 %v3300_v7, %v3292_v6  ;;  %v3737_v7 = vld [vmem:[#allocation6 + $0x1d0] sm:$0xff] }
 0x5cd   :  { %v8488_v14 = vpack.c.bf16 %v3302_v8, %v3294_v55  ;;  %v8426_v17 = vpack.c.bf16 %v3299_v15, %v3291_v21  ;;  %v8570_v55 = vpack.c.bf16 %v3737_v7, %v3729_v50  ;;  %v3744_v8 = vld [vmem:[#allocation6 + $0x208] sm:$0xff]  ;;  %v3751_v15 = vld [vmem:[#allocation6 + $0x240] sm:$0xff]  ;;  %v3809_v7 = vld [vmem:[#allocation6 + $0x410] sm:$0xff] }
 0x5cf   :  { %8407 = vmatpush1.bf16.msra.mxu0 %v8406_v28  ;;  %8471 = vmatpush1.bf16.msra.mxu1 %v8470_v20  ;;  %v3680_v28 = vld [vmem:[#allocation6 + $0x8] sm:$0xff] }
 0x5d0   :  { %8409 = vmatprep.subr.bf16.mxu0 %v8408_v24  ;;  %8473 = vmatprep.subr.bf16.mxu1 %v8472_v26  ;;  %v3688_v20 = vld [vmem:[#allocation6 + $0x48] sm:$0xff]  ;;  %v3690_v24 = vld [vmem:[#allocation6 + $0x58] sm:$0xff]  ;;  %v3679_v26 = vld [vmem:[#allocation6] sm:$0xff] }
 0x5d1   :  { %v8492_v23 = vpack.c.bf16 %v3688_v20, %v3680_v28  ;;  %v8556_v29 = vpack.c.bf16 %v3690_v24, %v3682_v22  ;;  %v8494_v30 = vpack.c.bf16 %v3687_v27, %v3679_v26  ;;  %v3760_v20 = vld [vmem:[#allocation6 + $0x288] sm:$0xff]  ;;  %v3770_v26 = vld [vmem:[#allocation6 + $0x2d8] sm:$0xff]  ;;  %v3759_v27 = vld [vmem:[#allocation6 + $0x280] sm:$0xff] }
 0x5d2   :  { %v3768_v22 = vld [vmem:[#allocation6 + $0x2c8] sm:$0xff] }
 0x5d3   :  { %8411 = vmatpush1.bf16.msra.mxu0 %v8410_v5  ;;  %8475 = vmatpush1.bf16.msra.mxu1 %v8474_v32  ;;  %v8558_v5 = vpack.c.bf16 %v3689_v34, %v3681_v33  ;;  %v3704_v32 = vld [vmem:[#allocation6 + $0xc8] sm:$0xff]  ;;  %v8512_v24 = vpack.c.bf16 %v3768_v22, %v3760_v20  ;;  %v3761_v34 = vld [vmem:[#allocation6 + $0x290] sm:$0xff] }
 0x5d4   :  { %8413 = vmatprep.subr.bf16.mxu0 %v8412_v42  ;;  %8477 = vmatprep.subr.bf16.mxu1 %v8476_v43  ;;  %v8560_v42 = vpack.c.bf16 %v3706_v12, %v3698_v41  ;;  %v3695_v43 = vld [vmem:[#allocation6 + $0x80] sm:$0xff]  ;;  %v3784_v41 = vld [vmem:[#allocation6 + $0x348] sm:$0xff]  ;;  %v3778_v12 = vld [vmem:[#allocation6 + $0x318] sm:$0xff] }
 0x5d5   :  { %v8498_v51 = vpack.c.bf16 %v3703_v44, %v3695_v43  ;;  %v3775_v43 = vld [vmem:[#allocation6 + $0x300] sm:$0xff]  ;;  %v3840_v22 = vld [vmem:[#allocation6 + $0x508] sm:$0xff] }
 0x5d6   :  { %v3783_v44 = vld [vmem:[#allocation6 + $0x340] sm:$0xff] }
 0x5d7   :  { %8415 = vmatpush1.bf16.msra.mxu0 %v8414_v48  ;;  %8479 = vmatpush1.bf16.msra.mxu1 %v8478_v49  ;;  %v8562_v48 = vpack.c.bf16 %v3705_v54, %v3697_v40  ;;  %v8500_v49 = vpack.c.bf16 %v3720_v47, %v3712_v46  ;;  %v3777_v54 = vld [vmem:[#allocation6 + $0x310] sm:$0xff] }
 0x5d8   :  { %8417 = vmatprep.subr.bf16.mxu0 %v8416_v53  ;;  %8481 = vmatprep.subr.bf16.mxu1 %v8480_v56  ;;  %v3711_v53 = vld [vmem:[#allocation6 + $0x100] sm:$0xff]  ;;  %v8564_v56 = vpack.c.bf16 %v3722_v52, %v3714_v36  ;;  %v3785_v46 = vld [vmem:[#allocation6 + $0x350] sm:$0xff]  ;;  %v3794_v36 = vld [vmem:[#allocation6 + $0x398] sm:$0xff] }
 0x5d9   :  { %v8502_v9 = vpack.c.bf16 %v3719_v57, %v3711_v53  ;;  %v8582_v47 = vpack.c.bf16 %v3785_v46, %v3777_v54  ;;  %v3802_v53 = vld [vmem:[#allocation6 + $0x3d8] sm:$0xff]  ;;  %v3799_v57 = vld [vmem:[#allocation6 + $0x3c0] sm:$0xff]  ;;  %v3857_v46 = vld [vmem:[#allocation6 + $0x590] sm:$0xff] }
 0x5db   :  { %8419 = vmatpush1.bf16.msra.mxu0 %v8418_v60  ;;  %8483 = vmatpush1.bf16.msra.mxu1 %v8482_v61  ;;  %v3730_v60 = vld [vmem:[#allocation6 + $0x198] sm:$0xff]  ;;  %v8566_v61 = vpack.c.bf16 %v3721_v59, %v3713_v58  ;;  %v8584_v58 = vpack.c.bf16 %v3802_v53, %v3794_v36  ;;  %v3880_v36 = vld [vmem:[#allocation6 + $0x648] sm:$0xff] }
 0x5dc   :  { %8421 = vmatprep.subr.bf16.mxu0 %v8420_v31  ;;  %8485 = vmatprep.subr.bf16.mxu1 %v8484_v38  ;;  %v8568_v31 = vpack.c.bf16 %v3738_v63, %v3730_v60  ;;  %v3727_v38 = vld [vmem:[#allocation6 + $0x180] sm:$0xff]  ;;  %v3808_v60 = vld [vmem:[#allocation6 + $0x408] sm:$0xff] }
 0x5dd   :  { %v8506_v6 = vpack.c.bf16 %v3735_v3, %v3727_v38  ;;  %v3807_v38 = vld [vmem:[#allocation6 + $0x400] sm:$0xff] }
 0x5de   :  { %v3815_v3 = vld [vmem:[#allocation6 + $0x440] sm:$0xff] }
 0x5df   :  { %8423 = vmatpush1.bf16.msra.mxu0 %v8422_v10  ;;  %8487 = vmatpush1.bf16.msra.mxu1 %v8486_v11  ;;  %v3752_v10 = vld [vmem:[#allocation6 + $0x248] sm:$0xff]  ;;  %v3746_v11 = vld [vmem:[#allocation6 + $0x218] sm:$0xff] }
 0x5e0   :  { %8425 = vmatprep.subr.bf16.mxu0 %v8424_v13  ;;  %8489 = vmatprep.subr.bf16.mxu1 %v8488_v14  ;;  %v8508_v21 = vpack.c.bf16 %v3752_v10, %v3744_v8  ;;  %v3754_v13 = vld [vmem:[#allocation6 + $0x258] sm:$0xff]  ;;  %v3743_v14 = vld [vmem:[#allocation6 + $0x200] sm:$0xff]  ;;  %v3824_v10 = vld [vmem:[#allocation6 + $0x488] sm:$0xff] }
 0x5e1   :  { %v8572_v25 = vpack.c.bf16 %v3754_v13, %v3746_v11  ;;  %v8510_v16 = vpack.c.bf16 %v3751_v15, %v3743_v14  ;;  %v3832_v11 = vld [vmem:[#allocation6 + $0x4c8] sm:$0xff]  ;;  %v3834_v14 = vld [vmem:[#allocation6 + $0x4d8] sm:$0xff]  ;;  %v3823_v15 = vld [vmem:[#allocation6 + $0x480] sm:$0xff] }
 0x5e2   :  { %v8528_v13 = vpack.c.bf16 %v3832_v11, %v3824_v10  ;;  %v3904_v10 = vld [vmem:[#allocation6 + $0x708] sm:$0xff] }
 0x5e3   :  { %8427 = vmatpush1.bf16.msra.mxu0 %v8426_v17  ;;  %8491 = vmatpush1.bf16.msra.mxu1 %v8490_v18  ;;  %v3745_v17 = vld [vmem:[#allocation6 + $0x210] sm:$0xff]  ;;  %v3912_v11 = vld [vmem:[#allocation6 + $0x748] sm:$0xff] }
 0x5e4   :  { %8493 = vmatprep.subr.bf16.mxu0 %v8492_v23  ;;  %8557 = vmatprep.subr.bf16.mxu1 %v8556_v29  ;;  %v3753_v18 = vld [vmem:[#allocation6 + $0x250] sm:$0xff]  ;;  %v3762_v23 = vld [vmem:[#allocation6 + $0x298] sm:$0xff]  ;;  %v3767_v29 = vld [vmem:[#allocation6 + $0x2c0] sm:$0xff] }
 0x5e5   :  { %v8574_v28 = vpack.c.bf16 %v3753_v18, %v3745_v17  ;;  %v8514_v33 = vpack.c.bf16 %v3767_v29, %v3759_v27  ;;  %v3825_v18 = vld [vmem:[#allocation6 + $0x490] sm:$0xff]  ;;  %v3850_v27 = vld [vmem:[#allocation6 + $0x558] sm:$0xff]  ;;  %v3839_v29 = vld [vmem:[#allocation6 + $0x500] sm:$0xff] }
 0x5e6   :  { %3515 = vmatmul.mubr.f32.vlgmr.msra.gmra.mrb[28].mxu0 %v10339_v19  ;;  %3586 = vmatmul.mubr.f32.vlgmr.msra.gmra.mrb[40].mxu1 %v10339_v19  ;;  %v8496_v19 = vpack.c.bf16 %v3704_v32, %v3696_v45  ;;  %v3769_v45 = vld [vmem:[#allocation6 + $0x2d0] sm:$0xff]  ;;  %v3776_v32 = vld [vmem:[#allocation6 + $0x308] sm:$0xff] }
 0x5e7   :  { %8495 = vmatpush1.bf16.msra.mxu0 %v8494_v30  ;;  %8559 = vmatpush1.bf16.msra.mxu1 %v8558_v5  ;;  %v8576_v30 = vpack.c.bf16 %v3770_v26, %v3762_v23  ;;  %v8578_v5 = vpack.c.bf16 %v3769_v45, %v3761_v34  ;;  %v3848_v23 = vld [vmem:[#allocation6 + $0x548] sm:$0xff]  ;;  %v3841_v45 = vld [vmem:[#allocation6 + $0x510] sm:$0xff] }
 0x5e8   :  { %8497 = vmatprep.subr.bf16.mxu0 %v8496_v19  ;;  %8561 = vmatprep.subr.bf16.mxu1 %v8560_v42  ;;  %v8516_v19 = vpack.c.bf16 %v3784_v41, %v3776_v32  ;;  %v3786_v42 = vld [vmem:[#allocation6 + $0x358] sm:$0xff]  ;;  %v8532_v26 = vpack.c.bf16 %v3848_v23, %v3840_v22  ;;  %v3856_v41 = vld [vmem:[#allocation6 + $0x588] sm:$0xff] }
 0x5e9   :  { %v8580_v40 = vpack.c.bf16 %v3786_v42, %v3778_v12  ;;  %v3864_v12 = vld [vmem:[#allocation6 + $0x5c8] sm:$0xff]  ;;  %v3922_v23 = vld [vmem:[#allocation6 + $0x798] sm:$0xff] }
 0x5ea   :  { %v8536_v42 = vpack.c.bf16 %v3864_v12, %v3856_v41  ;;  %v3928_v22 = vld [vmem:[#allocation6 + $0x7c8] sm:$0xff] }
 0x5eb   :  { %8499 = vmatpush1.bf16.msra.mxu0 %v8498_v51  ;;  %8563 = vmatpush1.bf16.msra.mxu1 %v8562_v48  ;;  %v8518_v51 = vpack.c.bf16 %v3783_v44, %v3775_v43  ;;  %v3792_v48 = vld [vmem:[#allocation6 + $0x388] sm:$0xff]  ;;  %v3866_v43 = vld [vmem:[#allocation6 + $0x5d8] sm:$0xff]  ;;  %v3855_v44 = vld [vmem:[#allocation6 + $0x580] sm:$0xff] }
 0x5ec   :  { %8501 = vmatprep.subr.bf16.mxu0 %v8500_v49  ;;  %8565 = vmatprep.subr.bf16.mxu1 %v8564_v56  ;;  %v3800_v49 = vld [vmem:[#allocation6 + $0x3c8] sm:$0xff]  ;;  %v3791_v56 = vld [vmem:[#allocation6 + $0x380] sm:$0xff] }
 0x5ed   :  { %v8520_v52 = vpack.c.bf16 %v3800_v49, %v3792_v48  ;;  %v8522_v59 = vpack.c.bf16 %v3799_v57, %v3791_v56  ;;  %v3872_v49 = vld [vmem:[#allocation6 + $0x608] sm:$0xff]  ;;  %v3882_v56 = vld [vmem:[#allocation6 + $0x658] sm:$0xff]  ;;  %v3871_v57 = vld [vmem:[#allocation6 + $0x600] sm:$0xff] }
 0x5ee   :  { %v8540_v53 = vpack.c.bf16 %v3880_v36, %v3872_v49  ;;  %v3684_v12 = vld [vmem:[#allocation6 + $0x28] sm:$0xff] }
 0x5ef   :  { %8503 = vmatpush1.bf16.msra.mxu0 %v8502_v9  ;;  %8567 = vmatpush1.bf16.msra.mxu1 %v8566_v61  ;;  %v3793_v9 = vld [vmem:[#allocation6 + $0x390] sm:$0xff]  ;;  %v3816_v61 = vld [vmem:[#allocation6 + $0x448] sm:$0xff] }
 0x5f0   :  { %8505 = vmatprep.subr.bf16.mxu0 %v8504_v62  ;;  %8569 = vmatprep.subr.bf16.mxu1 %v8568_v31  ;;  %v8586_v4 = vpack.c.bf16 %v3801_v0, %v3793_v9  ;;  %v3810_v62 = vld [vmem:[#allocation6 + $0x418] sm:$0xff]  ;;  %v8524_v63 = vpack.c.bf16 %v3816_v61, %v3808_v60  ;;  %v3873_v0 = vld [vmem:[#allocation6 + $0x610] sm:$0xff]  ;;  %v3888_v60 = vld [vmem:[#allocation6 + $0x688] sm:$0xff] }
 0x5f1   :  { %v3818_v31 = vld [vmem:[#allocation6 + $0x458] sm:$0xff]  ;;  %v3593_v49 = vld [vmem:[#allocation2 + $0x88] sm:$0xf] }
 0x5f2   :  { %v8588_v50 = vpack.c.bf16 %v3818_v31, %v3810_v62  ;;  %v3896_v62 = vld [vmem:[#allocation6 + $0x6c8] sm:$0xff]  ;;  %v3898_v31 = vld [vmem:[#allocation6 + $0x6d8] sm:$0xff] }
 0x5f3   :  { %8507 = vmatpush1.bf16.msra.mxu0 %v8506_v6  ;;  %8571 = vmatpush1.bf16.msra.mxu1 %v8570_v55  ;;  %v8526_v6 = vpack.c.bf16 %v3815_v3, %v3807_v38  ;;  %v3817_v55 = vld [vmem:[#allocation6 + $0x450] sm:$0xff]  ;;  %v8544_v38 = vpack.c.bf16 %v3896_v62, %v3888_v60 }
 0x5f4   :  { %8509 = vmatprep.subr.bf16.mxu0 %v8508_v21  ;;  %8573 = vmatprep.subr.bf16.mxu1 %v8572_v25  ;;  %v8590_v8 = vpack.c.bf16 %v3817_v55, %v3809_v7  ;;  %v3826_v21 = vld [vmem:[#allocation6 + $0x498] sm:$0xff]  ;;  %v3831_v25 = vld [vmem:[#allocation6 + $0x4c0] sm:$0xff]  ;;  %v3889_v7 = vld [vmem:[#allocation6 + $0x690] sm:$0xff] }
 0x5f5   :  { %v8530_v17 = vpack.c.bf16 %v3831_v25, %v3823_v15  ;;  %v3914_v15 = vld [vmem:[#allocation6 + $0x758] sm:$0xff]  ;;  %v3903_v25 = vld [vmem:[#allocation6 + $0x700] sm:$0xff] }
 0x5f7   :  { %8511 = vmatpush1.bf16.msra.mxu0 %v8510_v16  ;;  %8575 = vmatpush1.bf16.msra.mxu1 %v8574_v28  ;;  %v8592_v16 = vpack.c.bf16 %v3834_v14, %v3826_v21  ;;  %v3833_v28 = vld [vmem:[#allocation6 + $0x4d0] sm:$0xff]  ;;  %v3906_v14 = vld [vmem:[#allocation6 + $0x718] sm:$0xff] }
 0x5f8   :  { %8513 = vmatprep.subr.bf16.mxu0 %v8512_v24  ;;  %8577 = vmatprep.subr.bf16.mxu1 %v8576_v30  ;;  %v8594_v20 = vpack.c.bf16 %v3833_v28, %v3825_v18  ;;  %v3842_v24 = vld [vmem:[#allocation6 + $0x518] sm:$0xff]  ;;  %v3847_v30 = vld [vmem:[#allocation6 + $0x540] sm:$0xff]  ;;  %v3905_v18 = vld [vmem:[#allocation6 + $0x710] sm:$0xff] }
 0x5f9   :  { %v8534_v34 = vpack.c.bf16 %v3847_v30, %v3839_v29  ;;  %v3913_v28 = vld [vmem:[#allocation6 + $0x750] sm:$0xff]  ;;  %v3919_v30 = vld [vmem:[#allocation6 + $0x780] sm:$0xff] }
 0x5fb   :  { %8515 = vmatpush1.bf16.msra.mxu0 %v8514_v33  ;;  %8579 = vmatpush1.bf16.msra.mxu1 %v8578_v5  ;;  %v8596_v33 = vpack.c.bf16 %v3850_v27, %v3842_v24  ;;  %v3849_v5 = vld [vmem:[#allocation6 + $0x550] sm:$0xff]  ;;  %v8614_v27 = vpack.c.bf16 %v3913_v28, %v3905_v18  ;;  %v3601_v28 = vld [vmem:[#allocation2 + $0x68] sm:$0xf0] }
 0x5fc   :  { %8517 = vmatprep.subr.bf16.mxu0 %v8516_v19  ;;  %8581 = vmatprep.subr.bf16.mxu1 %v8580_v40  ;;  %v8598_v32 = vpack.c.bf16 %v3849_v5, %v3841_v45  ;;  %v3858_v19 = vld [vmem:[#allocation6 + $0x598] sm:$0xff]  ;;  %v3863_v40 = vld [vmem:[#allocation6 + $0x5c0] sm:$0xff]  ;;  %v3921_v45 = vld [vmem:[#allocation6 + $0x790] sm:$0xff] }
 0x5fd   :  { %v8538_v54 = vpack.c.bf16 %v3863_v40, %v3855_v44  ;;  %v3929_v5 = vld [vmem:[#allocation6 + $0x7d0] sm:$0xff]  ;;  %v3694_v44 = vld [vmem:[#allocation6 + $0x78] sm:$0xff] }
 0x5fe   :  { %v8618_v41 = vpack.c.bf16 %v3929_v5, %v3921_v45 }
 0x5ff   :  { %8519 = vmatpush1.bf16.msra.mxu0 %v8518_v51  ;;  %8583 = vmatpush1.bf16.msra.mxu1 %v8582_v47  ;;  %v8600_v51 = vpack.c.bf16 %v3866_v43, %v3858_v19  ;;  %v3865_v47 = vld [vmem:[#allocation6 + $0x5d0] sm:$0xff]  ;;  %v3692_v19 = vld [vmem:[#allocation6 + $0x68] sm:$0xff] }
 0x600   :  { %8521 = vmatprep.subr.bf16.mxu0 %v8520_v52  ;;  %8585 = vmatprep.subr.bf16.mxu1 %v8584_v58  ;;  %v8602_v48 = vpack.c.bf16 %v3865_v47, %v3857_v46  ;;  %v3874_v52 = vld [vmem:[#allocation6 + $0x618] sm:$0xff]  ;;  %v3879_v58 = vld [vmem:[#allocation6 + $0x640] sm:$0xff]  ;;  %v8620_v43 = vpack.c.bf16 %v3692_v19, %v3684_v12 }
 0x601   :  { %v8542_v9 = vpack.c.bf16 %v3879_v58, %v3871_v57  ;;  %v3594_v57 = vld [vmem:[#allocation2 + $0x90] sm:$0xf] }
 0x603   :  { %8523 = vmatpush1.bf16.msra.mxu0 %v8522_v59  ;;  %8587 = vmatpush1.bf16.msra.mxu1 %v8586_v4  ;;  %v8604_v59 = vpack.c.bf16 %v3882_v56, %v3874_v52  ;;  %v3881_v4 = vld [vmem:[#allocation6 + $0x650] sm:$0xff] }
 0x604   :  { %8525 = vmatprep.subr.bf16.mxu0 %v8524_v63  ;;  %8589 = vmatprep.subr.bf16.mxu1 %v8588_v50  ;;  %v8606_v61 = vpack.c.bf16 %v3881_v4, %v3873_v0  ;;  %v3890_v63 = vld [vmem:[#allocation6 + $0x698] sm:$0xff]  ;;  %v3887_v50 = vld [vmem:[#allocation6 + $0x680] sm:$0xff] }
 0x605   :  { %v8608_v3 = vpack.c.bf16 %v3898_v31, %v3890_v63 }
 0x607   :  { %8527 = vmatpush1.bf16.msra.mxu0 %v8526_v6  ;;  %8591 = vmatpush1.bf16.msra.mxu1 %v8590_v8  ;;  %v3895_v6 = vld [vmem:[#allocation6 + $0x6c0] sm:$0xff]  ;;  %v3897_v8 = vld [vmem:[#allocation6 + $0x6d0] sm:$0xff] }
 0x608   :  { %8529 = vmatprep.subr.bf16.mxu0 %v8528_v13  ;;  %8593 = vmatprep.subr.bf16.mxu1 %v8592_v16  ;;  %v8546_v55 = vpack.c.bf16 %v3895_v6, %v3887_v50  ;;  %v8610_v21 = vpack.c.bf16 %v3897_v8, %v3889_v7  ;;  %v8548_v13 = vpack.c.bf16 %v3912_v11, %v3904_v10 }
 0x609   :  { %v8612_v16 = vpack.c.bf16 %v3914_v15, %v3906_v14 }
 0x60b   :  { %8531 = vmatpush1.bf16.msra.mxu0 %v8530_v17  ;;  %8595 = vmatpush1.bf16.msra.mxu1 %v8594_v20  ;;  %v3911_v17 = vld [vmem:[#allocation6 + $0x740] sm:$0xff]  ;;  %v3920_v20 = vld [vmem:[#allocation6 + $0x788] sm:$0xff] }
 0x60c   :  { %8533 = vmatprep.subr.bf16.mxu0 %v8532_v26  ;;  %8597 = vmatprep.subr.bf16.mxu1 %v8596_v33  ;;  %v8550_v24 = vpack.c.bf16 %v3911_v17, %v3903_v25  ;;  %v3930_v26 = vld [vmem:[#allocation6 + $0x7d8] sm:$0xff]  ;;  %v8552_v29 = vpack.c.bf16 %v3928_v22, %v3920_v20  ;;  %v3927_v33 = vld [vmem:[#allocation6 + $0x7c0] sm:$0xff] }
 0x60f   :  { %8535 = vmatpush1.bf16.msra.mxu0 %v8534_v34  ;;  %8599 = vmatpush1.bf16.msra.mxu1 %v8598_v32  ;;  %v8616_v34 = vpack.c.bf16 %v3930_v26, %v3922_v23  ;;  %v8554_v32 = vpack.c.bf16 %v3927_v33, %v3919_v30  ;;  %v3602_v26 = vld [vmem:[#allocation2 + $0x70] sm:$0xf0]  ;;  %v3603_v30 = vld [vmem:[#allocation2 + $0x78] sm:$0xf0] }
 0x610   :  { %8537 = vmatprep.subr.bf16.mxu0 %v8536_v42  ;;  %8601 = vmatprep.subr.bf16.mxu1 %v8600_v51  ;;  %v3686_v42 = vld [vmem:[#allocation6 + $0x38] sm:$0xff] }
 0x611   :  { %v8684_v40 = vpack.c.bf16 %v3694_v44, %v3686_v42 }
 0x613   :  { %8539 = vmatpush1.bf16.msra.mxu0 %v8538_v54  ;;  %8603 = vmatpush1.bf16.msra.mxu1 %v8602_v48  ;;  %v3592_v54 = vld [vmem:[#allocation2 + $0x80] sm:$0xf] }
 0x614   :  { %8541 = vmatprep.subr.bf16.mxu0 %v8540_v53  ;;  %8605 = vmatprep.subr.bf16.mxu1 %v8604_v59  ;;  %v3595_v59 = vld [vmem:[#allocation2 + $0x98] sm:$0xf] }
 0x617   :  { %8543 = vmatpush1.bf16.msra.mxu0 %v8542_v9  ;;  %8607 = vmatpush1.bf16.msra.mxu1 %v8606_v61 }
 0x618   :  { %8545 = vmatprep.subr.bf16.mxu0 %v8544_v38  ;;  %8609 = vmatprep.subr.bf16.mxu1 %v8608_v3  ;;  %v3640_v3 = vrot.slane %v10332_v35, 4 }
 0x61b   :  { %8547 = vmatpush1.bf16.msra.mxu0 %v8546_v55  ;;  %8611 = vmatpush1.bf16.msra.mxu1 %v8610_v21 }
 0x61c   :  { %8549 = vmatprep.subr.bf16.mxu0 %v8548_v13  ;;  %8613 = vmatprep.subr.bf16.mxu1 %v8612_v16  ;;  %v3600_v16 = vld [vmem:[#allocation2 + $0x60] sm:$0xf0] }
 0x61f   :  { %8551 = vmatpush1.bf16.msra.mxu0 %v8550_v24  ;;  %8615 = vmatpush1.bf16.msra.mxu1 %v8614_v27 }
 0x620   :  { %8553 = vmatprep.subr.bf16.mxu0 %v8552_v29  ;;  %8617 = vmatprep.subr.bf16.mxu1 %v8616_v34 }
 0x623   :  { %8555 = vmatpush1.bf16.msra.mxu0 %v8554_v32  ;;  %8619 = vmatpush1.bf16.msra.mxu1 %v8618_v41 }
 0x624   :  { %8621 = vmatprep.subr.bf16.mxu0 %v8620_v43  ;;  %8685 = vmatprep.subr.bf16.mxu1 %v8684_v40  ;;  %v3667_v43 = vrot.slane %v10336_v2, 4  ;;  %v3710_v2 = vld [vmem:[#allocation6 + $0xf8] sm:$0xff] }
 0x679   :  { %v3374_v51 = vpop.f32.mrb[26].mxu0  ;;  %v3445_v46 = vpop.f32.mrb[38].mxu1 }
 0x67a   :  { %v3596_v47 = vadd.f32 %v3592_v54, %v3374_v51  ;;  %v3376_v48 = vpop.f32.mrb[27].mxu0  ;;  %v3447_v36 = vpop.f32.mrb[39].mxu1  ;;  %v3598_v58 = vadd.f32 %v3594_v57, %v3445_v46  ;;  %v3700_v57 = vld [vmem:[#allocation6 + $0xa8] sm:$0xff] }
 0x67b   :  { %v3597_v52 = vadd.f32 %v3593_v49, %v3376_v48  ;;  %v3599_v9 = vadd.f32 %v3595_v59, %v3447_v36  ;;  %v3683_v48 = vld [vmem:[#allocation6 + $0x20] sm:$0xff]  ;;  %v3702_v59 = vld [vmem:[#allocation6 + $0xb8] sm:$0xff] }
 0x67c   :  { %v7092_v53 = vmul.f32 -1.442695, %v3596_v47  ;;  %v7094_v0 = vmul.f32 -1.442695, %v3598_v58  ;;  %v3691_v36 = vld [vmem:[#allocation6 + $0x60] sm:$0xff]  ;;  %v3708_v58 = vld [vmem:[#allocation6 + $0xe8] sm:$0xff] }
 0x67d   :  { %v7093_v56 = vmul.f32 -1.442695, %v3597_v52  ;;  %v3685_v52 = vld [vmem:[#allocation6 + $0x30] sm:$0xff] }
 0x67e   :  { %9686 = vpow2.f32 %v7092_v53  ;;  %v3693_v53 = vld [vmem:[#allocation6 + $0x70] sm:$0xff] }
 0x67f   :  { %9688 = vpow2.f32 %v7093_v56 }
 0x680   :  { %9690 = vtanh.f32 %v3599_v9 }
 0x681   :  { %9692 = vpow2.f32 %v7094_v0  ;;  %v8622_v0 = vpack.c.bf16 %v3691_v36, %v3683_v48  ;;  %v3774_v48 = vld [vmem:[#allocation6 + $0x2f8] sm:$0xff] }
 0x688   :  { %v9687_v4 = vpop.eup %9686 }
 0x689   :  { %v3629_v60 = vadd.f32 1.0, %v9687_v4  ;;  %v9689_v61 = vpop.eup %9688  ;;  %v8686_v4 = vpack.c.bf16 %v3693_v53, %v3685_v52  ;;  %v3763_v52 = vld [vmem:[#allocation6 + $0x2a0] sm:$0xff] }
 0x68a   :  { %v3630_v62 = vadd.f32 1.0, %v9689_v61  ;;  %v9691_v63 = vpop.eup %9690  ;;  %v3707_v61 = vld [vmem:[#allocation6 + $0xe0] sm:$0xff] }
 0x68b   :  { %9694 = vrcp.f32 %v3629_v60  ;;  %v9693_v31 = vpop.eup %9692  ;;  %v3699_v60 = vld [vmem:[#allocation6 + $0xa0] sm:$0xff] }
 0x68c   :  { %9696 = vrcp.f32 %v3630_v62  ;;  %v3631_v7 = vadd.f32 1.0, %v9693_v31  ;;  %v3701_v62 = vld [vmem:[#allocation6 + $0xb0] sm:$0xff]  ;;  %v3716_v31 = vld [vmem:[#allocation6 + $0x128] sm:$0xff]  ;;  %v3771_v53 = vld [vmem:[#allocation6 + $0x2e0] sm:$0xff] }
 0x68e   :  { %9698 = vrcp.f32 %v3631_v7  ;;  %v3726_v7 = vld [vmem:[#allocation6 + $0x178] sm:$0xff] }
 0x695   :  { %v9695_v38 = vpop.eup %9694 }
 0x696   :  { %v3643_v50 = vmul.f32 %v9695_v38, %v9691_v63  ;;  %v9697_v6 = vpop.eup %9696  ;;  %v3709_v63 = vld [vmem:[#allocation6 + $0xf0] sm:$0xff]  ;;  %v8624_v38 = vpack.c.bf16 %v3708_v58, %v3700_v57 }
 0x697   :  { %v3642_v55 = vmul.f32 %v9697_v6, %v3640_v3  ;;  %v8688_v3 = vpack.c.bf16 %v3710_v2, %v3702_v59  ;;  %v3718_v6 = vld [vmem:[#allocation6 + $0x138] sm:$0xff]  ;;  %v3765_v58 = vld [vmem:[#allocation6 + $0x2b0] sm:$0xff]  ;;  %v3780_v2 = vld [vmem:[#allocation6 + $0x328] sm:$0xff] }
 0x698   :  { %v9699_v10 = vpop.eup %9698  ;;  %v3773_v59 = vld [vmem:[#allocation6 + $0x2f0] sm:$0xff] }
 0x699   :  { %v10346_v8 = vadd.f32 %v3643_v50, %v3642_v55  ;;  %v3724_v50 = vld [vmem:[#allocation6 + $0x168] sm:$0xff]  ;;  %v8626_v55 = vpack.c.bf16 %v3707_v61, %v3699_v60  ;;  %v8642_v60 = vpack.c.bf16 %v3771_v53, %v3763_v52  ;;  %v8706_v61 = vpack.c.bf16 %v3773_v59, %v3765_v58 }
 0x69b   :  { %9700 = vtanh.f32 %v10346_v8 }
 0x6a5   :  { %v9701_v11 = vpop.eup %9700 }
 0x6a6   :  { %v10349_v21 = vmul.f32 %v9701_v11, %v9699_v10  ;;  %v8690_v10 = vpack.c.bf16 %v3709_v63, %v3701_v62  ;;  %v3715_v11 = vld [vmem:[#allocation6 + $0x120] sm:$0xff] }
 0x6a7   :  { %v3779_v62 = vld [vmem:[#allocation6 + $0x320] sm:$0xff] }
 0x6a8   :  { %3674 = vst [vmem:[#allocation3 + $0x20] sm:$0xf] %v10349_v21  ;;  %v3787_v63 = vld [vmem:[#allocation6 + $0x360] sm:$0xff] }
 0x6b9   :  { %v3516_v13 = vpop.f32.mrb[28].mxu0  ;;  %v3587_v14 = vpop.f32.mrb[40].mxu1 }
 0x6ba   :  { %v3608_v15 = vrot.slane %v3516_v13, 4  ;;  %v3518_v25 = vpop.f32.mrb[29].mxu0  ;;  %v3589_v35 = vpop.f32.mrb[41].mxu1  ;;  %v3610_v24 = vrot.slane %v3587_v14, 4  ;;  %v3723_v13 = vld [vmem:[#allocation6 + $0x160] sm:$0xff]  ;;  %v8628_v14 = vpack.c.bf16 %v3724_v50, %v3716_v31  ;;  %v3789_v50 = vld [vmem:[#allocation6 + $0x370] sm:$0xff] }
 0x6bb   :  { %v3609_v17 = vrot.slane %v3518_v25, 4  ;;  %v3611_v27 = vrot.slane %v3589_v35, 4  ;;  %v3717_v25 = vld [vmem:[#allocation6 + $0x130] sm:$0xff] }
 0x6bc   :  { %v3616_v18 = vadd.f32 %v3608_v15, %v3600_v16  ;;  %v3618_v29 = vadd.f32 %v3610_v24, %v3602_v26  ;;  %v8692_v15 = vpack.c.bf16 %v3726_v7, %v3718_v6  ;;  %v3725_v35 = vld [vmem:[#allocation6 + $0x170] sm:$0xff]  ;;  %v3732_v16 = vld [vmem:[#allocation6 + $0x1a8] sm:$0xff]  ;;  %v3739_v24 = vld [vmem:[#allocation6 + $0x1e0] sm:$0xff] }
 0x6bd   :  { %v3617_v20 = vadd.f32 %v3609_v17, %v3601_v28  ;;  %v3619_v33 = vadd.f32 %v3611_v27, %v3603_v30  ;;  %v3740_v17 = vld [vmem:[#allocation6 + $0x1e8] sm:$0xff]  ;;  %v3742_v28 = vld [vmem:[#allocation6 + $0x1f8] sm:$0xff]  ;;  %v3741_v30 = vld [vmem:[#allocation6 + $0x1f0] sm:$0xff] }
 0x6be   :  { %v7095_v22 = vmul.f32 -1.442695, %v3616_v18  ;;  %v7097_v34 = vmul.f32 -1.442695, %v3618_v29  ;;  %v3734_v18 = vld [vmem:[#allocation6 + $0x1b8] sm:$0xff]  ;;  %v8632_v26 = vpack.c.bf16 %v3740_v17, %v3732_v16  ;;  %v3733_v29 = vld [vmem:[#allocation6 + $0x1b0] sm:$0xff] }
 0x6bf   :  { %v7096_v23 = vmul.f32 -1.442695, %v3617_v20  ;;  %v8630_v20 = vpack.c.bf16 %v3723_v13, %v3715_v11  ;;  %v8696_v27 = vpack.c.bf16 %v3742_v28, %v3734_v18  ;;  %v3796_v6 = vld [vmem:[#allocation6 + $0x3a8] sm:$0xff]  ;;  %v8646_v11 = vpack.c.bf16 %v3787_v63, %v3779_v62  ;;  %v3797_v16 = vld [vmem:[#allocation6 + $0x3b0] sm:$0xff] }
 0x6c0   :  { %9702 = vpow2.f32 %v7095_v22  ;;  %v8694_v22 = vpack.c.bf16 %v3725_v35, %v3717_v25  ;;  %v3804_v7 = vld [vmem:[#allocation6 + $0x3e8] sm:$0xff]  ;;  %v3805_v17 = vld [vmem:[#allocation6 + $0x3f0] sm:$0xff] }
 0x6c1   :  { %9704 = vpow2.f32 %v7096_v23  ;;  %v3731_v23 = vld [vmem:[#allocation6 + $0x1a0] sm:$0xff]  ;;  %v8648_v25 = vpack.c.bf16 %v3804_v7, %v3796_v6  ;;  %v3812_v18 = vld [vmem:[#allocation6 + $0x428] sm:$0xff]  ;;  %v3861_v6 = vld [vmem:[#allocation6 + $0x5b0] sm:$0xff] }
 0x6c2   :  { %9706 = vtanh.f32 %v3619_v33  ;;  %v3748_v33 = vld [vmem:[#allocation6 + $0x228] sm:$0xff]  ;;  %v3869_v7 = vld [vmem:[#allocation6 + $0x5f0] sm:$0xff] }
 0x6c3   :  { %9708 = vpow2.f32 %v7097_v34  ;;  %v3756_v34 = vld [vmem:[#allocation6 + $0x268] sm:$0xff] }
 0x6c4   :  { %v3820_v28 = vld [vmem:[#allocation6 + $0x468] sm:$0xff] }
 0x6ca   :  { %v9703_v45 = vpop.eup %9702 }
 0x6cb   :  { %v3656_v5 = vadd.f32 1.0, %v9703_v45  ;;  %v9705_v32 = vpop.eup %9704  ;;  %v3750_v45 = vld [vmem:[#allocation6 + $0x238] sm:$0xff] }
 0x6cc   :  { %v3657_v41 = vadd.f32 1.0, %v9705_v32  ;;  %v9707_v12 = vpop.eup %9706  ;;  %v8634_v32 = vpack.c.bf16 %v3739_v24, %v3731_v23  ;;  %v8714_v24 = vpack.c.bf16 %v3805_v17, %v3797_v16 }
 0x6cd   :  { %9710 = vrcp.f32 %v3656_v5  ;;  %v9709_v19 = vpop.eup %9708  ;;  %v3758_v5 = vld [vmem:[#allocation6 + $0x278] sm:$0xff] }
 0x6ce   :  { %9712 = vrcp.f32 %v3657_v41  ;;  %v3658_v51 = vadd.f32 1.0, %v9709_v19  ;;  %v8698_v41 = vpack.c.bf16 %v3741_v30, %v3733_v29  ;;  %v3755_v19 = vld [vmem:[#allocation6 + $0x260] sm:$0xff]  ;;  %v8652_v29 = vpack.c.bf16 %v3820_v28, %v3812_v18  ;;  %v3877_v18 = vld [vmem:[#allocation6 + $0x630] sm:$0xff] }
 0x6cf   :  { %v3885_v28 = vld [vmem:[#allocation6 + $0x670] sm:$0xff] }
 0x6d0   :  { %9714 = vrcp.f32 %v3658_v51  ;;  %v3764_v51 = vld [vmem:[#allocation6 + $0x2a8] sm:$0xff] }
 0x6d7   :  { %v9711_v42 = vpop.eup %9710 }
 0x6d8   :  { %v3670_v44 = vmul.f32 %v9711_v42, %v9707_v12  ;;  %v9713_v40 = vpop.eup %9712  ;;  %v3747_v12 = vld [vmem:[#allocation6 + $0x220] sm:$0xff]  ;;  %v8636_v42 = vpack.c.bf16 %v3756_v34, %v3748_v33  ;;  %v3813_v33 = vld [vmem:[#allocation6 + $0x430] sm:$0xff] }
 0x6d9   :  { %v3669_v54 = vmul.f32 %v9713_v40, %v3667_v43  ;;  %v8700_v43 = vpack.c.bf16 %v3758_v5, %v3750_v45  ;;  %v3757_v40 = vld [vmem:[#allocation6 + $0x270] sm:$0xff]  ;;  %v3828_v45 = vld [vmem:[#allocation6 + $0x4a8] sm:$0xff] }
 0x6da   :  { %v9715_v47 = vpop.eup %9714  ;;  %v3821_v34 = vld [vmem:[#allocation6 + $0x470] sm:$0xff]  ;;  %v3836_v5 = vld [vmem:[#allocation6 + $0x4e8] sm:$0xff] }
 0x6db   :  { %v10353_v46 = vadd.f32 %v3670_v44, %v3669_v54  ;;  %v3749_v44 = vld [vmem:[#allocation6 + $0x230] sm:$0xff]  ;;  %v3772_v54 = vld [vmem:[#allocation6 + $0x2e8] sm:$0xff] }
 0x6dc   :  { %v8702_v36 = vpack.c.bf16 %v3757_v40, %v3749_v44  ;;  %v8656_v44 = vpack.c.bf16 %v3836_v5, %v3828_v45  ;;  %v3893_v45 = vld [vmem:[#allocation6 + $0x6b0] sm:$0xff] }
 0x6dd   :  { %9716 = vtanh.f32 %v10353_v46  ;;  %v3901_v5 = vld [vmem:[#allocation6 + $0x6f0] sm:$0xff] }
 0x6e7   :  { %v9717_v49 = vpop.eup %9716 }
 0x6e8   :  { %v3673_v56 = vmul.f32 %v9717_v49, %v9715_v47  ;;  %v3766_v47 = vld [vmem:[#allocation6 + $0x2b8] sm:$0xff]  ;;  %v8638_v49 = vpack.c.bf16 %v3755_v19, %v3747_v12  ;;  %v8718_v19 = vpack.c.bf16 %v3821_v34, %v3813_v33 }
 0x6e9   :  { %v8704_v57 = vpack.c.bf16 %v3774_v48, %v3766_v47  ;;  %v3844_v47 = vld [vmem:[#allocation6 + $0x528] sm:$0xff] }
 0x6ea   :  { %3675 = vst [vmem:[#allocation3 + $0x18] sm:$0xf0] %v3673_v56  ;;  %v3677_v9 = vrot.slane %v3673_v56, 4  ;;  %v8640_v56 = vpack.c.bf16 %v3772_v54, %v3764_v51  ;;  %v3829_v51 = vld [vmem:[#allocation6 + $0x4b0] sm:$0xff]  ;;  %v3852_v48 = vld [vmem:[#allocation6 + $0x568] sm:$0xff] }
 0x6eb   :  { %v3837_v54 = vld [vmem:[#allocation6 + $0x4f0] sm:$0xff]  ;;  %v8660_v58 = vpack.c.bf16 %v3852_v48, %v3844_v47 }
 0x6ec   :  { %3999 = vmatprep.mubr.f32.mxu0 %v3677_v9  ;;  %4070 = vmatprep.mubr.f32.mxu1 %v3677_v9  ;;  %v8722_v53 = vpack.c.bf16 %v3837_v54, %v3829_v51  ;;  %v3909_v47 = vld [vmem:[#allocation6 + $0x730] sm:$0xff] }
 0x6ed   :  { %4000 = vmatmul.mubr.f32.vlgmr.msra.gmra.mrb[30].mxu0 %v10349_v21  ;;  %4071 = vmatmul.mubr.f32.vlgmr.msra.gmra.mrb[42].mxu1 %v10349_v21  ;;  %v3917_v48 = vld [vmem:[#allocation6 + $0x770] sm:$0xff] }
 0x6ee   :  { %8623 = vmatpush1.bf16.msra.mxu0 %v8622_v0  ;;  %8687 = vmatpush1.bf16.msra.mxu1 %v8686_v4  ;;  %v3782_v0 = vld [vmem:[#allocation6 + $0x338] sm:$0xff] }
 0x6ef   :  { %4141 = vmatprep.mubr.f32.mxu0 %v3677_v9  ;;  %4212 = vmatprep.mubr.f32.mxu1 %v3677_v9  ;;  %v3788_v9 = vld [vmem:[#allocation6 + $0x368] sm:$0xff]  ;;  %v3790_v4 = vld [vmem:[#allocation6 + $0x378] sm:$0xff] }
 0x6f0   :  { %8625 = vmatprep.subr.bf16.mxu0 %v8624_v38  ;;  %8689 = vmatprep.subr.bf16.mxu1 %v8688_v3  ;;  %v8644_v31 = vpack.c.bf16 %v3788_v9, %v3780_v2  ;;  %v8708_v38 = vpack.c.bf16 %v3790_v4, %v3782_v0  ;;  %v3781_v3 = vld [vmem:[#allocation6 + $0x330] sm:$0xff]  ;;  %v3860_v0 = vld [vmem:[#allocation6 + $0x5a8] sm:$0xff] }
 0x6f1   :  { %v8710_v13 = vpack.c.bf16 %v3789_v50, %v3781_v3  ;;  %v3845_v2 = vld [vmem:[#allocation6 + $0x530] sm:$0xff]  ;;  %v3868_v4 = vld [vmem:[#allocation6 + $0x5e8] sm:$0xff] }
 0x6f2   :  { %8627 = vmatpush1.bf16.msra.mxu0 %v8626_v55  ;;  %8691 = vmatpush1.bf16.msra.mxu1 %v8690_v10  ;;  %v3798_v55 = vld [vmem:[#allocation6 + $0x3b8] sm:$0xff]  ;;  %v3853_v9 = vld [vmem:[#allocation6 + $0x570] sm:$0xff]  ;;  %v8664_v3 = vpack.c.bf16 %v3868_v4, %v3860_v0 }
 0x6f3   :  { %8629 = vmatprep.subr.bf16.mxu0 %v8628_v14  ;;  %8693 = vmatprep.subr.bf16.mxu1 %v8692_v15  ;;  %v3806_v10 = vld [vmem:[#allocation6 + $0x3f8] sm:$0xff]  ;;  %v3795_v14 = vld [vmem:[#allocation6 + $0x3a0] sm:$0xff]  ;;  %v8726_v63 = vpack.c.bf16 %v3853_v9, %v3845_v2  ;;  %v3925_v0 = vld [vmem:[#allocation6 + $0x7b0] sm:$0xff] }
 0x6f4   :  { %v3803_v15 = vld [vmem:[#allocation6 + $0x3e0] sm:$0xff]  ;;  %v8712_v35 = vpack.c.bf16 %v3806_v10, %v3798_v55  ;;  %v3876_v55 = vld [vmem:[#allocation6 + $0x628] sm:$0xff]  ;;  %v3933_v4 = vld [vmem:[#allocation6 + $0x7f0] sm:$0xff] }
 0x6f5   :  { %v8650_v23 = vpack.c.bf16 %v3803_v15, %v3795_v14  ;;  %v3884_v10 = vld [vmem:[#allocation6 + $0x668] sm:$0xff]  ;;  %v8730_v15 = vpack.c.bf16 %v3869_v7, %v3861_v6  ;;  %v3931_v9 = vld [vmem:[#allocation6 + $0x7e0] sm:$0xff] }
 0x6f6   :  { %8631 = vmatpush1.bf16.msra.mxu0 %v8630_v20  ;;  %8695 = vmatpush1.bf16.msra.mxu1 %v8694_v22  ;;  %v3814_v20 = vld [vmem:[#allocation6 + $0x438] sm:$0xff]  ;;  %v8668_v16 = vpack.c.bf16 %v3884_v10, %v3876_v55  ;;  %v4313_v6 = vld [vmem:[#allocation6 + $0x40] sm:$0xff]  ;;  %v4307_v10 = vld [vmem:[#allocation6 + $0x10] sm:$0xff] }
 0x6f7   :  { %8633 = vmatprep.subr.bf16.mxu0 %v8632_v26  ;;  %8697 = vmatprep.subr.bf16.mxu1 %v8696_v27  ;;  %v3822_v22 = vld [vmem:[#allocation6 + $0x478] sm:$0xff]  ;;  %v3811_v26 = vld [vmem:[#allocation6 + $0x420] sm:$0xff] }
 0x6f8   :  { %v3819_v27 = vld [vmem:[#allocation6 + $0x460] sm:$0xff]  ;;  %v8716_v30 = vpack.c.bf16 %v3822_v22, %v3814_v20  ;;  %v3892_v20 = vld [vmem:[#allocation6 + $0x6a8] sm:$0xff] }
 0x6f9   :  { %v8654_v12 = vpack.c.bf16 %v3819_v27, %v3811_v26  ;;  %v3900_v22 = vld [vmem:[#allocation6 + $0x6e8] sm:$0xff]  ;;  %v8734_v27 = vpack.c.bf16 %v3885_v28, %v3877_v18  ;;  %v4329_v18 = vld [vmem:[#allocation6 + $0xc0] sm:$0xff]  ;;  %v4323_v28 = vld [vmem:[#allocation6 + $0x90] sm:$0xff] }
 0x6fa   :  { %8635 = vmatpush1.bf16.msra.mxu0 %v8634_v32  ;;  %8699 = vmatpush1.bf16.msra.mxu1 %v8698_v41  ;;  %v3830_v32 = vld [vmem:[#allocation6 + $0x4b8] sm:$0xff]  ;;  %v8672_v33 = vpack.c.bf16 %v3900_v22, %v3892_v20  ;;  %v4331_v22 = vld [vmem:[#allocation6 + $0xd0] sm:$0xff] }
 0x6fb   :  { %8637 = vmatprep.subr.bf16.mxu0 %v8636_v42  ;;  %8701 = vmatprep.subr.bf16.mxu1 %v8700_v43  ;;  %v3838_v41 = vld [vmem:[#allocation6 + $0x4f8] sm:$0xff]  ;;  %v3827_v42 = vld [vmem:[#allocation6 + $0x4a0] sm:$0xff] }
 0x6fc   :  { %v3835_v43 = vld [vmem:[#allocation6 + $0x4e0] sm:$0xff]  ;;  %v8720_v40 = vpack.c.bf16 %v3838_v41, %v3830_v32  ;;  %v3908_v32 = vld [vmem:[#allocation6 + $0x728] sm:$0xff] }
 0x6fd   :  { %v8658_v52 = vpack.c.bf16 %v3835_v43, %v3827_v42  ;;  %v3916_v41 = vld [vmem:[#allocation6 + $0x768] sm:$0xff]  ;;  %v8738_v43 = vpack.c.bf16 %v3901_v5, %v3893_v45  ;;  %v4345_v45 = vld [vmem:[#allocation6 + $0x140] sm:$0xff]  ;;  %v4339_v5 = vld [vmem:[#allocation6 + $0x110] sm:$0xff] }
 0x6fe   :  { %8639 = vmatpush1.bf16.msra.mxu0 %v8638_v49  ;;  %8703 = vmatpush1.bf16.msra.mxu1 %v8702_v36  ;;  %v3846_v49 = vld [vmem:[#allocation6 + $0x538] sm:$0xff]  ;;  %v8676_v51 = vpack.c.bf16 %v3916_v41, %v3908_v32  ;;  %v4347_v32 = vld [vmem:[#allocation6 + $0x150] sm:$0xff] }
 0x6ff   :  { %8641 = vmatprep.subr.bf16.mxu0 %v8640_v56  ;;  %8705 = vmatprep.subr.bf16.mxu1 %v8704_v57  ;;  %v3854_v36 = vld [vmem:[#allocation6 + $0x578] sm:$0xff]  ;;  %v3843_v56 = vld [vmem:[#allocation6 + $0x520] sm:$0xff] }
 0x700   :  { %v3851_v57 = vld [vmem:[#allocation6 + $0x560] sm:$0xff]  ;;  %v8724_v59 = vpack.c.bf16 %v3854_v36, %v3846_v49  ;;  %v3924_v49 = vld [vmem:[#allocation6 + $0x7a8] sm:$0xff] }
 0x701   :  { %v8662_v62 = vpack.c.bf16 %v3851_v57, %v3843_v56  ;;  %v3932_v36 = vld [vmem:[#allocation6 + $0x7e8] sm:$0xff]  ;;  %v8742_v57 = vpack.c.bf16 %v3917_v48, %v3909_v47  ;;  %v4361_v47 = vld [vmem:[#allocation6 + $0x1c0] sm:$0xff]  ;;  %v4355_v48 = vld [vmem:[#allocation6 + $0x190] sm:$0xff] }
 0x702   :  { %8643 = vmatpush1.bf16.msra.mxu0 %v8642_v60  ;;  %8707 = vmatpush1.bf16.msra.mxu1 %v8706_v61  ;;  %v3862_v60 = vld [vmem:[#allocation6 + $0x5b8] sm:$0xff] }
 0x703   :  { %8645 = vmatprep.subr.bf16.mxu0 %v8644_v31  ;;  %8709 = vmatprep.subr.bf16.mxu1 %v8708_v38  ;;  %v3870_v61 = vld [vmem:[#allocation6 + $0x5f8] sm:$0xff]  ;;  %v3859_v31 = vld [vmem:[#allocation6 + $0x5a0] sm:$0xff] }
 0x704   :  { %v3867_v38 = vld [vmem:[#allocation6 + $0x5e0] sm:$0xff]  ;;  %v8728_v50 = vpack.c.bf16 %v3870_v61, %v3862_v60  ;;  %v8746_v61 = vpack.c.bf16 %v3933_v4, %v3925_v0 }
 0x705   :  { %v8666_v14 = vpack.c.bf16 %v3867_v38, %v3859_v31  ;;  %v4308_v31 = vld [vmem:[#allocation6 + $0x18] sm:$0xff] }
 0x706   :  { %8647 = vmatpush1.bf16.msra.mxu0 %v8646_v11  ;;  %8711 = vmatpush1.bf16.msra.mxu1 %v8710_v13  ;;  %v3878_v11 = vld [vmem:[#allocation6 + $0x638] sm:$0xff] }
 0x707   :  { %8649 = vmatprep.subr.bf16.mxu0 %v8648_v25  ;;  %8713 = vmatprep.subr.bf16.mxu1 %v8712_v35  ;;  %v3886_v13 = vld [vmem:[#allocation6 + $0x678] sm:$0xff]  ;;  %v3875_v25 = vld [vmem:[#allocation6 + $0x620] sm:$0xff] }
 0x708   :  { %v3883_v35 = vld [vmem:[#allocation6 + $0x660] sm:$0xff]  ;;  %v8732_v17 = vpack.c.bf16 %v3886_v13, %v3878_v11  ;;  %v4315_v11 = vld [vmem:[#allocation6 + $0x50] sm:$0xff]  ;;  %v4322_v13 = vld [vmem:[#allocation6 + $0x88] sm:$0xff] }
 0x709   :  { %v8670_v26 = vpack.c.bf16 %v3883_v35, %v3875_v25  ;;  %v4324_v25 = vld [vmem:[#allocation6 + $0x98] sm:$0xff] }
 0x70a   :  { %8651 = vmatpush1.bf16.msra.mxu0 %v8650_v23  ;;  %8715 = vmatpush1.bf16.msra.mxu1 %v8714_v24  ;;  %v3894_v23 = vld [vmem:[#allocation6 + $0x6b8] sm:$0xff] }
 0x70b   :  { %8653 = vmatprep.subr.bf16.mxu0 %v8652_v29  ;;  %8717 = vmatprep.subr.bf16.mxu1 %v8716_v30  ;;  %v3902_v24 = vld [vmem:[#allocation6 + $0x6f8] sm:$0xff]  ;;  %v3891_v29 = vld [vmem:[#allocation6 + $0x6a0] sm:$0xff] }
 0x70c   :  { %v3899_v30 = vld [vmem:[#allocation6 + $0x6e0] sm:$0xff]  ;;  %v8736_v34 = vpack.c.bf16 %v3902_v24, %v3894_v23  ;;  %v4332_v35 = vld [vmem:[#allocation6 + $0xd8] sm:$0xff]  ;;  %v4338_v23 = vld [vmem:[#allocation6 + $0x108] sm:$0xff] }
 0x70d   :  { %v8674_v42 = vpack.c.bf16 %v3899_v30, %v3891_v29  ;;  %v4346_v24 = vld [vmem:[#allocation6 + $0x148] sm:$0xff]  ;;  %v4340_v29 = vld [vmem:[#allocation6 + $0x118] sm:$0xff] }
 0x70e   :  { %8655 = vmatpush1.bf16.msra.mxu0 %v8654_v12  ;;  %8719 = vmatpush1.bf16.msra.mxu1 %v8718_v19  ;;  %v3910_v12 = vld [vmem:[#allocation6 + $0x738] sm:$0xff] }
 0x70f   :  { %8657 = vmatprep.subr.bf16.mxu0 %v8656_v44  ;;  %8721 = vmatprep.subr.bf16.mxu1 %v8720_v40  ;;  %v3918_v19 = vld [vmem:[#allocation6 + $0x778] sm:$0xff]  ;;  %v3907_v44 = vld [vmem:[#allocation6 + $0x720] sm:$0xff] }
 0x710   :  { %v3915_v40 = vld [vmem:[#allocation6 + $0x760] sm:$0xff]  ;;  %v8740_v54 = vpack.c.bf16 %v3918_v19, %v3910_v12  ;;  %v4348_v30 = vld [vmem:[#allocation6 + $0x158] sm:$0xff]  ;;  %v4354_v12 = vld [vmem:[#allocation6 + $0x188] sm:$0xff] }
 0x711   :  { %v8678_v56 = vpack.c.bf16 %v3915_v40, %v3907_v44  ;;  %v4362_v19 = vld [vmem:[#allocation6 + $0x1c8] sm:$0xff]  ;;  %v4364_v40 = vld [vmem:[#allocation6 + $0x1d8] sm:$0xff] }
 0x712   :  { %8659 = vmatpush1.bf16.msra.mxu0 %v8658_v52  ;;  %8723 = vmatpush1.bf16.msra.mxu1 %v8722_v53  ;;  %v3926_v52 = vld [vmem:[#allocation6 + $0x7b8] sm:$0xff]  ;;  %v8760_v44 = vpack.c.bf16 %v4362_v19, %v4354_v12  ;;  %v4434_v12 = vld [vmem:[#allocation6 + $0x408] sm:$0xff] }
 0x713   :  { %8661 = vmatprep.subr.bf16.mxu0 %v8660_v58  ;;  %8725 = vmatprep.subr.bf16.mxu1 %v8724_v59  ;;  %v3934_v53 = vld [vmem:[#allocation6 + $0x7f8] sm:$0xff]  ;;  %v3923_v58 = vld [vmem:[#allocation6 + $0x7a0] sm:$0xff]  ;;  %v8680_v59 = vpack.c.bf16 %v3932_v36, %v3924_v49  ;;  %v4363_v36 = vld [vmem:[#allocation6 + $0x1d0] sm:$0xff] }
 0x714   :  { %v8744_v2 = vpack.c.bf16 %v3934_v53, %v3926_v52  ;;  %v8682_v60 = vpack.c.bf16 %v3931_v9, %v3923_v58  ;;  %v8826_v52 = vpack.c.bf16 %v4363_v36, %v4355_v48  ;;  %v4370_v53 = vld [vmem:[#allocation6 + $0x208] sm:$0xff]  ;;  %v4377_v9 = vld [vmem:[#allocation6 + $0x240] sm:$0xff]  ;;  %v4435_v48 = vld [vmem:[#allocation6 + $0x410] sm:$0xff] }
 0x715   :  { %v4442_v19 = vld [vmem:[#allocation6 + $0x448] sm:$0xff]  ;;  %v4443_v36 = vld [vmem:[#allocation6 + $0x450] sm:$0xff] }
 0x716   :  { %8663 = vmatpush1.bf16.msra.mxu0 %v8662_v62  ;;  %8727 = vmatpush1.bf16.msra.mxu1 %v8726_v63  ;;  %v4306_v62 = vld [vmem:[#allocation6 + $0x8] sm:$0xff] }
 0x717   :  { %8665 = vmatprep.subr.bf16.mxu0 %v8664_v3  ;;  %8729 = vmatprep.subr.bf16.mxu1 %v8728_v50  ;;  %v4314_v63 = vld [vmem:[#allocation6 + $0x48] sm:$0xff]  ;;  %v4316_v3 = vld [vmem:[#allocation6 + $0x58] sm:$0xff]  ;;  %v4305_v50 = vld [vmem:[#allocation6] sm:$0xff] }
 0x718   :  { %v8748_v38 = vpack.c.bf16 %v4314_v63, %v4306_v62  ;;  %v8812_v7 = vpack.c.bf16 %v4316_v3, %v4308_v31  ;;  %v8750_v55 = vpack.c.bf16 %v4313_v6, %v4305_v50  ;;  %v4386_v62 = vld [vmem:[#allocation6 + $0x288] sm:$0xff]  ;;  %v4396_v3 = vld [vmem:[#allocation6 + $0x2d8] sm:$0xff] }
 0x719   :  { %v4394_v31 = vld [vmem:[#allocation6 + $0x2c8] sm:$0xff] }
 0x71a   :  { %8667 = vmatpush1.bf16.msra.mxu0 %v8666_v14  ;;  %8731 = vmatpush1.bf16.msra.mxu1 %v8730_v15  ;;  %v8814_v14 = vpack.c.bf16 %v4315_v11, %v4307_v10  ;;  %v4330_v15 = vld [vmem:[#allocation6 + $0xc8] sm:$0xff]  ;;  %v8768_v50 = vpack.c.bf16 %v4394_v31, %v4386_v62  ;;  %v4387_v10 = vld [vmem:[#allocation6 + $0x290] sm:$0xff]  ;;  %v4468_v31 = vld [vmem:[#allocation6 + $0x518] sm:$0xff] }
 0x71b   :  { %8669 = vmatprep.subr.bf16.mxu0 %v8668_v16  ;;  %8733 = vmatprep.subr.bf16.mxu1 %v8732_v17  ;;  %v8816_v16 = vpack.c.bf16 %v4332_v35, %v4324_v25  ;;  %v4321_v17 = vld [vmem:[#allocation6 + $0x80] sm:$0xff]  ;;  %v4466_v62 = vld [vmem:[#allocation6 + $0x508] sm:$0xff] }
 0x71c   :  { %v8754_v20 = vpack.c.bf16 %v4329_v18, %v4321_v17  ;;  %v4401_v17 = vld [vmem:[#allocation6 + $0x300] sm:$0xff] }
 0x71e   :  { %8671 = vmatpush1.bf16.msra.mxu0 %v8670_v26  ;;  %8735 = vmatpush1.bf16.msra.mxu1 %v8734_v27  ;;  %v8818_v26 = vpack.c.bf16 %v4331_v22, %v4323_v28  ;;  %v8756_v27 = vpack.c.bf16 %v4346_v24, %v4338_v23  ;;  %v4409_v28 = vld [vmem:[#allocation6 + $0x340] sm:$0xff]  ;;  %v4411_v22 = vld [vmem:[#allocation6 + $0x350] sm:$0xff]  ;;  %v4418_v24 = vld [vmem:[#allocation6 + $0x388] sm:$0xff] }
 0x71f   :  { %8673 = vmatprep.subr.bf16.mxu0 %v8672_v33  ;;  %8737 = vmatprep.subr.bf16.mxu1 %v8736_v34  ;;  %v4337_v33 = vld [vmem:[#allocation6 + $0x100] sm:$0xff]  ;;  %v8820_v34 = vpack.c.bf16 %v4348_v30, %v4340_v29  ;;  %v8774_v23 = vpack.c.bf16 %v4409_v28, %v4401_v17 }
 0x720   :  { %v8758_v41 = vpack.c.bf16 %v4345_v45, %v4337_v33  ;;  %v4428_v33 = vld [vmem:[#allocation6 + $0x3d8] sm:$0xff]  ;;  %v4425_v45 = vld [vmem:[#allocation6 + $0x3c0] sm:$0xff] }
 0x721   :  { %v4489_v28 = vld [vmem:[#allocation6 + $0x5c0] sm:$0xff] }
 0x722   :  { %8675 = vmatpush1.bf16.msra.mxu0 %v8674_v42  ;;  %8739 = vmatpush1.bf16.msra.mxu1 %v8738_v43  ;;  %v4356_v42 = vld [vmem:[#allocation6 + $0x198] sm:$0xff]  ;;  %v8822_v43 = vpack.c.bf16 %v4347_v32, %v4339_v5  ;;  %v4419_v32 = vld [vmem:[#allocation6 + $0x390] sm:$0xff] }
 0x723   :  { %8677 = vmatprep.subr.bf16.mxu0 %v8676_v51  ;;  %8741 = vmatprep.subr.bf16.mxu1 %v8740_v54  ;;  %v8824_v51 = vpack.c.bf16 %v4364_v40, %v4356_v42  ;;  %v4353_v54 = vld [vmem:[#allocation6 + $0x180] sm:$0xff]  ;;  %v4436_v42 = vld [vmem:[#allocation6 + $0x418] sm:$0xff] }
 0x724   :  { %v8762_v49 = vpack.c.bf16 %v4361_v47, %v4353_v54  ;;  %v4433_v54 = vld [vmem:[#allocation6 + $0x400] sm:$0xff] }
 0x725   :  { %v4441_v47 = vld [vmem:[#allocation6 + $0x440] sm:$0xff] }
 0x726   :  { %8679 = vmatpush1.bf16.msra.mxu0 %v8678_v56  ;;  %8743 = vmatpush1.bf16.msra.mxu1 %v8742_v57  ;;  %v4378_v56 = vld [vmem:[#allocation6 + $0x248] sm:$0xff]  ;;  %v4372_v57 = vld [vmem:[#allocation6 + $0x218] sm:$0xff] }
 0x727   :  { %8681 = vmatprep.subr.bf16.mxu0 %v8680_v59  ;;  %8745 = vmatprep.subr.bf16.mxu1 %v8744_v2  ;;  %v8764_v58 = vpack.c.bf16 %v4378_v56, %v4370_v53  ;;  %v4380_v59 = vld [vmem:[#allocation6 + $0x258] sm:$0xff]  ;;  %v4369_v2 = vld [vmem:[#allocation6 + $0x200] sm:$0xff]  ;;  %v4458_v53 = vld [vmem:[#allocation6 + $0x4c8] sm:$0xff] }
 0x728   :  { %v8828_v0 = vpack.c.bf16 %v4380_v59, %v4372_v57  ;;  %v8766_v4 = vpack.c.bf16 %v4377_v9, %v4369_v2  ;;  %v4452_v56 = vld [vmem:[#allocation6 + $0x498] sm:$0xff]  ;;  %v8846_v59 = vpack.c.bf16 %v4443_v36, %v4435_v48  ;;  %v4449_v9 = vld [vmem:[#allocation6 + $0x480] sm:$0xff] }
 0x729   :  { %v4460_v57 = vld [vmem:[#allocation6 + $0x4d8] sm:$0xff] }
 0x72a   :  { %8683 = vmatpush1.bf16.msra.mxu0 %v8682_v60  ;;  %8747 = vmatpush1.bf16.msra.mxu1 %v8746_v61  ;;  %v4371_v60 = vld [vmem:[#allocation6 + $0x210] sm:$0xff]  ;;  %v4524_v36 = vld [vmem:[#allocation6 + $0x6d8] sm:$0xff] }
 0x72b   :  { %8749 = vmatprep.subr.bf16.mxu0 %v8748_v38  ;;  %8813 = vmatprep.subr.bf16.mxu1 %v8812_v7  ;;  %v4379_v61 = vld [vmem:[#allocation6 + $0x250] sm:$0xff]  ;;  %v4388_v38 = vld [vmem:[#allocation6 + $0x298] sm:$0xff]  ;;  %v4385_v7 = vld [vmem:[#allocation6 + $0x280] sm:$0xff] }
 0x72c   :  { %v8830_v63 = vpack.c.bf16 %v4379_v61, %v4371_v60  ;;  %v8832_v6 = vpack.c.bf16 %v4396_v3, %v4388_v38  ;;  %v8848_v60 = vpack.c.bf16 %v4460_v57, %v4452_v56  ;;  %v4459_v61 = vld [vmem:[#allocation6 + $0x4d0] sm:$0xff]  ;;  %v4476_v38 = vld [vmem:[#allocation6 + $0x558] sm:$0xff] }
 0x72d   :  { %4142 = vmatmul.mubr.f32.vlgmr.msra.gmra.mrb[32].mxu0 %v10349_v21  ;;  %4213 = vmatmul.mubr.f32.vlgmr.msra.gmra.mrb[44].mxu1 %v10349_v21  ;;  %v8752_v21 = vpack.c.bf16 %v4330_v15, %v4322_v13  ;;  %v4395_v13 = vld [vmem:[#allocation6 + $0x2d0] sm:$0xff]  ;;  %v4410_v15 = vld [vmem:[#allocation6 + $0x348] sm:$0xff] }
 0x72e   :  { %8751 = vmatpush1.bf16.msra.mxu0 %v8750_v55  ;;  %8815 = vmatpush1.bf16.msra.mxu1 %v8814_v14  ;;  %v4393_v55 = vld [vmem:[#allocation6 + $0x2c0] sm:$0xff]  ;;  %v4402_v14 = vld [vmem:[#allocation6 + $0x308] sm:$0xff]  ;;  %v8834_v25 = vpack.c.bf16 %v4395_v13, %v4387_v10  ;;  %v4467_v10 = vld [vmem:[#allocation6 + $0x510] sm:$0xff] }
 0x72f   :  { %8753 = vmatprep.subr.bf16.mxu0 %v8752_v21  ;;  %8817 = vmatprep.subr.bf16.mxu1 %v8816_v16  ;;  %v8770_v11 = vpack.c.bf16 %v4393_v55, %v4385_v7  ;;  %v8772_v35 = vpack.c.bf16 %v4410_v15, %v4402_v14  ;;  %v4404_v21 = vld [vmem:[#allocation6 + $0x318] sm:$0xff]  ;;  %v4465_v7 = vld [vmem:[#allocation6 + $0x500] sm:$0xff]  ;;  %v4475_v13 = vld [vmem:[#allocation6 + $0x550] sm:$0xff] }
 0x730   :  { %v4412_v16 = vld [vmem:[#allocation6 + $0x358] sm:$0xff]  ;;  %v4473_v55 = vld [vmem:[#allocation6 + $0x540] sm:$0xff]  ;;  %v4482_v14 = vld [vmem:[#allocation6 + $0x588] sm:$0xff] }
 0x731   :  { %v8836_v18 = vpack.c.bf16 %v4412_v16, %v4404_v21  ;;  %v4490_v15 = vld [vmem:[#allocation6 + $0x5c8] sm:$0xff]  ;;  %v8790_v21 = vpack.c.bf16 %v4473_v55, %v4465_v7  ;;  %v8854_v16 = vpack.c.bf16 %v4475_v13, %v4467_v10  ;;  %v4529_v10 = vld [vmem:[#allocation6 + $0x700] sm:$0xff]  ;;  %v4531_v13 = vld [vmem:[#allocation6 + $0x710] sm:$0xff] }
 0x732   :  { %8755 = vmatpush1.bf16.msra.mxu0 %v8754_v20  ;;  %8819 = vmatpush1.bf16.msra.mxu1 %v8818_v26  ;;  %v4403_v20 = vld [vmem:[#allocation6 + $0x310] sm:$0xff]  ;;  %v4426_v26 = vld [vmem:[#allocation6 + $0x3c8] sm:$0xff]  ;;  %v8792_v17 = vpack.c.bf16 %v4490_v15, %v4482_v14 }
 0x733   :  { %8757 = vmatprep.subr.bf16.mxu0 %v8756_v27  ;;  %8821 = vmatprep.subr.bf16.mxu1 %v8820_v34  ;;  %v4420_v27 = vld [vmem:[#allocation6 + $0x398] sm:$0xff]  ;;  %v8838_v29 = vpack.c.bf16 %v4411_v22, %v4403_v20  ;;  %v8776_v30 = vpack.c.bf16 %v4426_v26, %v4418_v24  ;;  %v4417_v34 = vld [vmem:[#allocation6 + $0x380] sm:$0xff]  ;;  %v4483_v20 = vld [vmem:[#allocation6 + $0x590] sm:$0xff] }
 0x734   :  { %v8840_v5 = vpack.c.bf16 %v4428_v33, %v4420_v27  ;;  %v4498_v24 = vld [vmem:[#allocation6 + $0x608] sm:$0xff]  ;;  %v4500_v27 = vld [vmem:[#allocation6 + $0x618] sm:$0xff]  ;;  %v4539_v15 = vld [vmem:[#allocation6 + $0x750] sm:$0xff] }
 0x735   :  { %v4506_v26 = vld [vmem:[#allocation6 + $0x648] sm:$0xff] }
 0x736   :  { %8759 = vmatpush1.bf16.msra.mxu0 %v8758_v41  ;;  %8823 = vmatpush1.bf16.msra.mxu1 %v8822_v43  ;;  %v4427_v41 = vld [vmem:[#allocation6 + $0x3d0] sm:$0xff]  ;;  %v4444_v43 = vld [vmem:[#allocation6 + $0x458] sm:$0xff] }
 0x737   :  { %8761 = vmatprep.subr.bf16.mxu0 %v8760_v44  ;;  %8825 = vmatprep.subr.bf16.mxu1 %v8824_v51  ;;  %v8778_v44 = vpack.c.bf16 %v4425_v45, %v4417_v34  ;;  %v8842_v40 = vpack.c.bf16 %v4427_v41, %v4419_v32  ;;  %v8780_v51 = vpack.c.bf16 %v4442_v19, %v4434_v12  ;;  %v4497_v32 = vld [vmem:[#allocation6 + $0x600] sm:$0xff]  ;;  %v4499_v12 = vld [vmem:[#allocation6 + $0x610] sm:$0xff] }
 0x738   :  { %v4505_v41 = vld [vmem:[#allocation6 + $0x640] sm:$0xff] }
 0x739   :  { %v8798_v56 = vpack.c.bf16 %v4505_v41, %v4497_v32  ;;  %v4312_v32 = vld [vmem:[#allocation6 + $0x38] sm:$0xff] }
 0x73a   :  { %8763 = vmatpush1.bf16.msra.mxu0 %v8762_v49  ;;  %8827 = vmatpush1.bf16.msra.mxu1 %v8826_v52  ;;  %v8844_v49 = vpack.c.bf16 %v4444_v43, %v4436_v42  ;;  %v4450_v52 = vld [vmem:[#allocation6 + $0x488] sm:$0xff]  ;;  %v4320_v41 = vld [vmem:[#allocation6 + $0x78] sm:$0xff] }
 0x73b   :  { %8765 = vmatprep.subr.bf16.mxu0 %v8764_v58  ;;  %8829 = vmatprep.subr.bf16.mxu1 %v8828_v0  ;;  %v8782_v58 = vpack.c.bf16 %v4441_v47, %v4433_v54  ;;  %v8784_v2 = vpack.c.bf16 %v4458_v53, %v4450_v52  ;;  %v4457_v0 = vld [vmem:[#allocation6 + $0x4c0] sm:$0xff]  ;;  %v4522_v54 = vld [vmem:[#allocation6 + $0x6c8] sm:$0xff] }
 0x73c   :  { %v8786_v3 = vpack.c.bf16 %v4457_v0, %v4449_v9  ;;  %v4219_v47 = vld [vmem:[#allocation2 + $0x80] sm:$0xf0]  ;;  %v4220_v53 = vld [vmem:[#allocation2 + $0x88] sm:$0xf0]  ;;  %v4515_v0 = vld [vmem:[#allocation6 + $0x690] sm:$0xff] }
 0x73d   :  { %v4521_v9 = vld [vmem:[#allocation6 + $0x6c0] sm:$0xff] }
 0x73e   :  { %8767 = vmatpush1.bf16.msra.mxu0 %v8766_v4  ;;  %8831 = vmatpush1.bf16.msra.mxu1 %v8830_v63  ;;  %v4451_v4 = vld [vmem:[#allocation6 + $0x490] sm:$0xff]  ;;  %v4474_v63 = vld [vmem:[#allocation6 + $0x548] sm:$0xff] }
 0x73f   :  { %8769 = vmatprep.subr.bf16.mxu0 %v8768_v50  ;;  %8833 = vmatprep.subr.bf16.mxu1 %v8832_v6  ;;  %v8850_v50 = vpack.c.bf16 %v4459_v61, %v4451_v4  ;;  %v8788_v6 = vpack.c.bf16 %v4474_v63, %v4466_v62  ;;  %v4523_v61 = vld [vmem:[#allocation6 + $0x6d0] sm:$0xff]  ;;  %v4530_v62 = vld [vmem:[#allocation6 + $0x708] sm:$0xff] }
 0x740   :  { %v4538_v63 = vld [vmem:[#allocation6 + $0x748] sm:$0xff]  ;;  %v8866_v7 = vpack.c.bf16 %v4523_v61, %v4515_v0 }
 0x741   :  { %v8804_v55 = vpack.c.bf16 %v4538_v63, %v4530_v62 }
 0x742   :  { %8771 = vmatpush1.bf16.msra.mxu0 %v8770_v11  ;;  %8835 = vmatpush1.bf16.msra.mxu1 %v8834_v25  ;;  %v8852_v11 = vpack.c.bf16 %v4476_v38, %v4468_v31  ;;  %v4484_v25 = vld [vmem:[#allocation6 + $0x598] sm:$0xff] }
 0x743   :  { %8773 = vmatprep.subr.bf16.mxu0 %v8772_v35  ;;  %8837 = vmatprep.subr.bf16.mxu1 %v8836_v18  ;;  %v4492_v35 = vld [vmem:[#allocation6 + $0x5d8] sm:$0xff]  ;;  %v4481_v18 = vld [vmem:[#allocation6 + $0x580] sm:$0xff] }
 0x744   :  { %v8856_v22 = vpack.c.bf16 %v4492_v35, %v4484_v25  ;;  %v4532_v38 = vld [vmem:[#allocation6 + $0x718] sm:$0xff]  ;;  %v4546_v25 = vld [vmem:[#allocation6 + $0x788] sm:$0xff] }
 0x745   :  { %v4554_v35 = vld [vmem:[#allocation6 + $0x7c8] sm:$0xff] }
 0x746   :  { %8775 = vmatpush1.bf16.msra.mxu0 %v8774_v23  ;;  %8839 = vmatpush1.bf16.msra.mxu1 %v8838_v29  ;;  %v4491_v23 = vld [vmem:[#allocation6 + $0x5d0] sm:$0xff]  ;;  %v4508_v29 = vld [vmem:[#allocation6 + $0x658] sm:$0xff] }
 0x747   :  { %8777 = vmatprep.subr.bf16.mxu0 %v8776_v30  ;;  %8841 = vmatprep.subr.bf16.mxu1 %v8840_v5  ;;  %v8794_v30 = vpack.c.bf16 %v4489_v28, %v4481_v18  ;;  %v8858_v45 = vpack.c.bf16 %v4491_v23, %v4483_v20  ;;  %v8796_v5 = vpack.c.bf16 %v4506_v26, %v4498_v24  ;;  %v4556_v18 = vld [vmem:[#allocation6 + $0x7d8] sm:$0xff]  ;;  %v4545_v26 = vld [vmem:[#allocation6 + $0x780] sm:$0xff] }
 0x748   :  { %v4222_v20 = vld [vmem:[#allocation2 + $0x98] sm:$0xf0]  ;;  %v8870_v23 = vpack.c.bf16 %v4539_v15, %v4531_v13  ;;  %v8808_v24 = vpack.c.bf16 %v4554_v35, %v4546_v25 }
 0x74a   :  { %8779 = vmatpush1.bf16.msra.mxu0 %v8778_v44  ;;  %8843 = vmatpush1.bf16.msra.mxu1 %v8842_v40  ;;  %v8860_v44 = vpack.c.bf16 %v4508_v29, %v4500_v27  ;;  %v4507_v40 = vld [vmem:[#allocation6 + $0x650] sm:$0xff]  ;;  %v4553_v27 = vld [vmem:[#allocation6 + $0x7c0] sm:$0xff] }
 0x74b   :  { %8781 = vmatprep.subr.bf16.mxu0 %v8780_v51  ;;  %8845 = vmatprep.subr.bf16.mxu1 %v8844_v49  ;;  %v4514_v51 = vld [vmem:[#allocation6 + $0x688] sm:$0xff]  ;;  %v4516_v49 = vld [vmem:[#allocation6 + $0x698] sm:$0xff]  ;;  %v4547_v29 = vld [vmem:[#allocation6 + $0x790] sm:$0xff] }
 0x74e   :  { %8783 = vmatpush1.bf16.msra.mxu0 %v8782_v58  ;;  %8847 = vmatpush1.bf16.msra.mxu1 %v8846_v59  ;;  %v8862_v58 = vpack.c.bf16 %v4507_v40, %v4499_v12  ;;  %v8800_v59 = vpack.c.bf16 %v4522_v54, %v4514_v51  ;;  %v8940_v40 = vpack.c.bf16 %v4320_v41, %v4312_v32  ;;  %v4328_v32 = vld [vmem:[#allocation6 + $0xb8] sm:$0xff] }
 0x74f   :  { %8785 = vmatprep.subr.bf16.mxu0 %v8784_v2  ;;  %8849 = vmatprep.subr.bf16.mxu1 %v8848_v60  ;;  %v4513_v2 = vld [vmem:[#allocation6 + $0x680] sm:$0xff]  ;;  %v8864_v60 = vpack.c.bf16 %v4524_v36, %v4516_v49  ;;  %v4336_v41 = vld [vmem:[#allocation6 + $0xf8] sm:$0xff] }
 0x752   :  { %8787 = vmatpush1.bf16.msra.mxu0 %v8786_v3  ;;  %8851 = vmatpush1.bf16.msra.mxu1 %v8850_v50  ;;  %v4540_v3 = vld [vmem:[#allocation6 + $0x758] sm:$0xff] }
 0x753   :  { %8789 = vmatprep.subr.bf16.mxu0 %v8788_v6  ;;  %8853 = vmatprep.subr.bf16.mxu1 %v8852_v11  ;;  %v8802_v6 = vpack.c.bf16 %v4521_v9, %v4513_v2  ;;  %v4537_v11 = vld [vmem:[#allocation6 + $0x740] sm:$0xff]  ;;  %v8868_v14 = vpack.c.bf16 %v4540_v3, %v4532_v38 }
 0x756   :  { %8791 = vmatpush1.bf16.msra.mxu0 %v8790_v21  ;;  %8855 = vmatpush1.bf16.msra.mxu1 %v8854_v16  ;;  %v4221_v21 = vld [vmem:[#allocation2 + $0x90] sm:$0xf0] }
 0x757   :  { %8793 = vmatprep.subr.bf16.mxu0 %v8792_v17  ;;  %8857 = vmatprep.subr.bf16.mxu1 %v8856_v22  ;;  %v4548_v17 = vld [vmem:[#allocation6 + $0x798] sm:$0xff]  ;;  %v8806_v22 = vpack.c.bf16 %v4537_v11, %v4529_v10 }
 0x75a   :  { %8795 = vmatpush1.bf16.msra.mxu0 %v8794_v30  ;;  %8859 = vmatpush1.bf16.msra.mxu1 %v8858_v45  ;;  %v8872_v30 = vpack.c.bf16 %v4556_v18, %v4548_v17  ;;  %v4318_v45 = vld [vmem:[#allocation6 + $0x68] sm:$0xff]  ;;  %v4294_v17 = vrot.slane %v10353_v46, 4 }
 0x75b   :  { %8797 = vmatprep.subr.bf16.mxu0 %v8796_v5  ;;  %8861 = vmatprep.subr.bf16.mxu1 %v8860_v44  ;;  %v4334_v46 = vld [vmem:[#allocation6 + $0xe8] sm:$0xff] }
 0x75e   :  { %8799 = vmatpush1.bf16.msra.mxu0 %v8798_v56  ;;  %8863 = vmatpush1.bf16.msra.mxu1 %v8862_v58 }
 0x75f   :  { %8801 = vmatprep.subr.bf16.mxu0 %v8800_v59  ;;  %8865 = vmatprep.subr.bf16.mxu1 %v8864_v60  ;;  %v4239_v60 = vld [vmem:[#allocation2 + $0x60] sm:$0xf] }
 0x762   :  { %8803 = vmatpush1.bf16.msra.mxu0 %v8802_v6  ;;  %8867 = vmatpush1.bf16.msra.mxu1 %v8866_v7  ;;  %v4241_v6 = vld [vmem:[#allocation2 + $0x70] sm:$0xf] }
 0x763   :  { %8805 = vmatprep.subr.bf16.mxu0 %v8804_v55  ;;  %8869 = vmatprep.subr.bf16.mxu1 %v8868_v14  ;;  %v4242_v55 = vld [vmem:[#allocation2 + $0x78] sm:$0xf] }
 0x766   :  { %8807 = vmatpush1.bf16.msra.mxu0 %v8806_v22  ;;  %8871 = vmatpush1.bf16.msra.mxu1 %v8870_v23 }
 0x767   :  { %8809 = vmatprep.subr.bf16.mxu0 %v8808_v24  ;;  %8873 = vmatprep.subr.bf16.mxu1 %v8872_v30  ;;  %v4317_v30 = vld [vmem:[#allocation6 + $0x60] sm:$0xff] }
 0x7c0   :  { %v4001_v33 = vpop.f32.mrb[30].mxu0  ;;  %v10360_v34 = vpop.f32.mrb[42].mxu1 }
 0x7c1   :  { %v4227_v19 = vrot.slane %v4001_v33, 4  ;;  %v4003_v42 = vpop.f32.mrb[31].mxu0  ;;  %v10362_v43 = vpop.f32.mrb[43].mxu1  ;;  %v4229_v50 = vrot.slane %v10360_v34, 4  ;;  %v4555_v33 = vld [vmem:[#allocation6 + $0x7d0] sm:$0xff]  ;;  %v4310_v34 = vld [vmem:[#allocation6 + $0x28] sm:$0xff] }
 0x7c2   :  { %v4228_v48 = vrot.slane %v4003_v42, 4  ;;  %v4230_v16 = vrot.slane %v10362_v43, 4  ;;  %v8874_v42 = vpack.c.bf16 %v4555_v33, %v4547_v29  ;;  %v8876_v43 = vpack.c.bf16 %v4318_v45, %v4310_v34  ;;  %v4309_v29 = vld [vmem:[#allocation6 + $0x20] sm:$0xff]  ;;  %v4311_v33 = vld [vmem:[#allocation6 + $0x30] sm:$0xff] }
 0x7c3   :  { %v4235_v52 = vadd.f32 %v4227_v19, %v4219_v47  ;;  %v4237_v28 = vadd.f32 %v4229_v50, %v4221_v21  ;;  %v8810_v19 = vpack.c.bf16 %v4553_v27, %v4545_v26  ;;  %v4319_v34 = vld [vmem:[#allocation6 + $0x70] sm:$0xff] }
 0x7c4   :  { %v4236_v57 = vadd.f32 %v4228_v48, %v4220_v53  ;;  %v4238_v5 = vadd.f32 %v4230_v16, %v4222_v20  ;;  %8875 = vmatpush1.bf16.msra.mxu1 %v8874_v42  ;;  %v8942_v42 = vpack.c.bf16 %v4319_v34, %v4311_v33  ;;  %v4389_v33 = vld [vmem:[#allocation6 + $0x2a0] sm:$0xff] }
 0x7c5   :  { %v7098_v4 = vmul.f32 -1.442695, %v4235_v52  ;;  %v7100_v12 = vmul.f32 -1.442695, %v4237_v28  ;;  %8811 = vmatpush1.bf16.msra.mxu0 %v8810_v19  ;;  %8941 = vmatprep.subr.bf16.mxu1 %v8940_v40  ;;  %v4267_v52 = vrot.slane %v10346_v8, 4  ;;  %v8878_v19 = vpack.c.bf16 %v4317_v30, %v4309_v29  ;;  %v4397_v34 = vld [vmem:[#allocation6 + $0x2e0] sm:$0xff] }
 0x7c6   :  { %v7099_v31 = vmul.f32 -1.442695, %v4236_v57  ;;  %8877 = vmatprep.subr.bf16.mxu0 %v8876_v43  ;;  %v4325_v43 = vld [vmem:[#allocation6 + $0xa0] sm:$0xff] }
 0x7c7   :  { %9718 = vpow2.f32 %v7098_v4 }
 0x7c8   :  { %9720 = vpow2.f32 %v7099_v31  ;;  %v4240_v31 = vld [vmem:[#allocation2 + $0x68] sm:$0xf] }
 0x7c9   :  { %9722 = vtanh.f32 %v4238_v5  ;;  %v4326_v5 = vld [vmem:[#allocation6 + $0xa8] sm:$0xff] }
 0x7ca   :  { %9724 = vpow2.f32 %v7100_v12 }
 0x7d1   :  { %v9719_v44 = vpop.eup %9718 }
 0x7d2   :  { %v4256_v51 = vadd.f32 1.0, %v9719_v44  ;;  %v9721_v54 = vpop.eup %9720  ;;  %v4333_v44 = vld [vmem:[#allocation6 + $0xe0] sm:$0xff] }
 0x7d3   :  { %v4257_v47 = vadd.f32 1.0, %v9721_v54  ;;  %v9723_v48 = vpop.eup %9722  ;;  %v4335_v54 = vld [vmem:[#allocation6 + $0xf0] sm:$0xff] }
 0x7d4   :  { %9726 = vrcp.f32 %v4256_v51  ;;  %v9725_v49 = vpop.eup %9724  ;;  %v4327_v51 = vld [vmem:[#allocation6 + $0xb0] sm:$0xff] }
 0x7d5   :  { %9728 = vrcp.f32 %v4257_v47  ;;  %v4258_v57 = vadd.f32 1.0, %v9725_v49  ;;  %v4342_v47 = vld [vmem:[#allocation6 + $0x128] sm:$0xff]  ;;  %v8944_v49 = vpack.c.bf16 %v4336_v41, %v4328_v32  ;;  %v4399_v32 = vld [vmem:[#allocation6 + $0x2f0] sm:$0xff] }
 0x7d6   :  { %v4406_v41 = vld [vmem:[#allocation6 + $0x328] sm:$0xff] }
 0x7d7   :  { %9730 = vrcp.f32 %v4258_v57  ;;  %v8946_v57 = vpack.c.bf16 %v4335_v54, %v4327_v51  ;;  %v4405_v51 = vld [vmem:[#allocation6 + $0x320] sm:$0xff] }
 0x7d8   :  { %v4413_v54 = vld [vmem:[#allocation6 + $0x360] sm:$0xff] }
 0x7de   :  { %v9727_v36 = vpop.eup %9726 }
 0x7df   :  { %v4270_v53 = vmul.f32 %v9727_v36, %v9723_v48  ;;  %v9729_v56 = vpop.eup %9728  ;;  %v8880_v48 = vpack.c.bf16 %v4334_v46, %v4326_v5  ;;  %v4350_v36 = vld [vmem:[#allocation6 + $0x168] sm:$0xff]  ;;  %v4391_v46 = vld [vmem:[#allocation6 + $0x2b0] sm:$0xff] }
 0x7e0   :  { %v4269_v58 = vmul.f32 %v9729_v56, %v4267_v52  ;;  %v4344_v52 = vld [vmem:[#allocation6 + $0x138] sm:$0xff]  ;;  %v8882_v56 = vpack.c.bf16 %v4333_v44, %v4325_v43  ;;  %v8898_v43 = vpack.c.bf16 %v4397_v34, %v4389_v33  ;;  %v8962_v44 = vpack.c.bf16 %v4399_v32, %v4391_v46 }
 0x7e1   :  { %v9731_v2 = vpop.eup %9730 }
 0x7e2   :  { %v10367_v59 = vadd.f32 %v4270_v53, %v4269_v58  ;;  %v4352_v53 = vld [vmem:[#allocation6 + $0x178] sm:$0xff]  ;;  %v4341_v58 = vld [vmem:[#allocation6 + $0x120] sm:$0xff] }
 0x7e4   :  { %9732 = vtanh.f32 %v10367_v59 }
 0x7ee   :  { %v9733_v9 = vpop.eup %9732 }
 0x7ef   :  { %v4273_v0 = vmul.f32 %v9733_v9, %v9731_v2  ;;  %v4349_v2 = vld [vmem:[#allocation6 + $0x160] sm:$0xff]  ;;  %v8884_v9 = vpack.c.bf16 %v4350_v36, %v4342_v47  ;;  %v4415_v36 = vld [vmem:[#allocation6 + $0x370] sm:$0xff] }
 0x7f1   :  { %4301 = vst [vmem:[#allocation3 + $0x20] sm:$0xf0] %v4273_v0  ;;  %v10374_v40 = vrot.slane %v4273_v0, 4  ;;  %v8948_v0 = vpack.c.bf16 %v4352_v53, %v4344_v52  ;;  %v4422_v52 = vld [vmem:[#allocation6 + $0x3a8] sm:$0xff] }
 0x7f2   :  { %v4430_v53 = vld [vmem:[#allocation6 + $0x3e8] sm:$0xff] }
 0x800   :  { %v4143_v4 = vpop.f32.mrb[32].mxu0  ;;  %v4214_v61 = vpop.f32.mrb[44].mxu1 }
 0x801   :  { %v4243_v62 = vadd.f32 %v4239_v60, %v4143_v4  ;;  %v4145_v63 = vpop.f32.mrb[33].mxu0  ;;  %v4216_v8 = vpop.f32.mrb[45].mxu1  ;;  %v4245_v7 = vadd.f32 %v4241_v6, %v4214_v61  ;;  %v4343_v4 = vld [vmem:[#allocation6 + $0x130] sm:$0xff]  ;;  %v4358_v61 = vld [vmem:[#allocation6 + $0x1a8] sm:$0xff] }
 0x802   :  { %v4244_v38 = vadd.f32 %v4240_v31, %v4145_v63  ;;  %v4246_v10 = vadd.f32 %v4242_v55, %v4216_v8  ;;  %v4351_v60 = vld [vmem:[#allocation6 + $0x170] sm:$0xff]  ;;  %v4360_v63 = vld [vmem:[#allocation6 + $0x1b8] sm:$0xff]  ;;  %v8886_v8 = vpack.c.bf16 %v4349_v2, %v4341_v58  ;;  %v8902_v58 = vpack.c.bf16 %v4413_v54, %v4405_v51 }
 0x803   :  { %v7101_v3 = vmul.f32 -1.442695, %v4243_v62  ;;  %v7103_v11 = vmul.f32 -1.442695, %v4245_v7  ;;  %v4366_v62 = vld [vmem:[#allocation6 + $0x1e8] sm:$0xff]  ;;  %v4368_v31 = vld [vmem:[#allocation6 + $0x1f8] sm:$0xff] }
 0x804   :  { %v7102_v50 = vmul.f32 -1.442695, %v4244_v38  ;;  %v8950_v38 = vpack.c.bf16 %v4351_v60, %v4343_v4  ;;  %v8888_v6 = vpack.c.bf16 %v4366_v62, %v4358_v61  ;;  %v8952_v7 = vpack.c.bf16 %v4368_v31, %v4360_v63  ;;  %v4359_v55 = vld [vmem:[#allocation6 + $0x1b0] sm:$0xff]  ;;  %v4438_v63 = vld [vmem:[#allocation6 + $0x428] sm:$0xff] }
 0x805   :  { %9734 = vpow2.f32 %v7101_v3  ;;  %v4357_v3 = vld [vmem:[#allocation6 + $0x1a0] sm:$0xff]  ;;  %v8904_v4 = vpack.c.bf16 %v4430_v53, %v4422_v52  ;;  %v4423_v61 = vld [vmem:[#allocation6 + $0x3b0] sm:$0xff]  ;;  %v4446_v31 = vld [vmem:[#allocation6 + $0x468] sm:$0xff] }
 0x806   :  { %9736 = vpow2.f32 %v7102_v50  ;;  %v4365_v50 = vld [vmem:[#allocation6 + $0x1e0] sm:$0xff]  ;;  %v4431_v62 = vld [vmem:[#allocation6 + $0x3f0] sm:$0xff] }
 0x807   :  { %9738 = vtanh.f32 %v4246_v10  ;;  %v4367_v10 = vld [vmem:[#allocation6 + $0x1f0] sm:$0xff] }
 0x808   :  { %9740 = vpow2.f32 %v7103_v11  ;;  %v4374_v11 = vld [vmem:[#allocation6 + $0x228] sm:$0xff]  ;;  %v4487_v52 = vld [vmem:[#allocation6 + $0x5b0] sm:$0xff] }
 0x809   :  { %v4495_v53 = vld [vmem:[#allocation6 + $0x5f0] sm:$0xff] }
 0x80f   :  { %v9735_v13 = vpop.eup %9734 }
 0x810   :  { %v4283_v14 = vadd.f32 1.0, %v9735_v13  ;;  %v9737_v15 = vpop.eup %9736  ;;  %v4382_v13 = vld [vmem:[#allocation6 + $0x268] sm:$0xff] }
 0x811   :  { %v4284_v25 = vadd.f32 1.0, %v9737_v15  ;;  %v9739_v35 = vpop.eup %9738  ;;  %v4384_v15 = vld [vmem:[#allocation6 + $0x278] sm:$0xff] }
 0x812   :  { %9742 = vrcp.f32 %v4283_v14  ;;  %v9741_v21 = vpop.eup %9740  ;;  %v4376_v14 = vld [vmem:[#allocation6 + $0x238] sm:$0xff] }
 0x813   :  { %9744 = vrcp.f32 %v4284_v25  ;;  %v4285_v20 = vadd.f32 1.0, %v9741_v21  ;;  %v8890_v25 = vpack.c.bf16 %v4365_v50, %v4357_v3  ;;  %v4373_v21 = vld [vmem:[#allocation6 + $0x220] sm:$0xff]  ;;  %v8970_v50 = vpack.c.bf16 %v4431_v62, %v4423_v61 }
 0x815   :  { %9746 = vrcp.f32 %v4285_v20  ;;  %v4383_v20 = vld [vmem:[#allocation6 + $0x270] sm:$0xff] }
 0x81c   :  { %v9743_v16 = vpop.eup %9742 }
 0x81d   :  { %v4297_v18 = vmul.f32 %v9743_v16, %v9739_v35  ;;  %v9745_v28 = vpop.eup %9744  ;;  %v8954_v35 = vpack.c.bf16 %v4367_v10, %v4359_v55  ;;  %v4381_v16 = vld [vmem:[#allocation6 + $0x260] sm:$0xff]  ;;  %v8908_v55 = vpack.c.bf16 %v4446_v31, %v4438_v63  ;;  %v4503_v63 = vld [vmem:[#allocation6 + $0x630] sm:$0xff] }
 0x81e   :  { %v4296_v22 = vmul.f32 %v9745_v28, %v4294_v17  ;;  %v8892_v17 = vpack.c.bf16 %v4382_v13, %v4374_v11  ;;  %v4375_v28 = vld [vmem:[#allocation6 + $0x230] sm:$0xff]  ;;  %v8894_v29 = vpack.c.bf16 %v4381_v16, %v4373_v21 }
 0x81f   :  { %v9747_v24 = vpop.eup %9746  ;;  %v8958_v30 = vpack.c.bf16 %v4383_v20, %v4375_v28  ;;  %v4439_v11 = vld [vmem:[#allocation6 + $0x430] sm:$0xff] }
 0x820   :  { %v10371_v23 = vadd.f32 %v4297_v18, %v4296_v22  ;;  %v8956_v18 = vpack.c.bf16 %v4384_v15, %v4376_v14  ;;  %v4390_v22 = vld [vmem:[#allocation6 + $0x2a8] sm:$0xff]  ;;  %v4447_v13 = vld [vmem:[#allocation6 + $0x470] sm:$0xff] }
 0x821   :  { %v4454_v14 = vld [vmem:[#allocation6 + $0x4a8] sm:$0xff]  ;;  %v8974_v16 = vpack.c.bf16 %v4447_v13, %v4439_v11  ;;  %v4511_v31 = vld [vmem:[#allocation6 + $0x670] sm:$0xff] }
 0x822   :  { %9748 = vtanh.f32 %v10371_v23  ;;  %v4462_v15 = vld [vmem:[#allocation6 + $0x4e8] sm:$0xff] }
 0x823   :  { %v8912_v28 = vpack.c.bf16 %v4462_v15, %v4454_v14  ;;  %v4519_v14 = vld [vmem:[#allocation6 + $0x6b0] sm:$0xff] }
 0x824   :  { %v4527_v15 = vld [vmem:[#allocation6 + $0x6f0] sm:$0xff] }
 0x82c   :  { %v9749_v26 = vpop.eup %9748 }
 0x82d   :  { %v4300_v27 = vmul.f32 %v9749_v26, %v9747_v24  ;;  %v4398_v24 = vld [vmem:[#allocation6 + $0x2e8] sm:$0xff]  ;;  %v4392_v26 = vld [vmem:[#allocation6 + $0x2b8] sm:$0xff] }
 0x82f   :  { %4302 = vst [vmem:[#allocation3 + $0x18] sm:$0xf] %v4300_v27  ;;  %v4304_v45 = vrot.slane %v4300_v27, 4  ;;  %v4400_v27 = vld [vmem:[#allocation6 + $0x2f8] sm:$0xff] }
 0x830   :  { %v8960_v5 = vpack.c.bf16 %v4400_v27, %v4392_v26  ;;  %v4470_v26 = vld [vmem:[#allocation6 + $0x528] sm:$0xff] }
 0x831   :  { %v4563_v12 = vrot.slane %v4304_v45, 4  ;;  %v8896_v45 = vpack.c.bf16 %v4398_v24, %v4390_v22  ;;  %v4455_v22 = vld [vmem:[#allocation6 + $0x4b0] sm:$0xff]  ;;  %v4478_v27 = vld [vmem:[#allocation6 + $0x568] sm:$0xff] }
 0x832   :  { %v4463_v24 = vld [vmem:[#allocation6 + $0x4f0] sm:$0xff]  ;;  %v8916_v46 = vpack.c.bf16 %v4478_v27, %v4470_v26 }
 0x833   :  { %4630 = vmatprep.mubr.f32.mxu0 %v4563_v12  ;;  %4701 = vmatprep.mubr.f32.mxu1 %v4563_v12  ;;  %v8978_v34 = vpack.c.bf16 %v4463_v24, %v4455_v22  ;;  %v4535_v26 = vld [vmem:[#allocation6 + $0x730] sm:$0xff] }
 0x834   :  { %4631 = vmatmul.mubr.f32.vlgmr.msra.gmra.mrb[34].mxu0 %v10374_v40  ;;  %4702 = vmatmul.mubr.f32.vlgmr.msra.gmra.mrb[46].mxu1 %v10374_v40  ;;  %v4543_v27 = vld [vmem:[#allocation6 + $0x770] sm:$0xff] }
 0x835   :  { %8879 = vmatpush1.bf16.msra.mxu0 %v8878_v19  ;;  %8943 = vmatpush1.bf16.msra.mxu1 %v8942_v42  ;;  %v4408_v19 = vld [vmem:[#allocation6 + $0x338] sm:$0xff] }
 0x836   :  { %4772 = vmatprep.mubr.f32.mxu0 %v4563_v12  ;;  %4843 = vmatprep.mubr.f32.mxu1 %v4563_v12  ;;  %v4414_v12 = vld [vmem:[#allocation6 + $0x368] sm:$0xff]  ;;  %v4416_v42 = vld [vmem:[#allocation6 + $0x378] sm:$0xff] }
 0x837   :  { %8881 = vmatprep.subr.bf16.mxu0 %v8880_v48  ;;  %8945 = vmatprep.subr.bf16.mxu1 %v8944_v49  ;;  %v8900_v47 = vpack.c.bf16 %v4414_v12, %v4406_v41  ;;  %v8964_v48 = vpack.c.bf16 %v4416_v42, %v4408_v19  ;;  %v4407_v49 = vld [vmem:[#allocation6 + $0x330] sm:$0xff]  ;;  %v4486_v19 = vld [vmem:[#allocation6 + $0x5a8] sm:$0xff] }
 0x838   :  { %v8966_v2 = vpack.c.bf16 %v4415_v36, %v4407_v49  ;;  %v4471_v41 = vld [vmem:[#allocation6 + $0x530] sm:$0xff]  ;;  %v4494_v42 = vld [vmem:[#allocation6 + $0x5e8] sm:$0xff] }
 0x839   :  { %8883 = vmatpush1.bf16.msra.mxu0 %v8882_v56  ;;  %8947 = vmatpush1.bf16.msra.mxu1 %v8946_v57  ;;  %v4424_v56 = vld [vmem:[#allocation6 + $0x3b8] sm:$0xff]  ;;  %v4479_v12 = vld [vmem:[#allocation6 + $0x570] sm:$0xff]  ;;  %v8920_v49 = vpack.c.bf16 %v4494_v42, %v4486_v19 }
 0x83a   :  { %8885 = vmatprep.subr.bf16.mxu0 %v8884_v9  ;;  %8949 = vmatprep.subr.bf16.mxu1 %v8948_v0  ;;  %v4432_v57 = vld [vmem:[#allocation6 + $0x3f8] sm:$0xff]  ;;  %v4421_v9 = vld [vmem:[#allocation6 + $0x3a0] sm:$0xff]  ;;  %v8982_v54 = vpack.c.bf16 %v4479_v12, %v4471_v41  ;;  %v4551_v19 = vld [vmem:[#allocation6 + $0x7b0] sm:$0xff] }
 0x83b   :  { %v4429_v0 = vld [vmem:[#allocation6 + $0x3e0] sm:$0xff]  ;;  %v8968_v60 = vpack.c.bf16 %v4432_v57, %v4424_v56  ;;  %v4502_v56 = vld [vmem:[#allocation6 + $0x628] sm:$0xff]  ;;  %v4559_v42 = vld [vmem:[#allocation6 + $0x7f0] sm:$0xff] }
 0x83c   :  { %v8906_v3 = vpack.c.bf16 %v4429_v0, %v4421_v9  ;;  %v4510_v57 = vld [vmem:[#allocation6 + $0x668] sm:$0xff]  ;;  %v8986_v0 = vpack.c.bf16 %v4495_v53, %v4487_v52  ;;  %v4557_v12 = vld [vmem:[#allocation6 + $0x7e0] sm:$0xff] }
 0x83d   :  { %8887 = vmatpush1.bf16.msra.mxu0 %v8886_v8  ;;  %8951 = vmatpush1.bf16.msra.mxu1 %v8950_v38  ;;  %v4440_v8 = vld [vmem:[#allocation6 + $0x438] sm:$0xff]  ;;  %v8924_v61 = vpack.c.bf16 %v4510_v57, %v4502_v56  ;;  %v4945_v52 = vld [vmem:[#allocation6 + $0x40] sm:$0xff]  ;;  %v4939_v57 = vld [vmem:[#allocation6 + $0x10] sm:$0xff] }
 0x83e   :  { %8889 = vmatprep.subr.bf16.mxu0 %v8888_v6  ;;  %8953 = vmatprep.subr.bf16.mxu1 %v8952_v7  ;;  %v4448_v38 = vld [vmem:[#allocation6 + $0x478] sm:$0xff]  ;;  %v4437_v6 = vld [vmem:[#allocation6 + $0x420] sm:$0xff] }
 0x83f   :  { %v4445_v7 = vld [vmem:[#allocation6 + $0x460] sm:$0xff]  ;;  %v8972_v10 = vpack.c.bf16 %v4448_v38, %v4440_v8  ;;  %v4518_v8 = vld [vmem:[#allocation6 + $0x6a8] sm:$0xff] }
 0x840   :  { %v8910_v21 = vpack.c.bf16 %v4445_v7, %v4437_v6  ;;  %v4526_v38 = vld [vmem:[#allocation6 + $0x6e8] sm:$0xff]  ;;  %v8990_v7 = vpack.c.bf16 %v4511_v31, %v4503_v63  ;;  %v4961_v63 = vld [vmem:[#allocation6 + $0xc0] sm:$0xff]  ;;  %v4955_v31 = vld [vmem:[#allocation6 + $0x90] sm:$0xff] }
 0x841   :  { %8891 = vmatpush1.bf16.msra.mxu0 %v8890_v25  ;;  %8955 = vmatpush1.bf16.msra.mxu1 %v8954_v35  ;;  %v4456_v25 = vld [vmem:[#allocation6 + $0x4b8] sm:$0xff]  ;;  %v8928_v11 = vpack.c.bf16 %v4526_v38, %v4518_v8  ;;  %v4963_v38 = vld [vmem:[#allocation6 + $0xd0] sm:$0xff] }
 0x842   :  { %8893 = vmatprep.subr.bf16.mxu0 %v8892_v17  ;;  %8957 = vmatprep.subr.bf16.mxu1 %v8956_v18  ;;  %v4464_v35 = vld [vmem:[#allocation6 + $0x4f8] sm:$0xff]  ;;  %v4453_v17 = vld [vmem:[#allocation6 + $0x4a0] sm:$0xff] }
 0x843   :  { %v4461_v18 = vld [vmem:[#allocation6 + $0x4e0] sm:$0xff]  ;;  %v8976_v20 = vpack.c.bf16 %v4464_v35, %v4456_v25  ;;  %v4534_v25 = vld [vmem:[#allocation6 + $0x728] sm:$0xff] }
 0x844   :  { %v8914_v33 = vpack.c.bf16 %v4461_v18, %v4453_v17  ;;  %v4542_v35 = vld [vmem:[#allocation6 + $0x768] sm:$0xff]  ;;  %v8994_v18 = vpack.c.bf16 %v4527_v15, %v4519_v14  ;;  %v4977_v14 = vld [vmem:[#allocation6 + $0x140] sm:$0xff]  ;;  %v4971_v15 = vld [vmem:[#allocation6 + $0x110] sm:$0xff] }
 0x845   :  { %8895 = vmatpush1.bf16.msra.mxu0 %v8894_v29  ;;  %8959 = vmatpush1.bf16.msra.mxu1 %v8958_v30  ;;  %v4472_v29 = vld [vmem:[#allocation6 + $0x538] sm:$0xff]  ;;  %v8932_v22 = vpack.c.bf16 %v4542_v35, %v4534_v25  ;;  %v4979_v25 = vld [vmem:[#allocation6 + $0x150] sm:$0xff] }
 0x846   :  { %8897 = vmatprep.subr.bf16.mxu0 %v8896_v45  ;;  %8961 = vmatprep.subr.bf16.mxu1 %v8960_v5  ;;  %v4480_v30 = vld [vmem:[#allocation6 + $0x578] sm:$0xff]  ;;  %v4469_v45 = vld [vmem:[#allocation6 + $0x520] sm:$0xff] }
 0x847   :  { %v4477_v5 = vld [vmem:[#allocation6 + $0x560] sm:$0xff]  ;;  %v8980_v32 = vpack.c.bf16 %v4480_v30, %v4472_v29  ;;  %v4550_v29 = vld [vmem:[#allocation6 + $0x7a8] sm:$0xff] }
 0x848   :  { %v8918_v51 = vpack.c.bf16 %v4477_v5, %v4469_v45  ;;  %v4558_v30 = vld [vmem:[#allocation6 + $0x7e8] sm:$0xff]  ;;  %v8998_v5 = vpack.c.bf16 %v4543_v27, %v4535_v26  ;;  %v4993_v26 = vld [vmem:[#allocation6 + $0x1c0] sm:$0xff]  ;;  %v4987_v27 = vld [vmem:[#allocation6 + $0x190] sm:$0xff] }
 0x849   :  { %8899 = vmatpush1.bf16.msra.mxu0 %v8898_v43  ;;  %8963 = vmatpush1.bf16.msra.mxu1 %v8962_v44  ;;  %v4488_v43 = vld [vmem:[#allocation6 + $0x5b8] sm:$0xff] }
 0x84a   :  { %8901 = vmatprep.subr.bf16.mxu0 %v8900_v47  ;;  %8965 = vmatprep.subr.bf16.mxu1 %v8964_v48  ;;  %v4496_v44 = vld [vmem:[#allocation6 + $0x5f8] sm:$0xff]  ;;  %v4485_v47 = vld [vmem:[#allocation6 + $0x5a0] sm:$0xff] }
 0x84b   :  { %v4493_v48 = vld [vmem:[#allocation6 + $0x5e0] sm:$0xff]  ;;  %v8984_v36 = vpack.c.bf16 %v4496_v44, %v4488_v43  ;;  %v9002_v44 = vpack.c.bf16 %v4559_v42, %v4551_v19 }
 0x84c   :  { %v8922_v9 = vpack.c.bf16 %v4493_v48, %v4485_v47  ;;  %v4940_v47 = vld [vmem:[#allocation6 + $0x18] sm:$0xff] }
 0x84d   :  { %8903 = vmatpush1.bf16.msra.mxu0 %v8902_v58  ;;  %8967 = vmatpush1.bf16.msra.mxu1 %v8966_v2  ;;  %v4504_v58 = vld [vmem:[#allocation6 + $0x638] sm:$0xff] }
 0x84e   :  { %8905 = vmatprep.subr.bf16.mxu0 %v8904_v4  ;;  %8969 = vmatprep.subr.bf16.mxu1 %v8968_v60  ;;  %v4512_v2 = vld [vmem:[#allocation6 + $0x678] sm:$0xff]  ;;  %v4501_v4 = vld [vmem:[#allocation6 + $0x620] sm:$0xff] }
 0x84f   :  { %v4509_v60 = vld [vmem:[#allocation6 + $0x660] sm:$0xff]  ;;  %v8988_v62 = vpack.c.bf16 %v4512_v2, %v4504_v58  ;;  %v4947_v58 = vld [vmem:[#allocation6 + $0x50] sm:$0xff]  ;;  %v4954_v2 = vld [vmem:[#allocation6 + $0x88] sm:$0xff] }
 0x850   :  { %v8926_v6 = vpack.c.bf16 %v4509_v60, %v4501_v4  ;;  %v4956_v4 = vld [vmem:[#allocation6 + $0x98] sm:$0xff] }
 0x851   :  { %8907 = vmatpush1.bf16.msra.mxu0 %v8906_v3  ;;  %8971 = vmatpush1.bf16.msra.mxu1 %v8970_v50  ;;  %v4520_v3 = vld [vmem:[#allocation6 + $0x6b8] sm:$0xff] }
 0x852   :  { %8909 = vmatprep.subr.bf16.mxu0 %v8908_v55  ;;  %8973 = vmatprep.subr.bf16.mxu1 %v8972_v10  ;;  %v4528_v50 = vld [vmem:[#allocation6 + $0x6f8] sm:$0xff]  ;;  %v4517_v55 = vld [vmem:[#allocation6 + $0x6a0] sm:$0xff] }
 0x853   :  { %v4525_v10 = vld [vmem:[#allocation6 + $0x6e0] sm:$0xff]  ;;  %v8992_v13 = vpack.c.bf16 %v4528_v50, %v4520_v3  ;;  %v4964_v60 = vld [vmem:[#allocation6 + $0xd8] sm:$0xff]  ;;  %v4970_v3 = vld [vmem:[#allocation6 + $0x108] sm:$0xff] }
 0x854   :  { %v8930_v17 = vpack.c.bf16 %v4525_v10, %v4517_v55  ;;  %v4978_v50 = vld [vmem:[#allocation6 + $0x148] sm:$0xff]  ;;  %v4972_v55 = vld [vmem:[#allocation6 + $0x118] sm:$0xff] }
 0x855   :  { %8911 = vmatpush1.bf16.msra.mxu0 %v8910_v21  ;;  %8975 = vmatpush1.bf16.msra.mxu1 %v8974_v16  ;;  %v4536_v21 = vld [vmem:[#allocation6 + $0x738] sm:$0xff] }
 0x856   :  { %8913 = vmatprep.subr.bf16.mxu0 %v8912_v28  ;;  %8977 = vmatprep.subr.bf16.mxu1 %v8976_v20  ;;  %v4544_v16 = vld [vmem:[#allocation6 + $0x778] sm:$0xff]  ;;  %v4533_v28 = vld [vmem:[#allocation6 + $0x720] sm:$0xff] }
 0x857   :  { %v4541_v20 = vld [vmem:[#allocation6 + $0x760] sm:$0xff]  ;;  %v8996_v24 = vpack.c.bf16 %v4544_v16, %v4536_v21  ;;  %v4980_v10 = vld [vmem:[#allocation6 + $0x158] sm:$0xff]  ;;  %v4986_v21 = vld [vmem:[#allocation6 + $0x188] sm:$0xff] }
 0x858   :  { %v8934_v45 = vpack.c.bf16 %v4541_v20, %v4533_v28  ;;  %v4994_v16 = vld [vmem:[#allocation6 + $0x1c8] sm:$0xff]  ;;  %v4996_v20 = vld [vmem:[#allocation6 + $0x1d8] sm:$0xff] }
 0x859   :  { %8915 = vmatpush1.bf16.msra.mxu0 %v8914_v33  ;;  %8979 = vmatpush1.bf16.msra.mxu1 %v8978_v34  ;;  %v4552_v33 = vld [vmem:[#allocation6 + $0x7b8] sm:$0xff]  ;;  %v9016_v28 = vpack.c.bf16 %v4994_v16, %v4986_v21  ;;  %v5066_v21 = vld [vmem:[#allocation6 + $0x408] sm:$0xff] }
 0x85a   :  { %8917 = vmatprep.subr.bf16.mxu0 %v8916_v46  ;;  %8981 = vmatprep.subr.bf16.mxu1 %v8980_v32  ;;  %v4560_v34 = vld [vmem:[#allocation6 + $0x7f8] sm:$0xff]  ;;  %v4549_v46 = vld [vmem:[#allocation6 + $0x7a0] sm:$0xff]  ;;  %v8936_v32 = vpack.c.bf16 %v4558_v30, %v4550_v29  ;;  %v4995_v30 = vld [vmem:[#allocation6 + $0x1d0] sm:$0xff] }
 0x85b   :  { %v9000_v41 = vpack.c.bf16 %v4560_v34, %v4552_v33  ;;  %v8938_v43 = vpack.c.bf16 %v4557_v12, %v4549_v46  ;;  %v9082_v33 = vpack.c.bf16 %v4995_v30, %v4987_v27  ;;  %v5002_v34 = vld [vmem:[#allocation6 + $0x208] sm:$0xff]  ;;  %v5009_v12 = vld [vmem:[#allocation6 + $0x240] sm:$0xff]  ;;  %v5067_v27 = vld [vmem:[#allocation6 + $0x410] sm:$0xff] }
 0x85c   :  { %v5074_v16 = vld [vmem:[#allocation6 + $0x448] sm:$0xff]  ;;  %v5075_v30 = vld [vmem:[#allocation6 + $0x450] sm:$0xff] }
 0x85d   :  { %8919 = vmatpush1.bf16.msra.mxu0 %v8918_v51  ;;  %8983 = vmatpush1.bf16.msra.mxu1 %v8982_v54  ;;  %v4938_v51 = vld [vmem:[#allocation6 + $0x8] sm:$0xff] }
 0x85e   :  { %8921 = vmatprep.subr.bf16.mxu0 %v8920_v49  ;;  %8985 = vmatprep.subr.bf16.mxu1 %v8984_v36  ;;  %v4946_v54 = vld [vmem:[#allocation6 + $0x48] sm:$0xff]  ;;  %v4948_v49 = vld [vmem:[#allocation6 + $0x58] sm:$0xff]  ;;  %v4937_v36 = vld [vmem:[#allocation6] sm:$0xff] }
 0x85f   :  { %v9004_v48 = vpack.c.bf16 %v4946_v54, %v4938_v51  ;;  %v9068_v53 = vpack.c.bf16 %v4948_v49, %v4940_v47  ;;  %v9006_v56 = vpack.c.bf16 %v4945_v52, %v4937_v36  ;;  %v5018_v51 = vld [vmem:[#allocation6 + $0x288] sm:$0xff]  ;;  %v5028_v49 = vld [vmem:[#allocation6 + $0x2d8] sm:$0xff] }
 0x860   :  { %v5026_v47 = vld [vmem:[#allocation6 + $0x2c8] sm:$0xff] }
 0x861   :  { %8923 = vmatpush1.bf16.msra.mxu0 %v8922_v9  ;;  %8987 = vmatpush1.bf16.msra.mxu1 %v8986_v0  ;;  %v9070_v9 = vpack.c.bf16 %v4947_v58, %v4939_v57  ;;  %v4962_v0 = vld [vmem:[#allocation6 + $0xc8] sm:$0xff]  ;;  %v9024_v36 = vpack.c.bf16 %v5026_v47, %v5018_v51  ;;  %v5019_v57 = vld [vmem:[#allocation6 + $0x290] sm:$0xff]  ;;  %v5100_v47 = vld [vmem:[#allocation6 + $0x518] sm:$0xff] }
 0x862   :  { %8925 = vmatprep.subr.bf16.mxu0 %v8924_v61  ;;  %8989 = vmatprep.subr.bf16.mxu1 %v8988_v62  ;;  %v9072_v61 = vpack.c.bf16 %v4964_v60, %v4956_v4  ;;  %v4953_v62 = vld [vmem:[#allocation6 + $0x80] sm:$0xff]  ;;  %v5098_v51 = vld [vmem:[#allocation6 + $0x508] sm:$0xff] }
 0x863   :  { %v9010_v8 = vpack.c.bf16 %v4961_v63, %v4953_v62  ;;  %v5033_v62 = vld [vmem:[#allocation6 + $0x300] sm:$0xff] }
 0x865   :  { %8927 = vmatpush1.bf16.msra.mxu0 %v8926_v6  ;;  %8991 = vmatpush1.bf16.msra.mxu1 %v8990_v7  ;;  %v9074_v6 = vpack.c.bf16 %v4963_v38, %v4955_v31  ;;  %v9012_v7 = vpack.c.bf16 %v4978_v50, %v4970_v3  ;;  %v5041_v31 = vld [vmem:[#allocation6 + $0x340] sm:$0xff]  ;;  %v5043_v38 = vld [vmem:[#allocation6 + $0x350] sm:$0xff]  ;;  %v5050_v50 = vld [vmem:[#allocation6 + $0x388] sm:$0xff] }
 0x866   :  { %8929 = vmatprep.subr.bf16.mxu0 %v8928_v11  ;;  %8993 = vmatprep.subr.bf16.mxu1 %v8992_v13  ;;  %v4969_v11 = vld [vmem:[#allocation6 + $0x100] sm:$0xff]  ;;  %v9076_v13 = vpack.c.bf16 %v4980_v10, %v4972_v55  ;;  %v9030_v3 = vpack.c.bf16 %v5041_v31, %v5033_v62 }
 0x867   :  { %v9014_v35 = vpack.c.bf16 %v4977_v14, %v4969_v11  ;;  %v5060_v11 = vld [vmem:[#allocation6 + $0x3d8] sm:$0xff]  ;;  %v5057_v14 = vld [vmem:[#allocation6 + $0x3c0] sm:$0xff] }
 0x868   :  { %v5121_v31 = vld [vmem:[#allocation6 + $0x5c0] sm:$0xff] }
 0x869   :  { %8931 = vmatpush1.bf16.msra.mxu0 %v8930_v17  ;;  %8995 = vmatpush1.bf16.msra.mxu1 %v8994_v18  ;;  %v4988_v17 = vld [vmem:[#allocation6 + $0x198] sm:$0xff]  ;;  %v9078_v18 = vpack.c.bf16 %v4979_v25, %v4971_v15  ;;  %v5051_v25 = vld [vmem:[#allocation6 + $0x390] sm:$0xff] }
 0x86a   :  { %8933 = vmatprep.subr.bf16.mxu0 %v8932_v22  ;;  %8997 = vmatprep.subr.bf16.mxu1 %v8996_v24  ;;  %v9080_v22 = vpack.c.bf16 %v4996_v20, %v4988_v17  ;;  %v4985_v24 = vld [vmem:[#allocation6 + $0x180] sm:$0xff]  ;;  %v5068_v17 = vld [vmem:[#allocation6 + $0x418] sm:$0xff] }
 0x86b   :  { %v9018_v29 = vpack.c.bf16 %v4993_v26, %v4985_v24  ;;  %v5065_v24 = vld [vmem:[#allocation6 + $0x400] sm:$0xff] }
 0x86c   :  { %v5073_v26 = vld [vmem:[#allocation6 + $0x440] sm:$0xff] }
 0x86d   :  { %8935 = vmatpush1.bf16.msra.mxu0 %v8934_v45  ;;  %8999 = vmatpush1.bf16.msra.mxu1 %v8998_v5  ;;  %v5010_v45 = vld [vmem:[#allocation6 + $0x248] sm:$0xff]  ;;  %v5004_v5 = vld [vmem:[#allocation6 + $0x218] sm:$0xff] }
 0x86e   :  { %8937 = vmatprep.subr.bf16.mxu0 %v8936_v32  ;;  %9001 = vmatprep.subr.bf16.mxu1 %v9000_v41  ;;  %v9020_v46 = vpack.c.bf16 %v5010_v45, %v5002_v34  ;;  %v5012_v32 = vld [vmem:[#allocation6 + $0x258] sm:$0xff]  ;;  %v5001_v41 = vld [vmem:[#allocation6 + $0x200] sm:$0xff]  ;;  %v5090_v34 = vld [vmem:[#allocation6 + $0x4c8] sm:$0xff] }
 0x86f   :  { %v9084_v19 = vpack.c.bf16 %v5012_v32, %v5004_v5  ;;  %v9022_v42 = vpack.c.bf16 %v5009_v12, %v5001_v41  ;;  %v5084_v45 = vld [vmem:[#allocation6 + $0x498] sm:$0xff]  ;;  %v9102_v32 = vpack.c.bf16 %v5075_v30, %v5067_v27  ;;  %v5081_v12 = vld [vmem:[#allocation6 + $0x480] sm:$0xff]  ;;  %v5139_v27 = vld [vmem:[#allocation6 + $0x650] sm:$0xff] }
 0x870   :  { %v5092_v5 = vld [vmem:[#allocation6 + $0x4d8] sm:$0xff]  ;;  %v5154_v30 = vld [vmem:[#allocation6 + $0x6c8] sm:$0xff] }
 0x871   :  { %8939 = vmatpush1.bf16.msra.mxu0 %v8938_v43  ;;  %9003 = vmatpush1.bf16.msra.mxu1 %v9002_v44  ;;  %v5003_v43 = vld [vmem:[#allocation6 + $0x210] sm:$0xff] }
 0x872   :  { %9005 = vmatprep.subr.bf16.mxu0 %v9004_v48  ;;  %9069 = vmatprep.subr.bf16.mxu1 %v9068_v53  ;;  %v5011_v44 = vld [vmem:[#allocation6 + $0x250] sm:$0xff]  ;;  %v5020_v48 = vld [vmem:[#allocation6 + $0x298] sm:$0xff]  ;;  %v5017_v53 = vld [vmem:[#allocation6 + $0x280] sm:$0xff] }
 0x873   :  { %v9086_v54 = vpack.c.bf16 %v5011_v44, %v5003_v43  ;;  %v9088_v52 = vpack.c.bf16 %v5028_v49, %v5020_v48  ;;  %v9104_v43 = vpack.c.bf16 %v5092_v5, %v5084_v45  ;;  %v5091_v44 = vld [vmem:[#allocation6 + $0x4d0] sm:$0xff]  ;;  %v5108_v48 = vld [vmem:[#allocation6 + $0x558] sm:$0xff] }
 0x874   :  { %4773 = vmatmul.mubr.f32.vlgmr.msra.gmra.mrb[36].mxu0 %v10374_v40  ;;  %4844 = vmatmul.mubr.f32.vlgmr.msra.gmra.mrb[48].mxu1 %v10374_v40  ;;  %v9008_v40 = vpack.c.bf16 %v4962_v0, %v4954_v2  ;;  %v5027_v2 = vld [vmem:[#allocation6 + $0x2d0] sm:$0xff]  ;;  %v5042_v0 = vld [vmem:[#allocation6 + $0x348] sm:$0xff]  ;;  %v5156_v45 = vld [vmem:[#allocation6 + $0x6d8] sm:$0xff] }
 0x875   :  { %9007 = vmatpush1.bf16.msra.mxu0 %v9006_v56  ;;  %9071 = vmatpush1.bf16.msra.mxu1 %v9070_v9  ;;  %v5025_v56 = vld [vmem:[#allocation6 + $0x2c0] sm:$0xff]  ;;  %v5034_v9 = vld [vmem:[#allocation6 + $0x308] sm:$0xff]  ;;  %v9090_v4 = vpack.c.bf16 %v5027_v2, %v5019_v57  ;;  %v5099_v57 = vld [vmem:[#allocation6 + $0x510] sm:$0xff] }
 0x876   :  { %9009 = vmatprep.subr.bf16.mxu0 %v9008_v40  ;;  %9073 = vmatprep.subr.bf16.mxu1 %v9072_v61  ;;  %v9026_v58 = vpack.c.bf16 %v5025_v56, %v5017_v53  ;;  %v9028_v60 = vpack.c.bf16 %v5042_v0, %v5034_v9  ;;  %v5036_v40 = vld [vmem:[#allocation6 + $0x318] sm:$0xff]  ;;  %v5097_v53 = vld [vmem:[#allocation6 + $0x500] sm:$0xff]  ;;  %v5107_v2 = vld [vmem:[#allocation6 + $0x550] sm:$0xff] }
 0x877   :  { %v5044_v61 = vld [vmem:[#allocation6 + $0x358] sm:$0xff]  ;;  %v5105_v56 = vld [vmem:[#allocation6 + $0x540] sm:$0xff]  ;;  %v5114_v9 = vld [vmem:[#allocation6 + $0x588] sm:$0xff] }
 0x878   :  { %v9092_v63 = vpack.c.bf16 %v5044_v61, %v5036_v40  ;;  %v5122_v0 = vld [vmem:[#allocation6 + $0x5c8] sm:$0xff]  ;;  %v9046_v40 = vpack.c.bf16 %v5105_v56, %v5097_v53  ;;  %v9110_v61 = vpack.c.bf16 %v5107_v2, %v5099_v57  ;;  %v5161_v57 = vld [vmem:[#allocation6 + $0x700] sm:$0xff]  ;;  %v5163_v2 = vld [vmem:[#allocation6 + $0x710] sm:$0xff] }
 0x879   :  { %9011 = vmatpush1.bf16.msra.mxu0 %v9010_v8  ;;  %9075 = vmatpush1.bf16.msra.mxu1 %v9074_v6  ;;  %v5035_v8 = vld [vmem:[#allocation6 + $0x310] sm:$0xff]  ;;  %v5058_v6 = vld [vmem:[#allocation6 + $0x3c8] sm:$0xff]  ;;  %v9048_v62 = vpack.c.bf16 %v5122_v0, %v5114_v9 }
 0x87a   :  { %9013 = vmatprep.subr.bf16.mxu0 %v9012_v7  ;;  %9077 = vmatprep.subr.bf16.mxu1 %v9076_v13  ;;  %v5052_v7 = vld [vmem:[#allocation6 + $0x398] sm:$0xff]  ;;  %v9094_v55 = vpack.c.bf16 %v5043_v38, %v5035_v8  ;;  %v9032_v10 = vpack.c.bf16 %v5058_v6, %v5050_v50  ;;  %v5049_v13 = vld [vmem:[#allocation6 + $0x380] sm:$0xff]  ;;  %v5115_v8 = vld [vmem:[#allocation6 + $0x590] sm:$0xff] }
 0x87b   :  { %v9096_v15 = vpack.c.bf16 %v5060_v11, %v5052_v7  ;;  %v5130_v50 = vld [vmem:[#allocation6 + $0x608] sm:$0xff]  ;;  %v5132_v11 = vld [vmem:[#allocation6 + $0x618] sm:$0xff]  ;;  %v5171_v0 = vld [vmem:[#allocation6 + $0x750] sm:$0xff] }
 0x87c   :  { %v5138_v6 = vld [vmem:[#allocation6 + $0x648] sm:$0xff] }
 0x87d   :  { %9015 = vmatpush1.bf16.msra.mxu0 %v9014_v35  ;;  %9079 = vmatpush1.bf16.msra.mxu1 %v9078_v18  ;;  %v5059_v35 = vld [vmem:[#allocation6 + $0x3d0] sm:$0xff]  ;;  %v5076_v18 = vld [vmem:[#allocation6 + $0x458] sm:$0xff] }
 0x87e   :  { %9017 = vmatprep.subr.bf16.mxu0 %v9016_v28  ;;  %9081 = vmatprep.subr.bf16.mxu1 %v9080_v22  ;;  %v9034_v28 = vpack.c.bf16 %v5057_v14, %v5049_v13  ;;  %v9098_v20 = vpack.c.bf16 %v5059_v35, %v5051_v25  ;;  %v9036_v22 = vpack.c.bf16 %v5074_v16, %v5066_v21  ;;  %v5140_v13 = vld [vmem:[#allocation6 + $0x658] sm:$0xff]  ;;  %v4851_v25 = vld [vmem:[#allocation2 + $0xc8] sm:$0xf] }
 0x881   :  { %9019 = vmatpush1.bf16.msra.mxu0 %v9018_v29  ;;  %9083 = vmatpush1.bf16.msra.mxu1 %v9082_v33  ;;  %v9100_v29 = vpack.c.bf16 %v5076_v18, %v5068_v17  ;;  %v5082_v33 = vld [vmem:[#allocation6 + $0x488] sm:$0xff]  ;;  %v9052_v18 = vpack.c.bf16 %v5138_v6, %v5130_v50  ;;  %v5185_v50 = vld [vmem:[#allocation6 + $0x7c0] sm:$0xff]  ;;  %v5179_v6 = vld [vmem:[#allocation6 + $0x790] sm:$0xff] }
 0x882   :  { %9021 = vmatprep.subr.bf16.mxu0 %v9020_v46  ;;  %9085 = vmatprep.subr.bf16.mxu1 %v9084_v19  ;;  %v9038_v46 = vpack.c.bf16 %v5073_v26, %v5065_v24  ;;  %v9040_v41 = vpack.c.bf16 %v5090_v34, %v5082_v33  ;;  %v5089_v19 = vld [vmem:[#allocation6 + $0x4c0] sm:$0xff]  ;;  %v9116_v26 = vpack.c.bf16 %v5140_v13, %v5132_v11  ;;  %v5148_v34 = vld [vmem:[#allocation6 + $0x698] sm:$0xff]  ;;  %v4942_v11 = vld [vmem:[#allocation6 + $0x28] sm:$0xff] }
 0x883   :  { %v9042_v49 = vpack.c.bf16 %v5089_v19, %v5081_v12  ;;  %v5153_v12 = vld [vmem:[#allocation6 + $0x6c0] sm:$0xff]  ;;  %v5147_v19 = vld [vmem:[#allocation6 + $0x690] sm:$0xff]  ;;  %v4950_v13 = vld [vmem:[#allocation6 + $0x68] sm:$0xff] }
 0x885   :  { %9023 = vmatpush1.bf16.msra.mxu0 %v9022_v42  ;;  %9087 = vmatpush1.bf16.msra.mxu1 %v9086_v54  ;;  %v5083_v42 = vld [vmem:[#allocation6 + $0x490] sm:$0xff]  ;;  %v5106_v54 = vld [vmem:[#allocation6 + $0x548] sm:$0xff] }
 0x886   :  { %9025 = vmatprep.subr.bf16.mxu0 %v9024_v36  ;;  %9089 = vmatprep.subr.bf16.mxu1 %v9088_v52  ;;  %v9106_v36 = vpack.c.bf16 %v5091_v44, %v5083_v42  ;;  %v9044_v52 = vpack.c.bf16 %v5106_v54, %v5098_v51  ;;  %v9120_v42 = vpack.c.bf16 %v5156_v45, %v5148_v34  ;;  %v5162_v44 = vld [vmem:[#allocation6 + $0x708] sm:$0xff] }
 0x887   :  { %v5170_v51 = vld [vmem:[#allocation6 + $0x748] sm:$0xff] }
 0x888   :  { %v4852_v54 = vld [vmem:[#allocation2 + $0xd0] sm:$0xf]  ;;  %v9060_v56 = vpack.c.bf16 %v5170_v51, %v5162_v44  ;;  %v4859_v51 = vld [vmem:[#allocation2 + $0x28] sm:$0xf0] }
 0x889   :  { %9027 = vmatpush1.bf16.msra.mxu0 %v9026_v58  ;;  %9091 = vmatpush1.bf16.msra.mxu1 %v9090_v4  ;;  %v9108_v58 = vpack.c.bf16 %v5108_v48, %v5100_v47  ;;  %v5116_v4 = vld [vmem:[#allocation6 + $0x598] sm:$0xff] }
 0x88a   :  { %9029 = vmatprep.subr.bf16.mxu0 %v9028_v60  ;;  %9093 = vmatprep.subr.bf16.mxu1 %v9092_v63  ;;  %v5124_v60 = vld [vmem:[#allocation6 + $0x5d8] sm:$0xff]  ;;  %v5113_v63 = vld [vmem:[#allocation6 + $0x580] sm:$0xff] }
 0x88b   :  { %v9112_v38 = vpack.c.bf16 %v5124_v60, %v5116_v4  ;;  %v9050_v21 = vpack.c.bf16 %v5121_v31, %v5113_v63  ;;  %v5164_v47 = vld [vmem:[#allocation6 + $0x718] sm:$0xff]  ;;  %v5178_v4 = vld [vmem:[#allocation6 + $0x788] sm:$0xff] }
 0x88c   :  { %v5172_v48 = vld [vmem:[#allocation6 + $0x758] sm:$0xff]  ;;  %v5186_v60 = vld [vmem:[#allocation6 + $0x7c8] sm:$0xff] }
 0x88d   :  { %9031 = vmatpush1.bf16.msra.mxu0 %v9030_v3  ;;  %9095 = vmatpush1.bf16.msra.mxu1 %v9094_v55  ;;  %v5123_v3 = vld [vmem:[#allocation6 + $0x5d0] sm:$0xff]  ;;  %v4850_v55 = vld [vmem:[#allocation2 + $0xc0] sm:$0xf]  ;;  %v9124_v9 = vpack.c.bf16 %v5172_v48, %v5164_v47 }
 0x88e   :  { %9033 = vmatprep.subr.bf16.mxu0 %v9032_v10  ;;  %9097 = vmatprep.subr.bf16.mxu1 %v9096_v15  ;;  %v9114_v17 = vpack.c.bf16 %v5123_v3, %v5115_v8  ;;  %v9126_v8 = vpack.c.bf16 %v5171_v0, %v5163_v2  ;;  %v5177_v3 = vld [vmem:[#allocation6 + $0x780] sm:$0xff] }
 0x891   :  { %9035 = vmatpush1.bf16.msra.mxu0 %v9034_v28  ;;  %9099 = vmatpush1.bf16.msra.mxu1 %v9098_v20  ;;  %v5129_v28 = vld [vmem:[#allocation6 + $0x600] sm:$0xff] }
 0x892   :  { %9037 = vmatprep.subr.bf16.mxu0 %v9036_v22  ;;  %9101 = vmatprep.subr.bf16.mxu1 %v9100_v29  ;;  %v5137_v20 = vld [vmem:[#allocation6 + $0x640] sm:$0xff]  ;;  %v5131_v22 = vld [vmem:[#allocation6 + $0x610] sm:$0xff]  ;;  %v5146_v29 = vld [vmem:[#allocation6 + $0x688] sm:$0xff] }
 0x893   :  { %v9054_v5 = vpack.c.bf16 %v5137_v20, %v5129_v28 }
 0x895   :  { %9039 = vmatpush1.bf16.msra.mxu0 %v9038_v46  ;;  %9103 = vmatpush1.bf16.msra.mxu1 %v9102_v32  ;;  %v9118_v46 = vpack.c.bf16 %v5139_v27, %v5131_v22  ;;  %v9056_v32 = vpack.c.bf16 %v5154_v30, %v5146_v29 }
 0x896   :  { %9041 = vmatprep.subr.bf16.mxu0 %v9040_v41  ;;  %9105 = vmatprep.subr.bf16.mxu1 %v9104_v43  ;;  %v5145_v41 = vld [vmem:[#allocation6 + $0x680] sm:$0xff]  ;;  %v5155_v43 = vld [vmem:[#allocation6 + $0x6d0] sm:$0xff] }
 0x897   :  { %v9122_v53 = vpack.c.bf16 %v5155_v43, %v5147_v19 }
 0x899   :  { %9043 = vmatpush1.bf16.msra.mxu0 %v9042_v49  ;;  %9107 = vmatpush1.bf16.msra.mxu1 %v9106_v36  ;;  %v4853_v36 = vld [vmem:[#allocation2 + $0xd8] sm:$0xf] }
 0x89a   :  { %9045 = vmatprep.subr.bf16.mxu0 %v9044_v52  ;;  %9109 = vmatprep.subr.bf16.mxu1 %v9108_v58  ;;  %v9058_v52 = vpack.c.bf16 %v5153_v12, %v5145_v41  ;;  %v5169_v58 = vld [vmem:[#allocation6 + $0x740] sm:$0xff] }
 0x89b   :  { %v9062_v31 = vpack.c.bf16 %v5169_v58, %v5161_v57 }
 0x89d   :  { %9047 = vmatpush1.bf16.msra.mxu0 %v9046_v40  ;;  %9111 = vmatpush1.bf16.msra.mxu1 %v9110_v61  ;;  %v5180_v61 = vld [vmem:[#allocation6 + $0x798] sm:$0xff] }
 0x89e   :  { %9049 = vmatprep.subr.bf16.mxu0 %v9048_v62  ;;  %9113 = vmatprep.subr.bf16.mxu1 %v9112_v38  ;;  %v5188_v62 = vld [vmem:[#allocation6 + $0x7d8] sm:$0xff]  ;;  %v9064_v38 = vpack.c.bf16 %v5186_v60, %v5178_v4 }
 0x8a1   :  { %9051 = vmatpush1.bf16.msra.mxu0 %v9050_v21  ;;  %9115 = vmatpush1.bf16.msra.mxu1 %v9114_v17  ;;  %v9066_v21 = vpack.c.bf16 %v5185_v50, %v5177_v3 }
 0x8a2   :  { %9053 = vmatprep.subr.bf16.mxu0 %v9052_v18  ;;  %9117 = vmatprep.subr.bf16.mxu1 %v9116_v26  ;;  %v9132_v18 = vpack.c.bf16 %v4950_v13, %v4942_v11  ;;  %v4898_v26 = vrot.slane %v10367_v59, 4  ;;  %v4951_v11 = vld [vmem:[#allocation6 + $0x70] sm:$0xff] }
 0x8a5   :  { %9055 = vmatpush1.bf16.msra.mxu0 %v9054_v5  ;;  %9119 = vmatpush1.bf16.msra.mxu1 %v9118_v46 }
 0x8a6   :  { %9057 = vmatprep.subr.bf16.mxu0 %v9056_v32  ;;  %9121 = vmatprep.subr.bf16.mxu1 %v9120_v42  ;;  %v4858_v42 = vld [vmem:[#allocation2 + $0x20] sm:$0xf0] }
 0x8a9   :  { %9059 = vmatpush1.bf16.msra.mxu0 %v9058_v52  ;;  %9123 = vmatpush1.bf16.msra.mxu1 %v9122_v53 }
 0x8aa   :  { %9061 = vmatprep.subr.bf16.mxu0 %v9060_v56  ;;  %9125 = vmatprep.subr.bf16.mxu1 %v9124_v9  ;;  %v4861_v56 = vld [vmem:[#allocation2 + $0x38] sm:$0xf0] }
 0x8ad   :  { %9063 = vmatpush1.bf16.msra.mxu0 %v9062_v31  ;;  %9127 = vmatpush1.bf16.msra.mxu1 %v9126_v8 }
 0x8ae   :  { %9065 = vmatprep.subr.bf16.mxu0 %v9064_v38 }
 0x8b1   :  { %9067 = vmatpush1.bf16.msra.mxu0 %v9066_v21 }
 0x8b2   :  { %9133 = vmatprep.subr.bf16.mxu0 %v9132_v18  ;;  %v4965_v18 = vld [vmem:[#allocation6 + $0xe0] sm:$0xff] }
 0x907   :  { %v4632_v7 = vpop.f32.mrb[34].mxu0  ;;  %v4703_v10 = vpop.f32.mrb[46].mxu1 }
 0x908   :  { %v4854_v14 = vadd.f32 %v4850_v55, %v4632_v7  ;;  %v4634_v15 = vpop.f32.mrb[35].mxu0  ;;  %v4705_v35 = vpop.f32.mrb[47].mxu1  ;;  %v4856_v49 = vadd.f32 %v4852_v54, %v4703_v10  ;;  %v9128_v55 = vpack.c.bf16 %v5188_v62, %v5180_v61  ;;  %v5187_v10 = vld [vmem:[#allocation6 + $0x7d0] sm:$0xff]  ;;  %v4925_v62 = vrot.slane %v10371_v23, 4  ;;  %v4968_v23 = vld [vmem:[#allocation6 + $0xf8] sm:$0xff] }
 0x909   :  { %v4855_v16 = vadd.f32 %v4851_v25, %v4634_v15  ;;  %v4857_v40 = vadd.f32 %v4853_v36, %v4705_v35  ;;  %v4944_v15 = vld [vmem:[#allocation6 + $0x38] sm:$0xff]  ;;  %v9130_v17 = vpack.c.bf16 %v5187_v10, %v5179_v6  ;;  %v4860_v36 = vld [vmem:[#allocation2 + $0x30] sm:$0xf0]  ;;  %v4941_v6 = vld [vmem:[#allocation6 + $0x20] sm:$0xff] }
 0x90a   :  { %v7104_v24 = vmul.f32 -1.442695, %v4854_v14  ;;  %v7106_v63 = vmul.f32 -1.442695, %v4856_v49  ;;  %v4952_v25 = vld [vmem:[#allocation6 + $0x78] sm:$0xff]  ;;  %9129 = vmatprep.subr.bf16.mxu1 %v9128_v55  ;;  %v4949_v55 = vld [vmem:[#allocation6 + $0x60] sm:$0xff] }
 0x90b   :  { %v7105_v33 = vmul.f32 -1.442695, %v4855_v16  ;;  %v9196_v28 = vpack.c.bf16 %v4952_v25, %v4944_v15  ;;  %9131 = vmatpush1.bf16.msra.mxu1 %v9130_v17  ;;  %v4943_v10 = vld [vmem:[#allocation6 + $0x30] sm:$0xff]  ;;  %v4966_v15 = vld [vmem:[#allocation6 + $0xe8] sm:$0xff]  ;;  %v4960_v25 = vld [vmem:[#allocation6 + $0xb8] sm:$0xff]  ;;  %v9134_v21 = vpack.c.bf16 %v4949_v55, %v4941_v6 }
 0x90c   :  { %9750 = vpow2.f32 %v7104_v24  ;;  %v4957_v17 = vld [vmem:[#allocation6 + $0xa0] sm:$0xff]  ;;  %v5032_v6 = vld [vmem:[#allocation6 + $0x2f8] sm:$0xff] }
 0x90d   :  { %9752 = vpow2.f32 %v7105_v33  ;;  %9197 = vmatprep.subr.bf16.mxu1 %v9196_v28  ;;  %v4959_v28 = vld [vmem:[#allocation6 + $0xb0] sm:$0xff] }
 0x90e   :  { %9754 = vtanh.f32 %v4857_v40 }
 0x90f   :  { %9756 = vpow2.f32 %v7106_v63 }
 0x916   :  { %v9751_v7 = vpop.eup %9750 }
 0x917   :  { %v4887_v14 = vadd.f32 1.0, %v9751_v7  ;;  %v9753_v35 = vpop.eup %9752 }
 0x918   :  { %v4888_v16 = vadd.f32 1.0, %v9753_v35  ;;  %v9755_v20 = vpop.eup %9754 }
 0x919   :  { %9758 = vrcp.f32 %v4887_v14  ;;  %v9757_v22 = vpop.eup %9756  ;;  %v4958_v14 = vld [vmem:[#allocation6 + $0xa8] sm:$0xff] }
 0x91a   :  { %9760 = vrcp.f32 %v4888_v16  ;;  %v4889_v30 = vadd.f32 1.0, %v9757_v22  ;;  %v9198_v16 = vpack.c.bf16 %v4951_v11, %v4943_v10  ;;  %v4974_v22 = vld [vmem:[#allocation6 + $0x128] sm:$0xff]  ;;  %v5021_v10 = vld [vmem:[#allocation6 + $0x2a0] sm:$0xff] }
 0x91b   :  { %v5029_v11 = vld [vmem:[#allocation6 + $0x2e0] sm:$0xff] }
 0x91c   :  { %9762 = vrcp.f32 %v4889_v30  ;;  %v4984_v30 = vld [vmem:[#allocation6 + $0x178] sm:$0xff] }
 0x923   :  { %v9759_v24 = vpop.eup %9758 }
 0x924   :  { %v4901_v27 = vmul.f32 %v9759_v24, %v9755_v20  ;;  %v9761_v29 = vpop.eup %9760  ;;  %v4967_v20 = vld [vmem:[#allocation6 + $0xf0] sm:$0xff]  ;;  %v9136_v24 = vpack.c.bf16 %v4966_v15, %v4958_v14 }
 0x925   :  { %v4900_v33 = vmul.f32 %v9761_v29, %v4898_v26  ;;  %v9200_v26 = vpack.c.bf16 %v4968_v23, %v4960_v25  ;;  %v4976_v29 = vld [vmem:[#allocation6 + $0x138] sm:$0xff]  ;;  %v5023_v15 = vld [vmem:[#allocation6 + $0x2b0] sm:$0xff]  ;;  %v5038_v23 = vld [vmem:[#allocation6 + $0x328] sm:$0xff] }
 0x926   :  { %v9763_v45 = vpop.eup %9762  ;;  %v5031_v25 = vld [vmem:[#allocation6 + $0x2f0] sm:$0xff] }
 0x927   :  { %v10381_v34 = vadd.f32 %v4901_v27, %v4900_v33  ;;  %v4982_v27 = vld [vmem:[#allocation6 + $0x168] sm:$0xff]  ;;  %v9138_v33 = vpack.c.bf16 %v4965_v18, %v4957_v17  ;;  %v9154_v17 = vpack.c.bf16 %v5029_v11, %v5021_v10  ;;  %v9218_v18 = vpack.c.bf16 %v5031_v25, %v5023_v15 }
 0x929   :  { %9764 = vtanh.f32 %v10381_v34 }
 0x933   :  { %v9765_v5 = vpop.eup %9764 }
 0x934   :  { %v10384_v46 = vmul.f32 %v9765_v5, %v9763_v45  ;;  %v9202_v45 = vpack.c.bf16 %v4967_v20, %v4959_v28  ;;  %v4973_v5 = vld [vmem:[#allocation6 + $0x120] sm:$0xff] }
 0x935   :  { %v5037_v28 = vld [vmem:[#allocation6 + $0x320] sm:$0xff] }
 0x936   :  { %4932 = vst [vmem:[#allocation3 + $0x30] sm:$0xf] %v10384_v46  ;;  %v5045_v20 = vld [vmem:[#allocation6 + $0x360] sm:$0xff] }
 0x947   :  { %v4774_v32 = vpop.f32.mrb[36].mxu0  ;;  %v4845_v41 = vpop.f32.mrb[48].mxu1 }
 0x948   :  { %v4866_v12 = vrot.slane %v4774_v32, 4  ;;  %v4776_v19 = vpop.f32.mrb[37].mxu0  ;;  %v4847_v59 = vpop.f32.mrb[49].mxu1  ;;  %v4868_v49 = vrot.slane %v4845_v41, 4  ;;  %v4981_v32 = vld [vmem:[#allocation6 + $0x160] sm:$0xff]  ;;  %v9140_v41 = vpack.c.bf16 %v4982_v27, %v4974_v22  ;;  %v5047_v27 = vld [vmem:[#allocation6 + $0x370] sm:$0xff] }
 0x949   :  { %v4867_v43 = vrot.slane %v4776_v19, 4  ;;  %v4869_v52 = vrot.slane %v4847_v59, 4  ;;  %v4975_v19 = vld [vmem:[#allocation6 + $0x130] sm:$0xff] }
 0x94a   :  { %v4874_v44 = vadd.f32 %v4866_v12, %v4858_v42  ;;  %v4876_v53 = vadd.f32 %v4868_v49, %v4860_v36  ;;  %v9204_v12 = vpack.c.bf16 %v4984_v30, %v4976_v29  ;;  %v4983_v59 = vld [vmem:[#allocation6 + $0x170] sm:$0xff]  ;;  %v4990_v42 = vld [vmem:[#allocation6 + $0x1a8] sm:$0xff]  ;;  %v4997_v49 = vld [vmem:[#allocation6 + $0x1e0] sm:$0xff] }
 0x94b   :  { %v4875_v54 = vadd.f32 %v4867_v43, %v4859_v51  ;;  %v4877_v57 = vadd.f32 %v4869_v52, %v4861_v56  ;;  %v4998_v43 = vld [vmem:[#allocation6 + $0x1e8] sm:$0xff]  ;;  %v5000_v51 = vld [vmem:[#allocation6 + $0x1f8] sm:$0xff]  ;;  %v4999_v56 = vld [vmem:[#allocation6 + $0x1f0] sm:$0xff] }
 0x94c   :  { %v7107_v47 = vmul.f32 -1.442695, %v4874_v44  ;;  %v7109_v58 = vmul.f32 -1.442695, %v4876_v53  ;;  %v4992_v44 = vld [vmem:[#allocation6 + $0x1b8] sm:$0xff]  ;;  %v9144_v36 = vpack.c.bf16 %v4998_v43, %v4990_v42  ;;  %v4991_v53 = vld [vmem:[#allocation6 + $0x1b0] sm:$0xff] }
 0x94d   :  { %v7108_v48 = vmul.f32 -1.442695, %v4875_v54  ;;  %v9142_v54 = vpack.c.bf16 %v4981_v32, %v4973_v5  ;;  %v9208_v52 = vpack.c.bf16 %v5000_v51, %v4992_v44  ;;  %v5054_v29 = vld [vmem:[#allocation6 + $0x3a8] sm:$0xff]  ;;  %v9158_v5 = vpack.c.bf16 %v5045_v20, %v5037_v28  ;;  %v5055_v42 = vld [vmem:[#allocation6 + $0x3b0] sm:$0xff] }
 0x94e   :  { %9766 = vpow2.f32 %v7107_v47  ;;  %v9206_v47 = vpack.c.bf16 %v4983_v59, %v4975_v19  ;;  %v5062_v30 = vld [vmem:[#allocation6 + $0x3e8] sm:$0xff]  ;;  %v5063_v43 = vld [vmem:[#allocation6 + $0x3f0] sm:$0xff] }
 0x94f   :  { %9768 = vpow2.f32 %v7108_v48  ;;  %v4989_v48 = vld [vmem:[#allocation6 + $0x1a0] sm:$0xff]  ;;  %v9160_v19 = vpack.c.bf16 %v5062_v30, %v5054_v29  ;;  %v5070_v44 = vld [vmem:[#allocation6 + $0x428] sm:$0xff]  ;;  %v5119_v29 = vld [vmem:[#allocation6 + $0x5b0] sm:$0xff] }
 0x950   :  { %9770 = vtanh.f32 %v4877_v57  ;;  %v5006_v57 = vld [vmem:[#allocation6 + $0x228] sm:$0xff]  ;;  %v5127_v30 = vld [vmem:[#allocation6 + $0x5f0] sm:$0xff] }
 0x951   :  { %9772 = vpow2.f32 %v7109_v58  ;;  %v5014_v58 = vld [vmem:[#allocation6 + $0x268] sm:$0xff] }
 0x952   :  { %v5078_v51 = vld [vmem:[#allocation6 + $0x468] sm:$0xff] }
 0x958   :  { %v9767_v2 = vpop.eup %9766 }
 0x959   :  { %v4914_v9 = vadd.f32 1.0, %v9767_v2  ;;  %v9769_v0 = vpop.eup %9768  ;;  %v5008_v2 = vld [vmem:[#allocation6 + $0x238] sm:$0xff] }
 0x95a   :  { %v4915_v4 = vadd.f32 1.0, %v9769_v0  ;;  %v9771_v60 = vpop.eup %9770  ;;  %v9146_v0 = vpack.c.bf16 %v4997_v49, %v4989_v48  ;;  %v9226_v49 = vpack.c.bf16 %v5063_v43, %v5055_v42 }
 0x95b   :  { %9774 = vrcp.f32 %v4914_v9  ;;  %v9773_v40 = vpop.eup %9772  ;;  %v5016_v9 = vld [vmem:[#allocation6 + $0x278] sm:$0xff] }
 0x95c   :  { %9776 = vrcp.f32 %v4915_v4  ;;  %v4916_v8 = vadd.f32 1.0, %v9773_v40  ;;  %v9210_v4 = vpack.c.bf16 %v4999_v56, %v4991_v53  ;;  %v5013_v40 = vld [vmem:[#allocation6 + $0x260] sm:$0xff]  ;;  %v9164_v53 = vpack.c.bf16 %v5078_v51, %v5070_v44  ;;  %v5135_v44 = vld [vmem:[#allocation6 + $0x630] sm:$0xff] }
 0x95d   :  { %v5143_v51 = vld [vmem:[#allocation6 + $0x670] sm:$0xff] }
 0x95e   :  { %9778 = vrcp.f32 %v4916_v8  ;;  %v5022_v8 = vld [vmem:[#allocation6 + $0x2a8] sm:$0xff] }
 0x965   :  { %v9775_v61 = vpop.eup %9774 }
 0x966   :  { %v4928_v63 = vmul.f32 %v9775_v61, %v9771_v60  ;;  %v9777_v31 = vpop.eup %9776  ;;  %v5005_v60 = vld [vmem:[#allocation6 + $0x220] sm:$0xff]  ;;  %v9148_v61 = vpack.c.bf16 %v5014_v58, %v5006_v57  ;;  %v5071_v57 = vld [vmem:[#allocation6 + $0x430] sm:$0xff] }
 0x967   :  { %v4927_v38 = vmul.f32 %v9777_v31, %v4925_v62  ;;  %v9212_v62 = vpack.c.bf16 %v5016_v9, %v5008_v2  ;;  %v5015_v31 = vld [vmem:[#allocation6 + $0x270] sm:$0xff]  ;;  %v5086_v2 = vld [vmem:[#allocation6 + $0x4a8] sm:$0xff] }
 0x968   :  { %v9779_v50 = vpop.eup %9778  ;;  %v5079_v58 = vld [vmem:[#allocation6 + $0x470] sm:$0xff]  ;;  %v5094_v9 = vld [vmem:[#allocation6 + $0x4e8] sm:$0xff] }
 0x969   :  { %v10388_v3 = vadd.f32 %v4928_v63, %v4927_v38  ;;  %v5007_v63 = vld [vmem:[#allocation6 + $0x230] sm:$0xff]  ;;  %v5030_v38 = vld [vmem:[#allocation6 + $0x2e8] sm:$0xff] }
 0x96a   :  { %v9214_v55 = vpack.c.bf16 %v5015_v31, %v5007_v63  ;;  %v9168_v63 = vpack.c.bf16 %v5094_v9, %v5086_v2  ;;  %v5151_v2 = vld [vmem:[#allocation6 + $0x6b0] sm:$0xff] }
 0x96b   :  { %9780 = vtanh.f32 %v10388_v3  ;;  %v5159_v9 = vld [vmem:[#allocation6 + $0x6f0] sm:$0xff] }
 0x975   :  { %v9781_v7 = vpop.eup %9780 }
 0x976   :  { %v4931_v13 = vmul.f32 %v9781_v7, %v9779_v50  ;;  %v5024_v50 = vld [vmem:[#allocation6 + $0x2b8] sm:$0xff]  ;;  %v9150_v7 = vpack.c.bf16 %v5013_v40, %v5005_v60  ;;  %v9230_v40 = vpack.c.bf16 %v5079_v58, %v5071_v57 }
 0x977   :  { %v9216_v14 = vpack.c.bf16 %v5032_v6, %v5024_v50  ;;  %v5102_v50 = vld [vmem:[#allocation6 + $0x528] sm:$0xff] }
 0x978   :  { %4933 = vst [vmem:[#allocation3 + $0x8] sm:$0xf0] %v4931_v13  ;;  %v4935_v35 = vrot.slane %v4931_v13, 4  ;;  %v9152_v13 = vpack.c.bf16 %v5030_v38, %v5022_v8  ;;  %v5087_v8 = vld [vmem:[#allocation6 + $0x4b0] sm:$0xff]  ;;  %v5110_v6 = vld [vmem:[#allocation6 + $0x568] sm:$0xff] }
 0x979   :  { %v5095_v38 = vld [vmem:[#allocation6 + $0x4f0] sm:$0xff]  ;;  %v9172_v15 = vpack.c.bf16 %v5110_v6, %v5102_v50 }
 0x97a   :  { %5257 = vmatprep.mubr.f32.mxu0 %v4935_v35  ;;  %5328 = vmatprep.mubr.f32.mxu1 %v4935_v35  ;;  %v9234_v11 = vpack.c.bf16 %v5095_v38, %v5087_v8  ;;  %v5167_v50 = vld [vmem:[#allocation6 + $0x730] sm:$0xff] }
 0x97b   :  { %5258 = vmatmul.mubr.f32.vlgmr.msra.gmra.mrb[38].mxu0 %v10384_v46  ;;  %5329 = vmatmul.mubr.f32.vlgmr.msra.gmra.mrb[50].mxu1 %v10384_v46  ;;  %v5175_v6 = vld [vmem:[#allocation6 + $0x770] sm:$0xff] }
 0x97c   :  { %9135 = vmatpush1.bf16.msra.mxu0 %v9134_v21  ;;  %9199 = vmatpush1.bf16.msra.mxu1 %v9198_v16  ;;  %v5040_v21 = vld [vmem:[#allocation6 + $0x338] sm:$0xff] }
 0x97d   :  { %5399 = vmatprep.mubr.f32.mxu0 %v4935_v35  ;;  %5470 = vmatprep.mubr.f32.mxu1 %v4935_v35  ;;  %v5046_v35 = vld [vmem:[#allocation6 + $0x368] sm:$0xff]  ;;  %v5048_v16 = vld [vmem:[#allocation6 + $0x378] sm:$0xff] }
 0x97e   :  { %9137 = vmatprep.subr.bf16.mxu0 %v9136_v24  ;;  %9201 = vmatprep.subr.bf16.mxu1 %v9200_v26  ;;  %v9156_v22 = vpack.c.bf16 %v5046_v35, %v5038_v23  ;;  %v9220_v24 = vpack.c.bf16 %v5048_v16, %v5040_v21  ;;  %v5039_v26 = vld [vmem:[#allocation6 + $0x330] sm:$0xff]  ;;  %v5118_v21 = vld [vmem:[#allocation6 + $0x5a8] sm:$0xff] }
 0x97f   :  { %v9222_v32 = vpack.c.bf16 %v5047_v27, %v5039_v26  ;;  %v5103_v23 = vld [vmem:[#allocation6 + $0x530] sm:$0xff]  ;;  %v5126_v16 = vld [vmem:[#allocation6 + $0x5e8] sm:$0xff] }
 0x980   :  { %9139 = vmatpush1.bf16.msra.mxu0 %v9138_v33  ;;  %9203 = vmatpush1.bf16.msra.mxu1 %v9202_v45  ;;  %v5056_v33 = vld [vmem:[#allocation6 + $0x3b8] sm:$0xff]  ;;  %v5111_v35 = vld [vmem:[#allocation6 + $0x570] sm:$0xff]  ;;  %v9176_v26 = vpack.c.bf16 %v5126_v16, %v5118_v21 }
 0x981   :  { %9141 = vmatprep.subr.bf16.mxu0 %v9140_v41  ;;  %9205 = vmatprep.subr.bf16.mxu1 %v9204_v12  ;;  %v5064_v45 = vld [vmem:[#allocation6 + $0x3f8] sm:$0xff]  ;;  %v5053_v41 = vld [vmem:[#allocation6 + $0x3a0] sm:$0xff]  ;;  %v9238_v20 = vpack.c.bf16 %v5111_v35, %v5103_v23  ;;  %v5183_v21 = vld [vmem:[#allocation6 + $0x7b0] sm:$0xff] }
 0x982   :  { %v5061_v12 = vld [vmem:[#allocation6 + $0x3e0] sm:$0xff]  ;;  %v9224_v59 = vpack.c.bf16 %v5064_v45, %v5056_v33  ;;  %v5134_v33 = vld [vmem:[#allocation6 + $0x628] sm:$0xff]  ;;  %v5191_v16 = vld [vmem:[#allocation6 + $0x7f0] sm:$0xff] }
 0x983   :  { %v9162_v48 = vpack.c.bf16 %v5061_v12, %v5053_v41  ;;  %v5142_v45 = vld [vmem:[#allocation6 + $0x668] sm:$0xff]  ;;  %v9242_v12 = vpack.c.bf16 %v5127_v30, %v5119_v29  ;;  %v5189_v35 = vld [vmem:[#allocation6 + $0x7e0] sm:$0xff]  ;;  %v5576_v29 = vld [vmem:[#allocation8 + $0x38] sm:$0xff] }
 0x984   :  { %9143 = vmatpush1.bf16.msra.mxu0 %v9142_v54  ;;  %9207 = vmatpush1.bf16.msra.mxu1 %v9206_v47  ;;  %v5072_v54 = vld [vmem:[#allocation6 + $0x438] sm:$0xff]  ;;  %v9180_v42 = vpack.c.bf16 %v5142_v45, %v5134_v33  ;;  %v5573_v45 = vld [vmem:[#allocation8 + $0x20] sm:$0xff] }
 0x985   :  { %9145 = vmatprep.subr.bf16.mxu0 %v9144_v36  ;;  %9209 = vmatprep.subr.bf16.mxu1 %v9208_v52  ;;  %v5080_v47 = vld [vmem:[#allocation6 + $0x478] sm:$0xff]  ;;  %v5069_v36 = vld [vmem:[#allocation6 + $0x420] sm:$0xff] }
 0x986   :  { %v5077_v52 = vld [vmem:[#allocation6 + $0x460] sm:$0xff]  ;;  %v9228_v56 = vpack.c.bf16 %v5080_v47, %v5072_v54  ;;  %v5150_v54 = vld [vmem:[#allocation6 + $0x6a8] sm:$0xff] }
 0x987   :  { %v9166_v60 = vpack.c.bf16 %v5077_v52, %v5069_v36  ;;  %v5158_v47 = vld [vmem:[#allocation6 + $0x6e8] sm:$0xff]  ;;  %v9246_v52 = vpack.c.bf16 %v5143_v51, %v5135_v44  ;;  %v5584_v44 = vld [vmem:[#allocation8 + $0x78] sm:$0xff] }
 0x988   :  { %9147 = vmatpush1.bf16.msra.mxu0 %v9146_v0  ;;  %9211 = vmatpush1.bf16.msra.mxu1 %v9210_v4  ;;  %v5088_v0 = vld [vmem:[#allocation6 + $0x4b8] sm:$0xff]  ;;  %v9184_v57 = vpack.c.bf16 %v5158_v47, %v5150_v54  ;;  %v5581_v54 = vld [vmem:[#allocation8 + $0x60] sm:$0xff]  ;;  %v5583_v47 = vld [vmem:[#allocation8 + $0x70] sm:$0xff] }
 0x989   :  { %9149 = vmatprep.subr.bf16.mxu0 %v9148_v61  ;;  %9213 = vmatprep.subr.bf16.mxu1 %v9212_v62  ;;  %v5096_v4 = vld [vmem:[#allocation6 + $0x4f8] sm:$0xff]  ;;  %v5085_v61 = vld [vmem:[#allocation6 + $0x4a0] sm:$0xff] }
 0x98a   :  { %v5093_v62 = vld [vmem:[#allocation6 + $0x4e0] sm:$0xff]  ;;  %v9232_v31 = vpack.c.bf16 %v5096_v4, %v5088_v0  ;;  %v5166_v0 = vld [vmem:[#allocation6 + $0x728] sm:$0xff] }
 0x98b   :  { %v9170_v10 = vpack.c.bf16 %v5093_v62, %v5085_v61  ;;  %v5174_v4 = vld [vmem:[#allocation6 + $0x768] sm:$0xff]  ;;  %v9250_v62 = vpack.c.bf16 %v5159_v9, %v5151_v2 }
 0x98c   :  { %9151 = vmatpush1.bf16.msra.mxu0 %v9150_v7  ;;  %9215 = vmatpush1.bf16.msra.mxu1 %v9214_v55  ;;  %v5104_v7 = vld [vmem:[#allocation6 + $0x538] sm:$0xff]  ;;  %v9188_v8 = vpack.c.bf16 %v5174_v4, %v5166_v0  ;;  %v5589_v0 = vld [vmem:[#allocation8 + $0xa0] sm:$0xff]  ;;  %v5591_v4 = vld [vmem:[#allocation8 + $0xb0] sm:$0xff] }
 0x98d   :  { %9153 = vmatprep.subr.bf16.mxu0 %v9152_v13  ;;  %9217 = vmatprep.subr.bf16.mxu1 %v9216_v14  ;;  %v5112_v55 = vld [vmem:[#allocation6 + $0x578] sm:$0xff]  ;;  %v5101_v13 = vld [vmem:[#allocation6 + $0x520] sm:$0xff] }
 0x98e   :  { %v5109_v14 = vld [vmem:[#allocation6 + $0x560] sm:$0xff]  ;;  %v9236_v25 = vpack.c.bf16 %v5112_v55, %v5104_v7  ;;  %v5182_v7 = vld [vmem:[#allocation6 + $0x7a8] sm:$0xff] }
 0x98f   :  { %v9174_v28 = vpack.c.bf16 %v5109_v14, %v5101_v13  ;;  %v5190_v55 = vld [vmem:[#allocation6 + $0x7e8] sm:$0xff]  ;;  %v9254_v14 = vpack.c.bf16 %v5175_v6, %v5167_v50 }
 0x990   :  { %9155 = vmatpush1.bf16.msra.mxu0 %v9154_v17  ;;  %9219 = vmatpush1.bf16.msra.mxu1 %v9218_v18  ;;  %v5120_v17 = vld [vmem:[#allocation6 + $0x5b8] sm:$0xff] }
 0x991   :  { %9157 = vmatprep.subr.bf16.mxu0 %v9156_v22  ;;  %9221 = vmatprep.subr.bf16.mxu1 %v9220_v24  ;;  %v5128_v18 = vld [vmem:[#allocation6 + $0x5f8] sm:$0xff]  ;;  %v5117_v22 = vld [vmem:[#allocation6 + $0x5a0] sm:$0xff] }
 0x992   :  { %v5125_v24 = vld [vmem:[#allocation6 + $0x5e0] sm:$0xff]  ;;  %v9240_v27 = vpack.c.bf16 %v5128_v18, %v5120_v17  ;;  %v9258_v18 = vpack.c.bf16 %v5191_v16, %v5183_v21  ;;  %v5747_v16 = vld [vmem:[%s10680_s5 + $0x18] sm:$0xff] }
 0x993   :  { %v9178_v41 = vpack.c.bf16 %v5125_v24, %v5117_v22  ;;  %v5569_v22 = vld [vmem:[#allocation8] sm:$0xff] }
 0x994   :  { %9159 = vmatpush1.bf16.msra.mxu0 %v9158_v5  ;;  %9223 = vmatpush1.bf16.msra.mxu1 %v9222_v32  ;;  %v5136_v5 = vld [vmem:[#allocation6 + $0x638] sm:$0xff]  ;;  %v5745_v21 = vld [vmem:[%s10680_s5 + $0x8] sm:$0xff] }
 0x995   :  { %9161 = vmatprep.subr.bf16.mxu0 %v9160_v19  ;;  %9225 = vmatprep.subr.bf16.mxu1 %v9224_v59  ;;  %v5144_v32 = vld [vmem:[#allocation6 + $0x678] sm:$0xff]  ;;  %v5133_v19 = vld [vmem:[#allocation6 + $0x620] sm:$0xff] }
 0x996   :  { %v5141_v59 = vld [vmem:[#allocation6 + $0x660] sm:$0xff]  ;;  %v9244_v43 = vpack.c.bf16 %v5144_v32, %v5136_v5  ;;  %v5575_v5 = vld [vmem:[#allocation8 + $0x30] sm:$0xff] }
 0x997   :  { %v9182_v36 = vpack.c.bf16 %v5141_v59, %v5133_v19  ;;  %v9266_v32 = vpack.c.bf16 %v5575_v5, %v5573_v45  ;;  %v5577_v19 = vld [vmem:[#allocation8 + $0x40] sm:$0xff]  ;;  %v5579_v59 = vld [vmem:[#allocation8 + $0x50] sm:$0xff] }
 0x998   :  { %9163 = vmatpush1.bf16.msra.mxu0 %v9162_v48  ;;  %9227 = vmatpush1.bf16.msra.mxu1 %v9226_v49  ;;  %v5152_v48 = vld [vmem:[#allocation6 + $0x6b8] sm:$0xff] }
 0x999   :  { %9165 = vmatprep.subr.bf16.mxu0 %v9164_v53  ;;  %9229 = vmatprep.subr.bf16.mxu1 %v9228_v56  ;;  %v5160_v49 = vld [vmem:[#allocation6 + $0x6f8] sm:$0xff]  ;;  %v5149_v53 = vld [vmem:[#allocation6 + $0x6a0] sm:$0xff] }
 0x99a   :  { %v5157_v56 = vld [vmem:[#allocation6 + $0x6e0] sm:$0xff]  ;;  %v9248_v58 = vpack.c.bf16 %v5160_v49, %v5152_v48  ;;  %v9274_v48 = vpack.c.bf16 %v5583_v47, %v5581_v54  ;;  %v5586_v49 = vld [vmem:[#allocation8 + $0x88] sm:$0xff] }
 0x99b   :  { %v9186_v61 = vpack.c.bf16 %v5157_v56, %v5149_v53  ;;  %v5587_v56 = vld [vmem:[#allocation8 + $0x90] sm:$0xff] }
 0x99c   :  { %9167 = vmatpush1.bf16.msra.mxu0 %v9166_v60  ;;  %9231 = vmatpush1.bf16.msra.mxu1 %v9230_v40  ;;  %v5168_v60 = vld [vmem:[#allocation6 + $0x738] sm:$0xff] }
 0x99d   :  { %9169 = vmatprep.subr.bf16.mxu0 %v9168_v63  ;;  %9233 = vmatprep.subr.bf16.mxu1 %v9232_v31  ;;  %v5176_v40 = vld [vmem:[#allocation6 + $0x778] sm:$0xff]  ;;  %v5165_v63 = vld [vmem:[#allocation6 + $0x720] sm:$0xff] }
 0x99e   :  { %v5173_v31 = vld [vmem:[#allocation6 + $0x760] sm:$0xff]  ;;  %v9252_v38 = vpack.c.bf16 %v5176_v40, %v5168_v60  ;;  %v5594_v60 = vld [vmem:[#allocation8 + $0xc8] sm:$0xff]  ;;  %v5596_v40 = vld [vmem:[#allocation8 + $0xd8] sm:$0xff] }
 0x99f   :  { %v9190_v13 = vpack.c.bf16 %v5173_v31, %v5165_v63  ;;  %v5593_v63 = vld [vmem:[#allocation8 + $0xc0] sm:$0xff]  ;;  %v5595_v31 = vld [vmem:[#allocation8 + $0xd0] sm:$0xff] }
 0x9a0   :  { %9171 = vmatpush1.bf16.msra.mxu0 %v9170_v10  ;;  %9235 = vmatpush1.bf16.msra.mxu1 %v9234_v11  ;;  %v5184_v10 = vld [vmem:[#allocation6 + $0x7b8] sm:$0xff]  ;;  %v9286_v50 = vpack.c.bf16 %v5595_v31, %v5593_v63 }
 0x9a1   :  { %9173 = vmatprep.subr.bf16.mxu0 %v9172_v15  ;;  %9237 = vmatprep.subr.bf16.mxu1 %v9236_v25  ;;  %v5192_v11 = vld [vmem:[#allocation6 + $0x7f8] sm:$0xff]  ;;  %v5181_v15 = vld [vmem:[#allocation6 + $0x7a0] sm:$0xff]  ;;  %v9192_v25 = vpack.c.bf16 %v5190_v55, %v5182_v7  ;;  %v5599_v55 = vld [vmem:[#allocation8 + $0xf0] sm:$0xff] }
 0x9a2   :  { %v9256_v23 = vpack.c.bf16 %v5192_v11, %v5184_v10  ;;  %v9194_v17 = vpack.c.bf16 %v5189_v35, %v5181_v15  ;;  %v5597_v7 = vld [vmem:[#allocation8 + $0xe0] sm:$0xff]  ;;  %v5602_v10 = vld [vmem:[#allocation8 + $0x108] sm:$0xff]  ;;  %v5604_v11 = vld [vmem:[#allocation8 + $0x118] sm:$0xff] }
 0x9a3   :  { %v5603_v15 = vld [vmem:[#allocation8 + $0x110] sm:$0xff]  ;;  %v5608_v35 = vld [vmem:[#allocation8 + $0x138] sm:$0xff] }
 0x9a4   :  { %9175 = vmatpush1.bf16.msra.mxu0 %v9174_v28  ;;  %9239 = vmatpush1.bf16.msra.mxu1 %v9238_v20  ;;  %v5570_v28 = vld [vmem:[#allocation8 + $0x8] sm:$0xff]  ;;  %v5572_v20 = vld [vmem:[#allocation8 + $0x18] sm:$0xff] }
 0x9a5   :  { %9177 = vmatprep.subr.bf16.mxu0 %v9176_v26  ;;  %9241 = vmatprep.subr.bf16.mxu1 %v9240_v27  ;;  %v9260_v24 = vpack.c.bf16 %v5572_v20, %v5570_v28  ;;  %v5571_v26 = vld [vmem:[#allocation8 + $0x10] sm:$0xff]  ;;  %v5574_v27 = vld [vmem:[#allocation8 + $0x28] sm:$0xff]  ;;  %v5477_v20 = vld [vmem:[#allocation2 + $0xc0] sm:$0xf0] }
 0x9a6   :  { %v9262_v30 = vpack.c.bf16 %v5571_v26, %v5569_v22  ;;  %v9264_v33 = vpack.c.bf16 %v5576_v29, %v5574_v27  ;;  %v10408_v26 = vpack.c.bf16 %v5747_v16, %v5745_v21  ;;  %v5616_v63 = vld [vmem:[#allocation8 + $0x178] sm:$0xff] }
 0x9a8   :  { %9179 = vmatpush1.bf16.msra.mxu0 %v9178_v41  ;;  %9243 = vmatpush1.bf16.msra.mxu1 %v9242_v12  ;;  %v5578_v41 = vld [vmem:[#allocation8 + $0x48] sm:$0xff] }
 0x9a9   :  { %9181 = vmatprep.subr.bf16.mxu0 %v9180_v42  ;;  %9245 = vmatprep.subr.bf16.mxu1 %v9244_v43  ;;  %v9270_v42 = vpack.c.bf16 %v5579_v59, %v5577_v19  ;;  %v5582_v43 = vld [vmem:[#allocation8 + $0x68] sm:$0xff]  ;;  %v5751_v59 = vld [vmem:[%s10680_s5 + $0x38] sm:$0xff] }
 0x9aa   :  { %v9272_v51 = vpack.c.bf16 %v5584_v44, %v5582_v43  ;;  %v5750_v43 = vld [vmem:[%s10680_s5 + $0x30] sm:$0xff] }
 0x9ac   :  { %9183 = vmatpush1.bf16.msra.mxu0 %v9182_v36  ;;  %9247 = vmatpush1.bf16.msra.mxu1 %v9246_v52  ;;  %v5588_v36 = vld [vmem:[#allocation8 + $0x98] sm:$0xff]  ;;  %v5585_v52 = vld [vmem:[#allocation8 + $0x80] sm:$0xff] }
 0x9ad   :  { %9185 = vmatprep.subr.bf16.mxu0 %v9184_v57  ;;  %9249 = vmatprep.subr.bf16.mxu1 %v9248_v58  ;;  %v9276_v53 = vpack.c.bf16 %v5588_v36, %v5586_v49  ;;  %v5590_v57 = vld [vmem:[#allocation8 + $0xa8] sm:$0xff]  ;;  %v5592_v58 = vld [vmem:[#allocation8 + $0xb8] sm:$0xff]  ;;  %v9278_v2 = vpack.c.bf16 %v5587_v56, %v5585_v52 }
 0x9ae   :  { %v9280_v9 = vpack.c.bf16 %v5592_v58, %v5590_v57  ;;  %v5755_v49 = vld [vmem:[%s10680_s5 + $0x58] sm:$0xff]  ;;  %v5754_v56 = vld [vmem:[%s10680_s5 + $0x50] sm:$0xff] }
 0x9b0   :  { %9187 = vmatpush1.bf16.msra.mxu0 %v9186_v61  ;;  %9251 = vmatpush1.bf16.msra.mxu1 %v9250_v62  ;;  %v9282_v61 = vpack.c.bf16 %v5591_v4, %v5589_v0  ;;  %v9284_v62 = vpack.c.bf16 %v5596_v40, %v5594_v60  ;;  %v5609_v60 = vld [vmem:[#allocation8 + $0x140] sm:$0xff]  ;;  %v5611_v40 = vld [vmem:[#allocation8 + $0x150] sm:$0xff] }
 0x9b1   :  { %9189 = vmatprep.subr.bf16.mxu0 %v9188_v8  ;;  %9253 = vmatprep.subr.bf16.mxu1 %v9252_v38  ;;  %v5598_v8 = vld [vmem:[#allocation8 + $0xe8] sm:$0xff]  ;;  %v5600_v38 = vld [vmem:[#allocation8 + $0xf8] sm:$0xff] }
 0x9b2   :  { %v9288_v6 = vpack.c.bf16 %v5600_v38, %v5598_v8  ;;  %v5756_v38 = vld [vmem:[%s10680_s5 + $0x60] sm:$0xff] }
 0x9b4   :  { %9191 = vmatpush1.bf16.msra.mxu0 %v9190_v13  ;;  %9255 = vmatpush1.bf16.msra.mxu1 %v9254_v14  ;;  %v9290_v13 = vpack.c.bf16 %v5599_v55, %v5597_v7  ;;  %v5601_v14 = vld [vmem:[#allocation8 + $0x100] sm:$0xff]  ;;  %v5479_v7 = vld [vmem:[#allocation2 + $0xd0] sm:$0xf0] }
 0x9b5   :  { %9193 = vmatprep.subr.bf16.mxu0 %v9192_v25  ;;  %9257 = vmatprep.subr.bf16.mxu1 %v9256_v23  ;;  %v9292_v25 = vpack.c.bf16 %v5604_v11, %v5602_v10  ;;  %v5606_v23 = vld [vmem:[#allocation8 + $0x128] sm:$0xff]  ;;  %v9294_v5 = vpack.c.bf16 %v5603_v15, %v5601_v14  ;;  %v5613_v11 = vld [vmem:[#allocation8 + $0x160] sm:$0xff] }
 0x9b6   :  { %v9296_v19 = vpack.c.bf16 %v5608_v35, %v5606_v23  ;;  %v5618_v15 = vld [vmem:[#allocation8 + $0x188] sm:$0xff]  ;;  %v5480_v35 = vld [vmem:[#allocation2 + $0xd8] sm:$0xf0] }
 0x9b8   :  { %9195 = vmatpush1.bf16.msra.mxu0 %v9194_v17  ;;  %9259 = vmatpush1.bf16.msra.mxu1 %v9258_v18  ;;  %v5744_v17 = vld [vmem:[%s10680_s5] sm:$0xff]  ;;  %v5746_v18 = vld [vmem:[%s10680_s5 + $0x10] sm:$0xff] }
 0x9b9   :  { %9261 = vmatprep.subr.bf16.mxu0 %v9260_v24  ;;  %v5605_v24 = vld [vmem:[#allocation8 + $0x120] sm:$0xff]  ;;  %v10410_v27 = vpack.c.bf16 %v5746_v18, %v5744_v17  ;;  %9325 = vmatprep.subr.bf16.mxu1 %v10408_v26 }
 0x9ba   :  { %v5617_v18 = vld [vmem:[#allocation8 + $0x180] sm:$0xff] }
 0x9bb   :  { %5400 = vmatmul.mubr.f32.vlgmr.msra.gmra.mrb[40].mxu0 %v10384_v46  ;;  %5471 = vmatmul.mubr.f32.vlgmr.msra.gmra.mrb[52].mxu1 %v10384_v46  ;;  %v5580_v46 = vld [vmem:[#allocation8 + $0x58] sm:$0xff] }
 0x9bc   :  { %5828 = vmatprep.mubr.f32.mxu1 %v9999_v1  ;;  %9263 = vmatpush1.bf16.msra.mxu0 %v9262_v30  ;;  %v9268_v12 = vpack.c.bf16 %v5580_v46, %v5578_v41  ;;  %v5610_v41 = vld [vmem:[#allocation8 + $0x148] sm:$0xff] }
 0x9bd   :  { %9265 = vmatprep.subr.bf16.mxu0 %v9264_v33  ;;  %v5478_v33 = vld [vmem:[#allocation2 + $0xc8] sm:$0xf0]  ;;  %9327 = vmatpush1.bf16.msra.mxu1 %v10410_v27 }
 0x9be   :  { %v5749_v46 = vld [vmem:[%s10680_s5 + $0x28] sm:$0xff] }
 0x9bf   :  { %v10428_v54 = vpack.c.bf16 %v5751_v59, %v5749_v46  ;;  %v5626_v46 = vld [vmem:[#allocation8 + $0x1c8] sm:$0xff] }
 0x9c0   :  { %9267 = vmatpush1.bf16.msra.mxu0 %v9266_v32  ;;  %v5607_v32 = vld [vmem:[#allocation8 + $0x130] sm:$0xff] }
 0x9c1   :  { %9269 = vmatprep.subr.bf16.mxu0 %v9268_v12  ;;  %v9298_v58 = vpack.c.bf16 %v5607_v32, %v5605_v24  ;;  %9329 = vmatprep.subr.bf16.mxu1 %v10428_v54  ;;  %v5624_v24 = vld [vmem:[#allocation8 + $0x1b8] sm:$0xff]  ;;  %v5623_v32 = vld [vmem:[#allocation8 + $0x1b0] sm:$0xff] }
 0x9c4   :  { %9271 = vmatpush1.bf16.msra.mxu0 %v9270_v42  ;;  %v5748_v42 = vld [vmem:[%s10680_s5 + $0x20] sm:$0xff] }
 0x9c5   :  { %9273 = vmatprep.subr.bf16.mxu0 %v9272_v51  ;;  %v5612_v51 = vld [vmem:[#allocation8 + $0x158] sm:$0xff]  ;;  %v10430_v47 = vpack.c.bf16 %v5750_v43, %v5748_v42  ;;  %v5625_v43 = vld [vmem:[#allocation8 + $0x1c0] sm:$0xff] }
 0x9c6   :  { %v9300_v4 = vpack.c.bf16 %v5612_v51, %v5610_v41  ;;  %v5630_v51 = vld [vmem:[#allocation8 + $0x1e8] sm:$0xff] }
 0x9c7   :  { %9331 = vmatpush1.bf16.msra.mxu1 %v10430_v47 }
 0x9c8   :  { %9275 = vmatpush1.bf16.msra.mxu0 %v9274_v48  ;;  %v5753_v48 = vld [vmem:[%s10680_s5 + $0x48] sm:$0xff] }
 0x9c9   :  { %9277 = vmatprep.subr.bf16.mxu0 %v9276_v53  ;;  %v10438_v52 = vpack.c.bf16 %v5755_v49, %v5753_v48  ;;  %v5752_v53 = vld [vmem:[%s10680_s5 + $0x40] sm:$0xff] }
 0x9ca   :  { %v10454_v31 = vpack.c.bf16 %v5754_v56, %v5752_v53  ;;  %v5632_v48 = vld [vmem:[#allocation8 + $0x1f8] sm:$0xff]  ;;  %v5629_v53 = vld [vmem:[#allocation8 + $0x1e0] sm:$0xff]  ;;  %v5631_v56 = vld [vmem:[#allocation8 + $0x1f0] sm:$0xff] }
 0x9cb   :  { %9333 = vmatprep.subr.bf16.mxu1 %v10438_v52 }
 0x9cc   :  { %9279 = vmatpush1.bf16.msra.mxu0 %v9278_v2  ;;  %v5757_v2 = vld [vmem:[%s10680_s5 + $0x68] sm:$0xff]  ;;  %9335 = vmatpush1.bf16.msra.mxu1 %v10454_v31 }
 0x9cd   :  { %9281 = vmatprep.subr.bf16.mxu0 %v9280_v9  ;;  %v5759_v9 = vld [vmem:[%s10680_s5 + $0x78] sm:$0xff] }
 0x9ce   :  { %v10457_v8 = vpack.c.bf16 %v5759_v9, %v5757_v2  ;;  %v9322_v2 = vpack.c.bf16 %v5631_v56, %v5629_v53 }
 0x9d0   :  { %9283 = vmatpush1.bf16.msra.mxu0 %v9282_v61  ;;  %9337 = vmatprep.subr.bf16.mxu1 %v10457_v8 }
 0x9d1   :  { %9285 = vmatprep.subr.bf16.mxu0 %v9284_v62  ;;  %v5614_v62 = vld [vmem:[#allocation8 + $0x168] sm:$0xff] }
 0x9d2   :  { %v9304_v10 = vpack.c.bf16 %v5616_v63, %v5614_v62 }
 0x9d4   :  { %9287 = vmatpush1.bf16.msra.mxu0 %v9286_v50  ;;  %v5758_v50 = vld [vmem:[%s10680_s5 + $0x70] sm:$0xff] }
 0x9d5   :  { %9289 = vmatprep.subr.bf16.mxu0 %v9288_v6  ;;  %v9302_v6 = vpack.c.bf16 %v5611_v40, %v5609_v60  ;;  %v10467_v23 = vpack.c.bf16 %v5758_v50, %v5756_v38 }
 0x9d7   :  { %9339 = vmatpush1.bf16.msra.mxu1 %v10467_v23 }
 0x9d8   :  { %9291 = vmatpush1.bf16.msra.mxu0 %v9290_v13  ;;  %v5615_v13 = vld [vmem:[#allocation8 + $0x170] sm:$0xff]  ;;  %9341 = vmatprep.subr.bf16.mxu1 %v10408_v26 }
 0x9d9   :  { %9293 = vmatprep.subr.bf16.mxu0 %v9292_v25  ;;  %v5620_v25 = vld [vmem:[#allocation8 + $0x198] sm:$0xff]  ;;  %v9306_v21 = vpack.c.bf16 %v5615_v13, %v5613_v11  ;;  %v5498_v11 = vld [vmem:[#allocation2 + $0x28] sm:$0xf] }
 0x9da   :  { %v9308_v17 = vpack.c.bf16 %v5620_v25, %v5618_v15  ;;  %5829 = vmatmul.mubr.f32.vlgmr.msra.gmra.mrb[54].mxu1 %v9999_v1 }
 0x9db   :  { %9343 = vmatpush1.bf16.msra.mxu1 %v10410_v27  ;;  %5936 = vmatprep.mubr.f32.mxu1 %v9999_v1 }
 0x9dc   :  { %9295 = vmatpush1.bf16.msra.mxu0 %v9294_v5  ;;  %v5621_v5 = vld [vmem:[#allocation8 + $0x1a0] sm:$0xff]  ;;  %9345 = vmatprep.subr.bf16.mxu1 %v10428_v54 }
 0x9dd   :  { %9297 = vmatprep.subr.bf16.mxu0 %v9296_v19  ;;  %v9314_v59 = vpack.c.bf16 %v5623_v32, %v5621_v5 }
 0x9df   :  { %9347 = vmatpush1.bf16.msra.mxu1 %v10430_v47 }
 0x9e0   :  { %9299 = vmatpush1.bf16.msra.mxu0 %v9298_v58  ;;  %9349 = vmatprep.subr.bf16.mxu1 %v10438_v52 }
 0x9e1   :  { %9301 = vmatprep.subr.bf16.mxu0 %v9300_v4 }
 0x9e3   :  { %9351 = vmatpush1.bf16.msra.mxu1 %v10454_v31 }
 0x9e4   :  { %9303 = vmatpush1.bf16.msra.mxu0 %v9302_v6  ;;  %9353 = vmatprep.subr.bf16.mxu1 %v10457_v8 }
 0x9e5   :  { %9305 = vmatprep.subr.bf16.mxu0 %v9304_v10 }
 0x9e7   :  { %9355 = vmatpush1.bf16.msra.mxu1 %v10467_v23 }
 0x9e8   :  { %9307 = vmatpush1.bf16.msra.mxu0 %v9306_v21  ;;  %9357 = vmatprep.subr.bf16.mxu1 %v10408_v26 }
 0x9e9   :  { %9309 = vmatprep.subr.bf16.mxu0 %v9308_v17 }
 0xa4e   :  { %v5259_v28 = vpop.f32.mrb[38].mxu0  ;;  %v5330_v22 = vpop.f32.mrb[50].mxu1 }
 0xa4f   :  { %v5485_v29 = vrot.slane %v5259_v28, 4  ;;  %v5261_v30 = vpop.f32.mrb[39].mxu0  ;;  %v10412_v45 = vpop.f32.mrb[51].mxu1  ;;  %v5487_v61 = vrot.slane %v5330_v22, 4  ;;  %v5619_v28 = vld [vmem:[#allocation8 + $0x190] sm:$0xff]  ;;  %v5622_v22 = vld [vmem:[#allocation8 + $0x1a8] sm:$0xff] }
 0xa50   :  { %v5486_v12 = vrot.slane %v5261_v30, 4  ;;  %v5488_v55 = vrot.slane %v10412_v45, 4  ;;  %v9310_v30 = vpack.c.bf16 %v5619_v28, %v5617_v18  ;;  %v9312_v45 = vpack.c.bf16 %v5624_v24, %v5622_v22 }
 0xa51   :  { %v5493_v44 = vadd.f32 %v5485_v29, %v5477_v20  ;;  %v5495_v14 = vadd.f32 %v5487_v61, %v5479_v7 }
 0xa52   :  { %v5494_v36 = vadd.f32 %v5486_v12, %v5478_v33  ;;  %v5496_v16 = vadd.f32 %v5488_v55, %v5480_v35  ;;  %v5628_v12 = vld [vmem:[#allocation8 + $0x1d8] sm:$0xff]  ;;  %9311 = vmatpush1.bf16.msra.mxu0 %v9310_v30  ;;  %v5499_v35 = vld [vmem:[#allocation2 + $0x30] sm:$0xf] }
 0xa53   :  { %v7110_v57 = vmul.f32 -1.442695, %v5493_v44  ;;  %v7112_v20 = vmul.f32 -1.442695, %v5495_v14  ;;  %9313 = vmatprep.subr.bf16.mxu0 %v9312_v45  ;;  %v9316_v42 = vpack.c.bf16 %v5628_v12, %v5626_v46  ;;  %v5627_v44 = vld [vmem:[#allocation8 + $0x1d0] sm:$0xff]  ;;  %v5552_v45 = vrot.slane %v10388_v3, 4 }
 0xa54   :  { %v7111_v0 = vmul.f32 -1.442695, %v5494_v36  ;;  %v9318_v49 = vpack.c.bf16 %v5627_v44, %v5625_v43  ;;  %v9320_v36 = vpack.c.bf16 %v5632_v48, %v5630_v51  ;;  %v5561_v44 = vld [vmem:[#allocation3] sm:$0xff]  ;;  %v5564_v51 = vld [vmem:[#allocation3 + $0x18] sm:$0xff]  ;;  %v5563_v3 = vld [vmem:[#allocation3 + $0x10] sm:$0xff] }
 0xa55   :  { %9782 = vpow2.f32 %v7110_v57  ;;  %v5566_v48 = vld [vmem:[#allocation3 + $0x28] sm:$0xff] }
 0xa56   :  { %9784 = vpow2.f32 %v7111_v0  ;;  %9315 = vmatpush1.bf16.msra.mxu0 %v9314_v59  ;;  %v5525_v0 = vrot.slane %v10381_v34, 4  ;;  %v5497_v34 = vld [vmem:[#allocation2 + $0x20] sm:$0xf] }
 0xa57   :  { %9786 = vtanh.f32 %v5496_v16  ;;  %9317 = vmatprep.subr.bf16.mxu0 %v9316_v42  ;;  %v5500_v16 = vld [vmem:[#allocation2 + $0x38] sm:$0xf] }
 0xa58   :  { %9788 = vpow2.f32 %v7112_v20 }
 0xa5a   :  { %9319 = vmatpush1.bf16.msra.mxu0 %v9318_v49  ;;  %v5565_v49 = vld [vmem:[#allocation3 + $0x20] sm:$0xff] }
 0xa5b   :  { %9321 = vmatprep.subr.bf16.mxu0 %v9320_v36  ;;  %v5568_v36 = vld [vmem:[#allocation3 + $0x38] sm:$0xff] }
 0xa5e   :  { %9323 = vmatpush1.bf16.msra.mxu0 %v9322_v2 }
 0xa5f   :  { %v9783_v29 = vpop.eup %9782  ;;  %9389 = vmatprep.subr.bf16.mxu0 %v10408_v26 }
 0xa60   :  { %v5514_v33 = vadd.f32 1.0, %v9783_v29  ;;  %v9785_v41 = vpop.eup %9784 }
 0xa61   :  { %v5515_v19 = vadd.f32 1.0, %v9785_v41  ;;  %v9787_v57 = vpop.eup %9786 }
 0xa62   :  { %9790 = vrcp.f32 %v5514_v33  ;;  %v9789_v58 = vpop.eup %9788 }
 0xa63   :  { %9792 = vrcp.f32 %v5515_v19  ;;  %v5516_v40 = vadd.f32 1.0, %v9789_v58  ;;  %v5633_v58 = vld [vmem:[%s10681_s6] sm:$0x3] }
 0xa64   :  { %v5638_v2 = vrot.slane %v5633_v58, %v10221_v37 }
 0xa65   :  { %9794 = vrcp.f32 %v5516_v40 }
 0xa6c   :  { %v9791_v9 = vpop.eup %9790 }
 0xa6d   :  { %v5528_v4 = vmul.f32 %v9791_v9, %v9787_v57  ;;  %v9793_v60 = vpop.eup %9792  ;;  %v5642_v9 = vrot.slane %v5633_v58, %v10229_v39 }
 0xa6e   :  { %v5527_v61 = vmul.f32 %v9793_v60, %v5525_v0 }
 0xa6f   :  { %v9795_v63 = vpop.eup %9794 }
 0xa70   :  { %v5529_v62 = vadd.f32 %v5528_v4, %v5527_v61 }
 0xa72   :  { %9796 = vtanh.f32 %v5529_v62 }
 0xa7c   :  { %v9797_v38 = vpop.eup %9796 }
 0xa7d   :  { %v5531_v50 = vmul.f32 %v9797_v38, %v9795_v63 }
 0xa7f   :  { %5559 = vst [vmem:[#allocation3 + $0x30] sm:$0xf0] %v5531_v50 }
 0xa86   :  { %v5567_v53 = vld [vmem:[#allocation3 + $0x30] sm:$0xff] }
 0xa8e   :  { %v5401_v6 = vpop.f32.mrb[40].mxu0  ;;  %v5472_v7 = vpop.f32.mrb[52].mxu1 }
 0xa8f   :  { %v5501_v55 = vadd.f32 %v5497_v34, %v5401_v6  ;;  %v5403_v10 = vpop.f32.mrb[41].mxu0  ;;  %v5474_v13 = vpop.f32.mrb[53].mxu1  ;;  %v5503_v21 = vadd.f32 %v5499_v35, %v5472_v7 }
 0xa90   :  { %v5502_v14 = vadd.f32 %v5498_v11, %v5403_v10  ;;  %v5504_v17 = vadd.f32 %v5500_v16, %v5474_v13 }
 0xa91   :  { %v7113_v15 = vmul.f32 -1.442695, %v5501_v55  ;;  %v7115_v18 = vmul.f32 -1.442695, %v5503_v21 }
 0xa92   :  { %v7114_v25 = vmul.f32 -1.442695, %v5502_v14 }
 0xa93   :  { %9798 = vpow2.f32 %v7113_v15 }
 0xa94   :  { %9800 = vpow2.f32 %v7114_v25 }
 0xa95   :  { %9802 = vtanh.f32 %v5504_v17 }
 0xa96   :  { %9804 = vpow2.f32 %v7115_v18 }
 0xa9d   :  { %v9799_v28 = vpop.eup %9798 }
 0xa9e   :  { %v5541_v20 = vadd.f32 1.0, %v9799_v28  ;;  %v9801_v22 = vpop.eup %9800 }
 0xa9f   :  { %v5542_v24 = vadd.f32 1.0, %v9801_v22  ;;  %v9803_v29 = vpop.eup %9802 }
 0xaa0   :  { %9806 = vrcp.f32 %v5541_v20  ;;  %v9805_v30 = vpop.eup %9804 }
 0xaa1   :  { %9808 = vrcp.f32 %v5542_v24  ;;  %v5543_v41 = vadd.f32 1.0, %v9805_v30 }
 0xaa3   :  { %9810 = vrcp.f32 %v5543_v41 }
 0xaaa   :  { %v9807_v33 = vpop.eup %9806 }
 0xaab   :  { %v5555_v5 = vmul.f32 %v9807_v33, %v9803_v29  ;;  %v9809_v32 = vpop.eup %9808 }
 0xaac   :  { %v5554_v46 = vmul.f32 %v9809_v32, %v5552_v45 }
 0xaad   :  { %v9811_v19 = vpop.eup %9810  ;;  %v5830_v56 = vpop.f32.mrb[54].mxu1 }
 0xaae   :  { %v5556_v12 = vadd.f32 %v5555_v5, %v5554_v46  ;;  %v5832_v57 = vpop.f32.mrb[55].mxu1 }
 0xab0   :  { %9812 = vtanh.f32 %v5556_v12 }
 0xaba   :  { %v9813_v59 = vpop.eup %9812 }
 0xabb   :  { %v5558_v42 = vmul.f32 %v9813_v59, %v9811_v19 }
 0xabd   :  { %5560 = vst [vmem:[#allocation3 + $0x8] sm:$0xf] %v5558_v42 }
 0xac4   :  { %v5562_v43 = vld [vmem:[#allocation3 + $0x8] sm:$0xff] }
 0xac5   :  { %5709 = vmatprep.mubr.f32.mxu0 %v5562_v43 }
 0xac6   :  { %5710 = vmatmul.mubr.f32.vlgmr.msra.gmra.mrb[42].mxu0 %v5561_v44 }
 0xac7   :  { %5715 = vmatprep.mubr.f32.mxu0 %v5564_v51  ;;  %9391 = vmatpush1.bf16.msra.mxu0 %v10410_v27 }
 0xac8   :  { %9393 = vmatprep.subr.bf16.mxu0 %v10428_v54 }
 0xaca   :  { %5716 = vmatmul.mubr.f32.gmra.mrb[44].mxu0 %v5563_v3 }
 0xacb   :  { %5721 = vmatprep.mubr.f32.mxu0 %v5566_v48  ;;  %9395 = vmatpush1.bf16.msra.mxu0 %v10430_v47 }
 0xacc   :  { %9397 = vmatprep.subr.bf16.mxu0 %v10438_v52 }
 0xace   :  { %5722 = vmatmul.mubr.f32.gmra.mrb[46].mxu0 %v5565_v49 }
 0xacf   :  { %5727 = vmatprep.mubr.f32.mxu0 %v5568_v36  ;;  %9399 = vmatpush1.bf16.msra.mxu0 %v10454_v31 }
 0xad0   :  { %9401 = vmatprep.subr.bf16.mxu0 %v10457_v8 }
 0xad2   :  { %5728 = vmatmul.mubr.f32.gmra.mrb[48].mxu0 %v5567_v53 }
 0xad3   :  { %9403 = vmatpush1.bf16.msra.mxu0 %v10467_v23  ;;  %6283 = vmatprep.mubr.f32.mxu0 %v9999_v1 }
 0xad4   :  { %9421 = vmatprep.subr.bf16.mxu0 %v10408_v26 }
 0xb99   :  { %v5711_v0 = vpop.f32.mrb[42].mxu0 }
 0xb9a   :  { %v5712_v4 = vadd.f32 %v5711_v0, %v5638_v2  ;;  %v5713_v60 = vpop.f32.mrb[43].mxu0 }
 0xb9b   :  { %v5714_v40 = vadd.f32 %v5713_v60, %v5642_v9 }
 0xb9c   :  { %5734 = vst [vmem:[#allocation4] sm:$0xff] %v5712_v4 }
 0xb9d   :  { %5735 = vst [vmem:[#allocation4 + $0x8] sm:$0xff] %v5714_v40  ;;  %v5717_v61 = vpop.f32.mrb[44].mxu0 }
 0xb9e   :  { %v5718_v62 = vadd.f32 %v5717_v61, %v5638_v2  ;;  %v5719_v63 = vpop.f32.mrb[45].mxu0 }
 0xb9f   :  { %v5720_v38 = vadd.f32 %v5719_v63, %v5642_v9 }
 0xba0   :  { %5736 = vst [vmem:[#allocation4 + $0x10] sm:$0xff] %v5718_v62 }
 0xba1   :  { %5737 = vst [vmem:[#allocation4 + $0x18] sm:$0xff] %v5720_v38  ;;  %v5723_v50 = vpop.f32.mrb[46].mxu0 }
 0xba2   :  { %v5724_v6 = vadd.f32 %v5723_v50, %v5638_v2  ;;  %v5725_v34 = vpop.f32.mrb[47].mxu0 }
 0xba3   :  { %v5726_v7 = vadd.f32 %v5725_v34, %v5642_v9  ;;  %v5742_v35 = vld [vmem:[#allocation4] sm:$0xf]  ;;  %v5867_v48 = vld [vmem:[#allocation4] sm:$0xf0] }
 0xba4   :  { %5738 = vst [vmem:[#allocation4 + $0x20] sm:$0xff] %v5724_v6  ;;  %v5743_v55 = vld [vmem:[#allocation4 + $0x8] sm:$0xf]  ;;  %v5835_v21 = vadd.f32 %v5830_v56, %v5742_v35  ;;  %v5868_v43 = vld [vmem:[#allocation4 + $0x8] sm:$0xf0] }
 0xba5   :  { %5739 = vst [vmem:[#allocation4 + $0x28] sm:$0xff] %v5726_v7  ;;  %v5836_v10 = vadd.f32 %v5832_v57, %v5743_v55  ;;  %v5729_v11 = vpop.f32.mrb[48].mxu0 }
 0xba6   :  { %v5730_v13 = vadd.f32 %v5729_v11, %v5638_v2  ;;  %v5731_v14 = vpop.f32.mrb[49].mxu0  ;;  %v7116_v16 = vmul.f32 -1.442695, %v5835_v21 }
 0xba7   :  { %v5732_v15 = vadd.f32 %v5731_v14, %v5642_v9  ;;  %9814 = vtanh.f32 %v5836_v10  ;;  %v7117_v45 = vmul.f32 -1.442695, %v5836_v10  ;;  %v5984_v14 = vld [vmem:[#allocation4 + $0x10] sm:$0xf] }
 0xba8   :  { %5740 = vst [vmem:[#allocation4 + $0x30] sm:$0xff] %v5730_v13  ;;  %9816 = vpow2.f32 %v7116_v16  ;;  %v5985_v55 = vld [vmem:[#allocation4 + $0x18] sm:$0xf] }
 0xba9   :  { %5741 = vst [vmem:[#allocation4 + $0x38] sm:$0xff] %v5732_v15 }
 0xbb1   :  { %v9815_v25 = vpop.eup %9814 }
 0xbb2   :  { %5852 = vrot.lane.b32.xlu0 %v9815_v25, %s9997_s28  ;;  %v9817_v17 = vpop.eup %9816 }
 0xbb3   :  { %v5843_v18 = vadd.f32 1.0, %v9817_v17 }
 0xbb5   :  { %9818 = vrcp.f32 %v5843_v18 }
 0xbbf   :  { %v9819_v28 = vpop.eup %9818 }
 0xbc0   :  { %v5850_v24 = vmul.f32 0.0, %v9819_v28 }
 0xc24   :  { %v5853_v20 = vpop.permute.xlu0 %5852 }
 0xc25   :  { %v5855_v22 = vmul.f32 %v9819_v28, %v5853_v20 }
 0xc27   :  { %5857 = vrot.lane.b32.xlu0 %v5855_v22, %s9997_s28 }
 0xc99   :  { %v5858_v29 = vpop.permute.xlu0 %5857 }
 0xc9a   :  { %v5860_v30 = vadd.f32 %v5858_v29, %v5850_v24 }
 0xc9c   :  { %9820 = vtanh.f32 %v5860_v30  ;;  %v5965_v9 = vrot.slane %v5860_v30, 4 }
 0xc9d   :  { %9822 = vpow2.f32 %v7117_v45 }
 0xca6   :  { %v9821_v33 = vpop.eup %9820 }
 0xca7   :  { %5863 = vrot.lane.b32.xlu1 %v9821_v33, %s9997_s28  ;;  %v9823_v5 = vpop.eup %9822 }
 0xca8   :  { %v5844_v32 = vadd.f32 1.0, %v9823_v5 }
 0xcaa   :  { %9824 = vrcp.f32 %v5844_v32 }
 0xcb4   :  { %v9825_v41 = vpop.eup %9824 }
 0xd19   :  { %v5864_v46 = vpop.permute.xlu1 %5863 }
 0xd1a   :  { %v5866_v12 = vmul.f32 %v9825_v41, %v5864_v46 }
 0xd1c   :  { %7118 = vmatmul.mubr.msk.f32.vlgmr.msra.gmra.mrb[56].mxu1 %vm5760_vm1, %v5866_v12 }
 0xd1d   :  { %9359 = vmatpush1.bf16.msra.mxu1 %v10410_v27  ;;  %6054 = vmatprep.mubr.f32.mxu1 %v9999_v1 }
 0xd1e   :  { %9361 = vmatprep.subr.bf16.mxu1 %v10428_v54 }
 0xd21   :  { %9363 = vmatpush1.bf16.msra.mxu1 %v10430_v47 }
 0xd22   :  { %9365 = vmatprep.subr.bf16.mxu1 %v10438_v52 }
 0xd25   :  { %9367 = vmatpush1.bf16.msra.mxu1 %v10454_v31 }
 0xd26   :  { %9369 = vmatprep.subr.bf16.mxu1 %v10457_v8 }
 0xd29   :  { %9371 = vmatpush1.bf16.msra.mxu1 %v10467_v23 }
 0xd2a   :  { %9373 = vmatprep.subr.bf16.mxu1 %v10408_v26 }
 0xdef   :  { %v5938_v19 = vpop.f32.mrb[56].mxu1 }
 0xdf0   :  { %v5940_v59 = vpop.f32.mrb[57].mxu1  ;;  %v5945_v3 = vrot.slane %v5938_v19, 4 }
 0xdf1   :  { %v5946_v42 = vrot.slane %v5940_v59, 4  ;;  %v6097_v59 = vld [vmem:[#allocation4 + $0x18] sm:$0xf0] }
 0xdf2   :  { %v5949_v49 = vadd.f32 %v5945_v3, %v5867_v48 }
 0xdf3   :  { %v5950_v44 = vadd.f32 %v5946_v42, %v5868_v43 }
 0xdf4   :  { %v7119_v36 = vmul.f32 -1.442695, %v5949_v49 }
 0xdf5   :  { %9826 = vtanh.f32 %v5950_v44  ;;  %v7120_v61 = vmul.f32 -1.442695, %v5950_v44 }
 0xdf6   :  { %9828 = vpow2.f32 %v7119_v36 }
 0xdff   :  { %v9827_v51 = vpop.eup %9826 }
 0xe00   :  { %5969 = vrot.lane.b32.xlu1 %v9827_v51, %s9997_s28  ;;  %v9829_v53 = vpop.eup %9828  ;;  %v6096_v51 = vld [vmem:[#allocation4 + $0x10] sm:$0xf0] }
 0xe01   :  { %v5957_v56 = vadd.f32 1.0, %v9829_v53 }
 0xe03   :  { %9830 = vrcp.f32 %v5957_v56 }
 0xe0d   :  { %v9831_v57 = vpop.eup %9830 }
 0xe0e   :  { %v5967_v0 = vmul.f32 %v9831_v57, %v5965_v9 }
 0xe72   :  { %v5970_v58 = vpop.permute.xlu1 %5969 }
 0xe73   :  { %v5972_v2 = vmul.f32 %v9831_v57, %v5970_v58 }
 0xe75   :  { %5974 = vrot.lane.b32.xlu0 %v5972_v2, %s9997_s28 }
 0xee7   :  { %v5975_v4 = vpop.permute.xlu0 %5974 }
 0xee8   :  { %v5977_v60 = vadd.f32 %v5975_v4, %v5967_v0 }
 0xeea   :  { %9832 = vtanh.f32 %v5977_v60  ;;  %v6077_v28 = vrot.slane %v5977_v60, 4 }
 0xeeb   :  { %9834 = vpow2.f32 %v7120_v61 }
 0xef4   :  { %v9833_v40 = vpop.eup %9832 }
 0xef5   :  { %5980 = vrot.lane.b32.xlu1 %v9833_v40, %s9997_s28  ;;  %v9835_v62 = vpop.eup %9834 }
 0xef6   :  { %v5958_v63 = vadd.f32 1.0, %v9835_v62 }
 0xef8   :  { %9836 = vrcp.f32 %v5958_v63 }
 0xf02   :  { %v9837_v38 = vpop.eup %9836 }
 0xf67   :  { %v5981_v50 = vpop.permute.xlu1 %5980 }
 0xf68   :  { %v5983_v6 = vmul.f32 %v9837_v38, %v5981_v50 }
 0xf6a   :  { %v5987_v34 = vrot.slane %v5983_v6, 4  ;;  %v6214_v6 = vld [vmem:[#allocation4 + $0x28] sm:$0xf] }
 0xf6c   :  { %7121 = vmatmul.mubr.msk.f32.vlgmr.msra.gmra.mrb[58].mxu1 %vm5760_vm1, %v5987_v34 }
 0xf6d   :  { %9375 = vmatpush1.bf16.msra.mxu1 %v10410_v27  ;;  %6165 = vmatprep.mubr.f32.mxu1 %v9999_v1 }
 0xf6e   :  { %9377 = vmatprep.subr.bf16.mxu1 %v10428_v54 }
 0xf71   :  { %9379 = vmatpush1.bf16.msra.mxu1 %v10430_v47 }
 0xf72   :  { %9381 = vmatprep.subr.bf16.mxu1 %v10438_v52 }
 0xf75   :  { %9383 = vmatpush1.bf16.msra.mxu1 %v10454_v31 }
 0xf76   :  { %9385 = vmatprep.subr.bf16.mxu1 %v10457_v8 }
 0xf79   :  { %9387 = vmatpush1.bf16.msra.mxu1 %v10467_v23 }
 0xf7a   :  { %9405 = vmatprep.subr.bf16.mxu1 %v10408_v26 }
0x103f   :  { %v6056_v7 = vpop.f32.mrb[58].mxu1 }
0x1040   :  { %v6058_v10 = vpop.f32.mrb[59].mxu1  ;;  %v6061_v15 = vadd.f32 %v6056_v7, %v5984_v14 }
0x1041   :  { %v6062_v11 = vadd.f32 %v6058_v10, %v5985_v55  ;;  %v6213_v10 = vld [vmem:[#allocation4 + $0x20] sm:$0xf] }
0x1042   :  { %v7122_v25 = vmul.f32 -1.442695, %v6061_v15 }
0x1043   :  { %9838 = vtanh.f32 %v6062_v11  ;;  %v7123_v30 = vmul.f32 -1.442695, %v6062_v11 }
0x1044   :  { %9840 = vpow2.f32 %v7122_v25 }
0x104d   :  { %v9839_v13 = vpop.eup %9838 }
0x104e   :  { %6081 = vrot.lane.b32.xlu0 %v9839_v13, %s9997_s28  ;;  %v9841_v35 = vpop.eup %9840 }
0x104f   :  { %v6069_v21 = vadd.f32 1.0, %v9841_v35 }
0x1051   :  { %9842 = vrcp.f32 %v6069_v21 }
0x105b   :  { %v9843_v16 = vpop.eup %9842 }
0x105c   :  { %v6079_v20 = vmul.f32 %v9843_v16, %v6077_v28 }
0x10c0   :  { %v6082_v17 = vpop.permute.xlu0 %6081 }
0x10c1   :  { %v6084_v18 = vmul.f32 %v9843_v16, %v6082_v17 }
0x10c3   :  { %6086 = vrot.lane.b32.xlu1 %v6084_v18, %s9997_s28 }
0x1135   :  { %v6087_v22 = vpop.permute.xlu1 %6086 }
0x1136   :  { %v6089_v24 = vadd.f32 %v6087_v22, %v6079_v20 }
0x1138   :  { %9844 = vtanh.f32 %v6089_v24  ;;  %v6194_v57 = vrot.slane %v6089_v24, 4 }
0x1139   :  { %9846 = vpow2.f32 %v7123_v30 }
0x1142   :  { %v9845_v29 = vpop.eup %9844 }
0x1143   :  { %6092 = vrot.lane.b32.xlu0 %v9845_v29, %s9997_s28  ;;  %v9847_v33 = vpop.eup %9846 }
0x1144   :  { %v6070_v45 = vadd.f32 1.0, %v9847_v33 }
0x1146   :  { %9848 = vrcp.f32 %v6070_v45 }
0x1150   :  { %v9849_v5 = vpop.eup %9848 }
0x11b5   :  { %v6093_v32 = vpop.permute.xlu0 %6092 }
0x11b6   :  { %v6095_v41 = vmul.f32 %v9849_v5, %v6093_v32 }
0x11b8   :  { %7124 = vmatmul.mubr.msk.f32.vlgmr.msra.gmra.mrb[60].mxu1 %vm5760_vm1, %v6095_v41 }
0x11b9   :  { %9407 = vmatpush1.bf16.msra.mxu1 %v10410_v27  ;;  %6394 = vmatprep.mubr.f32.mxu1 %v9999_v1 }
0x11ba   :  { %9409 = vmatprep.subr.bf16.mxu1 %v10428_v54 }
0x11bd   :  { %9411 = vmatpush1.bf16.msra.mxu1 %v10430_v47 }
0x11be   :  { %9413 = vmatprep.subr.bf16.mxu1 %v10438_v52 }
0x11c1   :  { %9415 = vmatpush1.bf16.msra.mxu1 %v10454_v31 }
0x11c2   :  { %9417 = vmatprep.subr.bf16.mxu1 %v10457_v8 }
0x11c5   :  { %9419 = vmatpush1.bf16.msra.mxu1 %v10467_v23 }
0x11c6   :  { %9437 = vmatprep.subr.bf16.mxu1 %v10408_v26 }
0x128b   :  { %v6167_v46 = vpop.f32.mrb[60].mxu1 }
0x128c   :  { %v6169_v12 = vpop.f32.mrb[61].mxu1  ;;  %v6174_v44 = vrot.slane %v6167_v46, 4  ;;  %v6326_v46 = vld [vmem:[#allocation4 + $0x28] sm:$0xf0] }
0x128d   :  { %v6175_v19 = vrot.slane %v6169_v12, 4 }
0x128e   :  { %v6178_v3 = vadd.f32 %v6174_v44, %v6096_v51 }
0x128f   :  { %v6179_v42 = vadd.f32 %v6175_v19, %v6097_v59  ;;  %v6325_v19 = vld [vmem:[#allocation4 + $0x20] sm:$0xf0] }
0x1290   :  { %v7125_v48 = vmul.f32 -1.442695, %v6178_v3 }
0x1291   :  { %9850 = vtanh.f32 %v6179_v42  ;;  %v7126_v4 = vmul.f32 -1.442695, %v6179_v42 }
0x1292   :  { %9852 = vpow2.f32 %v7125_v48  ;;  %v6674_v48 = vld [vmem:[#allocation10 + $0x8] sm:$0xff] }
0x129b   :  { %v9851_v43 = vpop.eup %9850 }
0x129c   :  { %6198 = vrot.lane.b32.xlu1 %v9851_v43, %s9997_s28  ;;  %v9853_v49 = vpop.eup %9852 }
0x129d   :  { %v6186_v36 = vadd.f32 1.0, %v9853_v49  ;;  %v6676_v49 = vld [vmem:[#allocation10 + $0x18] sm:$0xff] }
0x129f   :  { %9854 = vrcp.f32 %v6186_v36  ;;  %v9452_v36 = vpack.c.bf16 %v6676_v49, %v6674_v48  ;;  %v6705_v49 = vld [vmem:[#allocation10 + $0x100] sm:$0xff] }
0x12a9   :  { %v9855_v53 = vpop.eup %9854 }
0x12aa   :  { %v6196_v58 = vmul.f32 %v9855_v53, %v6194_v57 }
0x130e   :  { %v6199_v56 = vpop.permute.xlu1 %6198 }
0x130f   :  { %v6201_v26 = vmul.f32 %v9855_v53, %v6199_v56 }
0x1311   :  { %6203 = vrot.lane.b32.xlu0 %v6201_v26, %s9997_s28 }
0x1383   :  { %v6204_v2 = vpop.permute.xlu0 %6203 }
0x1384   :  { %v6206_v9 = vadd.f32 %v6204_v2, %v6196_v58  ;;  %v6673_v58 = vld [vmem:[#allocation10] sm:$0xff]  ;;  %v6675_v2 = vld [vmem:[#allocation10 + $0x10] sm:$0xff] }
0x1386   :  { %9856 = vtanh.f32 %v6206_v9  ;;  %v6306_v16 = vrot.slane %v6206_v9, 4 }
0x1387   :  { %9858 = vpow2.f32 %v7126_v4  ;;  %v6678_v4 = vld [vmem:[#allocation10 + $0x28] sm:$0xff] }
0x1390   :  { %v9857_v0 = vpop.eup %9856 }
0x1391   :  { %6209 = vrot.lane.b32.xlu1 %v9857_v0, %s9997_s28  ;;  %v9859_v60 = vpop.eup %9858 }
0x1392   :  { %v6187_v40 = vadd.f32 1.0, %v9859_v60  ;;  %v6680_v60 = vld [vmem:[#allocation10 + $0x38] sm:$0xff] }
0x1394   :  { %9860 = vrcp.f32 %v6187_v40 }
0x139e   :  { %v9861_v61 = vpop.eup %9860 }
0x1403   :  { %v6210_v62 = vpop.permute.xlu1 %6209 }
0x1404   :  { %v6212_v63 = vmul.f32 %v9861_v61, %v6210_v62  ;;  %v6672_v61 = vld [vmem:[#allocation3 + $0x38] sm:$0xf0]  ;;  %v9454_v62 = vpack.c.bf16 %v6675_v2, %v6673_v58  ;;  %v6709_v58 = vld [vmem:[#allocation10 + $0x120] sm:$0xff]  ;;  %v6711_v2 = vld [vmem:[#allocation10 + $0x130] sm:$0xff] }
0x1406   :  { %v6216_v38 = vrot.slane %v6212_v63, 4 }
0x1408   :  { %7127 = vmatmul.mubr.msk.f32.vlgmr.msra.gmra.mrb[50].mxu0 %vm5760_vm1, %v6216_v38  ;;  %v9456_v38 = vpack.c.bf16 %v6680_v60, %v6678_v4  ;;  %v9490_v4 = vpack.c.bf16 %v6711_v2, %v6709_v58 }
0x1409   :  { %9423 = vmatpush1.bf16.msra.mxu0 %v10410_v27  ;;  %6512 = vmatprep.mubr.f32.mxu0 %v9999_v1 }
0x140a   :  { %9425 = vmatprep.subr.bf16.mxu0 %v10428_v54 }
0x140d   :  { %9427 = vmatpush1.bf16.msra.mxu0 %v10430_v47 }
0x140e   :  { %9429 = vmatprep.subr.bf16.mxu0 %v10438_v52 }
0x1411   :  { %9431 = vmatpush1.bf16.msra.mxu0 %v10454_v31 }
0x1412   :  { %9433 = vmatprep.subr.bf16.mxu0 %v10457_v8 }
0x1415   :  { %9435 = vmatpush1.bf16.msra.mxu0 %v10467_v23 }
0x1416   :  { %9453 = vmatprep.subr.bf16.mxu0 %v9452_v36  ;;  %v6707_v36 = vld [vmem:[#allocation10 + $0x110] sm:$0xff] }
0x14db   :  { %v6285_v50 = vpop.f32.mrb[50].mxu0 }
0x14dc   :  { %v6287_v34 = vpop.f32.mrb[51].mxu0  ;;  %v6290_v11 = vadd.f32 %v6285_v50, %v6213_v10  ;;  %v6677_v50 = vld [vmem:[#allocation10 + $0x20] sm:$0xff] }
0x14dd   :  { %v6291_v7 = vadd.f32 %v6287_v34, %v6214_v6  ;;  %v6679_v6 = vld [vmem:[#allocation10 + $0x30] sm:$0xff]  ;;  %v6752_v34 = vrot.slane %v6672_v61, 4 }
0x14de   :  { %v7128_v13 = vmul.f32 -1.442695, %v6290_v11  ;;  %v9458_v10 = vpack.c.bf16 %v6679_v6, %v6677_v50  ;;  %v6715_v61 = vld [vmem:[#allocation10 + $0x150] sm:$0xff]  ;;  %v6717_v6 = vld [vmem:[#allocation10 + $0x160] sm:$0xff] }
0x14df   :  { %9862 = vtanh.f32 %v6291_v7  ;;  %v7129_v22 = vmul.f32 -1.442695, %v6291_v7  ;;  %v6682_v7 = vld [vmem:[#allocation10 + $0x48] sm:$0xff] }
0x14e0   :  { %9864 = vpow2.f32 %v7128_v13  ;;  %v6681_v13 = vld [vmem:[#allocation10 + $0x40] sm:$0xff] }
0x14e9   :  { %v9863_v55 = vpop.eup %9862 }
0x14ea   :  { %6310 = vrot.lane.b32.xlu0 %v9863_v55, %s9997_s28  ;;  %v9865_v14 = vpop.eup %9864  ;;  %v6684_v55 = vld [vmem:[#allocation10 + $0x58] sm:$0xff] }
0x14eb   :  { %v6298_v15 = vadd.f32 1.0, %v9865_v14  ;;  %v9460_v11 = vpack.c.bf16 %v6684_v55, %v6682_v7  ;;  %v6683_v14 = vld [vmem:[#allocation10 + $0x50] sm:$0xff]  ;;  %v6722_v7 = vld [vmem:[#allocation10 + $0x188] sm:$0xff]  ;;  %v6724_v55 = vld [vmem:[#allocation10 + $0x198] sm:$0xff] }
0x14ed   :  { %9866 = vrcp.f32 %v6298_v15  ;;  %v6686_v15 = vld [vmem:[#allocation10 + $0x68] sm:$0xff] }
0x14f7   :  { %v9867_v25 = vpop.eup %9866 }
0x14f8   :  { %v6308_v17 = vmul.f32 %v9867_v25, %v6306_v16  ;;  %v6685_v16 = vld [vmem:[#allocation10 + $0x60] sm:$0xff] }
0x155c   :  { %v6311_v35 = vpop.permute.xlu0 %6310 }
0x155d   :  { %v6313_v21 = vmul.f32 %v9867_v25, %v6311_v35  ;;  %v6688_v25 = vld [vmem:[#allocation10 + $0x78] sm:$0xff]  ;;  %v9462_v35 = vpack.c.bf16 %v6683_v14, %v6681_v13  ;;  %v6721_v13 = vld [vmem:[#allocation10 + $0x180] sm:$0xff]  ;;  %v6723_v14 = vld [vmem:[#allocation10 + $0x190] sm:$0xff] }
0x155f   :  { %6315 = vrot.lane.b32.xlu1 %v6313_v21, %s9997_s28  ;;  %v9464_v21 = vpack.c.bf16 %v6688_v25, %v6686_v15  ;;  %v6726_v15 = vld [vmem:[#allocation10 + $0x1a8] sm:$0xff]  ;;  %v6728_v25 = vld [vmem:[#allocation10 + $0x1b8] sm:$0xff] }
0x15d1   :  { %v6316_v18 = vpop.permute.xlu1 %6315 }
0x15d2   :  { %v6318_v28 = vadd.f32 %v6316_v18, %v6308_v17  ;;  %v6687_v17 = vld [vmem:[#allocation10 + $0x70] sm:$0xff]  ;;  %v6690_v18 = vld [vmem:[#allocation10 + $0x88] sm:$0xff] }
0x15d4   :  { %9868 = vtanh.f32 %v6318_v28  ;;  %v6423_v43 = vrot.slane %v6318_v28, 4  ;;  %v6692_v28 = vld [vmem:[#allocation10 + $0x98] sm:$0xff] }
0x15d5   :  { %9870 = vpow2.f32 %v7129_v22  ;;  %v9468_v22 = vpack.c.bf16 %v6692_v28, %v6690_v18  ;;  %v6730_v18 = vld [vmem:[#allocation10 + $0x1c8] sm:$0xff]  ;;  %v6732_v28 = vld [vmem:[#allocation10 + $0x1d8] sm:$0xff] }
0x15de   :  { %v9869_v20 = vpop.eup %9868 }
0x15df   :  { %6321 = vrot.lane.b32.xlu0 %v9869_v20, %s9997_s28  ;;  %v9871_v24 = vpop.eup %9870  ;;  %v9466_v20 = vpack.c.bf16 %v6687_v17, %v6685_v16  ;;  %v6725_v16 = vld [vmem:[#allocation10 + $0x1a0] sm:$0xff]  ;;  %v6727_v17 = vld [vmem:[#allocation10 + $0x1b0] sm:$0xff] }
0x15e0   :  { %v6299_v29 = vadd.f32 1.0, %v9871_v24  ;;  %v6689_v24 = vld [vmem:[#allocation10 + $0x80] sm:$0xff] }
0x15e2   :  { %9872 = vrcp.f32 %v6299_v29  ;;  %v6691_v29 = vld [vmem:[#allocation10 + $0x90] sm:$0xff] }
0x15ec   :  { %v9873_v30 = vpop.eup %9872 }
0x1651   :  { %v6322_v33 = vpop.permute.xlu0 %6321 }
0x1652   :  { %v6324_v45 = vmul.f32 %v9873_v30, %v6322_v33  ;;  %v6694_v30 = vld [vmem:[#allocation10 + $0xa8] sm:$0xff]  ;;  %v6696_v33 = vld [vmem:[#allocation10 + $0xb8] sm:$0xff] }
0x1654   :  { %7130 = vmatmul.mubr.msk.f32.vlgmr.msra.gmra.mrb[62].mxu1 %vm5760_vm1, %v6324_v45  ;;  %v9470_v45 = vpack.c.bf16 %v6691_v29, %v6689_v24  ;;  %v6729_v24 = vld [vmem:[#allocation10 + $0x1c0] sm:$0xff]  ;;  %v6731_v29 = vld [vmem:[#allocation10 + $0x1d0] sm:$0xff] }
0x1655   :  { %9439 = vmatpush1.bf16.msra.mxu1 %v10410_v27  ;;  %6623 = vmatprep.mubr.f32.mxu1 %v9999_v1 }
0x1656   :  { %9441 = vmatprep.subr.bf16.mxu1 %v10428_v54 }
0x1659   :  { %9443 = vmatpush1.bf16.msra.mxu1 %v10430_v47 }
0x165a   :  { %9445 = vmatprep.subr.bf16.mxu1 %v10438_v52 }
0x165d   :  { %9447 = vmatpush1.bf16.msra.mxu1 %v10454_v31 }
0x165e   :  { %9449 = vmatprep.subr.bf16.mxu1 %v10457_v8 }
0x1661   :  { %9451 = vmatpush1.bf16.msra.mxu1 %v10467_v23 }
0x1727   :  { %v6396_v5 = vpop.f32.mrb[62].mxu1 }
0x1728   :  { %v6398_v32 = vpop.f32.mrb[63].mxu1  ;;  %v6403_v54 = vrot.slane %v6396_v5, 4  ;;  %v9472_v5 = vpack.c.bf16 %v6696_v33, %v6694_v30  ;;  %v6734_v30 = vld [vmem:[#allocation10 + $0x1e8] sm:$0xff]  ;;  %v6736_v33 = vld [vmem:[#allocation10 + $0x1f8] sm:$0xff] }
0x1729   :  { %v6404_v41 = vrot.slane %v6398_v32, 4  ;;  %v6693_v32 = vld [vmem:[#allocation10 + $0xa0] sm:$0xff] }
0x172a   :  { %v6407_v47 = vadd.f32 %v6403_v54, %v6325_v19  ;;  %v6697_v19 = vld [vmem:[#allocation10 + $0xc0] sm:$0xff] }
0x172b   :  { %v6408_v12 = vadd.f32 %v6404_v41, %v6326_v46  ;;  %v6695_v41 = vld [vmem:[#allocation10 + $0xb0] sm:$0xff]  ;;  %v6698_v46 = vld [vmem:[#allocation10 + $0xc8] sm:$0xff] }
0x172c   :  { %v7131_v59 = vmul.f32 -1.442695, %v6407_v47  ;;  %v6699_v47 = vld [vmem:[#allocation10 + $0xd0] sm:$0xff] }
0x172d   :  { %9874 = vtanh.f32 %v6408_v12  ;;  %v7132_v56 = vmul.f32 -1.442695, %v6408_v12  ;;  %v6700_v12 = vld [vmem:[#allocation10 + $0xd8] sm:$0xff] }
0x172e   :  { %9876 = vpow2.f32 %v7131_v59  ;;  %v9476_v54 = vpack.c.bf16 %v6700_v12, %v6698_v46  ;;  %v6702_v59 = vld [vmem:[#allocation10 + $0xe8] sm:$0xff]  ;;  %v6671_v12 = vld [vmem:[#allocation3 + $0x30] sm:$0xf0] }
0x1737   :  { %v9875_v27 = vpop.eup %9874 }
0x1738   :  { %6427 = vrot.lane.b32.xlu1 %v9875_v27, %s9997_s28  ;;  %v9877_v52 = vpop.eup %9876  ;;  %v9474_v27 = vpack.c.bf16 %v6695_v41, %v6693_v32  ;;  %v6733_v32 = vld [vmem:[#allocation10 + $0x1e0] sm:$0xff]  ;;  %v6735_v41 = vld [vmem:[#allocation10 + $0x1f0] sm:$0xff] }
0x1739   :  { %v6415_v31 = vadd.f32 1.0, %v9877_v52  ;;  %v6704_v52 = vld [vmem:[#allocation10 + $0xf8] sm:$0xff]  ;;  %v9514_v46 = vpack.c.bf16 %v6735_v41, %v6733_v32 }
0x173b   :  { %9878 = vrcp.f32 %v6415_v31  ;;  %v9478_v31 = vpack.c.bf16 %v6699_v47, %v6697_v19  ;;  %v6443_v19 = vld [vmem:[#allocation4 + $0x38] sm:$0xf] }
0x1745   :  { %v9879_v8 = vpop.eup %9878 }
0x1746   :  { %v6425_v44 = vmul.f32 %v9879_v8, %v6423_v43  ;;  %v6706_v43 = vld [vmem:[#allocation10 + $0x108] sm:$0xff] }
0x17aa   :  { %v6428_v42 = vpop.permute.xlu1 %6427 }
0x17ab   :  { %v6430_v23 = vmul.f32 %v9879_v8, %v6428_v42  ;;  %v9480_v8 = vpack.c.bf16 %v6704_v52, %v6702_v59  ;;  %v6701_v42 = vld [vmem:[#allocation10 + $0xe0] sm:$0xff] }
0x17ad   :  { %6432 = vrot.lane.b32.xlu0 %v6430_v23, %s9997_s28  ;;  %v6703_v23 = vld [vmem:[#allocation10 + $0xf0] sm:$0xff] }
0x181f   :  { %v6433_v51 = vpop.permute.xlu0 %6432 }
0x1820   :  { %v10564_v3 = vadd.f32 %v6433_v51, %v6425_v44  ;;  %v6708_v44 = vld [vmem:[#allocation10 + $0x118] sm:$0xff]  ;;  %v9482_v51 = vpack.c.bf16 %v6703_v23, %v6701_v42 }
0x1821   :  { %v9484_v48 = vpack.c.bf16 %v6708_v44, %v6706_v43  ;;  %v6442_v44 = vld [vmem:[#allocation4 + $0x30] sm:$0xf] }
0x1822   :  { %9880 = vtanh.f32 %v10564_v3 }
0x1823   :  { %9882 = vpow2.f32 %v7132_v56  ;;  %v6712_v56 = vld [vmem:[#allocation10 + $0x138] sm:$0xff] }
0x182c   :  { %v9881_v53 = vpop.eup %9880 }
0x182d   :  { %6438 = vrot.lane.b32.xlu1 %v9881_v53, %s9997_s28  ;;  %v9883_v26 = vpop.eup %9882  ;;  %v6710_v53 = vld [vmem:[#allocation10 + $0x128] sm:$0xff] }
0x182e   :  { %v6416_v57 = vadd.f32 1.0, %v9883_v26  ;;  %v9486_v26 = vpack.c.bf16 %v6707_v36, %v6705_v49 }
0x1830   :  { %9884 = vrcp.f32 %v6416_v57  ;;  %v9488_v57 = vpack.c.bf16 %v6712_v56, %v6710_v53 }
0x183a   :  { %v9885_v9 = vpop.eup %9884 }
0x189f   :  { %v6439_v0 = vpop.permute.xlu1 %6438 }
0x18a0   :  { %v6441_v40 = vmul.f32 %v9885_v9, %v6439_v0  ;;  %v6714_v9 = vld [vmem:[#allocation10 + $0x148] sm:$0xff]  ;;  %v6716_v0 = vld [vmem:[#allocation10 + $0x158] sm:$0xff] }
0x18a1   :  { %v9492_v60 = vpack.c.bf16 %v6716_v0, %v6714_v9 }
0x18a2   :  { %v6445_v63 = vrot.slane %v6441_v40, 4  ;;  %v6713_v40 = vld [vmem:[#allocation10 + $0x140] sm:$0xff] }
0x18a4   :  { %7133 = vmatmul.mubr.msk.f32.vlgmr.msra.gmra.mrb[52].mxu0 %vm5760_vm1, %v6445_v63  ;;  %v6720_v63 = vld [vmem:[#allocation10 + $0x178] sm:$0xff] }
0x18a5   :  { %9455 = vmatpush1.bf16.msra.mxu0 %v9454_v62  ;;  %6819 = vmatprep.mubr.f32.mxu0 %v6752_v34  ;;  %v6718_v62 = vld [vmem:[#allocation10 + $0x168] sm:$0xff]  ;;  %v6719_v34 = vld [vmem:[#allocation10 + $0x170] sm:$0xff] }
0x18a6   :  { %9457 = vmatprep.subr.bf16.mxu0 %v9456_v38  ;;  %v9494_v38 = vpack.c.bf16 %v6715_v61, %v6713_v40  ;;  %v9496_v50 = vpack.c.bf16 %v6720_v63, %v6718_v62 }
0x18a9   :  { %9459 = vmatpush1.bf16.msra.mxu0 %v9458_v10  ;;  %v9498_v10 = vpack.c.bf16 %v6719_v34, %v6717_v6 }
0x18aa   :  { %9461 = vmatprep.subr.bf16.mxu0 %v9460_v11  ;;  %v9500_v11 = vpack.c.bf16 %v6724_v55, %v6722_v7 }
0x18ad   :  { %9463 = vmatpush1.bf16.msra.mxu0 %v9462_v35  ;;  %v9502_v35 = vpack.c.bf16 %v6723_v14, %v6721_v13 }
0x18ae   :  { %9465 = vmatprep.subr.bf16.mxu0 %v9464_v21  ;;  %v9504_v21 = vpack.c.bf16 %v6728_v25, %v6726_v15 }
0x18b1   :  { %9467 = vmatpush1.bf16.msra.mxu0 %v9466_v20  ;;  %v9506_v20 = vpack.c.bf16 %v6727_v17, %v6725_v16 }
0x18b2   :  { %9469 = vmatprep.subr.bf16.mxu0 %v9468_v22  ;;  %v9508_v22 = vpack.c.bf16 %v6732_v28, %v6730_v18 }
0x18b5   :  { %9471 = vmatpush1.bf16.msra.mxu0 %v9470_v45  ;;  %v9510_v45 = vpack.c.bf16 %v6731_v29, %v6729_v24  ;;  %v6555_v24 = vld [vmem:[#allocation4 + $0x38] sm:$0xf0] }
0x18b6   :  { %9473 = vmatprep.subr.bf16.mxu0 %v9472_v5  ;;  %v9512_v5 = vpack.c.bf16 %v6736_v33, %v6734_v30 }
0x18b9   :  { %9475 = vmatpush1.bf16.msra.mxu0 %v9474_v27  ;;  %v6751_v27 = vrot.slane %v6671_v12, 4 }
0x18ba   :  { %9477 = vmatprep.subr.bf16.mxu0 %v9476_v54 }
0x18bd   :  { %9479 = vmatpush1.bf16.msra.mxu0 %v9478_v31  ;;  %v6737_v31 = vld [vmem:[%s10683_s8] sm:$0x3] }
0x18be   :  { %9481 = vmatprep.subr.bf16.mxu0 %v9480_v8  ;;  %v6742_v8 = vrot.slane %v6737_v31, %v10221_v37  ;;  %v6746_v53 = vrot.slane %v6737_v31, %v10229_v39 }
0x18c1   :  { %9483 = vmatpush1.bf16.msra.mxu0 %v9482_v51 }
0x18c2   :  { %9485 = vmatprep.subr.bf16.mxu0 %v9484_v48 }
0x18c5   :  { %9487 = vmatpush1.bf16.msra.mxu0 %v9486_v26 }
0x18c6   :  { %9489 = vmatprep.subr.bf16.mxu0 %v9488_v57 }
0x18c9   :  { %9491 = vmatpush1.bf16.msra.mxu0 %v9490_v4  ;;  %v6535_v4 = vrot.slane %v10564_v3, 4 }
0x18ca   :  { %9493 = vmatprep.subr.bf16.mxu0 %v9492_v60 }
0x18cd   :  { %9495 = vmatpush1.bf16.msra.mxu0 %v9494_v38 }
0x18ce   :  { %9497 = vmatprep.subr.bf16.mxu0 %v9496_v50 }
0x18d1   :  { %9499 = vmatpush1.bf16.msra.mxu0 %v9498_v10 }
0x18d2   :  { %9501 = vmatprep.subr.bf16.mxu0 %v9500_v11 }
0x18d5   :  { %9503 = vmatpush1.bf16.msra.mxu0 %v9502_v35 }
0x18d6   :  { %9505 = vmatprep.subr.bf16.mxu0 %v9504_v21 }
0x18d9   :  { %9507 = vmatpush1.bf16.msra.mxu0 %v9506_v20 }
0x18da   :  { %9509 = vmatprep.subr.bf16.mxu0 %v9508_v22 }
0x18dd   :  { %9511 = vmatpush1.bf16.msra.mxu0 %v9510_v45  ;;  %v6554_v45 = vld [vmem:[#allocation4 + $0x30] sm:$0xf0] }
0x18de   :  { %9513 = vmatprep.subr.bf16.mxu0 %v9512_v5 }
0x18e1   :  { %9515 = vmatpush1.bf16.msra.mxu0 %v9514_v46 }
0x18e4   :  { %6820 = vmatmul.mubr.f32.vlgmr.msra.gmra.mrb[54].mxu0 %v6751_v27 }
0x1977   :  { %v6514_v54 = vpop.f32.mrb[52].mxu0 }
0x1978   :  { %v6516_v47 = vpop.f32.mrb[53].mxu0  ;;  %v6519_v51 = vadd.f32 %v6514_v54, %v6442_v44 }
0x1979   :  { %v6520_v59 = vadd.f32 %v6516_v47, %v6443_v19  ;;  %v6862_v19 = vld [vmem:[%s10684_s9] sm:$0xff]  ;;  %v6863_v47 = vld [vmem:[%s10684_s9 + $0x8] sm:$0xff] }
0x197a   :  { %v7134_v48 = vmul.f32 -1.442695, %v6519_v51  ;;  %v9517_v31 = vpack.c.bf16 %v6863_v47, %v6862_v19  ;;  %v6868_v51 = vld [vmem:[%s10684_s9 + $0x30] sm:$0xff] }
0x197b   :  { %9886 = vtanh.f32 %v6520_v59  ;;  %v7135_v50 = vmul.f32 -1.442695, %v6520_v59  ;;  %v6864_v59 = vld [vmem:[%s10684_s9 + $0x10] sm:$0xff] }
0x197c   :  { %9888 = vpow2.f32 %v7134_v48  ;;  %v6869_v48 = vld [vmem:[%s10684_s9 + $0x38] sm:$0xff] }
0x1985   :  { %v9887_v52 = vpop.eup %9886 }
0x1986   :  { %6539 = vrot.lane.b32.xlu0 %v9887_v52, %s9997_s28  ;;  %v9889_v49 = vpop.eup %9888  ;;  %v10000_v52 = vmov 0.0|0.0  }
0x1987   :  { %v6527_v36 = vadd.f32 1.0, %v9889_v49  ;;  %9516 = vmatprep.subr.bf16.mxu1 %v10000_v52  ;;  %v9526_v49 = vpack.c.bf16 %v6869_v48, %v6868_v51 }
0x1989   :  { %9890 = vrcp.f32 %v6527_v36  ;;  %v6870_v36 = vld [vmem:[%s10684_s9 + $0x40] sm:$0xff] }
0x1993   :  { %v9891_v26 = vpop.eup %9890 }
0x1994   :  { %v6537_v60 = vmul.f32 %v9891_v26, %v6535_v4 }
0x19b7   :  { %v6821_v42 = vpop.f32.mrb[54].mxu0 }
0x19b8   :  { %v6822_v23 = vadd.f32 %v6821_v42, %v6742_v8  ;;  %v6823_v43 = vpop.f32.mrb[55].mxu0  ;;  %v6865_v8 = vld [vmem:[%s10684_s9 + $0x18] sm:$0xff] }
0x19b9   :  { %v6824_v56 = vadd.f32 %v6823_v43, %v6746_v53  ;;  %v9520_v42 = vpack.c.bf16 %v6865_v8, %v6864_v59  ;;  %v6867_v43 = vld [vmem:[%s10684_s9 + $0x28] sm:$0xff] }
0x19ba   :  { %v7139_v2 = vmul.f32 -1.442695, %v6822_v23  ;;  %v6866_v23 = vld [vmem:[%s10684_s9 + $0x20] sm:$0xff]  ;;  %v6871_v53 = vld [vmem:[%s10684_s9 + $0x48] sm:$0xff] }
0x19bb   :  { %9892 = vtanh.f32 %v6824_v56  ;;  %v7140_v15 = vmul.f32 -1.442695, %v6824_v56  ;;  %v9523_v44 = vpack.c.bf16 %v6867_v43, %v6866_v23  ;;  %v9529_v56 = vpack.c.bf16 %v6871_v53, %v6870_v36 }
0x19bc   :  { %9894 = vpow2.f32 %v7139_v2  ;;  %v6875_v2 = vld [vmem:[%s10684_s9 + $0x68] sm:$0xff] }
0x19c5   :  { %v9893_v37 = vpop.eup %9892 }
0x19c6   :  { %v9895_v9 = vpop.eup %9894 }
0x19c7   :  { %v6832_v0 = vadd.f32 1.0, %v9895_v9 }
0x19c9   :  { %9896 = vrcp.f32 %v6832_v0 }
0x19d3   :  { %v9897_v61 = vpop.eup %9896 }
0x19d4   :  { %v6839_v3 = vmul.f32 0.0, %v9897_v61 }
0x19f8   :  { %v6540_v57 = vpop.permute.xlu0 %6539 }
0x19f9   :  { %v6542_v58 = vmul.f32 %v9891_v26, %v6540_v57  ;;  %v6872_v26 = vld [vmem:[%s10684_s9 + $0x50] sm:$0xff]  ;;  %v6873_v57 = vld [vmem:[%s10684_s9 + $0x58] sm:$0xff] }
0x19fb   :  { %6544 = vrot.lane.b32.xlu1 %v6542_v58, %s9997_s28  ;;  %v9532_v58 = vpack.c.bf16 %v6873_v57, %v6872_v26 }
0x19ff   :  { %6841 = vrot.lane.b32.xlu1 %v9893_v37, %s9997_s28  ;;  %v6874_v37 = vld [vmem:[%s10684_s9 + $0x60] sm:$0xff] }
0x1a00   :  { %v9535_v9 = vpack.c.bf16 %v6875_v2, %v6874_v37 }
0x1a6d   :  { %v6545_v39 = vpop.permute.xlu1 %6544 }
0x1a6e   :  { %v10578_v40 = vadd.f32 %v6545_v39, %v6537_v60 }
0x1a70   :  { %9898 = vtanh.f32 %v10578_v40  ;;  %v6652_v0 = vrot.slane %v10578_v40, 4 }
0x1a71   :  { %v6842_v62 = vpop.permute.xlu1 %6841  ;;  %9900 = vpow2.f32 %v7135_v50 }
0x1a72   :  { %v6844_v63 = vmul.f32 %v9897_v61, %v6842_v62  ;;  %v6876_v61 = vld [vmem:[%s10684_s9 + $0x70] sm:$0xff]  ;;  %v6877_v62 = vld [vmem:[%s10684_s9 + $0x78] sm:$0xff] }
0x1a74   :  { %6846 = vrot.lane.b32.xlu1 %v6844_v63, %s9997_s28  ;;  %v9538_v63 = vpack.c.bf16 %v6877_v62, %v6876_v61 }
0x1a7a   :  { %v9899_v38 = vpop.eup %9898 }
0x1a7b   :  { %6550 = vrot.lane.b32.xlu0 %v9899_v38, %s9997_s28  ;;  %v9901_v6 = vpop.eup %9900 }
0x1a7c   :  { %v6528_v34 = vadd.f32 1.0, %v9901_v6 }
0x1a7e   :  { %9902 = vrcp.f32 %v6528_v34 }
0x1a88   :  { %v9903_v10 = vpop.eup %9902 }
0x1ae6   :  { %v6847_v7 = vpop.permute.xlu1 %6846 }
0x1ae7   :  { %v6849_v55 = vadd.f32 %v6847_v7, %v6839_v3  ;;  %v6959_v7 = vld [vmem:[%s10686_s11] sm:$0xff] }
0x1ae9   :  { %9904 = vtanh.f32 %v6849_v55  ;;  %v6960_v55 = vld [vmem:[%s10686_s11 + $0x8] sm:$0xff] }
0x1aea   :  { %9906 = vpow2.f32 %v7140_v15 }
0x1aed   :  { %v6551_v11 = vpop.permute.xlu0 %6550 }
0x1aee   :  { %v6553_v13 = vmul.f32 %v9903_v10, %v6551_v11 }
0x1af0   :  { %7136 = vmatmul.mubr.msk.f32.vlgmr.msra.gmra.mrb[64].mxu1 %vm5760_vm1, %v6553_v13 }
0x1af1   :  { %9518 = vmatpush3.bf16.msra.mxu1 %v9517_v31  ;;  %7198 = vmatprep.mubr.msk.f32.mxu1 %vm10001_vm2, %v9999_v1 }
0x1af2   :  { %9519 = vmatprep.subr.bf16.mxu1 %v10000_v52 }
0x1af3   :  { %v9905_v14 = vpop.eup %9904 }
0x1af4   :  { %6852 = vrot.lane.b32.xlu1 %v9905_v14, %s9997_s28  ;;  %v9907_v25 = vpop.eup %9906  ;;  %v9541_v14 = vpack.c.bf16 %v6960_v55, %v6959_v7 }
0x1af5   :  { %v6833_v35 = vadd.f32 1.0, %v9907_v25  ;;  %9521 = vmatpush3.bf16.msra.mxu1 %v9520_v42  ;;  %v6961_v25 = vld [vmem:[%s10686_s11 + $0x10] sm:$0xff] }
0x1af6   :  { %9522 = vmatprep.subr.bf16.mxu1 %v10000_v52 }
0x1af7   :  { %9908 = vrcp.f32 %v6833_v35  ;;  %v6962_v35 = vld [vmem:[%s10686_s11 + $0x18] sm:$0xff] }
0x1af9   :  { %9524 = vmatpush3.bf16.msra.mxu1 %v9523_v44 }
0x1afa   :  { %9525 = vmatprep.subr.bf16.mxu1 %v10000_v52 }
0x1afd   :  { %9527 = vmatpush3.bf16.msra.mxu1 %v9526_v49 }
0x1afe   :  { %9528 = vmatprep.subr.bf16.mxu1 %v10000_v52 }
0x1b01   :  { %v9909_v21 = vpop.eup %9908  ;;  %9530 = vmatpush3.bf16.msra.mxu1 %v9529_v56 }
0x1b02   :  { %9531 = vmatprep.subr.bf16.mxu1 %v10000_v52 }
0x1b05   :  { %9533 = vmatpush3.bf16.msra.mxu1 %v9532_v58 }
0x1b06   :  { %9534 = vmatprep.subr.bf16.mxu1 %v10000_v52 }
0x1b09   :  { %9536 = vmatpush3.bf16.msra.mxu1 %v9535_v9 }
0x1b0a   :  { %9537 = vmatprep.subr.bf16.mxu1 %v10000_v52 }
0x1b0d   :  { %9539 = vmatpush3.bf16.msra.mxu1 %v9538_v63 }
0x1b0e   :  { %9540 = vmatprep.subr.bf16.mxu1 %v10000_v52 }
0x1b66   :  { %v6853_v16 = vpop.permute.xlu1 %6852 }
0x1b67   :  { %v6855_v17 = vmul.f32 %v9909_v21, %v6853_v16  ;;  %v9544_v21 = vpack.c.bf16 %v6962_v35, %v6961_v25  ;;  %v7141_v16 = vld [vmem:[%s10685_s10] ss:$0 sm:$0xff] }
0x1b69   :  { %v6857_v18 = vrot.slane %v6855_v17, 4 }
0x1b6b   :  { %6858 = vrot.lane.b32.xlu1 %v6857_v18, %s9997_s28 }
0x1bc3   :  { %v6625_v28 = vpop.f32.mrb[64].mxu1 }
0x1bc4   :  { %v6627_v20 = vpop.f32.mrb[65].mxu1  ;;  %v6632_v33 = vrot.slane %v6625_v28, 4 }
0x1bc5   :  { %v6633_v22 = vrot.slane %v6627_v20, 4  ;;  %v7142_v20 = vld [vmem:[#allocation5] ss:$0 sm:$0xff] }
0x1bc6   :  { %v6636_v5 = vadd.f32 %v6632_v33, %v6554_v45 }
0x1bc7   :  { %v10586_v29 = vadd.f32 %v6633_v22, %v6555_v24 }
0x1bc8   :  { %v7137_v32 = vmul.f32 -1.442695, %v6636_v5 }
0x1bc9   :  { %9910 = vtanh.f32 %v10586_v29  ;;  %v7138_v38 = vmul.f32 -1.442695, %v10586_v29 }
0x1bca   :  { %9912 = vpow2.f32 %v7137_v32 }
0x1bd3   :  { %v9911_v30 = vpop.eup %9910 }
0x1bd4   :  { %6656 = vrot.lane.b32.xlu0 %v9911_v30, %s9997_s28  ;;  %v9913_v41 = vpop.eup %9912 }
0x1bd5   :  { %v6644_v46 = vadd.f32 1.0, %v9913_v41 }
0x1bd7   :  { %9914 = vrcp.f32 %v6644_v46 }
0x1bdd   :  { %v6859_v11 = vpop.permute.xlu1 %6858 }
0x1be1   :  { %v9915_v12 = vpop.eup %9914 }
0x1be2   :  { %v6654_v4 = vmul.f32 %v9915_v12, %v6652_v0 }
0x1c46   :  { %v6657_v27 = vpop.permute.xlu0 %6656 }
0x1c47   :  { %v6659_v54 = vmul.f32 %v9915_v12, %v6657_v27 }
0x1c49   :  { %6661 = vrot.lane.b32.xlu0 %v6659_v54, %s9997_s28 }
0x1cbb   :  { %v6662_v60 = vpop.permute.xlu0 %6661 }
0x1cbc   :  { %v6664_v39 = vadd.f32 %v6662_v60, %v6654_v4 }
0x1cbe   :  { %9916 = vtanh.f32 %v6664_v39 }
0x1cbf   :  { %9918 = vpow2.f32 %v7138_v38 }
0x1cc8   :  { %v9917_v40 = vpop.eup %9916 }
0x1cc9   :  { %6667 = vrot.lane.b32.xlu0 %v9917_v40, %s9997_s28  ;;  %v9919_v50 = vpop.eup %9918 }
0x1cca   :  { %v6645_v6 = vadd.f32 1.0, %v9919_v50 }
0x1ccc   :  { %9920 = vrcp.f32 %v6645_v6 }
0x1cd6   :  { %v9921_v34 = vpop.eup %9920 }
0x1d3b   :  { %v6668_v3 = vpop.permute.xlu0 %6667 }
0x1d3c   :  { %v6670_v10 = vmul.f32 %v9921_v34, %v6668_v3 }
0x1d3e   :  { %v6861_v13 = vsel %vm5760_vm1, %v6670_v10, %v6859_v11 }
0x1d3f   :  { %v6886_v15 = vrot.slane %v6861_v13, 4 }
0x1d41   :  { %7199 = vmatmul.mubr.f32.vlgmr.msra.gmra.mrb[66].mxu1 %v6886_v15 }
0x1d42   :  { %9542 = vmatpush3.bf16.msra.mxu1 %v9541_v14  ;;  %7209 = vmatprep.mubr.msk.f32.mxu1 %vm10001_vm2, %v9999_v1 }
0x1d43   :  { %9543 = vmatprep.subr.bf16.mxu1 %v10000_v52 }
0x1d46   :  { %9545 = vmatpush3.bf16.msra.mxu1 %v9544_v21 }
0x1e14   :  { %v6954_v17 = vpop.f32.mrb[66].mxu1 }
0x1e15   :  { %v6955_v18 = vadd.f32 %v7141_v16, %v6954_v17  ;;  %v7200_v28 = vpop.f32.mrb[67].mxu1 }
0x1e17   :  { %v6958_v1 = vmax.f32 %v6955_v18, 0.0 }
0x1e19   :  { %7210 = vmatmul.mubr.msk.f32.vlgmr.msra.gmra.mrb[68].mxu1 %vm6970_vm3, %v6958_v1 }
0x1eec   :  { %v7040_v22 = vpop.f32.mrb[68].mxu1 }
0x1eed   :  { %v7041_v24 = vadd.f32 %v7142_v20, %v7040_v22  ;;  %v7211_v29 = vpop.f32.mrb[69].mxu1 }
0x1eef   :  { %7045 = vst.msk [vmem:[%s10688_s13] sm:$0xf] %vm7044_vm4, %v7041_v24 }
0x1ef0   :  { %7050 = vsyncpa [#allocation7], 1 }
0x1ef1   :  { %7051 = vsyncpa [#allocation9], 1 }

</bundles_post_ra>
